<compile_context>
chip_gen: v5e
topology: v5e:2x2
jax: 0.10.0
libtpu: 0.0.40
codegen_flags: <defaults>
</compile_context>

<pallas_src>
import math
from functools import partial

import jax
import jax.numpy as jnp
from jax.experimental import pallas as pl
from jax.experimental.pallas import tpu as pltpu


# ------------------------------------------------------------------ kernel ---
def _pos_embed_kernel(chan_ref, o_ref, *, Hf, Wf, normalize, scale,
                      rows_per_block):
    R, C = o_ref.shape
    r0 = pl.program_id(0) * rows_per_block
    # Flattened position index r = i*Wf + j for every output element.
    r = (jax.lax.broadcasted_iota(jnp.int32, (R, C), 0) + r0).astype(jnp.float32)
    # i = r // Wf, j = r % Wf without vector integer division.
    i = jnp.floor((r + 0.5) * (1.0 / Wf))
    j = r - i * Wf
    y = i + 1.0              # cumsum of ones along rows  -> y_embed
    x = j + 1.0              # cumsum of ones along cols  -> x_embed
    if normalize:
        eps = 1e-6
        y = y * (scale / (Hf + eps))
        x = x * (scale / (Wf + eps))
    y_scale = chan_ref[0:1, :]   # 1/dim_t on the pos_y half, 0 on the pos_x half
    x_scale = chan_ref[1:2, :]   # 1/dim_t on the pos_x half, 0 on the pos_y half
    phase = chan_ref[2:3, :]     # 0 -> sin channel, pi/2 -> cos channel
    # sin(v) for even channels, cos(v) = sin(v + pi/2) for odd channels.
    o_ref[...] = jnp.sin(y * y_scale + x * x_scale + phase)


# ----------------------------------------------------------------- wrapper ---
def position_embedding_sine(tensor, feature_size, num_pos_feats=128,
                            temperature=10000, normalize=False, scale=None):
    """Returns (Hf*Wf, 2*num_pos_feats) float32, matching the PyTorch module."""
    if scale is not None and normalize is False:
        raise ValueError('normalize should be True if scale is passed')
    if scale is None:
        scale = 2 * math.pi
    del tensor  # only supplies the device in the PyTorch module; values unused

    Hf, Wf = feature_size
    N = Hf * Wf
    C = 2 * num_pos_feats

    # Per-channel constants packed into ONE small (3, C) table (built on host,
    # O(C) work; everything O(N*C) happens inside the kernel).
    c = jnp.arange(C, dtype=jnp.int32)
    cc = c % num_pos_feats
    dim_t = jnp.asarray(temperature, jnp.float32) ** (
        2.0 * (cc // 2).astype(jnp.float32) / num_pos_feats)
    inv_dim_t = 1.0 / dim_t
    is_y = c < num_pos_feats
    chan_tbl = jnp.stack([
        jnp.where(is_y, inv_dim_t, 0.0),
        jnp.where(is_y, 0.0, inv_dim_t),
        (cc % 2).astype(jnp.float32) * (math.pi / 2.0),
    ]).astype(jnp.float32)

    # Two row-blocks ("parallel") so v7x's dual TensorCores both get work;
    # fall back to a single full-array block if N does not split cleanly into
    # (8,128)-aligned tiles.
    grid_rows = 2 if (N % 16 == 0 and N >= 16) else 1
    rows_per_block = N // grid_rows

    kernel = partial(_pos_embed_kernel, Hf=Hf, Wf=Wf, normalize=normalize,
                     scale=scale, rows_per_block=rows_per_block)

    out = pl.pallas_call(
        kernel,
        out_shape=jax.ShapeDtypeStruct((N, C), jnp.float32),
        grid_spec=pltpu.PrefetchScalarGridSpec(
            num_scalar_prefetch=0,
            grid=(grid_rows,),
            in_specs=[pl.BlockSpec((3, C), lambda g: (0, 0))],
            out_specs=pl.BlockSpec((rows_per_block, C), lambda g: (g, 0)),
        ),
        compiler_params=pltpu.CompilerParams(
            dimension_semantics=("parallel",)),
    )(chan_tbl)
    return out


# --------------------------------------------------------- pure-JAX reference
def ref_position_embedding_sine(feature_size, num_pos_feats, temperature,
                                normalize, scale):
    Hf, Wf = feature_size
    not_mask = jnp.ones((Hf, Wf), jnp.float32)
    y_embed = jnp.cumsum(not_mask, axis=0)
    x_embed = jnp.cumsum(not_mask, axis=1)
    if normalize:
        eps = 1e-6
        y_embed = y_embed / (y_embed[-1:, :] + eps) * scale
        x_embed = x_embed / (x_embed[:, -1:] + eps) * scale
    dim_t = jnp.arange(num_pos_feats, dtype=jnp.float32)
    dim_t = temperature ** (2 * (dim_t // 2) / num_pos_feats)
    pos_x = x_embed[:, :, None] / dim_t
    pos_y = y_embed[:, :, None] / dim_t
    pos_x = jnp.stack((jnp.sin(pos_x[:, :, 0::2]), jnp.cos(pos_x[:, :, 1::2])),
                      axis=3).reshape(Hf, Wf, -1)
    pos_y = jnp.stack((jnp.sin(pos_y[:, :, 0::2]), jnp.cos(pos_y[:, :, 1::2])),
                      axis=3).reshape(Hf, Wf, -1)
    pos = jnp.concatenate((pos_y, pos_x), axis=2).reshape(Hf * Wf, -1)
    return pos


# -------------------------------------------------------------------- main ---
if __name__ == "__main__":
    feature_size = (16, 16)   # spatial grid -> N = 256 positions
    num_pos_feats = 128       # module default -> C = 256 channels (lane-dense)
    temperature = 10000

    key = jax.random.PRNGKey(0)
    # Dummy feature map; PositionEmbeddingSine only uses it for its device.
    tensor = jax.random.normal(key, (2, 4, feature_size[0], feature_size[1]),
                               jnp.float32)

    # normalize=False (module default)
    pos = jax.block_until_ready(
        position_embedding_sine(tensor, feature_size, num_pos_feats,
                                temperature, normalize=False))
    ref = ref_position_embedding_sine(feature_size, num_pos_feats, temperature,
                                      normalize=False, scale=2 * math.pi)
    assert pos.shape == (feature_size[0] * feature_size[1], 2 * num_pos_feats)
    err = float(jnp.max(jnp.abs(pos - ref)))
    assert err < 1e-4, f"normalize=False mismatch, max abs err {err}"

    # normalize=True path
    pos_n = jax.block_until_ready(
        position_embedding_sine(tensor, feature_size, num_pos_feats,
                                temperature, normalize=True))
    ref_n = ref_position_embedding_sine(feature_size, num_pos_feats,
                                        temperature, normalize=True,
                                        scale=2 * math.pi)
    err_n = float(jnp.max(jnp.abs(pos_n - ref_n)))
    assert err_n < 1e-4, f"normalize=True mismatch, max abs err {err_n}"

    print("KERNEL_OK")
</pallas_src>

<mosaic_0001>
module attributes {stable_mosaic.version = 11 : i64} {
  func.func @_pos_embed_kernel(%arg0: i32, %arg1: memref<3x256xf32, #tpu.memory_space<vmem>>, %arg2: memref<128x256xf32, #tpu.memory_space<vmem>>) attributes {dimension_semantics = [#tpu.dimension_semantics<parallel>], iteration_bounds = array<i64: 2>, scalar_prefetch = 0 : i64, scratch_operands = 0 : i64, tpu.core_type = #tpu.core_type<tc>, window_params = [{pipeline_mode = #tpu.pipeline_mode<synchronous>, transform_indices = @transform_0, window_bounds = array<i64: 3, 256>}, {transform_indices = @transform_1, window_bounds = array<i64: 128, 256>}]} {
    %c128_i32 = arith.constant 128 : i32
    %0 = arith.muli %arg0, %c128_i32 : i32
    %1 = tpu.iota {dimensions = array<i32: 0>} : vector<128x256xi32>
    %2 = vector.broadcast %0 : i32 to vector<128x256xi32>
    %3 = arith.addi %1, %2 : vector<128x256xi32>
    %4 = arith.sitofp %3 : vector<128x256xi32> to vector<128x256xf32>
    %cst = arith.constant 5.000000e-01 : f32
    %5 = vector.broadcast %cst : f32 to vector<128x256xf32>
    %6 = arith.addf %4, %5 : vector<128x256xf32>
    %cst_0 = arith.constant 6.250000e-02 : f32
    %7 = vector.broadcast %cst_0 : f32 to vector<128x256xf32>
    %8 = arith.mulf %6, %7 : vector<128x256xf32>
    %9 = math.floor %8 : vector<128x256xf32>
    %cst_1 = arith.constant 1.600000e+01 : f32
    %10 = vector.broadcast %cst_1 : f32 to vector<128x256xf32>
    %11 = arith.mulf %9, %10 : vector<128x256xf32>
    %12 = arith.subf %4, %11 : vector<128x256xf32>
    %cst_2 = arith.constant 1.000000e+00 : f32
    %13 = vector.broadcast %cst_2 : f32 to vector<128x256xf32>
    %14 = arith.addf %9, %13 : vector<128x256xf32>
    %cst_3 = arith.constant 1.000000e+00 : f32
    %15 = vector.broadcast %cst_3 : f32 to vector<128x256xf32>
    %16 = arith.addf %12, %15 : vector<128x256xf32>
    %c0 = arith.constant 0 : index
    %c0_4 = arith.constant 0 : index
    %17 = vector.load %arg1[%c0, %c0_4] : memref<3x256xf32, #tpu.memory_space<vmem>>, vector<1x256xf32>
    %c1 = arith.constant 1 : index
    %c0_5 = arith.constant 0 : index
    %18 = vector.load %arg1[%c1, %c0_5] : memref<3x256xf32, #tpu.memory_space<vmem>>, vector<1x256xf32>
    %c2 = arith.constant 2 : index
    %c0_6 = arith.constant 0 : index
    %19 = vector.load %arg1[%c2, %c0_6] : memref<3x256xf32, #tpu.memory_space<vmem>>, vector<1x256xf32>
    %20 = vector.broadcast %17 : vector<1x256xf32> to vector<128x256xf32>
    %21 = arith.mulf %14, %20 : vector<128x256xf32>
    %22 = vector.broadcast %18 : vector<1x256xf32> to vector<128x256xf32>
    %23 = arith.mulf %16, %22 : vector<128x256xf32>
    %24 = arith.addf %21, %23 : vector<128x256xf32>
    %25 = vector.broadcast %19 : vector<1x256xf32> to vector<128x256xf32>
    %26 = arith.addf %24, %25 : vector<128x256xf32>
    %27 = math.sin %26 : vector<128x256xf32>
    %c0_7 = arith.constant 0 : index
    %c0_8 = arith.constant 0 : index
    %28 = vector.load %arg2[%c0_7, %c0_8] : memref<128x256xf32, #tpu.memory_space<vmem>>, vector<128x256xf32>
    tpu.vector_store %arg2[%c0_7, %c0_8], %27 {strides = array<i32>} : memref<128x256xf32, #tpu.memory_space<vmem>>, vector<128x256xf32>,
    return
  }
  func.func @transform_0(%arg0: i32) -> (i32, i32) {
    %c0_i32 = arith.constant 0 : i32
    %c0_i32_0 = arith.constant 0 : i32
    %c0_i32_1 = arith.constant 0 : i32
    return %c0_i32, %c0_i32_0 : i32, i32
  }
  func.func @transform_1(%arg0: i32) -> (i32, i32) {
    %c0_i32 = arith.constant 0 : i32
    %c0_i32_0 = arith.constant 0 : i32
    return %arg0, %c0_i32 : i32, i32
  }
}

</mosaic_0001>

<bundles_post_ra>
// kernel: tpu_custom_call.1
= control target key start
LH: loop header
LB: loop body
LE: loop exit
PB: predicated region body
PF: predicated region fallthrough
CT: control target
= control target key end

     0   :  { %6 = vsyncpa [#allocation3], 0  ;;  %s9898_s0 = inlined_call_operand.hbm [shape: f32[3,256], index: 0, kind: input, shape index: {}]   ;;  %s9899_s1 = inlined_call_operand.hbm [shape: f32[256,256], index: 1, kind: output, shape index: {}]  }
   0x1   :  { %7 = vsyncpa [#allocation4], 0 }
   0x2   :  { %9 = vsyncpa [#allocation4 + $0x1], 0  ;;  %s5781_s6 = smov 0   ;;  %s5783_s7 = smov 0  }
   0x3   :  { %s5785_s8 = smov 0   ;;  %s5787_s9 = smov 0  }
   0x4 LB: > { %s5802_s10 = sadd.s32 4294967295, %s5759_s9   ;;  %s5493_s11 = sadd.s32 4294967294, %s5759_s9   ;;  %s5759_s9 = sphi %s5787_s9, %s10079_s9   ;;  %s5755_s8 = sphi %s5785_s8, %s10078_s8   ;;  %s5751_s7 = sphi %s5783_s7, %s10077_s7   ;;  %s5747_s6 = sphi %s5781_s6, %s10076_s6  }
   0x5   : > { %s5806_s12 = sadd.s32 1, %s5759_s9   ;;  %s43_s13 = sadd.s32 1, %s5755_s8 }
   0x6   : > { %s40_s14 = ssub.s32 %s5759_s9, %s5806_s12  ;;  %p53_p0 = scmp.ne.s32.totalorder %s5755_s8, %s5751_s7 }
   0x7   : > { %p41_p1 = scmp.eq.s32.totalorder %s40_s14, 0  ;;  %p54_p2 = scmp.eq.s32.totalorder %s5802_s10, 1 }
   0x8   : > { %p59_p3 = scmp.ne.s32.totalorder %s5751_s7, %s5747_s6  ;;  %p60_p4 = scmp.eq.s32.totalorder %s5493_s11, 1 }
   0x9   : > { %s5817_s15 = scalar_select %p41_p1, %s5755_s8, %s43_s13  }
   0xa   : > { %p5819_p5 = por %p54_p2, %p53_p0  ;;  %p5823_p6 = por %p60_p4, %p59_p3 }
   0xb   : > { %p5494_p7 = scmp.ge.s32.totalorder %s5759_s9, 1  ;;  %p67_p8 = scmp.lt.s32.totalorder %s5759_s9, 3 }
   0xc   : > { %p5618_p9 = scmp.eq.s32.totalorder %s5802_s10, 0  ;;  %s79_s20 = sshll.u32 %s9898_s0, 4  ;;  %s80_s20 = int_to_ptr.hbm [resolvable:$true] %s79_s20 }
   0xd   : > { %p68_p10 = pnand %p5494_p7, %p67_p8  ;;  %s5761_s21 = smov [#allocation2]  }
   0xe   : > { %s81_s22 = sshll.u32 %s5761_s21, 4  ;;  %s82_s22 = int_to_ptr.vmem [resolvable:$true] %s81_s22 }
   0xf   : > { %p5610_p11 = pneg %p68_p10  ;;  %94 = sbr.rel (%p68_p10) target bundleno = 1335 (0x537), region = 24 }
  0x11   : > { %p5611_p12 = pnand %p5618_p9, %p5610_p11 }
  0x13   : > { %5613 = dma.hbm_to_vmem [thread:$0]  (!%p5611_p12), %s80_s20, 128, %s82_s22, [#allocation3]  }
  0x14   : > { %5738 = dma.done.wait (%p5618_p9), [#allocation3], 128  }
  0x15   : > { %5740 = vsyncadd (%p5618_p9), [#allocation3], 4294967168  ;;  %s5499_s23 = sshll.u32 %s5802_s10, 7  ;;  %v112_v0 = vlaneseq  ;;  %s107_s24 = sand.u32 1, %s5751_s7  }
  0x16   : > { %v129_v2 = vstv %s5499_s23  ;;  %s5498_s25 = sshll.u32 %s107_s24, 8  ;;  %s5603_s27 = sshll.u32 %s5802_s10, 8 }
  0x17   : > { %v113_v1 = vshrl.u32 %v112_v0, 7  ;;  %s6492_s26 = scalar_lea.vmem [#allocation5], %s5498_s25  ;;  %s5427_s30 = scalar_lea.hbm %s9899_s1, %s5603_s27 }
  0x18   : > { %s5428_s2 = sshll.u32 %s6492_s26, 4  ;;  %s5430_s3 = sshll.u32 %s5427_s30, 4  ;;  %s5429_s2 = int_to_ptr.vmem [resolvable:$true] %s5428_s2  ;;  %s5431_s3 = int_to_ptr.hbm [resolvable:$true] %s5430_s3 }
  0x19   : > { %v114_v3 = vadd.s32 8, %v113_v1  ;;  %v115_v4 = vadd.s32 16, %v113_v1  ;;  %v116_v5 = vadd.s32 24, %v113_v1  ;;  %v117_v6 = vadd.s32 32, %v113_v1  ;;  %s5415_s4 = scalar_lea.sflag [#allocation4], %s107_s24  ;;  %s5707_s5 = sshra.s32 %s5431_s3, 4  ;;  %s5708_s5 = int_to_ptr.hbm [resolvable:$true] %s5707_s5 }
  0x1a   : > { %v118_v7 = vadd.s32 40, %v113_v1  ;;  %v119_v8 = vadd.s32 48, %v113_v1  ;;  %v120_v9 = vadd.s32 56, %v113_v1  ;;  %v121_v10 = vadd.s32 64, %v113_v1  ;;  %s5709_s10 = scalar_lea.hbm %s5708_s5, 256  ;;  %s5713_s14 = scalar_lea.hbm %s9899_s1, 512 }
  0x1b   : > { %v122_v11 = vadd.s32 72, %v113_v1  ;;  %v123_v12 = vadd.s32 80, %v113_v1  ;;  %v124_v13 = vadd.s32 88, %v113_v1  ;;  %v125_v14 = vadd.s32 96, %v113_v1  ;;  %p5710_p13 = scmp.ne.s32.totalorder %s5708_s5, %s5709_s10  ;;  %p5714_p2 = scmp.lt.s32.totalorder %s5708_s5, %s9899_s1 }
  0x1c   : > { %v126_v15 = vadd.s32 104, %v113_v1  ;;  %v127_v16 = vadd.s32 112, %v113_v1  ;;  %v128_v17 = vadd.s32 120, %v113_v1  ;;  %v5834_v18 = vadd.s32 %v129_v2, %v113_v1  ;;  %p5715_p3 = scmp.lt.s32.totalorder %s5713_s14, %s5709_s10 }
  0x1d   : > { %v5836_v19 = vadd.s32 %v129_v2, %v114_v3  ;;  %v5838_v20 = vadd.s32 %v129_v2, %v115_v4  ;;  %v5840_v21 = vadd.s32 %v129_v2, %v116_v5  ;;  %v5842_v22 = vadd.s32 %v129_v2, %v117_v6  ;;  %p5711_p0 = pnand %p5710_p13, %p5819_p5 }
  0x1e   : > { %v5844_v23 = vadd.s32 %v129_v2, %v118_v7  ;;  %v5846_v24 = vadd.s32 %v129_v2, %v119_v8  ;;  %v5848_v25 = vadd.s32 %v129_v2, %v120_v9  ;;  %v5850_v26 = vadd.s32 %v129_v2, %v121_v10  ;;  %p5716_p4 = por %p5715_p3, %p5714_p2 }
  0x1f   : > { %v5852_v27 = vadd.s32 %v129_v2, %v122_v11  ;;  %v5854_v28 = vadd.s32 %v129_v2, %v123_v12  ;;  %v5856_v29 = vadd.s32 %v129_v2, %v124_v13  ;;  %v5858_v30 = vadd.s32 %v129_v2, %v125_v14  ;;  %p5712_p1 = pneg %p5711_p0 }
  0x20   : > { %v5860_v31 = vadd.s32 %v129_v2, %v126_v15  ;;  %v5862_v32 = vadd.s32 %v129_v2, %v127_v16  ;;  %v5864_v33 = vadd.s32 %v129_v2, %v128_v17  ;;  %v146_v34 = vcvt.s32.f32 %v5834_v18 }
  0x21   : > { %v147_v35 = vcvt.s32.f32 %v5836_v19  ;;  %v148_v36 = vcvt.s32.f32 %v5838_v20  ;;  %v149_v37 = vcvt.s32.f32 %v5840_v21  ;;  %v150_v38 = vcvt.s32.f32 %v5842_v22  ;;  %p5717_p7 = pnand %p5716_p4, %p5712_p1 }
  0x22   : > { %v151_v39 = vcvt.s32.f32 %v5844_v23  ;;  %v152_v40 = vcvt.s32.f32 %v5846_v24  ;;  %v153_v41 = vcvt.s32.f32 %v5848_v25  ;;  %v154_v42 = vcvt.s32.f32 %v5850_v26 }
  0x23   : > { %v9906_v43 = vcvt.s32.f32 %v5852_v27  ;;  %v9905_v44 = vcvt.s32.f32 %v5854_v28  ;;  %v9904_v45 = vcvt.s32.f32 %v5856_v29  ;;  %v9903_v46 = vcvt.s32.f32 %v5858_v30 }
  0x24   : > { %v9902_v47 = vcvt.s32.f32 %v5860_v31  ;;  %v9901_v48 = vcvt.s32.f32 %v5862_v32  ;;  %v9900_v49 = vcvt.s32.f32 %v5864_v33  ;;  %v162_v50 = vadd.f32 0.5, %v146_v34 }
  0x25   : > { %v163_v51 = vadd.f32 0.5, %v147_v35  ;;  %v164_v52 = vadd.f32 0.5, %v148_v36  ;;  %v165_v53 = vadd.f32 0.5, %v149_v37  ;;  %v166_v54 = vadd.f32 0.5, %v150_v38 }
  0x26   : > { %v167_v55 = vadd.f32 0.5, %v151_v39  ;;  %v168_v56 = vadd.f32 0.5, %v152_v40  ;;  %v169_v57 = vadd.f32 0.5, %v153_v41  ;;  %v170_v58 = vadd.f32 0.5, %v154_v42 }
  0x27   : > { %v171_v59 = vadd.f32 0.5, %v9906_v43  ;;  %v172_v60 = vadd.f32 0.5, %v9905_v44  ;;  %v173_v61 = vadd.f32 0.5, %v9904_v45  ;;  %v174_v62 = vadd.f32 0.5, %v9903_v46 }
  0x28   : > { %v175_v63 = vadd.f32 0.5, %v9902_v47  ;;  %v176_v0 = vadd.f32 0.5, %v9901_v48  ;;  %v177_v1 = vadd.f32 0.5, %v9900_v49  ;;  %v5914_v2 = vmul.f32 0.0625, %v162_v50 }
  0x29   : > { %v5916_v3 = vmul.f32 0.0625, %v163_v51  ;;  %v5918_v4 = vmul.f32 0.0625, %v164_v52  ;;  %v5920_v5 = vmul.f32 0.0625, %v165_v53  ;;  %v5922_v6 = vmul.f32 0.0625, %v166_v54 }
  0x2a   : > { %v5924_v7 = vmul.f32 0.0625, %v167_v55  ;;  %v5926_v8 = vmul.f32 0.0625, %v168_v56  ;;  %v5928_v9 = vmul.f32 0.0625, %v169_v57  ;;  %v5930_v10 = vmul.f32 0.0625, %v170_v58 }
  0x2b   : > { %v5932_v11 = vmul.f32 0.0625, %v171_v59  ;;  %v5934_v12 = vmul.f32 0.0625, %v172_v60  ;;  %v5936_v13 = vmul.f32 0.0625, %v173_v61  ;;  %v5938_v14 = vmul.f32 0.0625, %v174_v62 }
  0x2c   : > { %v5940_v15 = vmul.f32 0.0625, %v175_v63  ;;  %v5942_v16 = vmul.f32 0.0625, %v176_v0  ;;  %v5944_v17 = vmul.f32 0.0625, %v177_v1  ;;  %v194_v50 = vfloor.f32 %v5914_v2 }
  0x2d   : > { %v195_v51 = vfloor.f32 %v5916_v3  ;;  %v196_v52 = vfloor.f32 %v5918_v4  ;;  %v197_v53 = vfloor.f32 %v5920_v5  ;;  %v198_v54 = vfloor.f32 %v5922_v6 }
  0x2e   : > { %v199_v55 = vfloor.f32 %v5924_v7  ;;  %v200_v56 = vfloor.f32 %v5926_v8  ;;  %v201_v57 = vfloor.f32 %v5928_v9  ;;  %v202_v58 = vfloor.f32 %v5930_v10 }
  0x2f   : > { %v203_v59 = vfloor.f32 %v5932_v11  ;;  %v204_v60 = vfloor.f32 %v5934_v12  ;;  %v205_v61 = vfloor.f32 %v5936_v13  ;;  %v206_v62 = vfloor.f32 %v5938_v14 }
  0x30   : > { %v207_v63 = vfloor.f32 %v5940_v15  ;;  %v208_v0 = vfloor.f32 %v5942_v16  ;;  %v209_v1 = vfloor.f32 %v5944_v17  ;;  %v210_v2 = vmul.f32 16.0, %v194_v50 }
  0x31   : > { %v211_v3 = vmul.f32 16.0, %v195_v51  ;;  %v212_v4 = vmul.f32 16.0, %v196_v52  ;;  %v213_v5 = vmul.f32 16.0, %v197_v53  ;;  %v214_v6 = vmul.f32 16.0, %v198_v54 }
  0x32   : > { %v215_v7 = vmul.f32 16.0, %v199_v55  ;;  %v216_v8 = vmul.f32 16.0, %v200_v56  ;;  %v217_v9 = vmul.f32 16.0, %v201_v57  ;;  %v218_v10 = vmul.f32 16.0, %v202_v58 }
  0x33   : > { %v219_v11 = vmul.f32 16.0, %v203_v59  ;;  %v220_v12 = vmul.f32 16.0, %v204_v60  ;;  %v221_v13 = vmul.f32 16.0, %v205_v61  ;;  %v222_v49 = vmul.f32 16.0, %v206_v62 }
  0x34   : > { %v223_v14 = vmul.f32 16.0, %v207_v63  ;;  %v224_v48 = vmul.f32 16.0, %v208_v0  ;;  %v225_v15 = vmul.f32 16.0, %v209_v1  ;;  %v226_v16 = vsub.f32 %v146_v34, %v210_v2 }
  0x35   : > { %v227_v17 = vsub.f32 %v147_v35, %v211_v3  ;;  %v228_v47 = vsub.f32 %v148_v36, %v212_v4  ;;  %v229_v46 = vsub.f32 %v149_v37, %v213_v5  ;;  %v230_v45 = vsub.f32 %v150_v38, %v214_v6 }
  0x36   : > { %v231_v44 = vsub.f32 %v151_v39, %v215_v7  ;;  %v232_v43 = vsub.f32 %v152_v40, %v216_v8  ;;  %v233_v18 = vsub.f32 %v153_v41, %v217_v9  ;;  %v234_v19 = vsub.f32 %v154_v42, %v218_v10 }
  0x37   : > { %v9940_v20 = vcvt.s32.f32 %v5852_v27  ;;  %v9941_v21 = vcvt.s32.f32 %v5854_v28  ;;  %v9942_v22 = vcvt.s32.f32 %v5856_v29  ;;  %v9943_v23 = vcvt.s32.f32 %v5858_v30 }
  0x38   : > { %v9944_v24 = vcvt.s32.f32 %v5860_v31  ;;  %v9945_v25 = vcvt.s32.f32 %v5862_v32  ;;  %v9946_v26 = vcvt.s32.f32 %v5864_v33  ;;  %v5994_v27 = vadd.f32 1.0, %v194_v50  ;;  %v274_v31 = vld [vmem:[#allocation2] ss:$4 sm:$0x3] }
  0x39   : > { %v235_v34 = vsub.f32 %v9940_v20, %v219_v11  ;;  %v236_v35 = vsub.f32 %v9941_v21, %v220_v12  ;;  %v237_v36 = vsub.f32 %v9942_v22, %v221_v13  ;;  %v238_v37 = vsub.f32 %v9943_v23, %v222_v49 }
  0x3a   : > { %v239_v38 = vsub.f32 %v9944_v24, %v223_v14  ;;  %v240_v39 = vsub.f32 %v9945_v25, %v224_v48  ;;  %v241_v40 = vsub.f32 %v9946_v26, %v225_v15  ;;  %v5996_v41 = vadd.f32 1.0, %v195_v51  ;;  %v276_v51 = vld [vmem:[#allocation2 + $0x1] ss:$4 sm:$0x3] }
  0x3b   : > { %v244_v28 = vadd.f32 1.0, %v196_v52  ;;  %v245_v42 = vadd.f32 1.0, %v197_v53  ;;  %v246_v29 = vadd.f32 1.0, %v198_v54  ;;  %v247_v2 = vadd.f32 1.0, %v199_v55 }
  0x3c   : > { %v248_v3 = vadd.f32 1.0, %v200_v56  ;;  %v249_v30 = vadd.f32 1.0, %v201_v57  ;;  %v250_v49 = vadd.f32 1.0, %v202_v58  ;;  %v251_v4 = vadd.f32 1.0, %v203_v59 }
  0x3d   : > { %v252_v5 = vadd.f32 1.0, %v204_v60  ;;  %v253_v6 = vadd.f32 1.0, %v205_v61  ;;  %v254_v32 = vadd.f32 1.0, %v206_v62  ;;  %v255_v48 = vadd.f32 1.0, %v207_v63 }
  0x3e   : > { %v256_v7 = vadd.f32 1.0, %v208_v0  ;;  %v257_v33 = vadd.f32 1.0, %v209_v1  ;;  %v5998_v8 = vadd.f32 1.0, %v226_v16  ;;  %v6000_v50 = vadd.f32 1.0, %v227_v17 }
  0x3f   : > { %v260_v52 = vadd.f32 1.0, %v228_v47  ;;  %v261_v53 = vadd.f32 1.0, %v229_v46  ;;  %v262_v54 = vadd.f32 1.0, %v230_v45  ;;  %v263_v55 = vadd.f32 1.0, %v231_v44 }
  0x40   : > { %9947 = vst [vmem:[#allocation8_spill] sm:$0xff] %v6000_v50  ;;  %v6002_v56 = vld [vmem:[#allocation2 + $0x2] ss:$4 sm:$0x3]  ;;  %v264_v57 = vadd.f32 1.0, %v232_v43  ;;  %v265_v58 = vadd.f32 1.0, %v233_v18 }
  0x41   : > { %9948 = vst [vmem:[#allocation9_spill] sm:$0xff] %v6002_v56  ;;  %v266_v59 = vadd.f32 1.0, %v234_v19  ;;  %v267_v60 = vadd.f32 1.0, %v235_v34  ;;  %v268_v61 = vadd.f32 1.0, %v236_v35  ;;  %v269_v62 = vadd.f32 1.0, %v237_v36 }
  0x42   : > { %v6004_v63 = vadd.f32 1.0, %v238_v37  ;;  %v280_v0 = vperm.slane %v274_v31, 0  ;;  %v6006_v1 = vadd.f32 1.0, %v239_v38  ;;  %v6008_v9 = vadd.f32 1.0, %v240_v39 }
  0x43   : > { %v6010_v10 = vadd.f32 1.0, %v241_v40  ;;  %v6012_v46 = vperm.slane %v274_v31, 1  ;;  %v6018_v43 = vperm.slane %v276_v51, 0  ;;  %v318_v47 = vperm.slane %v276_v51, 1 }
  0x44   : > { %v6014_v44 = vmul.f32 %v280_v0, %v244_v28  ;;  %v6016_v45 = vmul.f32 %v280_v0, %v245_v42  ;;  %v284_v11 = vmul.f32 %v280_v0, %v5994_v27  ;;  %v6028_v14 = vperm.slane %v6002_v56, 0 }
  0x45   : > { %9949 = vst [vmem:[#allocation10_spill] sm:$0xff] %v6018_v43  ;;  %v6022_v12 = vmul.f32 %v6012_v46, %v244_v28  ;;  %v6025_v13 = vmul.f32 %v6012_v46, %v245_v42  ;;  %v6030_v15 = vmul.f32 %v280_v0, %v246_v29  ;;  %v6033_v16 = vmul.f32 %v6012_v46, %v246_v29 }
  0x46   : > { %9950 = vst [vmem:[#allocation11_spill] sm:$0xff] %v6028_v14  ;;  %v6035_v17 = vmul.f32 %v280_v0, %v247_v2  ;;  %v6038_v18 = vmul.f32 %v6012_v46, %v247_v2  ;;  %v6040_v19 = vmul.f32 %v280_v0, %v248_v3  ;;  %v6043_v20 = vmul.f32 %v6012_v46, %v248_v3 }
  0x47   : > { %v6045_v34 = vmul.f32 %v280_v0, %v249_v30  ;;  %v6048_v21 = vmul.f32 %v6012_v46, %v249_v30  ;;  %v6050_v35 = vmul.f32 %v280_v0, %v250_v49  ;;  %v6053_v22 = vmul.f32 %v6012_v46, %v250_v49 }
  0x48   : > { %v6055_v36 = vmul.f32 %v280_v0, %v251_v4  ;;  %v6058_v23 = vmul.f32 %v6012_v46, %v251_v4  ;;  %v6060_v37 = vmul.f32 %v280_v0, %v252_v5  ;;  %v6063_v24 = vmul.f32 %v6012_v46, %v252_v5 }
  0x49   : > { %v6065_v38 = vmul.f32 %v280_v0, %v253_v6  ;;  %v6068_v25 = vmul.f32 %v6012_v46, %v253_v6  ;;  %v6070_v39 = vmul.f32 %v280_v0, %v254_v32  ;;  %v6073_v26 = vmul.f32 %v6012_v46, %v254_v32 }
  0x4a   : > { %9951 = vst [vmem:[#allocation12_spill] sm:$0xff] %v6063_v24  ;;  %v6075_v40 = vmul.f32 %v280_v0, %v255_v48  ;;  %v6078_v28 = vmul.f32 %v6012_v46, %v255_v48  ;;  %v6080_v42 = vmul.f32 %v280_v0, %v256_v7  ;;  %v6083_v29 = vmul.f32 %v6012_v46, %v256_v7 }
  0x4b   : > { %9952 = vst [vmem:[#allocation13_spill] sm:$0xff] %v6065_v38  ;;  %v6085_v2 = vmul.f32 %v280_v0, %v257_v33  ;;  %v6088_v3 = vmul.f32 %v6012_v46, %v257_v33  ;;  %v6091_v30 = vmul.f32 %v280_v0, %v5996_v41  ;;  %v287_v49 = vmul.f32 %v6012_v46, %v5996_v41 }
  0x4c   : > { %9953 = vst [vmem:[#allocation14_spill] sm:$0xff] %v6068_v25  ;;  %v321_v4 = vmul.f32 %v6018_v43, %v5998_v8  ;;  %v324_v31 = vmul.f32 %v318_v47, %v6000_v50  ;;  %v325_v5 = vmul.f32 %v6018_v43, %v260_v52  ;;  %v326_v6 = vmul.f32 %v318_v47, %v260_v52 }
  0x4d   : > { %9954 = vst [vmem:[#allocation15_spill] sm:$0xff] %v6070_v39  ;;  %v327_v32 = vmul.f32 %v6018_v43, %v261_v53  ;;  %v328_v48 = vmul.f32 %v318_v47, %v261_v53  ;;  %v329_v7 = vmul.f32 %v6018_v43, %v262_v54  ;;  %v330_v33 = vmul.f32 %v318_v47, %v262_v54 }
  0x4e   : > { %9955 = vst [vmem:[#allocation16_spill] sm:$0xff] %v6073_v26  ;;  %v331_v51 = vmul.f32 %v6018_v43, %v263_v55  ;;  %v332_v0 = vmul.f32 %v318_v47, %v263_v55  ;;  %v334_v41 = vmul.f32 %v318_v47, %v264_v57  ;;  %v335_v14 = vmul.f32 %v6018_v43, %v265_v58 }
  0x4f   : > { %9956 = vst [vmem:[#allocation17_spill] sm:$0xff] %v6075_v40  ;;  %v336_v56 = vmul.f32 %v318_v47, %v265_v58  ;;  %v337_v50 = vmul.f32 %v6018_v43, %v266_v59  ;;  %v339_v52 = vmul.f32 %v6018_v43, %v267_v60  ;;  %v341_v53 = vmul.f32 %v6018_v43, %v268_v61 }
  0x50   : > { %9957 = vst [vmem:[#allocation18_spill] sm:$0xff] %v6078_v28  ;;  %v343_v54 = vmul.f32 %v6018_v43, %v269_v62  ;;  %v345_v55 = vmul.f32 %v6018_v43, %v6004_v63  ;;  %v347_v58 = vmul.f32 %v6018_v43, %v6006_v1  ;;  %v348_v28 = vmul.f32 %v318_v47, %v6006_v1 }
  0x51   : > { %9958 = vst [vmem:[#allocation19_spill] sm:$0xff] %v6080_v42  ;;  %v344_v42 = vmul.f32 %v318_v47, %v269_v62  ;;  %v352_v62 = vmul.f32 %v318_v47, %v6010_v10  ;;  %v285_v40 = vmul.f32 %v6012_v46, %v5994_v27  ;;  %v353_v26 = vadd.f32 %v321_v4, %v284_v11 }
  0x52   : > { %9959 = vst [vmem:[#allocation20_spill] sm:$0xff] %v6083_v29  ;;  %v342_v29 = vmul.f32 %v318_v47, %v268_v61  ;;  %v351_v61 = vmul.f32 %v6018_v43, %v6010_v10  ;;  %v356_v39 = vadd.f32 %v324_v31, %v287_v49  ;;  %v357_v25 = vadd.f32 %v325_v5, %v6014_v44  ;;  %v9974_v5 = vld [vmem:[#allocation8_spill] sm:$0xff] }
  0x53   : > { %9960 = vst [vmem:[#allocation21_spill] sm:$0xff] %v6085_v2  ;;  %v340_v2 = vmul.f32 %v318_v47, %v267_v60  ;;  %v350_v60 = vmul.f32 %v318_v47, %v6008_v9  ;;  %v358_v1 = vadd.f32 %v326_v6, %v6022_v12  ;;  %v359_v38 = vadd.f32 %v327_v32, %v6016_v45  ;;  %v9975_v6 = vld [vmem:[#allocation10_spill] sm:$0xff] }
  0x54   : > { %9961 = vst [vmem:[#allocation22_spill] sm:$0xff] %v6088_v3  ;;  %v338_v3 = vmul.f32 %v318_v47, %v266_v59  ;;  %v349_v59 = vmul.f32 %v6018_v43, %v6008_v9  ;;  %v360_v9 = vadd.f32 %v328_v48, %v6025_v13  ;;  %v361_v24 = vadd.f32 %v329_v7, %v6030_v15  ;;  %v9966_v49 = vld [vmem:[#allocation15_spill] sm:$0xff]  ;;  %v9976_v48 = vld [vmem:[#allocation9_spill] sm:$0xff] }
  0x55   : > { %9962 = vst [vmem:[#allocation23_spill] sm:$0xff] %v6091_v30  ;;  %v333_v30 = vmul.f32 %v6018_v43, %v264_v57  ;;  %v346_v57 = vmul.f32 %v318_v47, %v6004_v63  ;;  %v322_v63 = vmul.f32 %v318_v47, %v5998_v8  ;;  %v362_v43 = vadd.f32 %v330_v33, %v6033_v16  ;;  %v9963_v16 = vld [vmem:[#allocation12_spill] sm:$0xff]  ;;  %v9977_v33 = vld [vmem:[#allocation11_spill] sm:$0xff] }
  0x56   : > { %v363_v10 = vadd.f32 %v331_v51, %v6035_v17  ;;  %v364_v27 = vadd.f32 %v332_v0, %v6038_v18  ;;  %v366_v46 = vadd.f32 %v334_v41, %v6043_v20  ;;  %v367_v44 = vadd.f32 %v335_v14, %v6045_v34  ;;  %v9964_v18 = vld [vmem:[#allocation13_spill] sm:$0xff]  ;;  %v9967_v34 = vld [vmem:[#allocation16_spill] sm:$0xff] }
  0x57   : > { %v365_v8 = vadd.f32 %v333_v30, %v6040_v19  ;;  %v368_v47 = vadd.f32 %v336_v56, %v6048_v21  ;;  %v369_v45 = vadd.f32 %v337_v50, %v6050_v35  ;;  %v370_v11 = vadd.f32 %v338_v3, %v6053_v22  ;;  %v9965_v30 = vld [vmem:[#allocation14_spill] sm:$0xff]  ;;  %v9968_v21 = vld [vmem:[#allocation17_spill] sm:$0xff] }
  0x58   : > { %v371_v12 = vadd.f32 %v339_v52, %v6055_v36  ;;  %v372_v13 = vadd.f32 %v340_v2, %v6058_v23  ;;  %v373_v15 = vadd.f32 %v341_v53, %v6060_v37  ;;  %v374_v17 = vadd.f32 %v342_v29, %v9963_v16  ;;  %v9969_v35 = vld [vmem:[#allocation18_spill] sm:$0xff]  ;;  %v9970_v3 = vld [vmem:[#allocation19_spill] sm:$0xff] }
  0x59   : > { %v375_v19 = vadd.f32 %v343_v54, %v9964_v18  ;;  %v376_v20 = vadd.f32 %v344_v42, %v9965_v30  ;;  %v377_v14 = vadd.f32 %v345_v55, %v9966_v49  ;;  %v378_v56 = vadd.f32 %v346_v57, %v9967_v34  ;;  %v9971_v4 = vld [vmem:[#allocation20_spill] sm:$0xff] }
  0x5a   : > { %v379_v50 = vadd.f32 %v347_v58, %v9968_v21  ;;  %v380_v22 = vadd.f32 %v348_v28, %v9969_v35  ;;  %v381_v36 = vadd.f32 %v349_v59, %v9970_v3  ;;  %v382_v23 = vadd.f32 %v350_v60, %v9971_v4  ;;  %v9972_v2 = vld [vmem:[#allocation21_spill] sm:$0xff] }
  0x5b   : > { %v383_v37 = vadd.f32 %v351_v61, %v9972_v2  ;;  %v9973_v31 = vld [vmem:[#allocation22_spill] sm:$0xff]  ;;  %v323_v32 = vmul.f32 %v9975_v6, %v9974_v5  ;;  %v354_v42 = vadd.f32 %v322_v63, %v285_v40  ;;  %v387_v7 = vperm.slane %v9976_v48, 1 }
  0x5c   : > { %v384_v29 = vadd.f32 %v352_v62, %v9973_v31  ;;  %v6155_v51 = vadd.f32 %v9977_v33, %v357_v25  ;;  %v6158_v0 = vadd.f32 %v9977_v33, %v359_v38  ;;  %v6161_v28 = vadd.f32 %v9977_v33, %v361_v24  ;;  %v9990_v16 = vld [vmem:[#allocation23_spill] sm:$0xff] }
  0x5d   : > { %v6164_v41 = vadd.f32 %v9977_v33, %v363_v10  ;;  %v6167_v52 = vadd.f32 %v9977_v33, %v365_v8  ;;  %v6170_v53 = vadd.f32 %v9977_v33, %v353_v26  ;;  %v6172_v40 = vadd.f32 %v387_v7, %v356_v39 }
  0x5e   : > { %v6174_v54 = vadd.f32 %v387_v7, %v358_v1  ;;  %v6176_v25 = vadd.f32 %v387_v7, %v360_v9  ;;  %v6178_v38 = vadd.f32 %v387_v7, %v362_v43  ;;  %v6180_v55 = vadd.f32 %v387_v7, %v364_v27 }
  0x5f   : > { %v6182_v24 = vadd.f32 %v387_v7, %v366_v46  ;;  %v6185_v57 = vadd.f32 %v9977_v33, %v367_v44  ;;  %v6187_v58 = vadd.f32 %v387_v7, %v368_v47  ;;  %v6190_v26 = vadd.f32 %v9977_v33, %v369_v45 }
  0x60   : > { %v6192_v39 = vadd.f32 %v387_v7, %v370_v11  ;;  %v6195_v59 = vadd.f32 %v9977_v33, %v371_v12  ;;  %v6197_v60 = vadd.f32 %v387_v7, %v372_v13  ;;  %v6200_v43 = vadd.f32 %v9977_v33, %v373_v15 }
  0x61   : > { %v6202_v61 = vadd.f32 %v387_v7, %v374_v17  ;;  %v6205_v62 = vadd.f32 %v9977_v33, %v375_v19  ;;  %v6207_v63 = vadd.f32 %v387_v7, %v376_v20  ;;  %v6210_v1 = vadd.f32 %v9977_v33, %v377_v14 }
  0x62   : > { %9978 = vst [vmem:[#allocation12_spill] sm:$0xff] %v6200_v43  ;;  %v6212_v9 = vadd.f32 %v387_v7, %v378_v56  ;;  %v6215_v10 = vadd.f32 %v9977_v33, %v379_v50  ;;  %v6217_v27 = vadd.f32 %v387_v7, %v380_v22  ;;  %v6220_v8 = vadd.f32 %v9977_v33, %v381_v36 }
  0x63   : > { %9979 = vst [vmem:[#allocation13_spill] sm:$0xff] %v6202_v61  ;;  %v6222_v46 = vadd.f32 %v387_v7, %v382_v23  ;;  %v6225_v44 = vadd.f32 %v9977_v33, %v383_v37  ;;  %v6227_v47 = vadd.f32 %v387_v7, %v354_v42  ;;  %v6229_v45 = vadd.f32 %v387_v7, %v384_v29 }
  0x64   : > { %9980 = vst [vmem:[#allocation14_spill] sm:$0xff] %v6205_v62  ;;  %v9912_v11 = vand.u32 2147483647, %v6170_v53  ;;  %v425_v12 = vand.u32 2139095040, %v6170_v53  ;;  %v355_v17 = vadd.f32 %v323_v32, %v9990_v16  ;;  %v9921_v2 = vmov 683565275  }
  0x65   : > { %9981 = vst [vmem:[#allocation15_spill] sm:$0xff] %v6207_v63  ;;  %v580_v19 = vand.u32 2139095040, %v6227_v47  ;;  %v9911_v34 = vand.u32 2147483647, %v6227_v47  ;;  %v9919_v31 = vmov 2475754826  }
  0x66   : > { %9982 = vst [vmem:[#allocation16_spill] sm:$0xff] %v6210_v1  ;;  %v426_v13 = vshrl.u32 %v425_v12, 23  ;;  %v429_v15 = vand.u32 8388607, %v9912_v11  ;;  %v6238_v14 = vadd.f32 %v9977_v33, %v355_v17  ;;  %v9915_v5 = vmov 2131351028  }
  0x67   : > { %9983 = vst [vmem:[#allocation17_spill] sm:$0xff] %v6212_v9  ;;  %v581_v49 = vshrl.u32 %v580_v19, 23  ;;  %v584_v3 = vand.u32 8388607, %v9911_v34  ;;  %v9913_v32 = vmov 2102212464  }
  0x68   : > { %9984 = vst [vmem:[#allocation18_spill] sm:$0xff] %v6215_v10  ;;  %v5500_v18 = vadd.s32 4294967169, %v426_v13  ;;  %v430_v30 = vor.u32 8388608, %v429_v15  ;;  %v735_v4 = vand.u32 2139095040, %v6238_v14  ;;  %v9917_v48 = vmov 920167782  }
  0x69   : > { %9985 = vst [vmem:[#allocation19_spill] sm:$0xff] %v6217_v27  ;;  %v5503_v56 = vadd.s32 4294967169, %v581_v49  ;;  %v9923_v19 = vmov 1326507024   ;;  %v9994_v9 = vmov 2102212464  }
  0x6a   : > { %9986 = vst [vmem:[#allocation20_spill] sm:$0xff] %v6220_v8  ;;  %v432_v20 = vadd.s32 1, %v5500_v18  ;;  %v6241_v50 = vshll.u32 %v430_v30, 8 }
  0x6b   : > { %9987 = vst [vmem:[#allocation21_spill] sm:$0xff] %v6222_v46  ;;  %v587_v36 = vadd.s32 1, %v5503_v56 }
  0x6c   : > { %9988 = vst [vmem:[#allocation22_spill] sm:$0xff] %v6225_v44  ;;  %vm433_vm0 = vcmp.gt.s32.totalorder %v432_v20, 0  ;;  %v471_v33 = vand.u32 65535, %v6241_v50  ;;  %v472_v12 = vshrl.u32 %v6241_v50, 16 }
  0x6d   : > { %9989 = vst [vmem:[#allocation8_spill] sm:$0xff] %v6229_v45  ;;  %v434_v21 = vsel %vm433_vm0, %v432_v20, 0  ;;  %vm588_vm3 = vcmp.gt.s32.totalorder %v587_v36, 0 }
  0x6e   : > { %v435_v35 = vshrl.u32 %v434_v21, 5  ;;  %v436_v22 = vand.u32 31, %v434_v21  ;;  %v589_v34 = vsel %vm588_vm3, %v587_v36, 0 }
  0x6f   : > { %v6264_v36 = vshrl.u32 %v589_v34, 5 }
  0x70   : > { %v437_v23 = vsub.s32 32, %v436_v22  ;;  %v439_v37 = vshll.u32 %v9921_v2, %v436_v22  ;;  %v442_v29 = vshll.u32 %v9919_v31, %v436_v22  ;;  %v445_v6 = vshll.u32 %v9915_v5, %v436_v22 }
  0x71   : > { %v448_v42 = vshll.u32 %v9913_v32, %v436_v22  ;;  %v451_v7 = vshll.u32 %v9917_v48, %v436_v22  ;;  %vm454_vm1 = vcmp.lt.s32.totalorder %v435_v35, 1  ;;  %vm457_vm2 = vcmp.lt.s32.totalorder %v435_v35, 4 }
  0x72   : > { %v440_v13 = vshrl.u32 %v9919_v31, %v437_v23  ;;  %v443_v15 = vshrl.u32 %v9915_v5, %v437_v23  ;;  %v446_v16 = vshrl.u32 %v9913_v32, %v437_v23  ;;  %v438_v17 = vshrl.u32 %v9921_v2, %v437_v23 }
  0x73   : > { %v449_v18 = vshrl.u32 %v9917_v48, %v437_v23  ;;  %v452_v30 = vshrl.u32 %v9923_v19, %v437_v23  ;;  %vm456_vm4 = vcmp.lt.s32.totalorder %v435_v35, 3  ;;  %vm455_vm5 = vcmp.lt.s32.totalorder %v435_v35, 2 }
  0x74   : > { %v441_v20 = vor.u32 %v440_v13, %v439_v37  ;;  %v444_v49 = vor.u32 %v443_v15, %v442_v29  ;;  %v447_v56 = vor.u32 %v446_v16, %v445_v6  ;;  %v585_v23 = vor.u32 8388608, %v584_v3 }
  0x75   : > { %v450_v21 = vor.u32 %v449_v18, %v448_v42  ;;  %v453_v22 = vor.u32 %v452_v30, %v451_v7  ;;  %v591_v6 = vand.u32 31, %v589_v34  ;;  %v6266_v13 = vshrl.u32 %v735_v4, 23 }
  0x76   : > { %v459_v11 = vsel %vm457_vm2, %v447_v56, 2102212464  ;;  %v462_v32 = vsel %vm454_vm1, %v441_v20, %v444_v49  ;;  %v466_v5 = vsel %vm454_vm1, %v444_v49, %v447_v56  ;;  %v458_v48 = vsel %vm454_vm1, %v438_v17, %v441_v20 }
  0x77   : > { %v463_v31 = vsel %vm457_vm2, %v450_v21, 920167782  ;;  %v467_v2 = vsel %vm457_vm2, %v453_v22, 1326507024  ;;  %v460_v19 = vsel %vm456_vm4, %v444_v49, %v459_v11  ;;  %v6271_v3 = vsub.s32 32, %v591_v6 }
  0x78   : > { %v464_v37 = vsel %vm456_vm4, %v447_v56, %v463_v31  ;;  %v468_v29 = vsel %vm456_vm4, %v450_v21, %v467_v2  ;;  %v6269_v17 = vsel %vm455_vm5, %v458_v48, %v460_v19  ;;  %v9991_v11 = vmov 683565275  }
  0x79   : > { %v465_v42 = vsel %vm455_vm5, %v462_v32, %v464_v37  ;;  %v469_v7 = vsel %vm455_vm5, %v466_v5, %v468_v29  ;;  %v594_v2 = vshll.u32 %v9991_v11, %v591_v6  ;;  %v6274_v31 = vshll.u32 %v585_v23, 8 }
  0x7a   : > { %v473_v15 = vand.u32 65535, %v469_v7  ;;  %v474_v16 = vshrl.u32 %v469_v7, 16  ;;  %v495_v18 = vand.u32 65535, %v465_v42  ;;  %v496_v30 = vshrl.u32 %v465_v42, 16 }
  0x7b   : > { %v9992_v34 = vmov 2475754826   ;;  %v9993_v22 = vmov 2131351028   ;;  %vm609_vm6 = vcmp.lt.s32.totalorder %v6264_v36, 1  ;;  %v603_v1 = vshll.u32 %v9994_v9, %v591_v6 }
  0x7c   : > { %v475_v32 = vmul.u32 %v473_v15, %v471_v33  ;;  %v476_v20 = vmul.u32 %v474_v16, %v471_v33  ;;  %v477_v5 = vmul.u32 %v473_v15, %v472_v12  ;;  %v597_v49 = vshll.u32 %v9992_v34, %v591_v6 }
  0x7d   : > { %v497_v4 = vmul.u32 %v495_v18, %v471_v33  ;;  %v498_v56 = vmul.u32 %v496_v30, %v471_v33  ;;  %v499_v21 = vmul.u32 %v495_v18, %v472_v12  ;;  %v600_v37 = vshll.u32 %v9993_v22, %v591_v6 }
  0x7e   : > { %v478_v29 = vmul.u32 %v474_v16, %v472_v12  ;;  %v479_v35 = vshll.u32 %v476_v20, 16  ;;  %v481_v48 = vshll.u32 %v477_v5, 16  ;;  %v500_v19 = vmul.u32 %v496_v30, %v472_v12 }
  0x7f   : > { %v480_v42 = vshrl.u32 %v476_v20, 16  ;;  %v482_v7 = vshrl.u32 %v477_v5, 16  ;;  %v501_v23 = vshll.u32 %v498_v56, 16  ;;  %v503_v45 = vshll.u32 %v499_v21, 16 }
  0x80   : > { %vm483_vm7 = vc.u32 %v475_v32, %v479_v35  ;;  %v485_v44 = vadd.s32 %v479_v35, %v475_v32  ;;  %v502_v15 = vshrl.u32 %v498_v56, 16  ;;  %v595_v46 = vshrl.u32 %v9992_v34, %v6271_v3 }
  0x81   : > { %v5768_v33 = vmov 0   ;;  %vm505_vm8 = vc.u32 %v497_v4, %v501_v23  ;;  %v507_v16 = vadd.s32 %v501_v23, %v497_v4  ;;  %v598_v12 = vshrl.u32 %v9993_v22, %v6271_v3 }
  0x82   : > { %v484_v18 = vsel %vm483_vm7, 1, %v5768_v33  ;;  %vm487_vm9 = vc.u32 %v485_v44, %v481_v48  ;;  %v504_v20 = vshrl.u32 %v499_v21, 16  ;;  %v506_v5 = vsel %vm505_vm8, 1, %v5768_v33 }
  0x83   : > { %v486_v30 = vadd.s32 %v484_v18, %v478_v29  ;;  %v488_v8 = vsel %vm487_vm9, 1, %v5768_v33  ;;  %v508_v32 = vadd.s32 %v506_v5, %v500_v19  ;;  %vm509_vm10 = vc.u32 %v507_v16, %v503_v45 }
  0x84   : > { %v596_v56 = vor.u32 %v595_v46, %v594_v2  ;;  %v510_v27 = vsel %vm509_vm10, 1, %v5768_v33  ;;  %v599_v10 = vor.u32 %v598_v12, %v597_v49  ;;  %v601_v4 = vshrl.u32 %v9994_v9, %v6271_v3 }
  0x85   : > { %v490_v35 = vadd.s32 %v488_v8, %v486_v30  ;;  %v512_v23 = vadd.s32 %v510_v27, %v508_v32  ;;  %v9995_v44 = vmov 920167782   ;;  %v6293_v18 = vadd.s32 %v507_v16, %v503_v45 }
  0x86   : > { %v604_v21 = vshrl.u32 %v9995_v44, %v6271_v3  ;;  %v606_v29 = vshll.u32 %v9995_v44, %v591_v6  ;;  %v602_v19 = vor.u32 %v601_v4, %v600_v37  ;;  %v9996_v8 = vmov 1326507024  }
  0x87   : > { %v491_v48 = vadd.s32 %v490_v35, %v480_v42  ;;  %v607_v46 = vshrl.u32 %v9996_v8, %v6271_v3  ;;  %v513_v2 = vadd.s32 %v512_v23, %v502_v15  ;;  %vm611_vm11 = vcmp.lt.s32.totalorder %v6264_v36, 3 }
  0x88   : > { %v605_v49 = vor.u32 %v604_v21, %v603_v1  ;;  %vm612_vm12 = vcmp.lt.s32.totalorder %v6264_v36, 4  ;;  %vm610_vm13 = vcmp.lt.s32.totalorder %v6264_v36, 2  ;;  %v617_v45 = vsel %vm609_vm6, %v596_v56, %v599_v10 }
  0x89   : > { %v6299_v27 = vadd.s32 %v491_v48, %v482_v7  ;;  %v608_v12 = vor.u32 %v607_v46, %v606_v29  ;;  %v514_v30 = vadd.s32 %v513_v2, %v504_v20  ;;  %v5506_v37 = vadd.s32 4294967169, %v6266_v13 }
  0x8a   : > { %v618_v6 = vsel %vm612_vm12, %v605_v49, 920167782  ;;  %v515_v1 = vmul.u32 %v6241_v50, %v6269_v17  ;;  %v626_v7 = vand.u32 65535, %v6274_v31  ;;  %v621_v20 = vsel %vm609_vm6, %v599_v10, %v602_v19 }
  0x8b   : > { %vm517_vm14 = vc.u32 %v6299_v27, %v6293_v18  ;;  %v619_v42 = vsel %vm611_vm11, %v602_v19, %v618_v6  ;;  %v518_v15 = vadd.s32 1, %v514_v30  ;;  %v622_v13 = vsel %vm612_vm12, %v608_v12, 1326507024 }
  0x8c   : > { %v620_v16 = vsel %vm610_vm13, %v617_v45, %v619_v42  ;;  %v623_v50 = vsel %vm611_vm11, %v605_v49, %v622_v13  ;;  %v627_v17 = vshrl.u32 %v6274_v31, 16  ;;  %v593_v4 = vshrl.u32 %v9991_v11, %v6271_v3 }
  0x8d   : > { %v650_v5 = vand.u32 65535, %v620_v16  ;;  %v651_v32 = vshrl.u32 %v620_v16, 16  ;;  %v519_v35 = vsel %vm517_vm14, %v518_v15, %v514_v30  ;;  %v624_v23 = vsel %vm610_vm13, %v621_v20, %v623_v50 }
  0x8e   : > { %v520_v21 = vadd.s32 %v519_v35, %v515_v1  ;;  %v614_v29 = vsel %vm612_vm12, %v602_v19, 2102212464  ;;  %v628_v48 = vand.u32 65535, %v624_v23  ;;  %v629_v46 = vshrl.u32 %v624_v23, 16 }
  0x8f   : > { %v652_v2 = vmul.u32 %v650_v5, %v626_v7  ;;  %v653_v12 = vmul.u32 %v651_v32, %v626_v7  ;;  %v654_v49 = vmul.u32 %v650_v5, %v627_v17  ;;  %v742_v45 = vadd.s32 1, %v5506_v37 }
  0x90   : > { %v521_v6 = vadd.s32 536870912, %v520_v21  ;;  %v630_v42 = vmul.u32 %v628_v48, %v626_v7  ;;  %v631_v16 = vmul.u32 %v629_v46, %v626_v7  ;;  %v632_v30 = vmul.u32 %v628_v48, %v627_v17 }
  0x91   : > { %v613_v3 = vsel %vm609_vm6, %v593_v4, %v596_v56  ;;  %v615_v15 = vsel %vm611_vm11, %v599_v10, %v614_v29  ;;  %v656_v1 = vshll.u32 %v653_v12, 16  ;;  %v633_v19 = vmul.u32 %v629_v46, %v627_v17 }
  0x92   : > { %v6333_v20 = vshrl.u32 %v521_v6, 30  ;;  %v634_v13 = vshll.u32 %v631_v16, 16  ;;  %v636_v50 = vshll.u32 %v632_v30, 16  ;;  %v655_v35 = vmul.u32 %v651_v32, %v627_v17 }
  0x93   : > { %v658_v23 = vshll.u32 %v654_v49, 16  ;;  %vm660_vm15 = vc.u32 %v652_v2, %v656_v1  ;;  %vm743_vm0 = vcmp.gt.s32.totalorder %v742_v45, 0  ;;  %v657_v5 = vshrl.u32 %v653_v12, 16 }
  0x94   : > { %v523_v37 = vshll.u32 %v6333_v20, 30  ;;  %vm638_vm1 = vc.u32 %v630_v42, %v634_v13  ;;  %v640_v7 = vadd.s32 %v634_v13, %v630_v42  ;;  %v635_v48 = vshrl.u32 %v631_v16, 16 }
  0x95   : > { %v639_v56 = vsel %vm638_vm1, 1, %v5768_v33  ;;  %v661_v10 = vsel %vm660_vm15, 1, %v5768_v33  ;;  %v662_v4 = vadd.s32 %v656_v1, %v652_v2  ;;  %v744_v46 = vsel %vm743_vm0, %v742_v45, 0 }
  0x96   : > { %v524_v29 = vsub.s32 %v520_v21, %v523_v37  ;;  %v641_v6 = vadd.s32 %v639_v56, %v633_v19  ;;  %vm642_vm2 = vc.u32 %v640_v7, %v636_v50  ;;  %v637_v63 = vshrl.u32 %v632_v30, 16 }
  0x97   : > { %v643_v17 = vsel %vm642_vm2, 1, %v5768_v33  ;;  %v663_v32 = vadd.s32 %v661_v10, %v655_v35  ;;  %vm664_vm3 = vc.u32 %v662_v4, %v658_v23  ;;  %v659_v42 = vshrl.u32 %v654_v49, 16 }
  0x98   : > { %vm525_vm4 = vcmp.lt.s32.totalorder %v524_v29, 0  ;;  %v526_v62 = vsub.s32 0, %v524_v29  ;;  %v645_v61 = vadd.s32 %v643_v17, %v641_v6  ;;  %v665_v12 = vsel %vm664_vm3, 1, %v5768_v33 }
  0x99   : > { %v667_v16 = vadd.s32 %v665_v12, %v663_v32  ;;  %v9937_v13 = vand.u32 2147483647, %v6238_v14  ;;  %v746_v43 = vand.u32 31, %v744_v46  ;;  %v6341_v1 = vadd.s32 %v662_v4, %v658_v23 }
  0x9a   : > { %v527_v2 = vsel %vm525_vm4, %v526_v62, %v524_v29  ;;  %v646_v21 = vadd.s32 %v645_v61, %v635_v48  ;;  %v616_v30 = vsel %vm610_vm13, %v613_v3, %v615_v15  ;;  %vm424_vm5 = vcmp.lt.s32.totalorder %v6170_v53, 0 }
  0x9b   : > { %v528_v45 = vclz %v527_v2  ;;  %v668_v19 = vadd.s32 %v667_v16, %v657_v5  ;;  %v747_v35 = vsub.s32 32, %v746_v43  ;;  %v739_v7 = vand.u32 8388607, %v9937_v13 }
  0x9c   : > { %v6345_v50 = vadd.s32 %v646_v21, %v637_v63  ;;  %v516_v61 = vadd.s32 %v6293_v18, %v6299_v27  ;;  %v546_v62 = vsub.s32 4, %v6333_v20  ;;  %v670_v23 = vmul.u32 %v6274_v31, %v616_v30 }
  0x9d   : > { %v5501_v37 = vadd.s32 4294967294, %v528_v45  ;;  %v669_v49 = vadd.s32 %v668_v19, %v659_v42  ;;  %v9997_v63 = vand.u32 2147483647, %v6170_v53  ;;  %v6362_v15 = vshrl.u32 %v744_v46, 5 }
  0x9e   : > { %vm672_vm6 = vc.u32 %v6345_v50, %v6341_v1  ;;  %v749_v5 = vshll.u32 %v9991_v11, %v746_v43  ;;  %v750_v27 = vshrl.u32 %v9992_v34, %v747_v35  ;;  %v752_v31 = vshll.u32 %v9992_v34, %v746_v43 }
  0x9f   : > { %vm6358_vm7 = vcmp.le.f32.partialorder %v9997_v63, 0.7853982  ;;  %vm5502_vm8 = vcmp.lt.s32.totalorder %v5501_v37, 0  ;;  %v673_v3 = vadd.s32 1, %v669_v49  ;;  %v753_v48 = vshrl.u32 %v9993_v22, %v747_v35 }
  0xa0   : > { %v531_v18 = vsel %vm5502_vm8, 0, %v5501_v37  ;;  %v755_v32 = vshll.u32 %v9993_v22, %v746_v43  ;;  %v756_v12 = vshrl.u32 %v9994_v9, %v747_v35  ;;  %v758_v46 = vshll.u32 %v9994_v9, %v746_v43 }
  0xa1   : > { %v532_v56 = vsub.s32 32, %v531_v18  ;;  %v533_v10 = vshll.u32 %v524_v29, %v531_v18  ;;  %v536_v4 = vsub.s32 4294967266, %v531_v18  ;;  %v674_v6 = vsel %vm672_vm6, %v673_v3, %v669_v49 }
  0xa2   : > { %v675_v17 = vadd.s32 %v674_v6, %v670_v23  ;;  %v547_v2 = vsel %vm424_vm5, %v546_v62, %v6333_v20  ;;  %v740_v21 = vor.u32 8388608, %v739_v7  ;;  %v751_v30 = vor.u32 %v750_v27, %v749_v5 }
  0xa3   : > { %v534_v42 = vshrl.u32 %v516_v61, %v532_v56  ;;  %v537_v16 = vadd.s32 127, %v536_v4  ;;  %v759_v29 = vshrl.u32 %v9995_v44, %v747_v35  ;;  %v761_v19 = vshll.u32 %v9995_v44, %v746_v43 }
  0xa4   : > { %v676_v45 = vadd.s32 536870912, %v675_v17  ;;  %v754_v23 = vor.u32 %v753_v48, %v752_v31  ;;  %v762_v63 = vshrl.u32 %v9996_v8, %v747_v35  ;;  %v757_v18 = vor.u32 %v756_v12, %v755_v32 }
  0xa5   : > { %v535_v37 = vor.u32 %v534_v42, %v533_v10  ;;  %v538_v49 = vshll.u32 %v537_v16, 23  ;;  %v760_v61 = vor.u32 %v759_v29, %v758_v46  ;;  %vm764_vm9 = vcmp.lt.s32.totalorder %v6362_v15, 1 }
  0xa6   : > { %v677_v3 = vshrl.u32 %v676_v45, 30  ;;  %vm766_vm10 = vcmp.lt.s32.totalorder %v6362_v15, 3  ;;  %vm767_vm11 = vcmp.lt.s32.totalorder %v6362_v15, 4  ;;  %v549_v20 = vsel %vm6358_vm7, 0, %v547_v2 }
  0xa7   : > { %v539_v56 = vor.u32 4788187, %v538_v49  ;;  %v542_v4 = vcvt.s32.f32 %v535_v37  ;;  %v763_v7 = vor.u32 %v762_v63, %v761_v19  ;;  %vm579_vm12 = vcmp.lt.s32.totalorder %v6227_v47, 0 }
  0xa8   : > { %v678_v43 = vshll.u32 %v677_v3, 30  ;;  %v748_v5 = vshrl.u32 %v9991_v11, %v747_v35  ;;  %v773_v27 = vsel %vm767_vm11, %v760_v61, 920167782  ;;  %v6386_v31 = vshll.u32 %v740_v21, 8 }
  0xa9   : > { %v540_v62 = vand.u32 2147483647, %v539_v56  ;;  %vm765_vm13 = vcmp.lt.s32.totalorder %v6362_v15, 2  ;;  %v772_v10 = vsel %vm764_vm9, %v751_v30, %v754_v23  ;;  %v774_v6 = vsel %vm766_vm10, %v757_v18, %v773_v27 }
  0xaa   : > { %v6388_v48 = vsub.s32 %v675_v17, %v678_v43  ;;  %v566_v12 = vadd.s32 3, %v549_v20  ;;  %v769_v35 = vsel %vm767_vm11, %v757_v18, 2102212464  ;;  %v776_v46 = vsel %vm764_vm9, %v754_v23, %v757_v18 }
  0xab   : > { %v543_v32 = vmul.f32 %v542_v4, %v540_v62  ;;  %v701_v42 = vsub.s32 4, %v677_v3  ;;  %v777_v16 = vsel %vm767_vm11, %v763_v7, 1326507024  ;;  %v10000_v21 = vand.u32 2147483647, %v6227_v47 }
  0xac   : > { %vm680_vm14 = vcmp.lt.s32.totalorder %v6388_v48, 0  ;;  %v681_v17 = vsub.s32 0, %v6388_v48  ;;  %v775_v29 = vsel %vm765_vm13, %v772_v10, %v774_v6  ;;  %v778_v19 = vsel %vm766_vm10, %v760_v61, %v777_v16 }
  0xad   : > { %v544_v2 = vxor.u32 2147483648, %v543_v32  ;;  %vm6405_vm15 = vcmp.le.f32.partialorder %v10000_v21, 0.7853982  ;;  %v781_v37 = vand.u32 65535, %v6386_v31  ;;  %v768_v63 = vsel %vm764_vm9, %v748_v5, %v751_v30 }
  0xae   : > { %v682_v49 = vsel %vm680_vm14, %v681_v17, %v6388_v48  ;;  %v770_v18 = vsel %vm766_vm10, %v754_v23, %v769_v35  ;;  %v779_v56 = vsel %vm765_vm13, %v776_v46, %v778_v19  ;;  %v782_v62 = vshrl.u32 %v6386_v31, 16 }
  0xaf   : > { %v545_v4 = vsel %vm424_vm5, %v544_v2, %v543_v32  ;;  %v683_v20 = vclz %v682_v49  ;;  %v783_v43 = vand.u32 65535, %v779_v56  ;;  %v784_v7 = vshrl.u32 %v779_v56, 16 }
  0xb0   : > { %v6426_v61 = vsel %vm6358_vm7, %v6170_v53, %v545_v4  ;;  %v806_v30 = vshrl.u32 %v775_v29, 16  ;;  %v671_v27 = vadd.s32 %v6341_v1, %v6345_v50  ;;  %v6436_v32 = vand.u32 3, %v566_v12 }
  0xb1   : > { %v550_v23 = vmul.f32 %v6426_v61, %v6426_v61  ;;  %v5504_v10 = vadd.s32 4294967294, %v683_v20  ;;  %v6434_v6 = vmul.u32 %v784_v7, %v781_v37  ;;  %v6440_v36 = vsel %vm579_vm12, %v701_v42, %v677_v3 }
  0xb2   : > { %v6444_v35 = vsel %vm765_vm13, %v768_v63, %v770_v18  ;;  %v805_v46 = vand.u32 65535, %v775_v29  ;;  %v785_v2 = vmul.u32 %v783_v43, %v781_v37  ;;  %v6446_v1 = vmul.u32 %v783_v43, %v782_v62 }
  0xb3   : > { %v551_v17 = vmul.f32 -0.001358992, %v550_v23  ;;  %v558_v16 = vmul.f32 -0.00019511016, %v550_v23  ;;  %vm5505_vm0 = vcmp.lt.s32.totalorder %v5504_v10, 0  ;;  %v789_v50 = vshll.u32 %v6434_v6, 16 }
  0xb4   : > { %v686_v21 = vsel %vm5505_vm0, 0, %v5504_v10  ;;  %v6449_v12 = vmul.u32 %v806_v30, %v781_v37  ;;  %vm572_vm1 = vcmp.eq.s32.totalorder %v6436_v32, 2  ;;  %v704_v29 = vsel %vm6405_vm15, 0, %v6440_v36 }
  0xb5   : > { %v552_v19 = vadd.f32 0.041655596, %v551_v17  ;;  %v559_v49 = vadd.f32 0.008332121, %v558_v16  ;;  %v687_v3 = vsub.s32 32, %v686_v21  ;;  %v688_v42 = vshll.u32 %v6388_v48, %v686_v21 }
  0xb6   : > { %v691_v15 = vsub.s32 4294967266, %v686_v21  ;;  %v788_v63 = vmul.u32 %v784_v7, %v782_v62  ;;  %v807_v18 = vmul.u32 %v805_v46, %v781_v37  ;;  %vm793_vm2 = vc.u32 %v785_v2, %v789_v50 }
  0xb7   : > { %v553_v56 = vmul.f32 %v552_v19, %v550_v23  ;;  %v560_v4 = vmul.f32 %v559_v49, %v550_v23  ;;  %v689_v20 = vshrl.u32 %v671_v27, %v687_v3  ;;  %vm569_vm3 = vcmp.eq.s32.totalorder %v6436_v32, 0 }
  0xb8   : > { %v692_v43 = vadd.s32 127, %v691_v15  ;;  %v791_v10 = vshll.u32 %v6446_v1, 16  ;;  %v809_v17 = vmul.u32 %v805_v46, %v782_v62  ;;  %v811_v48 = vshll.u32 %v6449_v12, 16 }
  0xb9   : > { %v554_v16 = vadd.f32 -0.4999988, %v553_v56  ;;  %v561_v21 = vadd.f32 -0.16666654, %v560_v4  ;;  %vm568_vm4 = vcmp.lt.s32.totalorder %v6436_v32, 2  ;;  %v690_v36 = vor.u32 %v689_v20, %v688_v42 }
  0xba   : > { %v794_v37 = vsel %vm793_vm2, 1, %v5768_v33  ;;  %vm565_vm5 = vweird.f32 %v6170_v53  ;;  %v693_v7 = vshll.u32 %v692_v43, 23  ;;  %v795_v27 = vadd.s32 %v789_v50, %v785_v2 }
  0xbb   : > { %v796_v19 = vadd.s32 %v794_v37, %v788_v63  ;;  %v810_v49 = vmul.u32 %v806_v30, %v782_v62  ;;  %v555_v3 = vmul.f32 %v554_v16, %v550_v23  ;;  %v562_v15 = vmul.f32 %v561_v21, %v550_v23 }
  0xbc   : > { %v697_v13 = vcvt.s32.f32 %v690_v36  ;;  %v790_v46 = vshrl.u32 %v6434_v6, 16  ;;  %v694_v5 = vor.u32 4788187, %v693_v7  ;;  %vm797_vm6 = vc.u32 %v795_v27, %v791_v10 }
  0xbd   : > { %v813_v56 = vshll.u32 %v809_v17, 16  ;;  %vm815_vm7 = vc.u32 %v807_v18, %v811_v48  ;;  %v556_v42 = vadd.f32 1.0, %v555_v3  ;;  %v563_v4 = vadd.f32 1.0, %v562_v15 }
  0xbe   : > { %v798_v20 = vsel %vm797_vm6, 1, %v5768_v33  ;;  %v816_v43 = vsel %vm815_vm7, 1, %v5768_v33  ;;  %v695_v2 = vand.u32 2147483647, %v694_v5  ;;  %v817_v62 = vadd.s32 %v811_v48, %v807_v18 }
  0xbf   : > { %v800_v50 = vadd.s32 %v798_v20, %v796_v19  ;;  %v818_v30 = vadd.s32 %v816_v43, %v810_v49  ;;  %v564_v23 = vmul.f32 %v563_v4, %v6426_v61  ;;  %v573_v63 = vxor.u32 2147483648, %v556_v42 }
  0xc0   : > { %v792_v6 = vshrl.u32 %v6446_v1, 16  ;;  %v890_v10 = vand.u32 2139095040, %v6172_v40  ;;  %v698_v16 = vmul.f32 %v697_v13, %v695_v2  ;;  %v812_v36 = vshrl.u32 %v6449_v12, 16 }
  0xc1   : > { %v801_v21 = vadd.s32 %v800_v50, %v790_v46  ;;  %vm819_vm8 = vc.u32 %v817_v62, %v813_v56  ;;  %v570_v37 = vxor.u32 2147483648, %v564_v23  ;;  %v574_v5 = vsel %vm572_vm1, %v573_v63, %v564_v23 }
  0xc2   : > { %v820_v18 = vsel %vm819_vm8, 1, %v5768_v33  ;;  %v891_v48 = vshrl.u32 %v890_v10, 23  ;;  %v699_v61 = vxor.u32 2147483648, %v698_v16  ;;  %v721_v7 = vadd.s32 3, %v704_v29 }
  0xc3   : > { %v814_v27 = vshrl.u32 %v809_v17, 16  ;;  %v822_v1 = vadd.s32 %v820_v18, %v818_v30  ;;  %v571_v19 = vsel %vm569_vm3, %v556_v42, %v570_v37  ;;  %v6477_v49 = vadd.s32 %v801_v21, %v792_v6 }
  0xc4   : > { %v6479_v13 = vadd.s32 %v817_v62, %v813_v56  ;;  %v5509_v12 = vadd.s32 4294967169, %v891_v48  ;;  %v575_v3 = vsel %vm568_vm4, %v571_v19, %v574_v5  ;;  %v700_v15 = vsel %vm579_vm12, %v699_v61, %v698_v16 }
  0xc5   : > { %v823_v46 = vadd.s32 %v822_v1, %v812_v36  ;;  %v576_v29 = vsel %vm565_vm5, nan, %v575_v3  ;;  %v703_v17 = vsel %vm6405_vm15, %v6227_v47, %v700_v15  ;;  %v825_v56 = vmul.u32 %v6386_v31, %v6444_v35 }
  0xc6   : > { %v897_v42 = vadd.s32 1, %v5509_v12  ;;  %v705_v4 = vmul.f32 %v703_v17, %v703_v17  ;;  %5382 = vst [vmem:[%s6492_s26] sm:$0xff] %v576_v29  ;;  %v6495_v32 = vand.u32 3, %v721_v7  ;;  %vm827_vm9 = vc.u32 %v6477_v49, %v6479_v13 }
  0xc7   : > { %v824_v20 = vadd.s32 %v823_v46, %v814_v27  ;;  %v10003_v53 = vand.u32 2147483647, %v6172_v40  ;;  %v1042_v18 = vand.u32 2147483647, %v6155_v51  ;;  %vm720_vm14 = vweird.f32 %v6227_v47 }
  0xc8   : > { %vm898_vm10 = vcmp.gt.s32.totalorder %v897_v42, 0  ;;  %v706_v45 = vmul.f32 -0.001358992, %v705_v4  ;;  %v713_v2 = vmul.f32 -0.00019511016, %v705_v4  ;;  %vm727_vm11 = vcmp.eq.s32.totalorder %v6495_v32, 2 }
  0xc9   : > { %v894_v43 = vand.u32 8388607, %v10003_v53  ;;  %v828_v50 = vadd.s32 1, %v824_v20  ;;  %v899_v62 = vsel %vm898_vm10, %v897_v42, 0  ;;  %vm724_vm12 = vcmp.eq.s32.totalorder %v6495_v32, 0 }
  0xca   : > { %v901_v30 = vand.u32 31, %v899_v62  ;;  %v707_v23 = vadd.f32 0.041655596, %v706_v45  ;;  %v714_v31 = vadd.f32 0.008332121, %v713_v2  ;;  %vm723_vm13 = vcmp.lt.s32.totalorder %v6495_v32, 2 }
  0xcb   : > { %v829_v35 = vsel %vm827_vm9, %v828_v50, %v824_v20  ;;  %v895_v21 = vor.u32 8388608, %v894_v43  ;;  %v6514_v19 = vshrl.u32 %v899_v62, 5  ;;  %v1045_v43 = vand.u32 2139095040, %v6155_v51 }
  0xcc   : > { %v830_v63 = vadd.s32 %v829_v35, %v825_v56  ;;  %v6501_v6 = vsub.s32 32, %v901_v30  ;;  %v708_v10 = vmul.f32 %v707_v23, %v705_v4  ;;  %v715_v16 = vmul.f32 %v714_v31, %v705_v4 }
  0xcd   : > { %v904_v37 = vshll.u32 %v9991_v11, %v901_v30  ;;  %v907_v5 = vshll.u32 %v9992_v34, %v901_v30  ;;  %v910_v12 = vshll.u32 %v9993_v22, %v901_v30  ;;  %v913_v3 = vshll.u32 %v9994_v9, %v901_v30 }
  0xce   : > { %v831_v36 = vadd.s32 536870912, %v830_v63  ;;  %v709_v48 = vadd.f32 -0.4999988, %v708_v10  ;;  %v716_v61 = vadd.f32 -0.16666654, %v715_v16  ;;  %v905_v7 = vshrl.u32 %v9992_v34, %v6501_v6 }
  0xcf   : > { %v908_v27 = vshrl.u32 %v9993_v22, %v6501_v6  ;;  %v911_v29 = vshrl.u32 %v9994_v9, %v6501_v6  ;;  %v914_v42 = vshrl.u32 %v9995_v44, %v6501_v6  ;;  %v916_v56 = vshll.u32 %v9995_v44, %v901_v30 }
  0xd0   : > { %v832_v1 = vshrl.u32 %v831_v36, 30  ;;  %v710_v15 = vmul.f32 %v709_v48, %v705_v4  ;;  %v717_v46 = vmul.f32 %v716_v61, %v705_v4  ;;  %v917_v53 = vshrl.u32 %v9996_v8, %v6501_v6 }
  0xd1   : > { %vm734_vm15 = vcmp.lt.s32.totalorder %v6238_v14, 0  ;;  %v906_v50 = vor.u32 %v905_v7, %v904_v37  ;;  %v6527_v4 = vor.u32 %v908_v27, %v907_v5  ;;  %v915_v23 = vor.u32 %v914_v42, %v913_v3 }
  0xd2   : > { %v833_v20 = vshll.u32 %v832_v1, 30  ;;  %v711_v45 = vadd.f32 1.0, %v710_v15  ;;  %v718_v2 = vadd.f32 1.0, %v717_v46  ;;  %vm919_vm0 = vcmp.lt.s32.totalorder %v6514_v19, 1 }
  0xd3   : > { %v6532_v31 = vshll.u32 %v895_v21, 8  ;;  %v912_v10 = vor.u32 %v911_v29, %v910_v12  ;;  %v918_v16 = vor.u32 %v917_v53, %v916_v56  ;;  %v10004_v36 = vand.u32 2147483647, %v6238_v14 }
  0xd4   : > { %v6529_v62 = vsub.s32 %v830_v63, %v833_v20  ;;  %v719_v30 = vmul.f32 %v718_v2, %v703_v17  ;;  %v728_v35 = vxor.u32 2147483648, %v711_v45  ;;  %vm921_vm3 = vcmp.lt.s32.totalorder %v6514_v19, 3 }
  0xd5   : > { %vm6536_vm1 = vcmp.le.f32.partialorder %v10004_v36, 0.7853982  ;;  %vm922_vm4 = vcmp.lt.s32.totalorder %v6514_v19, 4  ;;  %vm920_vm5 = vcmp.lt.s32.totalorder %v6514_v19, 2  ;;  %v927_v37 = vsel %vm919_vm0, %v906_v50, %v6527_v4 }
  0xd6   : > { %vm835_vm2 = vcmp.lt.s32.totalorder %v6529_v62, 0  ;;  %v836_v63 = vsub.s32 0, %v6529_v62  ;;  %v725_v21 = vxor.u32 2147483648, %v719_v30  ;;  %v729_v17 = vsel %vm727_vm11, %v728_v35, %v719_v30 }
  0xd7   : > { %v826_v5 = vadd.s32 %v6479_v13, %v6477_v49  ;;  %v856_v7 = vsub.s32 4, %v832_v1  ;;  %v928_v27 = vsel %vm922_vm4, %v915_v23, 920167782  ;;  %v931_v46 = vsel %vm919_vm0, %v6527_v4, %v912_v10 }
  0xd8   : > { %v837_v61 = vsel %vm835_vm2, %v836_v63, %v6529_v62  ;;  %v726_v12 = vsel %vm724_vm12, %v711_v45, %v725_v21  ;;  %v929_v15 = vsel %vm921_vm3, %v912_v10, %v928_v27  ;;  %v932_v29 = vsel %vm922_vm4, %v918_v16, 1326507024 }
  0xd9   : > { %v838_v3 = vclz %v837_v61  ;;  %v730_v49 = vsel %vm723_vm13, %v726_v12, %v729_v17  ;;  %v930_v13 = vsel %vm920_vm5, %v927_v37, %v929_v15  ;;  %v1046_v42 = vshrl.u32 %v1045_v43, 23 }
  0xda   : > { %v731_v20 = vsel %vm720_vm14, nan, %v730_v49  ;;  %v933_v53 = vsel %vm921_vm3, %v915_v23, %v932_v29  ;;  %v936_v45 = vand.u32 65535, %v6532_v31  ;;  %v6575_v32 = vsel %vm734_vm15, %v856_v7, %v832_v1 }
  0xdb   : > { %v5507_v56 = vadd.s32 4294967294, %v838_v3  ;;  %v934_v2 = vsel %vm920_vm5, %v931_v46, %v933_v53  ;;  %v937_v30 = vshrl.u32 %v6532_v31, 16  ;;  %v961_v35 = vshrl.u32 %v930_v13, 16  ;;  %5383 = vst [vmem:[%s6492_s26 + $0x8] sm:$0xff] %v731_v20 }
  0xdc   : > { %v903_v47 = vshrl.u32 %v9991_v11, %v6501_v6  ;;  %v938_v43 = vand.u32 65535, %v934_v2  ;;  %v939_v16 = vshrl.u32 %v934_v2, 16  ;;  %v960_v36 = vand.u32 65535, %v930_v13 }
  0xdd   : > { %vm5508_vm6 = vcmp.lt.s32.totalorder %v5507_v56, 0  ;;  %v5512_v63 = vadd.s32 4294967169, %v1046_v42  ;;  %v6585_v1 = vand.u32 8388607, %v1042_v18  ;;  %v859_v61 = vsel %vm6536_vm1, 0, %v6575_v32 }
  0xde   : > { %v841_v23 = vsel %vm5508_vm6, 0, %v5507_v56  ;;  %v924_v6 = vsel %vm922_vm4, %v912_v10, 2102212464  ;;  %v940_v7 = vmul.u32 %v938_v43, %v936_v45  ;;  %v941_v27 = vmul.u32 %v939_v16, %v936_v45 }
  0xdf   : > { %v842_v21 = vsub.s32 32, %v841_v23  ;;  %v843_v17 = vshll.u32 %v6529_v62, %v841_v23  ;;  %v846_v37 = vsub.s32 4294967266, %v841_v23  ;;  %v963_v12 = vmul.u32 %v961_v35, %v936_v45 }
  0xe0   : > { %v923_v46 = vsel %vm919_vm0, %v903_v47, %v906_v50  ;;  %v942_v49 = vmul.u32 %v938_v43, %v937_v30  ;;  %v943_v13 = vmul.u32 %v939_v16, %v937_v30  ;;  %v944_v29 = vshll.u32 %v941_v27, 16 }
  0xe1   : > { %v844_v3 = vshrl.u32 %v826_v5, %v842_v21  ;;  %v847_v15 = vadd.s32 127, %v846_v37  ;;  %v962_v62 = vmul.u32 %v960_v36, %v936_v45  ;;  %v964_v42 = vmul.u32 %v960_v36, %v937_v30 }
  0xe2   : > { %v925_v53 = vsel %vm921_vm3, %v6527_v4, %v924_v6  ;;  %v946_v10 = vshll.u32 %v942_v49, 16  ;;  %vm948_vm7 = vc.u32 %v940_v7, %v944_v29  ;;  %v950_v32 = vadd.s32 %v944_v29, %v940_v7 }
  0xe3   : > { %v845_v20 = vor.u32 %v844_v3, %v843_v17  ;;  %v848_v56 = vshll.u32 %v847_v15, 23  ;;  %v965_v2 = vmul.u32 %v961_v35, %v937_v30  ;;  %v966_v5 = vshll.u32 %v963_v12, 16 }
  0xe4   : > { %v949_v50 = vsel %vm948_vm7, 1, %v5768_v33  ;;  %v968_v47 = vshll.u32 %v964_v42, 16  ;;  %v945_v43 = vshrl.u32 %v941_v27, 16  ;;  %vm952_vm8 = vc.u32 %v950_v32, %v946_v10 }
  0xe5   : > { %v849_v23 = vor.u32 4788187, %v848_v56  ;;  %v852_v21 = vcvt.s32.f32 %v845_v20  ;;  %v951_v16 = vadd.s32 %v949_v50, %v943_v13  ;;  %vm970_vm9 = vc.u32 %v962_v62, %v966_v5 }
  0xe6   : > { %v953_v36 = vsel %vm952_vm8, 1, %v5768_v33  ;;  %v971_v17 = vsel %vm970_vm9, 1, %v5768_v33  ;;  %v972_v4 = vadd.s32 %v966_v5, %v962_v62  ;;  %v947_v37 = vshrl.u32 %v942_v49, 16 }
  0xe7   : > { %v850_v45 = vand.u32 2147483647, %v849_v23  ;;  %v955_v6 = vadd.s32 %v953_v36, %v951_v16  ;;  %v973_v7 = vadd.s32 %v971_v17, %v965_v2  ;;  %v1052_v30 = vadd.s32 1, %v5512_v63 }
  0xe8   : > { %v926_v3 = vsel %vm920_vm5, %v923_v46, %v925_v53  ;;  %v967_v15 = vshrl.u32 %v963_v12, 16  ;;  %vm974_vm10 = vc.u32 %v972_v4, %v968_v47  ;;  %v969_v13 = vshrl.u32 %v964_v42, 16 }
  0xe9   : > { %v853_v35 = vmul.f32 %v852_v21, %v850_v45  ;;  %v956_v27 = vadd.s32 %v955_v6, %v945_v43  ;;  %v975_v29 = vsel %vm974_vm10, 1, %v5768_v33  ;;  %vm1053_vm11 = vcmp.gt.s32.totalorder %v1052_v30, 0 }
  0xea   : > { %v6604_v56 = vadd.s32 %v972_v4, %v968_v47  ;;  %v977_v10 = vadd.s32 %v975_v29, %v973_v7  ;;  %v1054_v62 = vsel %vm1053_vm11, %v1052_v30, 0  ;;  %v876_v46 = vadd.s32 3, %v859_v61 }
  0xeb   : > { %v854_v20 = vxor.u32 2147483648, %v853_v35  ;;  %v6606_v49 = vadd.s32 %v956_v27, %v947_v37  ;;  %v1056_v32 = vand.u32 31, %v1054_v62  ;;  %v980_v42 = vmul.u32 %v6532_v31, %v926_v3 }
  0xec   : > { %v978_v19 = vadd.s32 %v977_v10, %v967_v15  ;;  %v1050_v23 = vor.u32 8388608, %v6585_v1  ;;  %v6625_v16 = vshrl.u32 %v1054_v62, 5  ;;  %v877_v6 = vand.u32 3, %v876_v46 }
  0xed   : > { %v855_v63 = vsel %vm734_vm15, %v854_v20, %v853_v35  ;;  %v6614_v53 = vsub.s32 32, %v1056_v32  ;;  %vm982_vm12 = vc.u32 %v6606_v49, %v6604_v56  ;;  %v1059_v21 = vshll.u32 %v9991_v11, %v1056_v32 }
  0xee   : > { %v858_v12 = vsel %vm6536_vm1, %v6238_v14, %v855_v63  ;;  %v979_v5 = vadd.s32 %v978_v19, %v969_v13  ;;  %v1062_v48 = vshll.u32 %v9992_v34, %v1056_v32  ;;  %v1065_v45 = vshll.u32 %v9993_v22, %v1056_v32 }
  0xef   : > { %v860_v2 = vmul.f32 %v858_v12, %v858_v12  ;;  %v1060_v50 = vshrl.u32 %v9992_v34, %v6614_v53  ;;  %v1063_v61 = vshrl.u32 %v9993_v22, %v6614_v53  ;;  %v1066_v1 = vshrl.u32 %v9994_v9, %v6614_v53 }
  0xf0   : > { %v983_v43 = vadd.s32 1, %v979_v5  ;;  %v1068_v36 = vshll.u32 %v9994_v9, %v1056_v32  ;;  %v1069_v17 = vshrl.u32 %v9995_v44, %v6614_v53  ;;  %v1071_v15 = vshll.u32 %v9995_v44, %v1056_v32 }
  0xf1   : > { %v861_v31 = vmul.f32 -0.001358992, %v860_v2  ;;  %v868_v47 = vmul.f32 -0.00019511016, %v860_v2  ;;  %v6636_v35 = vor.u32 %v1060_v50, %v1059_v21  ;;  %v6638_v3 = vor.u32 %v1063_v61, %v1062_v48 }
  0xf2   : > { %v984_v7 = vsel %vm982_vm12, %v983_v43, %v979_v5  ;;  %v1070_v29 = vor.u32 %v1069_v17, %v1068_v36  ;;  %v1072_v20 = vshrl.u32 %v9996_v8, %v6614_v53  ;;  %v1067_v62 = vor.u32 %v1066_v1, %v1065_v45 }
  0xf3   : > { %v862_v4 = vadd.f32 0.041655596, %v861_v31  ;;  %v869_v37 = vadd.f32 0.008332121, %v868_v47  ;;  %v985_v30 = vadd.s32 %v984_v7, %v980_v42  ;;  %vm1074_vm13 = vcmp.lt.s32.totalorder %v6625_v16, 1 }
  0xf4   : > { %v6644_v63 = vshll.u32 %v1050_v23, 8  ;;  %vm1076_vm14 = vcmp.lt.s32.totalorder %v6625_v16, 3  ;;  %vm1077_vm15 = vcmp.lt.s32.totalorder %v6625_v16, 4  ;;  %v1073_v32 = vor.u32 %v1072_v20, %v1071_v15 }
  0xf5   : > { %v863_v27 = vmul.f32 %v862_v4, %v860_v2  ;;  %v870_v13 = vmul.f32 %v869_v37, %v860_v2  ;;  %v986_v10 = vadd.s32 536870912, %v985_v30  ;;  %vm1075_vm0 = vcmp.lt.s32.totalorder %v6625_v16, 2 }
  0xf6   : > { %v1082_v5 = vsel %vm1074_vm13, %v6636_v35, %v6638_v3  ;;  %vm875_vm1 = vweird.f32 %v6238_v14  ;;  %v1083_v23 = vsel %vm1077_vm15, %v1070_v29, 920167782  ;;  %vm878_vm2 = vcmp.lt.s32.totalorder %v877_v6, 2 }
  0xf7   : > { %v864_v19 = vadd.f32 -0.4999988, %v863_v27  ;;  %v871_v46 = vadd.f32 -0.16666654, %v870_v13  ;;  %v6648_v42 = vshrl.u32 %v986_v10, 30  ;;  %vm879_vm3 = vcmp.eq.s32.totalorder %v877_v6, 0 }
  0xf8   : > { %v1084_v61 = vsel %vm1076_vm14, %v1067_v62, %v1083_v23  ;;  %vm882_vm4 = vcmp.eq.s32.totalorder %v877_v6, 2  ;;  %v1087_v1 = vsel %vm1077_vm15, %v1073_v32, 1326507024  ;;  %v1091_v36 = vand.u32 65535, %v6644_v63 }
  0xf9   : > { %v865_v21 = vmul.f32 %v864_v19, %v860_v2  ;;  %v872_v50 = vmul.f32 %v871_v46, %v860_v2  ;;  %v988_v48 = vshll.u32 %v6648_v42, 30  ;;  %v1085_v43 = vsel %vm1075_vm0, %v1082_v5, %v1084_v61 }
  0xfa   : > { %v1086_v2 = vsel %vm1074_vm13, %v6638_v3, %v1067_v62  ;;  %v1088_v37 = vsel %vm1076_vm14, %v1070_v29, %v1087_v1  ;;  %v1092_v7 = vshrl.u32 %v6644_v63, 16  ;;  %v1116_v27 = vshrl.u32 %v1085_v43, 16 }
  0xfb   : > { %v866_v31 = vadd.f32 1.0, %v865_v21  ;;  %v873_v47 = vadd.f32 1.0, %v872_v50  ;;  %v6666_v45 = vsub.s32 %v985_v30, %v988_v48  ;;  %v1089_v30 = vsel %vm1075_vm0, %v1086_v2, %v1088_v37 }
  0xfc   : > { %v1093_v10 = vand.u32 65535, %v1089_v30  ;;  %v1094_v19 = vshrl.u32 %v1089_v30, 16  ;;  %v1058_v46 = vshrl.u32 %v9991_v11, %v6614_v53  ;;  %v1115_v29 = vand.u32 65535, %v1085_v43 }
  0xfd   : > { %v874_v17 = vmul.f32 %v873_v47, %v858_v12  ;;  %v883_v4 = vxor.u32 2147483648, %v866_v31  ;;  %vm990_vm5 = vcmp.lt.s32.totalorder %v6666_v45, 0  ;;  %v991_v15 = vsub.s32 0, %v6666_v45 }
  0xfe   : > { %v1200_v32 = vand.u32 2139095040, %v6174_v54  ;;  %vm889_vm6 = vcmp.lt.s32.totalorder %v6172_v40, 0  ;;  %v1095_v50 = vmul.u32 %v1093_v10, %v1091_v36  ;;  %v1096_v23 = vmul.u32 %v1094_v19, %v1091_v36 }
  0xff   : > { %v880_v13 = vxor.u32 2147483648, %v874_v17  ;;  %v884_v20 = vsel %vm882_vm4, %v883_v4, %v874_v17  ;;  %v992_v12 = vsel %vm990_vm5, %v991_v15, %v6666_v45  ;;  %v981_v61 = vadd.s32 %v6604_v56, %v6606_v49 }
 0x100   : > { %v993_v21 = vclz %v992_v12  ;;  %v1097_v47 = vmul.u32 %v1093_v10, %v1092_v7  ;;  %v1118_v2 = vmul.u32 %v1116_v27, %v1091_v36  ;;  %v1098_v1 = vmul.u32 %v1094_v19, %v1092_v7 }
 0x101   : > { %v881_v5 = vsel %vm879_vm3, %v866_v31, %v880_v13  ;;  %v1099_v17 = vshll.u32 %v1096_v23, 16  ;;  %v1011_v31 = vsub.s32 4, %v6648_v42  ;;  %v1078_v4 = vsel %vm1074_vm13, %v1058_v46, %v6636_v35 }
 0x102   : > { %v885_v48 = vsel %vm878_vm2, %v881_v5, %v884_v20  ;;  %v5510_v43 = vadd.s32 4294967294, %v993_v21  ;;  %v1079_v6 = vsel %vm1077_vm15, %v1067_v62, 2102212464  ;;  %v1101_v37 = vshll.u32 %v1097_v47, 16 }
 0x103   : > { %v886_v53 = vsel %vm875_vm1, nan, %v885_v48  ;;  %v10007_v56 = vand.u32 2147483647, %v6172_v40  ;;  %vm1103_vm9 = vc.u32 %v1095_v50, %v1099_v17  ;;  %v1105_v14 = vadd.s32 %v1099_v17, %v1095_v50 }
 0x104   : > { %5384 = vst [vmem:[%s6492_s26 + $0x10] sm:$0xff] %v886_v53  ;;  %vm5511_vm8 = vcmp.lt.s32.totalorder %v5510_v43, 0  ;;  %v1119_v15 = vmul.u32 %v1115_v29, %v1092_v7  ;;  %v1104_v13 = vsel %vm1103_vm9, 1, %v5768_v33  ;;  %v1117_v20 = vmul.u32 %v1115_v29, %v1091_v36 }
 0x105   : > { %vm6698_vm7 = vcmp.le.f32.partialorder %v10007_v56, 0.7853982  ;;  %v996_v30 = vsel %vm5511_vm8, 0, %v5510_v43  ;;  %v1121_v35 = vshll.u32 %v1118_v2, 16  ;;  %v1106_v12 = vadd.s32 %v1104_v13, %v1098_v1 }
 0x106   : > { %v997_v10 = vsub.s32 32, %v996_v30  ;;  %v998_v62 = vshll.u32 %v6666_v45, %v996_v30  ;;  %v1001_v19 = vsub.s32 4294967266, %v996_v30  ;;  %v1080_v46 = vsel %vm1076_vm14, %v6638_v3, %v1079_v6 }
 0x107   : > { %v1100_v5 = vshrl.u32 %v1096_v23, 16  ;;  %vm1107_vm10 = vc.u32 %v1105_v14, %v1101_v37  ;;  %v1120_v21 = vmul.u32 %v1116_v27, %v1092_v7  ;;  %v1123_v43 = vshll.u32 %v1119_v15, 16 }
 0x108   : > { %v999_v48 = vshrl.u32 %v981_v61, %v997_v10  ;;  %v1002_v50 = vadd.s32 127, %v1001_v19  ;;  %v1108_v53 = vsel %vm1107_vm10, 1, %v5768_v33  ;;  %v1012_v36 = vsel %vm889_vm6, %v1011_v31, %v6648_v42 }
 0x109   : > { %v1110_v29 = vadd.s32 %v1108_v53, %v1106_v12  ;;  %vm1125_vm11 = vc.u32 %v1117_v20, %v1121_v35  ;;  %v1127_v45 = vadd.s32 %v1121_v35, %v1117_v20  ;;  %v1102_v56 = vshrl.u32 %v1097_v47, 16 }
 0x10a   : > { %v1000_v1 = vor.u32 %v999_v48, %v998_v62  ;;  %v1003_v17 = vshll.u32 %v1002_v50, 23  ;;  %v1126_v3 = vsel %vm1125_vm11, 1, %v5768_v33  ;;  %v1122_v6 = vshrl.u32 %v1118_v2, 16 }
 0x10b   : > { %v1111_v23 = vadd.s32 %v1110_v29, %v1100_v5  ;;  %v1128_v7 = vadd.s32 %v1126_v3, %v1120_v21  ;;  %vm1129_vm12 = vc.u32 %v1127_v45, %v1123_v43  ;;  %v1201_v14 = vshrl.u32 %v1200_v32, 23 }
 0x10c   : > { %v1004_v27 = vor.u32 4788187, %v1003_v17  ;;  %v1007_v61 = vcvt.s32.f32 %v1000_v1  ;;  %v1130_v37 = vsel %vm1129_vm12, 1, %v5768_v33  ;;  %v1014_v42 = vsel %vm6698_vm7, 0, %v1012_v36 }
 0x10d   : > { %v1124_v31 = vshrl.u32 %v1119_v15, 16  ;;  %v1132_v30 = vadd.s32 %v1130_v37, %v1128_v7  ;;  %v1112_v20 = vadd.s32 %v1111_v23, %v1102_v56  ;;  %v1131_v35 = vadd.s32 %v1127_v45, %v1123_v43 }
 0x10e   : > { %v1005_v13 = vand.u32 2147483647, %v1004_v27  ;;  %v5515_v47 = vadd.s32 4294967169, %v1201_v14  ;;  %v1081_v10 = vsel %vm1075_vm0, %v1078_v4, %v1080_v46  ;;  %v1197_v62 = vand.u32 2147483647, %v6174_v54 }
 0x10f   : > { %v1133_v2 = vadd.s32 %v1132_v30, %v1122_v6  ;;  %v1031_v5 = vadd.s32 3, %v1014_v42  ;;  %v1135_v48 = vmul.u32 %v6644_v63, %v1081_v10  ;;  %vm1137_vm13 = vc.u32 %v1112_v20, %v1131_v35 }
 0x110   : > { %v1008_v19 = vmul.f32 %v1007_v61, %v1005_v13  ;;  %v1207_v12 = vadd.s32 1, %v5515_v47  ;;  %v1204_v50 = vand.u32 8388607, %v1197_v62  ;;  %v1352_v1 = vand.u32 2147483647, %v6158_v0 }
 0x111   : > { %v1134_v21 = vadd.s32 %v1133_v2, %v1124_v31  ;;  %v6728_v43 = vand.u32 3, %v1031_v5  ;;  %v1355_v49 = vand.u32 2139095040, %v6158_v0  ;;  %v6749_v10 = vadd.s32 %v1131_v35, %v1112_v20 }
 0x112   : > { %v1009_v32 = vxor.u32 2147483648, %v1008_v19  ;;  %vm1208_vm14 = vcmp.gt.s32.totalorder %v1207_v12, 0  ;;  %v1205_v17 = vor.u32 8388608, %v1204_v50  ;;  %vm1044_vm2 = vcmp.lt.s32.totalorder %v6155_v51, 0 }
 0x113   : > { %v1138_v15 = vadd.s32 1, %v1134_v21  ;;  %v1209_v53 = vsel %vm1208_vm14, %v1207_v12, 0  ;;  %vm1037_vm15 = vcmp.eq.s32.totalorder %v6728_v43, 2  ;;  %v1356_v12 = vshrl.u32 %v1355_v49, 23 }
 0x114   : > { %v1010_v16 = vsel %vm889_vm6, %v1009_v32, %v1008_v19  ;;  %v1211_v4 = vand.u32 31, %v1209_v53  ;;  %v6751_v2 = vshrl.u32 %v1209_v53, 5  ;;  %vm1034_vm0 = vcmp.eq.s32.totalorder %v6728_v43, 0 }
 0x115   : > { %v6726_v46 = vsel %vm6698_vm7, %v6172_v40, %v1010_v16  ;;  %v1139_v36 = vsel %vm1137_vm13, %v1138_v15, %v1134_v21  ;;  %vm1033_vm1 = vcmp.lt.s32.totalorder %v6728_v43, 2  ;;  %vm1030_vm3 = vweird.f32 %v6172_v40 }
 0x116   : > { %v1015_v63 = vmul.f32 %v6726_v46, %v6726_v46  ;;  %v1140_v29 = vadd.s32 %v1139_v36, %v1135_v48  ;;  %v6732_v45 = vsub.s32 32, %v1211_v4  ;;  %v1214_v56 = vshll.u32 %v9991_v11, %v1211_v4 }
 0x117   : > { %v1217_v3 = vshll.u32 %v9992_v34, %v1211_v4  ;;  %v1220_v27 = vshll.u32 %v9993_v22, %v1211_v4  ;;  %v1223_v42 = vshll.u32 %v9994_v9, %v1211_v4  ;;  %v1226_v19 = vshll.u32 %v9995_v44, %v1211_v4 }
 0x118   : > { %v1016_v23 = vmul.f32 -0.001358992, %v1015_v63  ;;  %v1023_v6 = vmul.f32 -0.00019511016, %v1015_v63  ;;  %v1141_v7 = vadd.s32 536870912, %v1140_v29  ;;  %v1215_v61 = vshrl.u32 %v9992_v34, %v6732_v45 }
 0x119   : > { %v1218_v37 = vshrl.u32 %v9993_v22, %v6732_v45  ;;  %v1221_v14 = vshrl.u32 %v9994_v9, %v6732_v45  ;;  %v1224_v47 = vshrl.u32 %v9995_v44, %v6732_v45  ;;  %v6754_v48 = vshll.u32 %v1205_v17, 8 }
 0x11a   : > { %v1017_v31 = vadd.f32 0.041655596, %v1016_v23  ;;  %v1024_v30 = vadd.f32 0.008332121, %v1023_v6  ;;  %v1142_v13 = vshrl.u32 %v1141_v7, 30  ;;  %v6757_v15 = vor.u32 %v1215_v61, %v1214_v56 }
 0x11b   : > { %v6759_v50 = vor.u32 %v1218_v37, %v1217_v3  ;;  %v1225_v16 = vor.u32 %v1224_v47, %v1223_v42  ;;  %v1227_v20 = vshrl.u32 %v9996_v8, %v6732_v45  ;;  %v1222_v36 = vor.u32 %v1221_v14, %v1220_v27 }
 0x11c   : > { %v1018_v5 = vmul.f32 %v1017_v31, %v1015_v63  ;;  %v1025_v21 = vmul.f32 %v1024_v30, %v1015_v63  ;;  %v1143_v32 = vshll.u32 %v1142_v13, 30  ;;  %vm1229_vm4 = vcmp.lt.s32.totalorder %v6751_v2, 1 }
 0x11d   : > { %v1228_v17 = vor.u32 %v1227_v20, %v1226_v19  ;;  %vm1231_vm5 = vcmp.lt.s32.totalorder %v6751_v2, 3  ;;  %vm1232_vm6 = vcmp.lt.s32.totalorder %v6751_v2, 4  ;;  %vm6771_vm8 = vcmp.le.f32.partialorder %v1042_v18, 0.7853982 }
 0x11e   : > { %v1019_v35 = vadd.f32 -0.4999988, %v1018_v5  ;;  %v1026_v53 = vadd.f32 -0.16666654, %v1025_v21  ;;  %v1144_v4 = vsub.s32 %v1140_v29, %v1143_v32  ;;  %vm1230_vm9 = vcmp.lt.s32.totalorder %v6751_v2, 2 }
 0x11f   : > { %v1238_v29 = vsel %vm1232_vm6, %v1225_v16, 920167782  ;;  %v5518_v6 = vadd.s32 4294967169, %v1356_v12  ;;  %v6780_v7 = vand.u32 8388607, %v1352_v1  ;;  %v1237_v18 = vsel %vm1229_vm4, %v6757_v15, %v6759_v50 }
 0x120   : > { %v1020_v56 = vmul.f32 %v1019_v35, %v1015_v63  ;;  %v1027_v3 = vmul.f32 %v1026_v53, %v1015_v63  ;;  %vm1145_vm7 = vcmp.lt.s32.totalorder %v1144_v4, 0  ;;  %v1146_v49 = vsub.s32 0, %v1144_v4 }
 0x121   : > { %v1166_v14 = vsub.s32 4, %v1142_v13  ;;  %v1239_v42 = vsel %vm1231_vm5, %v1222_v36, %v1238_v29  ;;  %v1241_v31 = vsel %vm1229_vm4, %v6759_v50, %v1222_v36  ;;  %v1242_v19 = vsel %vm1232_vm6, %v1228_v17, 1326507024 }
 0x122   : > { %v1021_v27 = vadd.f32 1.0, %v1020_v56  ;;  %v1028_v63 = vadd.f32 1.0, %v1027_v3  ;;  %v1147_v61 = vsel %vm1145_vm7, %v1146_v49, %v1144_v4  ;;  %v1246_v12 = vand.u32 65535, %v6754_v48 }
 0x123   : > { %v1148_v37 = vclz %v1147_v61  ;;  %v1240_v21 = vsel %vm1230_vm9, %v1237_v18, %v1239_v42  ;;  %v1243_v32 = vsel %vm1231_vm5, %v1225_v16, %v1242_v19  ;;  %v1247_v20 = vshrl.u32 %v6754_v48, 16 }
 0x124   : > { %v1029_v30 = vmul.f32 %v1028_v63, %v6726_v46  ;;  %v1038_v47 = vxor.u32 2147483648, %v1021_v27  ;;  %v1244_v46 = vsel %vm1230_vm9, %v1241_v31, %v1243_v32  ;;  %v1362_v56 = vadd.s32 1, %v5518_v6 }
 0x125   : > { %v5513_v5 = vadd.s32 4294967294, %v1148_v37  ;;  %v1167_v17 = vsel %vm1044_vm2, %v1166_v14, %v1142_v13  ;;  %v1248_v3 = vand.u32 65535, %v1244_v46  ;;  %v1249_v49 = vshrl.u32 %v1244_v46, 16 }
 0x126   : > { %v1035_v35 = vxor.u32 2147483648, %v1029_v30  ;;  %v1039_v53 = vsel %vm1037_vm15, %v1038_v47, %v1029_v30  ;;  %v1270_v63 = vand.u32 65535, %v1240_v21  ;;  %v1271_v61 = vshrl.u32 %v1240_v21, 16 }
 0x127   : > { %vm5514_vm10 = vcmp.lt.s32.totalorder %v5513_v5, 0  ;;  %v1169_v13 = vsel %vm6771_vm8, 0, %v1167_v17  ;;  %v1213_v14 = vshrl.u32 %v9991_v11, %v6732_v45  ;;  %v1250_v43 = vmul.u32 %v1248_v3, %v1246_v12 }
 0x128   : > { %v1036_v29 = vsel %vm1034_vm0, %v1021_v27, %v1035_v35  ;;  %v1151_v16 = vsel %vm5514_vm10, 0, %v5513_v5  ;;  %v1234_v27 = vsel %vm1232_vm6, %v1222_v36, 2102212464  ;;  %v1251_v19 = vmul.u32 %v1249_v49, %v1246_v12 }
 0x129   : > { %v1040_v18 = vsel %vm1033_vm1, %v1036_v29, %v1039_v53  ;;  %v1152_v37 = vsub.s32 32, %v1151_v16  ;;  %v1153_v42 = vshll.u32 %v1144_v4, %v1151_v16  ;;  %v1156_v31 = vsub.s32 4294967266, %v1151_v16 }
 0x12a   : > { %v1041_v6 = vsel %vm1030_vm3, nan, %v1040_v18  ;;  %v1252_v4 = vmul.u32 %v1248_v3, %v1247_v20  ;;  %v1272_v5 = vmul.u32 %v1270_v63, %v1246_v12  ;;  %v1273_v21 = vmul.u32 %v1271_v61, %v1246_v12 }
 0x12b   : > { %v1154_v30 = vshrl.u32 %v6749_v10, %v1152_v37  ;;  %v1157_v47 = vadd.s32 127, %v1156_v31  ;;  %5385 = vst [vmem:[%s6492_s26 + $0x18] sm:$0xff] %v1041_v6  ;;  %v1274_v40 = vmul.u32 %v1270_v63, %v1247_v20  ;;  %v1253_v53 = vmul.u32 %v1249_v49, %v1247_v20 }
 0x12c   : > { %v1254_v46 = vshll.u32 %v1251_v19, 16  ;;  %v1233_v45 = vsel %vm1229_vm4, %v1213_v14, %v6757_v15  ;;  %v1256_v17 = vshll.u32 %v1252_v4, 16  ;;  %v1275_v36 = vmul.u32 %v1271_v61, %v1247_v20 }
 0x12d   : > { %v1155_v32 = vor.u32 %v1154_v30, %v1153_v42  ;;  %v1158_v35 = vshll.u32 %v1157_v47, 23  ;;  %v1276_v29 = vshll.u32 %v1273_v21, 16  ;;  %v1235_v12 = vsel %vm1231_vm5, %v6759_v50, %v1234_v27 }
 0x12e   : > { %vm1258_vm11 = vc.u32 %v1250_v43, %v1254_v46  ;;  %v1260_v18 = vadd.s32 %v1254_v46, %v1250_v43  ;;  %v1255_v3 = vshrl.u32 %v1251_v19, 16  ;;  %v1278_v49 = vshll.u32 %v1274_v40, 16 }
 0x12f   : > { %v1159_v10 = vor.u32 4788187, %v1158_v35  ;;  %v1162_v16 = vcvt.s32.f32 %v1155_v32  ;;  %v1259_v63 = vsel %vm1258_vm11, 1, %v5768_v33  ;;  %vm1280_vm13 = vc.u32 %v1272_v5, %v1276_v29 }
 0x130   : > { %v1261_v42 = vadd.s32 %v1259_v63, %v1253_v53  ;;  %vm1262_vm12 = vc.u32 %v1260_v18, %v1256_v17  ;;  %v1257_v15 = vshrl.u32 %v1252_v4, 16  ;;  %v1281_v61 = vsel %vm1280_vm13, 1, %v5768_v33 }
 0x131   : > { %v1160_v37 = vand.u32 2147483647, %v1159_v10  ;;  %v1263_v20 = vsel %vm1262_vm12, 1, %v5768_v33  ;;  %v1282_v31 = vadd.s32 %v1276_v29, %v1272_v5  ;;  %v1283_v30 = vadd.s32 %v1281_v61, %v1275_v36 }
 0x132   : > { %v1265_v14 = vadd.s32 %v1263_v20, %v1261_v42  ;;  %vm1363_vm14 = vcmp.gt.s32.totalorder %v1362_v56, 0  ;;  %v1236_v50 = vsel %vm1230_vm9, %v1233_v45, %v1235_v12  ;;  %v1277_v27 = vshrl.u32 %v1273_v21, 16 }
 0x133   : > { %v1163_v6 = vmul.f32 %v1162_v16, %v1160_v37  ;;  %vm1284_vm15 = vc.u32 %v1282_v31, %v1278_v49  ;;  %v1364_v47 = vsel %vm1363_vm14, %v1362_v56, 0  ;;  %v1186_v19 = vadd.s32 3, %v1169_v13 }
 0x134   : > { %v1266_v32 = vadd.s32 %v1265_v14, %v1255_v3  ;;  %v1285_v4 = vsel %vm1284_vm15, 1, %v5768_v33  ;;  %v1279_v35 = vshrl.u32 %v1274_v40, 16  ;;  %v6832_v53 = vadd.s32 %v1282_v31, %v1278_v49 }
 0x135   : > { %v1164_v43 = vxor.u32 2147483648, %v1163_v6  ;;  %v1287_v46 = vadd.s32 %v1285_v4, %v1283_v30  ;;  %v1366_v5 = vand.u32 31, %v1364_v47  ;;  %v1360_v13 = vor.u32 8388608, %v6780_v7 }
 0x136   : > { %v6836_v36 = vadd.s32 %v1266_v32, %v1257_v15  ;;  %v6842_v29 = vand.u32 3, %v1186_v19  ;;  %v1290_v40 = vmul.u32 %v6754_v48, %v1236_v50  ;;  %v6845_v10 = vshrl.u32 %v1364_v47, 5 }
 0x137   : > { %v1165_v17 = vsel %vm1044_vm2, %v1164_v43, %v1163_v6  ;;  %v1288_v56 = vadd.s32 %v1287_v46, %v1277_v27  ;;  %v1367_v21 = vsub.s32 32, %v1366_v5  ;;  %v1369_v18 = vshll.u32 %v9991_v11, %v1366_v5 }
 0x138   : > { %v1168_v2 = vsel %vm6771_vm8, %v6155_v51, %v1165_v17  ;;  %vm1292_vm0 = vc.u32 %v6836_v36, %v6832_v53  ;;  %v1372_v7 = vshll.u32 %v9992_v34, %v1366_v5  ;;  %v1375_v37 = vshll.u32 %v9993_v22, %v1366_v5 }
 0x139   : > { %v1170_v45 = vmul.f32 %v1168_v2, %v1168_v2  ;;  %v1289_v16 = vadd.s32 %v1288_v56, %v1279_v35  ;;  %v1370_v23 = vshrl.u32 %v9992_v34, %v1367_v21  ;;  %v1373_v63 = vshrl.u32 %v9993_v22, %v1367_v21 }
 0x13a   : > { %v1376_v48 = vshrl.u32 %v9994_v9, %v1367_v21  ;;  %v1378_v42 = vshll.u32 %v9994_v9, %v1366_v5  ;;  %v1379_v61 = vshrl.u32 %v9995_v44, %v1367_v21  ;;  %vm1384_vm1 = vcmp.lt.s32.totalorder %v6845_v10, 1 }
 0x13b   : > { %v1171_v12 = vmul.f32 -0.001358992, %v1170_v45  ;;  %v1178_v3 = vmul.f32 -0.00019511016, %v1170_v45  ;;  %v1293_v49 = vadd.s32 1, %v1289_v16  ;;  %v1371_v6 = vor.u32 %v1370_v23, %v1369_v18 }
 0x13c   : > { %v1381_v14 = vshll.u32 %v9995_v44, %v1366_v5  ;;  %v1382_v30 = vshrl.u32 %v9996_v8, %v1367_v21  ;;  %v1374_v43 = vor.u32 %v1373_v63, %v1372_v7  ;;  %v1377_v19 = vor.u32 %v1376_v48, %v1375_v37 }
 0x13d   : > { %v1172_v15 = vadd.f32 0.041655596, %v1171_v12  ;;  %v1179_v20 = vadd.f32 0.008332121, %v1178_v3  ;;  %v1294_v31 = vsel %vm1292_vm0, %v1293_v49, %v1289_v16  ;;  %v1380_v32 = vor.u32 %v1379_v61, %v1378_v42 }
 0x13e   : > { %v1295_v47 = vadd.s32 %v1294_v31, %v1290_v40  ;;  %v1383_v4 = vor.u32 %v1382_v30, %v1381_v14  ;;  %vm1387_vm2 = vcmp.lt.s32.totalorder %v6845_v10, 4  ;;  %vm1386_vm3 = vcmp.lt.s32.totalorder %v6845_v10, 3 }
 0x13f   : > { %v1173_v50 = vmul.f32 %v1172_v15, %v1170_v45  ;;  %v1180_v27 = vmul.f32 %v1179_v20, %v1170_v45  ;;  %vm1385_vm4 = vcmp.lt.s32.totalorder %v6845_v10, 2  ;;  %v1393_v5 = vsel %vm1387_vm2, %v1380_v32, 920167782 }
 0x140   : > { %v1296_v17 = vadd.s32 536870912, %v1295_v47  ;;  %v6865_v56 = vshll.u32 %v1360_v13, 8  ;;  %v1392_v23 = vsel %vm1384_vm1, %v1371_v6, %v1374_v43  ;;  %vm1188_vm5 = vcmp.lt.s32.totalorder %v6842_v29, 2 }
 0x141   : > { %v1174_v35 = vadd.f32 -0.4999988, %v1173_v50  ;;  %v1181_v46 = vadd.f32 -0.16666654, %v1180_v27  ;;  %v1394_v12 = vsel %vm1386_vm3, %v1377_v19, %v1393_v5  ;;  %v1397_v3 = vsel %vm1387_vm2, %v1383_v4, 1326507024 }
 0x142   : > { %v6867_v18 = vshrl.u32 %v1296_v17, 30  ;;  %vm1189_vm6 = vcmp.eq.s32.totalorder %v6842_v29, 0  ;;  %vm1192_vm7 = vcmp.eq.s32.totalorder %v6842_v29, 2  ;;  %v1395_v49 = vsel %vm1385_vm4, %v1392_v23, %v1394_v12 }
 0x143   : > { %v1175_v16 = vmul.f32 %v1174_v35, %v1170_v45  ;;  %v1182_v40 = vmul.f32 %v1181_v46, %v1170_v45  ;;  %v1396_v45 = vsel %vm1384_vm1, %v1374_v43, %v1377_v19  ;;  %v1398_v37 = vsel %vm1386_vm3, %v1380_v32, %v1397_v3 }
 0x144   : > { %v1298_v13 = vshll.u32 %v6867_v18, 30  ;;  %v1401_v20 = vand.u32 65535, %v6865_v56  ;;  %v1368_v61 = vshrl.u32 %v9991_v11, %v1367_v21  ;;  %v1399_v31 = vsel %vm1385_vm4, %v1396_v45, %v1398_v37 }
 0x145   : > { %v1176_v7 = vadd.f32 1.0, %v1175_v16  ;;  %v1183_v63 = vadd.f32 1.0, %v1182_v40  ;;  %v1402_v14 = vshrl.u32 %v6865_v56, 16  ;;  %v1426_v30 = vshrl.u32 %v1395_v49, 16 }
 0x146   : > { %v1299_v15 = vsub.s32 %v1295_v47, %v1298_v13  ;;  %vm1185_vm9 = vweird.f32 %v6155_v51  ;;  %vm1199_vm10 = vcmp.lt.s32.totalorder %v6174_v54, 0  ;;  %v1403_v47 = vand.u32 65535, %v1399_v31 }
 0x147   : > { %v1184_v48 = vmul.f32 %v1183_v63, %v1168_v2  ;;  %v1193_v42 = vxor.u32 2147483648, %v1176_v7  ;;  %v1389_v2 = vsel %vm1387_vm2, %v1377_v19, 2102212464  ;;  %v1404_v32 = vshrl.u32 %v1399_v31, 16 }
 0x148   : > { %vm1300_vm8 = vcmp.lt.s32.totalorder %v1299_v15, 0  ;;  %v1301_v4 = vsub.s32 0, %v1299_v15  ;;  %v1425_v46 = vand.u32 65535, %v1395_v49  ;;  %v6896_v17 = vmul.u32 %v1426_v30, %v1401_v20 }
 0x149   : > { %v1190_v50 = vxor.u32 2147483648, %v1184_v48  ;;  %v1194_v27 = vsel %vm1192_vm7, %v1193_v42, %v1184_v48  ;;  %v1405_v51 = vmul.u32 %v1403_v47, %v1401_v20  ;;  %v1406_v40 = vmul.u32 %v1404_v32, %v1401_v20 }
 0x14a   : > { %v1302_v35 = vsel %vm1300_vm8, %v1301_v4, %v1299_v15  ;;  %v1291_v19 = vadd.s32 %v6832_v53, %v6836_v36  ;;  %v1388_v12 = vsel %vm1384_vm1, %v1368_v61, %v1371_v6  ;;  %v1407_v3 = vmul.u32 %v1403_v47, %v1402_v14 }
 0x14b   : > { %v1191_v21 = vsel %vm1189_vm6, %v1176_v7, %v1190_v50  ;;  %v1303_v16 = vclz %v1302_v35  ;;  %v1390_v63 = vsel %vm1386_vm3, %v1374_v43, %v1389_v2  ;;  %v1408_v13 = vmul.u32 %v1404_v32, %v1402_v14 }
 0x14c   : > { %v1195_v5 = vsel %vm1188_vm5, %v1191_v21, %v1194_v27  ;;  %v1409_v45 = vshll.u32 %v1406_v40, 16  ;;  %v1321_v29 = vsub.s32 4, %v6867_v18  ;;  %v1411_v49 = vshll.u32 %v1407_v3, 16 }
 0x14d   : > { %v1196_v23 = vsel %vm1185_vm9, nan, %v1195_v5  ;;  %v5516_v7 = vadd.s32 4294967294, %v1303_v16  ;;  %v1427_v37 = vmul.u32 %v1425_v46, %v1401_v20  ;;  %v1429_v48 = vmul.u32 %v1425_v46, %v1402_v14 }
 0x14e   : > { %5386 = vst [vmem:[%s6492_s26 + $0x20] sm:$0xff] %v1196_v23  ;;  %vm6910_vm11 = vcmp.le.f32.partialorder %v1197_v62, 0.7853982  ;;  %vm1413_vm13 = vc.u32 %v1405_v51, %v1409_v45  ;;  %v1415_v36 = vadd.s32 %v1409_v45, %v1405_v51  ;;  %v1431_v6 = vshll.u32 %v6896_v17, 16 }
 0x14f   : > { %vm5517_vm12 = vcmp.lt.s32.totalorder %v5516_v7, 0  ;;  %v1414_v42 = vsel %vm1413_vm13, 1, %v5768_v33  ;;  %v1430_v61 = vmul.u32 %v1426_v30, %v1402_v14  ;;  %v1510_v31 = vand.u32 2139095040, %v6176_v25 }
 0x150   : > { %v1306_v43 = vsel %vm5517_vm12, 0, %v5516_v7  ;;  %v1416_v4 = vadd.s32 %v1414_v42, %v1408_v13  ;;  %v1322_v62 = vsel %vm1199_vm10, %v1321_v29, %v6867_v18  ;;  %v1410_v2 = vshrl.u32 %v1406_v40, 16 }
 0x151   : > { %v1307_v50 = vsub.s32 32, %v1306_v43  ;;  %v1308_v20 = vshll.u32 %v1299_v15, %v1306_v43  ;;  %v1311_v27 = vsub.s32 4294967266, %v1306_v43  ;;  %vm1417_vm14 = vc.u32 %v1415_v36, %v1411_v49 }
 0x152   : > { %v1433_v47 = vshll.u32 %v1429_v48, 16  ;;  %v1418_v35 = vsel %vm1417_vm14, 1, %v5768_v33  ;;  %vm1435_vm15 = vc.u32 %v1427_v37, %v1431_v6  ;;  %v1437_v30 = vadd.s32 %v1431_v6, %v1427_v37 }
 0x153   : > { %v1309_v32 = vshrl.u32 %v1291_v19, %v1307_v50  ;;  %v1312_v21 = vadd.s32 127, %v1311_v27  ;;  %v1420_v46 = vadd.s32 %v1418_v35, %v1416_v4  ;;  %v1436_v14 = vsel %vm1435_vm15, 1, %v5768_v33 }
 0x154   : > { %v1511_v5 = vshrl.u32 %v1510_v31, 23  ;;  %v1412_v51 = vshrl.u32 %v1407_v3, 16  ;;  %v1438_v23 = vadd.s32 %v1436_v14, %v1430_v61  ;;  %v1432_v18 = vshrl.u32 %v6896_v17, 16 }
 0x155   : > { %v1310_v15 = vor.u32 %v1309_v32, %v1308_v20  ;;  %v1313_v16 = vshll.u32 %v1312_v21, 23  ;;  %v1421_v7 = vadd.s32 %v1420_v46, %v1410_v2  ;;  %vm1439_vm0 = vc.u32 %v1437_v30, %v1433_v47 }
 0x156   : > { %v5521_v40 = vadd.s32 4294967169, %v1511_v5  ;;  %v1440_v45 = vsel %vm1439_vm0, 1, %v5768_v33  ;;  %v1507_v29 = vand.u32 2147483647, %v6176_v25  ;;  %v1324_v49 = vsel %vm6910_vm11, 0, %v1322_v62 }
 0x157   : > { %v1314_v13 = vor.u32 4788187, %v1313_v16  ;;  %v1317_v19 = vcvt.s32.f32 %v1310_v15  ;;  %v1434_v37 = vshrl.u32 %v1429_v48, 16  ;;  %v1442_v36 = vadd.s32 %v1440_v45, %v1438_v23 }
 0x158   : > { %v1517_v6 = vadd.s32 1, %v5521_v40  ;;  %v6927_v3 = vadd.s32 %v1421_v7, %v1412_v51  ;;  %v6929_v42 = vadd.s32 %v1437_v30, %v1433_v47  ;;  %v1391_v17 = vsel %vm1385_vm4, %v1388_v12, %v1390_v63 }
 0x159   : > { %v1315_v43 = vand.u32 2147483647, %v1314_v13  ;;  %v1443_v61 = vadd.s32 %v1442_v36, %v1432_v18  ;;  %v1341_v50 = vadd.s32 3, %v1324_v49  ;;  %v1514_v20 = vand.u32 8388607, %v1507_v29 }
 0x15a   : > { %vm1518_vm1 = vcmp.gt.s32.totalorder %v1517_v6, 0  ;;  %v1445_v2 = vmul.u32 %v6865_v56, %v1391_v17  ;;  %vm1447_vm2 = vc.u32 %v6927_v3, %v6929_v42  ;;  %vm1340_vm9 = vweird.f32 %v6174_v54 }
 0x15b   : > { %v1318_v31 = vmul.f32 %v1317_v19, %v1315_v43  ;;  %v1519_v27 = vsel %vm1518_vm1, %v1517_v6, 0  ;;  %v1444_v4 = vadd.s32 %v1443_v61, %v1434_v37  ;;  %v6940_v12 = vand.u32 3, %v1341_v50 }
 0x15c   : > { %v1521_v48 = vand.u32 31, %v1519_v27  ;;  %v1515_v63 = vor.u32 8388608, %v1514_v20  ;;  %v6947_v46 = vshrl.u32 %v1519_v27, 5  ;;  %vm1354_vm12 = vcmp.lt.s32.totalorder %v6158_v0, 0 }
 0x15d   : > { %v1319_v62 = vxor.u32 2147483648, %v1318_v31  ;;  %v1448_v47 = vadd.s32 1, %v1444_v4  ;;  %vm1347_vm3 = vcmp.eq.s32.totalorder %v6940_v12, 2  ;;  %vm1344_vm6 = vcmp.eq.s32.totalorder %v6940_v12, 0 }
 0x15e   : > { %v1522_v32 = vsub.s32 32, %v1521_v48  ;;  %v1527_v56 = vshll.u32 %v9992_v34, %v1521_v48  ;;  %v1530_v5 = vshll.u32 %v9993_v22, %v1521_v48  ;;  %v1533_v15 = vshll.u32 %v9994_v9, %v1521_v48 }
 0x15f   : > { %v1320_v10 = vsel %vm1199_vm10, %v1319_v62, %v1318_v31  ;;  %v1449_v35 = vsel %vm1447_vm2, %v1448_v47, %v1444_v4  ;;  %v1536_v23 = vshll.u32 %v9995_v44, %v1521_v48  ;;  %v1524_v13 = vshll.u32 %v9991_v11, %v1521_v48 }
 0x160   : > { %v6945_v21 = vsel %vm6910_vm11, %v6174_v54, %v1320_v10  ;;  %v1450_v30 = vadd.s32 %v1449_v35, %v1445_v2  ;;  %v1528_v16 = vshrl.u32 %v9993_v22, %v1522_v32  ;;  %v1531_v51 = vshrl.u32 %v9994_v9, %v1522_v32 }
 0x161   : > { %v1325_v14 = vmul.f32 %v6945_v21, %v6945_v21  ;;  %v1534_v53 = vshrl.u32 %v9995_v44, %v1522_v32  ;;  %v1525_v19 = vshrl.u32 %v9992_v34, %v1522_v32  ;;  %v1537_v45 = vshrl.u32 %v9996_v8, %v1522_v32 }
 0x162   : > { %v1451_v40 = vadd.s32 536870912, %v1450_v30  ;;  %v6961_v49 = vshll.u32 %v1515_v63, 8  ;;  %v6966_v17 = vor.u32 %v1528_v16, %v1527_v56  ;;  %v6968_v61 = vor.u32 %v1531_v51, %v1530_v5 }
 0x163   : > { %v1326_v7 = vmul.f32 -0.001358992, %v1325_v14  ;;  %v1333_v18 = vmul.f32 -0.00019511016, %v1325_v14  ;;  %v1535_v43 = vor.u32 %v1534_v53, %v1533_v15  ;;  %v1538_v31 = vor.u32 %v1537_v45, %v1536_v23 }
 0x164   : > { %v6963_v6 = vshrl.u32 %v1451_v40, 30  ;;  %vm1542_vm4 = vcmp.lt.s32.totalorder %v6947_v46, 4  ;;  %vm1539_vm5 = vcmp.lt.s32.totalorder %v6947_v46, 1  ;;  %v1526_v4 = vor.u32 %v1525_v19, %v1524_v13 }
 0x165   : > { %v1327_v37 = vadd.f32 0.041655596, %v1326_v7  ;;  %v1334_v36 = vadd.f32 0.008332121, %v1333_v18  ;;  %vm1541_vm7 = vcmp.lt.s32.totalorder %v6947_v46, 3  ;;  %v6976_v48 = vand.u32 65535, %v6961_v49 }
 0x166   : > { %v1453_v27 = vshll.u32 %v6963_v6, 30  ;;  %v1665_v62 = vand.u32 2139095040, %v6161_v28  ;;  %vm1343_vm8 = vcmp.lt.s32.totalorder %v6940_v12, 2  ;;  %v1548_v63 = vsel %vm1542_vm4, %v1535_v43, 920167782 }
 0x167   : > { %v1328_v50 = vmul.f32 %v1327_v37, %v1325_v14  ;;  %v1335_v20 = vmul.f32 %v1334_v36, %v1325_v14  ;;  %vm1540_vm10 = vcmp.lt.s32.totalorder %v6947_v46, 2  ;;  %v1551_v35 = vsel %vm1539_vm5, %v6966_v17, %v6968_v61 }
 0x168   : > { %v6980_v10 = vsub.s32 %v1450_v30, %v1453_v27  ;;  %v1552_v56 = vsel %vm1542_vm4, %v1538_v31, 1326507024  ;;  %v1557_v5 = vshrl.u32 %v6961_v49, 16  ;;  %v1523_v51 = vshrl.u32 %v9991_v11, %v1522_v32 }
 0x169   : > { %v1329_v2 = vadd.f32 -0.4999988, %v1328_v50  ;;  %v1336_v47 = vadd.f32 -0.16666654, %v1335_v20  ;;  %v1547_v53 = vsel %vm1539_vm5, %v1526_v4, %v6966_v17  ;;  %v1549_v23 = vsel %vm1541_vm7, %v6968_v61, %v1548_v63 }
 0x16a   : > { %vm1455_vm11 = vcmp.lt.s32.totalorder %v6980_v10, 0  ;;  %v1456_v16 = vsub.s32 0, %v6980_v10  ;;  %v1553_v7 = vsel %vm1541_vm7, %v1535_v43, %v1552_v56  ;;  %v1662_v37 = vand.u32 2147483647, %v6161_v28 }
 0x16b   : > { %v1330_v15 = vmul.f32 %v1329_v2, %v1325_v14  ;;  %v1337_v30 = vmul.f32 %v1336_v47, %v1325_v14  ;;  %v1554_v13 = vsel %vm1540_vm10, %v1551_v35, %v1553_v7  ;;  %v1446_v50 = vadd.s32 %v6929_v42, %v6927_v3 }
 0x16c   : > { %v1457_v40 = vsel %vm1455_vm11, %v1456_v16, %v6980_v10  ;;  %v1558_v32 = vand.u32 65535, %v1554_v13  ;;  %v1559_v45 = vshrl.u32 %v1554_v13, 16  ;;  %v1666_v20 = vshrl.u32 %v1665_v62, 23 }
 0x16d   : > { %v1331_v14 = vadd.f32 1.0, %v1330_v15  ;;  %v1338_v18 = vadd.f32 1.0, %v1337_v30  ;;  %v1458_v19 = vclz %v1457_v40  ;;  %v1543_v27 = vsel %vm1539_vm5, %v1523_v51, %v1526_v4 }
 0x16e   : > { %v1550_v2 = vsel %vm1540_vm10, %v1547_v53, %v1549_v23  ;;  %v1561_v47 = vmul.u32 %v1559_v45, %v6976_v48  ;;  %v1562_v56 = vmul.u32 %v1558_v32, %v1557_v5  ;;  %v1560_v3 = vmul.u32 %v1558_v32, %v6976_v48 }
 0x16f   : > { %v1339_v36 = vmul.f32 %v1338_v18, %v6945_v21  ;;  %v1348_v31 = vxor.u32 2147483648, %v1331_v14  ;;  %v5519_v43 = vadd.s32 4294967294, %v1458_v19  ;;  %v1476_v21 = vsub.s32 4, %v6963_v6 }
 0x170   : > { %v1564_v42 = vshll.u32 %v1561_v47, 16  ;;  %v1580_v62 = vand.u32 65535, %v1550_v2  ;;  %v1563_v30 = vmul.u32 %v1559_v45, %v1557_v5  ;;  %v1581_v16 = vshrl.u32 %v1550_v2, 16 }
 0x171   : > { %v1345_v63 = vxor.u32 2147483648, %v1339_v36  ;;  %v1349_v35 = vsel %vm1347_vm3, %v1348_v31, %v1339_v36  ;;  %vm5520_vm13 = vcmp.lt.s32.totalorder %v5519_v43, 0  ;;  %vm7030_vm14 = vcmp.le.f32.partialorder %v1352_v1, 0.7853982 }
 0x172   : > { %v1461_v15 = vsel %vm5520_vm13, 0, %v5519_v43  ;;  %v1544_v12 = vsel %vm1542_vm4, %v6968_v61, 2102212464  ;;  %v1566_v13 = vshll.u32 %v1562_v56, 16  ;;  %vm1568_vm15 = vc.u32 %v1560_v3, %v1564_v42 }
 0x173   : > { %v1346_v4 = vsel %vm1344_vm6, %v1331_v14, %v1345_v63  ;;  %v1462_v53 = vsub.s32 32, %v1461_v15  ;;  %v1463_v23 = vshll.u32 %v6980_v10, %v1461_v15  ;;  %v1466_v7 = vsub.s32 4294967266, %v1461_v15 }
 0x174   : > { %v1350_v51 = vsel %vm1343_vm8, %v1346_v4, %v1349_v35  ;;  %v1477_v14 = vsel %vm1354_vm12, %v1476_v21, %v6963_v6  ;;  %v5524_v54 = vadd.s32 4294967169, %v1666_v20  ;;  %v1569_v32 = vsel %vm1568_vm15, 1, %v5768_v33 }
 0x175   : > { %v1351_v18 = vsel %vm1340_vm9, nan, %v1350_v51  ;;  %v1464_v10 = vshrl.u32 %v1446_v50, %v1462_v53  ;;  %v1467_v19 = vadd.s32 127, %v1466_v7  ;;  %v1570_v1 = vadd.s32 %v1564_v42, %v1560_v3 }
 0x176   : > { %5387 = vst [vmem:[%s6492_s26 + $0x28] sm:$0xff] %v1351_v18  ;;  %v1582_v45 = vmul.u32 %v1580_v62, %v6976_v48  ;;  %v1583_v36 = vmul.u32 %v1581_v16, %v6976_v48  ;;  %v1571_v6 = vadd.s32 %v1569_v32, %v1563_v30  ;;  %v1584_v2 = vmul.u32 %v1580_v62, %v1557_v5 }
 0x177   : > { %v1465_v31 = vor.u32 %v1464_v10, %v1463_v23  ;;  %v1468_v43 = vshll.u32 %v1467_v19, 23  ;;  %v1565_v63 = vshrl.u32 %v1561_v47, 16  ;;  %vm1572_vm0 = vc.u32 %v1570_v1, %v1566_v13 }
 0x178   : > { %v1585_v61 = vmul.u32 %v1581_v16, %v1557_v5  ;;  %v1586_v35 = vshll.u32 %v1583_v36, 16  ;;  %v1573_v20 = vsel %vm1572_vm0, 1, %v5768_v33  ;;  %v1588_v4 = vshll.u32 %v1584_v2, 16 }
 0x179   : > { %v1469_v50 = vor.u32 4788187, %v1468_v43  ;;  %v1472_v21 = vcvt.s32.f32 %v1465_v31  ;;  %v1545_v3 = vsel %vm1541_vm7, %v6966_v17, %v1544_v12  ;;  %v1575_v42 = vadd.s32 %v1573_v20, %v1571_v6 }
 0x17a   : > { %vm1590_vm1 = vc.u32 %v1582_v45, %v1586_v35  ;;  %v1592_v48 = vadd.s32 %v1586_v35, %v1582_v45  ;;  %v1567_v51 = vshrl.u32 %v1562_v56, 16  ;;  %v1672_v47 = vadd.s32 1, %v5524_v54 }
 0x17b   : > { %v1470_v15 = vand.u32 2147483647, %v1469_v50  ;;  %v1591_v62 = vsel %vm1590_vm1, 1, %v5768_v33  ;;  %v1576_v30 = vadd.s32 %v1575_v42, %v1565_v63  ;;  %v1587_v5 = vshrl.u32 %v1583_v36, 16 }
 0x17c   : > { %v1593_v16 = vadd.s32 %v1591_v62, %v1585_v61  ;;  %vm1594_vm2 = vc.u32 %v1592_v48, %v1588_v4  ;;  %v1479_v23 = vsel %vm7030_vm14, 0, %v1477_v14  ;;  %vm1673_vm3 = vcmp.gt.s32.totalorder %v1672_v47, 0 }
 0x17d   : > { %v1473_v53 = vmul.f32 %v1472_v21, %v1470_v15  ;;  %v1595_v7 = vsel %vm1594_vm2, 1, %v5768_v33  ;;  %v1546_v17 = vsel %vm1540_vm10, %v1543_v27, %v1545_v3  ;;  %v1589_v18 = vshrl.u32 %v1584_v2, 16 }
 0x17e   : > { %v1597_v12 = vadd.s32 %v1595_v7, %v1593_v16  ;;  %v1674_v56 = vsel %vm1673_vm3, %v1672_v47, 0  ;;  %v7054_v10 = vadd.s32 %v1576_v30, %v1567_v51  ;;  %v7056_v19 = vadd.s32 %v1592_v48, %v1588_v4 }
 0x17f   : > { %v1474_v13 = vxor.u32 2147483648, %v1473_v53  ;;  %v1676_v54 = vand.u32 31, %v1674_v56  ;;  %v1600_v14 = vmul.u32 %v6961_v49, %v1546_v17  ;;  %v1669_v45 = vand.u32 8388607, %v1662_v37 }
 0x180   : > { %v1598_v32 = vadd.s32 %v1597_v12, %v1587_v5  ;;  %v1496_v36 = vadd.s32 3, %v1479_v23  ;;  %v7068_v43 = vshrl.u32 %v1674_v56, 5  ;;  %vm1602_vm4 = vc.u32 %v7054_v10, %v7056_v19 }
 0x181   : > { %v1475_v1 = vsel %vm1354_vm12, %v1474_v13, %v1473_v53  ;;  %v7063_v46 = vsub.s32 32, %v1676_v54  ;;  %v1682_v2 = vshll.u32 %v9992_v34, %v1676_v54  ;;  %v1688_v49 = vshll.u32 %v9994_v9, %v1676_v54 }
 0x182   : > { %v1478_v27 = vsel %vm7030_vm14, %v6158_v0, %v1475_v1  ;;  %v1599_v31 = vadd.s32 %v1598_v32, %v1589_v18  ;;  %v1691_v35 = vshll.u32 %v9995_v44, %v1676_v54  ;;  %v1685_v20 = vshll.u32 %v9993_v22, %v1676_v54 }
 0x183   : > { %v1480_v6 = vmul.f32 %v1478_v27, %v1478_v27  ;;  %v1683_v61 = vshrl.u32 %v9993_v22, %v7063_v46  ;;  %v1689_v40 = vshrl.u32 %v9995_v44, %v7063_v46  ;;  %v1686_v4 = vshrl.u32 %v9994_v9, %v7063_v46 }
 0x184   : > { %v1603_v63 = vadd.s32 1, %v1599_v31  ;;  %v1679_v42 = vshll.u32 %v9991_v11, %v1676_v54  ;;  %v1680_v48 = vshrl.u32 %v9992_v34, %v7063_v46  ;;  %v1692_v15 = vshrl.u32 %v9996_v8, %v7063_v46 }
 0x185   : > { %v1481_v50 = vmul.f32 -0.001358992, %v1480_v6  ;;  %v1488_v21 = vmul.f32 -0.00019511016, %v1480_v6  ;;  %v1497_v47 = vand.u32 3, %v1496_v36  ;;  %v1670_v5 = vor.u32 8388608, %v1669_v45 }
 0x186   : > { %v1604_v3 = vsel %vm1602_vm4, %v1603_v63, %v1599_v31  ;;  %v7087_v16 = vor.u32 %v1683_v61, %v1682_v2  ;;  %v1690_v53 = vor.u32 %v1689_v40, %v1688_v49  ;;  %v1693_v23 = vor.u32 %v1692_v15, %v1691_v35 }
 0x187   : > { %v1482_v51 = vadd.f32 0.041655596, %v1481_v50  ;;  %v1489_v62 = vadd.f32 0.008332121, %v1488_v21  ;;  %v1605_v30 = vadd.s32 %v1604_v3, %v1600_v14  ;;  %v1687_v12 = vor.u32 %v1686_v4, %v1685_v20 }
 0x188   : > { %v1681_v56 = vor.u32 %v1680_v48, %v1679_v42  ;;  %vm1694_vm5 = vcmp.lt.s32.totalorder %v7068_v43, 1  ;;  %vm1697_vm6 = vcmp.lt.s32.totalorder %v7068_v43, 4  ;;  %vm1498_vm7 = vcmp.lt.s32.totalorder %v1497_v47, 2 }
 0x189   : > { %v1483_v7 = vmul.f32 %v1482_v51, %v1480_v6  ;;  %v1490_v17 = vmul.f32 %v1489_v62, %v1480_v6  ;;  %v1606_v18 = vadd.s32 536870912, %v1605_v30  ;;  %vm1696_vm8 = vcmp.lt.s32.totalorder %v7068_v43, 3 }
 0x18a   : > { %vm1495_vm9 = vweird.f32 %v6158_v0  ;;  %vm1695_vm10 = vcmp.lt.s32.totalorder %v7068_v43, 2  ;;  %v1703_v1 = vsel %vm1697_vm6, %v1690_v53, 920167782  ;;  %v1707_v14 = vsel %vm1697_vm6, %v1693_v23, 1326507024 }
 0x18b   : > { %v1484_v13 = vadd.f32 -0.4999988, %v1483_v7  ;;  %v1491_v54 = vadd.f32 -0.16666654, %v1490_v17  ;;  %v7091_v32 = vshrl.u32 %v1606_v18, 30  ;;  %v7100_v45 = vshll.u32 %v1670_v5, 8 }
 0x18c   : > { %v1706_v49 = vsel %vm1694_vm5, %v7087_v16, %v1687_v12  ;;  %vm1499_vm11 = vcmp.eq.s32.totalorder %v1497_v47, 0  ;;  %vm1502_vm12 = vcmp.eq.s32.totalorder %v1497_v47, 2  ;;  %v1702_v63 = vsel %vm1694_vm5, %v1681_v56, %v7087_v16 }
 0x18d   : > { %v1485_v36 = vmul.f32 %v1484_v13, %v1480_v6  ;;  %v1492_v31 = vmul.f32 %v1491_v54, %v1480_v6  ;;  %v1608_v2 = vshll.u32 %v7091_v32, 30  ;;  %v1708_v61 = vsel %vm1696_vm8, %v1690_v53, %v1707_v14 }
 0x18e   : > { %v1704_v6 = vsel %vm1696_vm8, %v1687_v12, %v1703_v1  ;;  %v1709_v21 = vsel %vm1695_vm10, %v1706_v49, %v1708_v61  ;;  %v1711_v20 = vand.u32 65535, %v7100_v45  ;;  %v1712_v4 = vshrl.u32 %v7100_v45, 16 }
 0x18f   : > { %v1486_v40 = vadd.f32 1.0, %v1485_v36  ;;  %v1493_v35 = vadd.f32 1.0, %v1492_v31  ;;  %v1609_v50 = vsub.s32 %v1605_v30, %v1608_v2  ;;  %v1817_v3 = vand.u32 2147483647, %v6178_v38 }
 0x190   : > { %v1678_v51 = vshrl.u32 %v9991_v11, %v7063_v46  ;;  %v1705_v62 = vsel %vm1695_vm10, %v1702_v63, %v1704_v6  ;;  %v1713_v30 = vand.u32 65535, %v1709_v21  ;;  %v1714_v5 = vshrl.u32 %v1709_v21, 16 }
 0x191   : > { %v1494_v42 = vmul.f32 %v1493_v35, %v1478_v27  ;;  %v1503_v48 = vxor.u32 2147483648, %v1486_v40  ;;  %vm1610_vm13 = vcmp.lt.s32.totalorder %v1609_v50, 0  ;;  %v1611_v15 = vsub.s32 0, %v1609_v50 }
 0x192   : > { %v1820_v17 = vand.u32 2139095040, %v6178_v38  ;;  %v1715_v13 = vmul.u32 %v1713_v30, %v1711_v20  ;;  %v1716_v27 = vmul.u32 %v1714_v5, %v1711_v20  ;;  %v1717_v54 = vmul.u32 %v1713_v30, %v1712_v4 }
 0x193   : > { %v1500_v53 = vxor.u32 2147483648, %v1494_v42  ;;  %v1504_v23 = vsel %vm1502_vm12, %v1503_v48, %v1494_v42  ;;  %v1612_v7 = vsel %vm1610_vm13, %v1611_v15, %v1609_v50  ;;  %v1601_v46 = vadd.s32 %v7056_v19, %v7054_v10 }
 0x194   : > { %v1613_v18 = vclz %v1612_v7  ;;  %v1735_v14 = vand.u32 65535, %v1705_v62  ;;  %v1736_v36 = vshrl.u32 %v1705_v62, 16  ;;  %v1718_v49 = vmul.u32 %v1714_v5, %v1712_v4 }
 0x195   : > { %v1501_v1 = vsel %vm1499_vm11, %v1486_v40, %v1500_v53  ;;  %v1719_v63 = vshll.u32 %v1716_v27, 16  ;;  %v1698_v35 = vsel %vm1694_vm5, %v1678_v51, %v1681_v56  ;;  %v1699_v40 = vsel %vm1697_vm6, %v1687_v12, 2102212464 }
 0x196   : > { %v1505_v31 = vsel %vm1498_vm7, %v1501_v1, %v1504_v23  ;;  %v5522_v2 = vadd.s32 4294967294, %v1613_v18  ;;  %v1721_v6 = vshll.u32 %v1717_v54, 16  ;;  %v1821_v19 = vshrl.u32 %v1820_v17, 23 }
 0x197   : > { %v1506_v61 = vsel %vm1495_vm9, nan, %v1505_v31  ;;  %vm1723_vm15 = vc.u32 %v1715_v13, %v1719_v63  ;;  %v1725_v10 = vadd.s32 %v1719_v63, %v1715_v13  ;;  %v1738_v42 = vmul.u32 %v1736_v36, %v1711_v20 }
 0x198   : > { %vm5523_vm14 = vcmp.lt.s32.totalorder %v5522_v2, 0  ;;  %5388 = vst [vmem:[%s6492_s26 + $0x30] sm:$0xff] %v1506_v61  ;;  %v1724_v21 = vsel %vm1723_vm15, 1, %v5768_v33  ;;  %v1739_v48 = vmul.u32 %v1735_v14, %v1712_v4  ;;  %v1631_v56 = vsub.s32 4, %v7091_v32 }
 0x199   : > { %v1616_v47 = vsel %vm5523_vm14, 0, %v5522_v2  ;;  %v1726_v30 = vadd.s32 %v1724_v21, %v1718_v49  ;;  %v1720_v51 = vshrl.u32 %v1716_v27, 16  ;;  %vm1727_vm0 = vc.u32 %v1725_v10, %v1721_v6 }
 0x19a   : > { %v1617_v15 = vsub.s32 32, %v1616_v47  ;;  %v1618_v0 = vshll.u32 %v1609_v50, %v1616_v47  ;;  %v1621_v62 = vsub.s32 4294967266, %v1616_v47  ;;  %v1737_v12 = vmul.u32 %v1735_v14, %v1711_v20 }
 0x19b   : > { %v1722_v23 = vshrl.u32 %v1717_v54, 16  ;;  %v1728_v7 = vsel %vm1727_vm0, 1, %v5768_v33  ;;  %v1740_v18 = vmul.u32 %v1736_v36, %v1712_v4  ;;  %v1741_v13 = vshll.u32 %v1738_v42, 16 }
 0x19c   : > { %v1619_v5 = vshrl.u32 %v1601_v46, %v1617_v15  ;;  %v1622_v53 = vadd.s32 127, %v1621_v62  ;;  %v1730_v17 = vadd.s32 %v1728_v7, %v1726_v30  ;;  %v1743_v1 = vshll.u32 %v1739_v48, 16 }
 0x19d   : > { %v1700_v50 = vsel %vm1696_vm8, %v7087_v16, %v1699_v40  ;;  %v5527_v49 = vadd.s32 4294967169, %v1821_v19  ;;  %v1742_v27 = vshrl.u32 %v1738_v42, 16  ;;  %vm1745_vm1 = vc.u32 %v1737_v12, %v1741_v13 }
 0x19e   : > { %v1620_v31 = vor.u32 %v1619_v5, %v1618_v0  ;;  %v1623_v2 = vshll.u32 %v1622_v53, 23  ;;  %v1731_v63 = vadd.s32 %v1730_v17, %v1720_v51  ;;  %v1747_v20 = vadd.s32 %v1741_v13, %v1737_v12 }
 0x19f   : > { %v1746_v54 = vsel %vm1745_vm1, 1, %v5768_v33  ;;  %v1827_v61 = vadd.s32 1, %v5527_v49  ;;  %v1701_v16 = vsel %vm1695_vm10, %v1698_v35, %v1700_v50  ;;  %vm1509_vm4 = vcmp.lt.s32.totalorder %v6176_v25, 0 }
 0x1a0   : > { %v1624_v46 = vor.u32 4788187, %v1623_v2  ;;  %v1627_v14 = vcvt.s32.f32 %v1620_v31  ;;  %v7142_v6 = vadd.s32 %v1731_v63, %v1722_v23  ;;  %v1748_v4 = vadd.s32 %v1746_v54, %v1740_v18 }
 0x1a1   : > { %vm1749_vm2 = vc.u32 %v1747_v20, %v1743_v1  ;;  %v7144_v36 = vadd.s32 %v1747_v20, %v1743_v1  ;;  %vm1828_vm3 = vcmp.gt.s32.totalorder %v1827_v61, 0  ;;  %v1744_v19 = vshrl.u32 %v1739_v48, 16 }
 0x1a2   : > { %v1625_v10 = vand.u32 2147483647, %v1624_v46  ;;  %v1750_v40 = vsel %vm1749_vm2, 1, %v5768_v33  ;;  %v1829_v21 = vsel %vm1828_vm3, %v1827_v61, 0  ;;  %vm7152_vm5 = vcmp.le.f32.partialorder %v1507_v29, 0.7853982 }
 0x1a3   : > { %v1752_v47 = vadd.s32 %v1750_v40, %v1748_v4  ;;  %v1632_v43 = vsel %vm1509_vm4, %v1631_v56, %v7091_v32  ;;  %v1831_v35 = vand.u32 31, %v1829_v21  ;;  %v1755_v62 = vmul.u32 %v7100_v45, %v1701_v16 }
 0x1a4   : > { %v1628_v15 = vmul.f32 %v1627_v14, %v1625_v10  ;;  %vm1757_vm6 = vc.u32 %v7142_v6, %v7144_v36  ;;  %v1824_v48 = vand.u32 8388607, %v1817_v3  ;;  %v7164_v29 = vshrl.u32 %v1829_v21, 5 }
 0x1a5   : > { %v1753_v0 = vadd.s32 %v1752_v47, %v1742_v27  ;;  %v7166_v51 = vsub.s32 32, %v1831_v35  ;;  %v1834_v12 = vshll.u32 %v9991_v11, %v1831_v35  ;;  %v1837_v32 = vshll.u32 %v9992_v34, %v1831_v35 }
 0x1a6   : > { %v1629_v30 = vxor.u32 2147483648, %v1628_v15  ;;  %v1840_v56 = vshll.u32 %v9993_v22, %v1831_v35  ;;  %v1843_v45 = vshll.u32 %v9994_v9, %v1831_v35  ;;  %v1846_v17 = vshll.u32 %v9995_v44, %v1831_v35 }
 0x1a7   : > { %v1754_v5 = vadd.s32 %v1753_v0, %v1744_v19  ;;  %v1835_v23 = vshrl.u32 %v9992_v34, %v7166_v51  ;;  %v1838_v7 = vshrl.u32 %v9993_v22, %v7166_v51  ;;  %v1841_v1 = vshrl.u32 %v9994_v9, %v7166_v51 }
 0x1a8   : > { %v1630_v53 = vsel %vm1509_vm4, %v1629_v30, %v1628_v15  ;;  %v1844_v31 = vshrl.u32 %v9995_v44, %v7166_v51  ;;  %v1634_v2 = vsel %vm7152_vm5, 0, %v1632_v43  ;;  %v1847_v49 = vshrl.u32 %v9996_v8, %v7166_v51 }
 0x1a9   : > { %v1633_v18 = vsel %vm7152_vm5, %v6176_v25, %v1630_v53  ;;  %v1758_v13 = vadd.s32 1, %v1754_v5  ;;  %v1825_v27 = vor.u32 8388608, %v1824_v48  ;;  %v7193_v20 = vor.u32 %v1835_v23, %v1834_v12 }
 0x1aa   : > { %v1635_v50 = vmul.f32 %v1633_v18, %v1633_v18  ;;  %v1845_v46 = vor.u32 %v1844_v31, %v1843_v45  ;;  %v7195_v4 = vor.u32 %v1838_v7, %v1837_v32  ;;  %v7197_v10 = vor.u32 %v1841_v1, %v1840_v56 }
 0x1ab   : > { %v1759_v63 = vsel %vm1757_vm6, %v1758_v13, %v1754_v5  ;;  %v1848_v16 = vor.u32 %v1847_v49, %v1846_v17  ;;  %vm1849_vm7 = vcmp.lt.s32.totalorder %v7164_v29, 1  ;;  %vm1851_vm8 = vcmp.lt.s32.totalorder %v7164_v29, 3 }
 0x1ac   : > { %v1636_v14 = vmul.f32 -0.001358992, %v1635_v50  ;;  %v1643_v54 = vmul.f32 -0.00019511016, %v1635_v50  ;;  %v1760_v61 = vadd.s32 %v1759_v63, %v1755_v62  ;;  %vm1852_vm9 = vcmp.lt.s32.totalorder %v7164_v29, 4 }
 0x1ad   : > { %v1651_v21 = vadd.s32 3, %v1634_v2  ;;  %vm1850_vm10 = vcmp.lt.s32.totalorder %v7164_v29, 2  ;;  %v1858_v42 = vsel %vm1852_vm9, %v1845_v46, 920167782  ;;  %v1857_v0 = vsel %vm1849_vm7, %v7193_v20, %v7195_v4 }
 0x1ae   : > { %v1637_v40 = vadd.f32 0.041655596, %v1636_v14  ;;  %v1644_v19 = vadd.f32 0.008332121, %v1643_v54  ;;  %v1761_v47 = vadd.s32 536870912, %v1760_v61  ;;  %v1859_v62 = vsel %vm1851_vm8, %v7197_v10, %v1858_v42 }
 0x1af   : > { %v1862_v48 = vsel %vm1852_vm9, %v1848_v16, 1326507024  ;;  %v7216_v30 = vshll.u32 %v1825_v27, 8  ;;  %v1861_v56 = vsel %vm1849_vm7, %v7195_v4, %v7197_v10  ;;  %v1652_v45 = vand.u32 3, %v1651_v21 }
 0x1b0   : > { %v1638_v15 = vmul.f32 %v1637_v40, %v1635_v50  ;;  %v1645_v43 = vmul.f32 %v1644_v19, %v1635_v50  ;;  %v7205_v35 = vshrl.u32 %v1761_v47, 30  ;;  %v1860_v53 = vsel %vm1850_vm10, %v1857_v0, %v1859_v62 }
 0x1b1   : > { %v1863_v23 = vsel %vm1851_vm8, %v1845_v46, %v1862_v48  ;;  %vm1650_vm11 = vweird.f32 %v6176_v25  ;;  %v1866_v31 = vand.u32 65535, %v7216_v30  ;;  %v1867_v2 = vshrl.u32 %v7216_v30, 16 }
 0x1b2   : > { %v1639_v12 = vadd.f32 -0.4999988, %v1638_v15  ;;  %v1646_v5 = vadd.f32 -0.16666654, %v1645_v43  ;;  %v1763_v32 = vshll.u32 %v7205_v35, 30  ;;  %v1864_v1 = vsel %vm1850_vm10, %v1861_v56, %v1863_v23 }
 0x1b3   : > { %v1891_v49 = vshrl.u32 %v1860_v53, 16  ;;  %vm1654_vm13 = vcmp.eq.s32.totalorder %v1652_v45, 0  ;;  %vm1657_vm14 = vcmp.eq.s32.totalorder %v1652_v45, 2  ;;  %v1868_v46 = vand.u32 65535, %v1864_v1 }
 0x1b4   : > { %v1640_v7 = vmul.f32 %v1639_v12, %v1635_v50  ;;  %v1647_v17 = vmul.f32 %v1646_v5, %v1635_v50  ;;  %v1764_v13 = vsub.s32 %v1760_v61, %v1763_v32  ;;  %v1869_v54 = vshrl.u32 %v1864_v1, 16 }
 0x1b5   : > { %v1890_v61 = vand.u32 65535, %v1860_v53  ;;  %v1870_v47 = vmul.u32 %v1868_v46, %v1866_v31  ;;  %v7232_v42 = vmul.u32 %v1868_v46, %v1867_v2  ;;  %vm1653_vm15 = vcmp.lt.s32.totalorder %v1652_v45, 2 }
 0x1b6   : > { %v1641_v63 = vadd.f32 1.0, %v1640_v7  ;;  %v1648_v27 = vadd.f32 1.0, %v1647_v17  ;;  %vm1765_vm12 = vcmp.lt.s32.totalorder %v1764_v13, 0  ;;  %v1766_v14 = vsub.s32 0, %v1764_v13 }
 0x1b7   : > { %v1871_v21 = vmul.u32 %v1869_v54, %v1866_v31  ;;  %v7234_v0 = vmul.u32 %v1891_v49, %v1866_v31  ;;  %vm1664_vm0 = vcmp.lt.s32.totalorder %v6161_v28, 0  ;;  %v1756_v62 = vadd.s32 %v7144_v36, %v7142_v6 }
 0x1b8   : > { %v1649_v50 = vmul.f32 %v1648_v27, %v1633_v18  ;;  %v1658_v16 = vxor.u32 2147483648, %v1641_v63  ;;  %v1767_v40 = vsel %vm1765_vm12, %v1766_v14, %v1764_v13  ;;  %v1975_v12 = vand.u32 2139095040, %v6164_v41 }
 0x1b9   : > { %v1768_v19 = vclz %v1767_v40  ;;  %v1874_v18 = vshll.u32 %v1871_v21, 16  ;;  %v1873_v32 = vmul.u32 %v1869_v54, %v1867_v2  ;;  %v1892_v56 = vmul.u32 %v1890_v61, %v1866_v31 }
 0x1ba   : > { %v1655_v15 = vxor.u32 2147483648, %v1649_v50  ;;  %v1659_v43 = vsel %vm1657_vm14, %v1658_v16, %v1649_v50  ;;  %v1894_v53 = vmul.u32 %v1890_v61, %v1867_v2  ;;  %v1876_v7 = vshll.u32 %v7232_v42, 16 }
 0x1bb   : > { %v5525_v48 = vadd.s32 4294967294, %v1768_v19  ;;  %vm1878_vm2 = vc.u32 %v1870_v47, %v1874_v18  ;;  %v1896_v36 = vshll.u32 %v7234_v0, 16  ;;  %vm7248_vm3 = vcmp.le.f32.partialorder %v1662_v37, 0.7853982 }
 0x1bc   : > { %v1656_v5 = vsel %vm1654_vm13, %v1641_v63, %v1655_v15  ;;  %v1879_v6 = vsel %vm1878_vm2, 1, %v5768_v33  ;;  %v1880_v14 = vadd.s32 %v1874_v18, %v1870_v47  ;;  %v1786_v46 = vsub.s32 4, %v7205_v35 }
 0x1bd   : > { %v1660_v23 = vsel %vm1653_vm15, %v1656_v5, %v1659_v43  ;;  %vm5526_vm1 = vcmp.lt.s32.totalorder %v5525_v48, 0  ;;  %v1833_v25 = vshrl.u32 %v9991_v11, %v7166_v51  ;;  %v1881_v54 = vadd.s32 %v1879_v6, %v1873_v32 }
 0x1be   : > { %v1661_v17 = vsel %vm1650_vm11, nan, %v1660_v23  ;;  %v1771_v1 = vsel %vm5526_vm1, 0, %v5525_v48  ;;  %v1895_v50 = vmul.u32 %v1891_v49, %v1867_v2  ;;  %v1875_v61 = vshrl.u32 %v1871_v21, 16 }
 0x1bf   : > { %v1772_v31 = vsub.s32 32, %v1771_v1  ;;  %v1773_v63 = vshll.u32 %v1764_v13, %v1771_v1  ;;  %v1776_v27 = vsub.s32 4294967266, %v1771_v1  ;;  %5389 = vst [vmem:[%s6492_s26 + $0x38] sm:$0xff] %v1661_v17  ;;  %vm1882_vm4 = vc.u32 %v1880_v14, %v1876_v7 }
 0x1c0   : > { %v1854_v37 = vsel %vm1852_vm9, %v7197_v10, 2102212464  ;;  %v1883_v13 = vsel %vm1882_vm4, 1, %v5768_v33  ;;  %v1898_v19 = vshll.u32 %v1894_v53, 16  ;;  %vm1900_vm5 = vc.u32 %v1892_v56, %v1896_v36 }
 0x1c1   : > { %v1774_v16 = vshrl.u32 %v1756_v62, %v1772_v31  ;;  %v1777_v40 = vadd.s32 127, %v1776_v27  ;;  %v1885_v43 = vadd.s32 %v1883_v13, %v1881_v54  ;;  %v1901_v48 = vsel %vm1900_vm5, 1, %v5768_v33 }
 0x1c2   : > { %v1787_v51 = vsel %vm1664_vm0, %v1786_v46, %v7205_v35  ;;  %v1902_v2 = vadd.s32 %v1896_v36, %v1892_v56  ;;  %v1903_v49 = vadd.s32 %v1901_v48, %v1895_v50  ;;  %v1976_v21 = vshrl.u32 %v1975_v12, 23 }
 0x1c3   : > { %v1775_v47 = vor.u32 %v1774_v16, %v1773_v63  ;;  %v1778_v15 = vshll.u32 %v1777_v40, 23  ;;  %v1877_v10 = vshrl.u32 %v7232_v42, 16  ;;  %v1886_v5 = vadd.s32 %v1885_v43, %v1875_v61 }
 0x1c4   : > { %v1897_v32 = vshrl.u32 %v7234_v0, 16  ;;  %vm1904_vm6 = vc.u32 %v1902_v2, %v1898_v19  ;;  %v1972_v23 = vand.u32 2147483647, %v6164_v41  ;;  %v5530_v7 = vadd.s32 4294967169, %v1976_v21 }
 0x1c5   : > { %v1779_v62 = vor.u32 4788187, %v1778_v15  ;;  %v1782_v18 = vcvt.s32.f32 %v1775_v47  ;;  %v1853_v1 = vsel %vm1849_vm7, %v1833_v25, %v7193_v20  ;;  %v1855_v35 = vsel %vm1851_vm8, %v7195_v4, %v1854_v37 }
 0x1c6   : > { %v1905_v12 = vsel %vm1904_vm6, 1, %v5768_v33  ;;  %v1789_v42 = vsel %vm7248_vm3, 0, %v1787_v51  ;;  %v1899_v56 = vshrl.u32 %v1894_v53, 16  ;;  %v1982_v6 = vadd.s32 1, %v5530_v7 }
 0x1c7   : > { %v1780_v17 = vand.u32 2147483647, %v1779_v62  ;;  %v1907_v0 = vadd.s32 %v1905_v12, %v1903_v49  ;;  %v7276_v31 = vadd.s32 %v1886_v5, %v1877_v10  ;;  %v7278_v63 = vadd.s32 %v1902_v2, %v1898_v19 }
 0x1c8   : > { %v1856_v20 = vsel %vm1850_vm10, %v1853_v1, %v1855_v35  ;;  %vm1983_vm7 = vcmp.gt.s32.totalorder %v1982_v6, 0  ;;  %v1806_v4 = vadd.s32 3, %v1789_v42  ;;  %v1979_v46 = vand.u32 8388607, %v1972_v23 }
 0x1c9   : > { %v1783_v36 = vmul.f32 %v1782_v18, %v1780_v17  ;;  %v1908_v27 = vadd.s32 %v1907_v0, %v1897_v32  ;;  %v1984_v25 = vsel %vm1983_vm7, %v1982_v6, 0  ;;  %v1910_v16 = vmul.u32 %v7216_v30, %v1856_v20 }
 0x1ca   : > { %v1986_v53 = vand.u32 31, %v1984_v25  ;;  %vm1912_vm8 = vc.u32 %v7276_v31, %v7278_v63  ;;  %v7296_v13 = vand.u32 3, %v1806_v4  ;;  %v1980_v19 = vor.u32 8388608, %v1979_v46 }
 0x1cb   : > { %v1784_v14 = vxor.u32 2147483648, %v1783_v36  ;;  %v1909_v54 = vadd.s32 %v1908_v27, %v1899_v56  ;;  %v7303_v21 = vshrl.u32 %v1984_v25, 5  ;;  %v2130_v10 = vand.u32 2139095040, %v6180_v55 }
 0x1cc   : > { %v1987_v61 = vsub.s32 32, %v1986_v53  ;;  %v1989_v47 = vshll.u32 %v9991_v11, %v1986_v53  ;;  %v1992_v43 = vshll.u32 %v9992_v34, %v1986_v53  ;;  %v1998_v49 = vshll.u32 %v9994_v9, %v1986_v53 }
 0x1cd   : > { %v1785_v50 = vsel %vm1664_vm0, %v1784_v14, %v1783_v36  ;;  %v1913_v40 = vadd.s32 1, %v1909_v54  ;;  %v1995_v62 = vshll.u32 %v9993_v22, %v1986_v53  ;;  %vm1812_vm9 = vcmp.eq.s32.totalorder %v7296_v13, 2 }
 0x1ce   : > { %v7292_v29 = vsel %vm7248_vm3, %v6161_v28, %v1785_v50  ;;  %v1990_v30 = vshrl.u32 %v9992_v34, %v1987_v61  ;;  %v1993_v48 = vshrl.u32 %v9993_v22, %v1987_v61  ;;  %v1996_v18 = vshrl.u32 %v9994_v9, %v1987_v61 }
 0x1cf   : > { %v1790_v37 = vmul.f32 %v7292_v29, %v7292_v29  ;;  %v1914_v15 = vsel %vm1912_vm8, %v1913_v40, %v1909_v54  ;;  %v1999_v17 = vshrl.u32 %v9995_v44, %v1987_v61  ;;  %v2001_v12 = vshll.u32 %v9995_v44, %v1986_v53 }
 0x1d0   : > { %v1915_v2 = vadd.s32 %v1914_v15, %v1910_v16  ;;  %v1991_v1 = vor.u32 %v1990_v30, %v1989_v47  ;;  %v7310_v35 = vor.u32 %v1993_v48, %v1992_v43  ;;  %v2002_v42 = vshrl.u32 %v9996_v8, %v1987_v61 }
 0x1d1   : > { %v1791_v45 = vmul.f32 -0.001358992, %v1790_v37  ;;  %v1798_v51 = vmul.f32 -0.00019511016, %v1790_v37  ;;  %v2000_v36 = vor.u32 %v1999_v17, %v1998_v49  ;;  %vm1809_vm10 = vcmp.eq.s32.totalorder %v7296_v13, 0 }
 0x1d2   : > { %v1916_v7 = vadd.s32 536870912, %v1915_v2  ;;  %v1997_v20 = vor.u32 %v1996_v18, %v1995_v62  ;;  %vm2004_vm11 = vcmp.lt.s32.totalorder %v7303_v21, 1  ;;  %vm2007_vm12 = vcmp.lt.s32.totalorder %v7303_v21, 4 }
 0x1d3   : > { %v1792_v5 = vadd.f32 0.041655596, %v1791_v45  ;;  %v1799_v32 = vadd.f32 0.008332121, %v1798_v51  ;;  %v7317_v27 = vshll.u32 %v1980_v19, 8  ;;  %vm1808_vm13 = vcmp.lt.s32.totalorder %v7296_v13, 2 }
 0x1d4   : > { %v1917_v6 = vshrl.u32 %v1916_v7, 30  ;;  %vm2006_vm14 = vcmp.lt.s32.totalorder %v7303_v21, 3  ;;  %vm1805_vm15 = vweird.f32 %v6161_v28  ;;  %v2003_v25 = vor.u32 %v2002_v42, %v2001_v12 }
 0x1d5   : > { %v1793_v56 = vmul.f32 %v1792_v5, %v1790_v37  ;;  %v1800_v0 = vmul.f32 %v1799_v32, %v1790_v37  ;;  %vm2005_vm0 = vcmp.lt.s32.totalorder %v7303_v21, 2  ;;  %v2013_v54 = vsel %vm2007_vm12, %v2000_v36, 920167782 }
 0x1d6   : > { %v1918_v46 = vshll.u32 %v1917_v6, 30  ;;  %v2127_v53 = vand.u32 2147483647, %v6180_v55  ;;  %vm1819_vm1 = vcmp.lt.s32.totalorder %v6178_v38, 0  ;;  %v2012_v19 = vsel %vm2004_vm11, %v1991_v1, %v7310_v35 }
 0x1d7   : > { %v1794_v14 = vadd.f32 -0.4999988, %v1793_v56  ;;  %v1801_v4 = vadd.f32 -0.16666654, %v1800_v0  ;;  %v2014_v47 = vsel %vm2006_vm14, %v1997_v20, %v2013_v54  ;;  %v2016_v15 = vsel %vm2004_vm11, %v7310_v35, %v1997_v20 }
 0x1d8   : > { %v1919_v40 = vsub.s32 %v1915_v2, %v1918_v46  ;;  %v2021_v30 = vand.u32 65535, %v7317_v27  ;;  %v2131_v43 = vshrl.u32 %v2130_v10, 23  ;;  %vm7338_vm3 = vcmp.le.f32.partialorder %v1817_v3, 0.7853982 }
 0x1d9   : > { %v1795_v50 = vmul.f32 %v1794_v14, %v1790_v37  ;;  %v1802_v16 = vmul.f32 %v1801_v4, %v1790_v37  ;;  %v1988_v2 = vshrl.u32 %v9991_v11, %v1987_v61  ;;  %v2015_v49 = vsel %vm2005_vm0, %v2012_v19, %v2014_v47 }
 0x1da   : > { %vm1920_vm2 = vcmp.lt.s32.totalorder %v1919_v40, 0  ;;  %v1921_v37 = vsub.s32 0, %v1919_v40  ;;  %v2017_v62 = vsel %vm2007_vm12, %v2003_v25, 1326507024  ;;  %v2022_v18 = vshrl.u32 %v7317_v27, 16 }
 0x1db   : > { %v1796_v48 = vadd.f32 1.0, %v1795_v50  ;;  %v1803_v45 = vadd.f32 1.0, %v1802_v16  ;;  %v2018_v3 = vsel %vm2006_vm14, %v2000_v36, %v2017_v62  ;;  %v1941_v17 = vsub.s32 4, %v1917_v6 }
 0x1dc   : > { %v1922_v32 = vsel %vm1920_vm2, %v1921_v37, %v1919_v40  ;;  %v2019_v61 = vsel %vm2005_vm0, %v2016_v15, %v2018_v3  ;;  %v2046_v12 = vshrl.u32 %v2015_v49, 16  ;;  %v2008_v46 = vsel %vm2004_vm11, %v1988_v2, %v1991_v1 }
 0x1dd   : > { %v1804_v10 = vmul.f32 %v1803_v45, %v7292_v29  ;;  %v1813_v5 = vxor.u32 2147483648, %v1796_v48  ;;  %v1923_v7 = vclz %v1922_v32  ;;  %v2023_v0 = vand.u32 65535, %v2019_v61 }
 0x1de   : > { %v2024_v14 = vshrl.u32 %v2019_v61, 16  ;;  %v1911_v29 = vadd.s32 %v7278_v63, %v7276_v31  ;;  %v5533_v36 = vadd.s32 4294967169, %v2131_v43  ;;  %v2009_v54 = vsel %vm2007_vm12, %v1997_v20, 2102212464 }
 0x1df   : > { %v1810_v42 = vxor.u32 2147483648, %v1804_v10  ;;  %v1814_v56 = vsel %vm1812_vm9, %v1813_v5, %v1804_v10  ;;  %v5528_v4 = vadd.s32 4294967294, %v1923_v7  ;;  %v2045_v16 = vand.u32 65535, %v2015_v49 }
 0x1e0   : > { %v2026_v50 = vmul.u32 %v2024_v14, %v2021_v30  ;;  %v1942_v31 = vsel %vm1819_vm1, %v1941_v17, %v1917_v6  ;;  %v2027_v63 = vmul.u32 %v2023_v0, %v2022_v18  ;;  %v2025_v15 = vmul.u32 %v2023_v0, %v2021_v30 }
 0x1e1   : > { %v1811_v25 = vsel %vm1809_vm10, %v1796_v48, %v1810_v42  ;;  %vm5529_vm4 = vcmp.lt.s32.totalorder %v5528_v4, 0  ;;  %v2048_v43 = vmul.u32 %v2046_v12, %v2021_v30  ;;  %v1944_v13 = vsel %vm7338_vm3, 0, %v1942_v31 }
 0x1e2   : > { %v1815_v19 = vsel %vm1808_vm13, %v1811_v25, %v1814_v56  ;;  %v1926_v47 = vsel %vm5529_vm4, 0, %v5528_v4  ;;  %v2029_v20 = vshll.u32 %v2026_v50, 16  ;;  %v2010_v2 = vsel %vm2006_vm14, %v7310_v35, %v2009_v54 }
 0x1e3   : > { %v1816_v1 = vsel %vm1805_vm15, nan, %v1815_v19  ;;  %v1927_v48 = vsub.s32 32, %v1926_v47  ;;  %v1928_v45 = vshll.u32 %v1919_v40, %v1926_v47  ;;  %v1931_v37 = vsub.s32 4294967266, %v1926_v47 }
 0x1e4   : > { %5390 = vst [vmem:[%s6492_s26 + $0x40] sm:$0xff] %v1816_v1  ;;  %v2028_v6 = vmul.u32 %v2024_v14, %v2022_v18  ;;  %v2049_v49 = vmul.u32 %v2045_v16, %v2022_v18  ;;  %v2031_v10 = vshll.u32 %v2027_v63, 16  ;;  %v2047_v5 = vmul.u32 %v2045_v16, %v2021_v30 }
 0x1e5   : > { %v1929_v62 = vshrl.u32 %v1911_v29, %v1927_v48  ;;  %v1932_v28 = vadd.s32 127, %v1931_v37  ;;  %vm2033_vm5 = vc.u32 %v2025_v15, %v2029_v20  ;;  %v2035_v32 = vadd.s32 %v2029_v20, %v2025_v15 }
 0x1e6   : > { %v2051_v3 = vshll.u32 %v2048_v43, 16  ;;  %v2137_v40 = vadd.s32 1, %v5533_v36  ;;  %v2034_v61 = vsel %vm2033_vm5, 1, %v5768_v33  ;;  %v2050_v42 = vmul.u32 %v2046_v12, %v2022_v18 }
 0x1e7   : > { %v1930_v7 = vor.u32 %v1929_v62, %v1928_v45  ;;  %v1933_v17 = vshll.u32 %v1932_v28, 23  ;;  %v2030_v56 = vshrl.u32 %v2026_v50, 16  ;;  %v2036_v0 = vadd.s32 %v2034_v61, %v2028_v6 }
 0x1e8   : > { %vm2037_vm6 = vc.u32 %v2035_v32, %v2031_v10  ;;  %v2053_v4 = vshll.u32 %v2049_v49, 16  ;;  %vm2055_vm7 = vc.u32 %v2047_v5, %v2051_v3  ;;  %v2032_v25 = vshrl.u32 %v2027_v63, 16 }
 0x1e9   : > { %v1934_v35 = vor.u32 4788187, %v1933_v17  ;;  %v1937_v14 = vcvt.s32.f32 %v1930_v7  ;;  %v2038_v29 = vsel %vm2037_vm6, 1, %v5768_v33  ;;  %v2056_v54 = vsel %vm2055_vm7, 1, %v5768_v33 }
 0x1ea   : > { %v2040_v30 = vadd.s32 %v2038_v29, %v2036_v0  ;;  %v2057_v16 = vadd.s32 %v2051_v3, %v2047_v5  ;;  %v2011_v19 = vsel %vm2005_vm0, %v2008_v46, %v2010_v2  ;;  %v2058_v31 = vadd.s32 %v2056_v54, %v2050_v42 }
 0x1eb   : > { %v1935_v36 = vand.u32 2147483647, %v1934_v35  ;;  %vm2138_vm8 = vcmp.gt.s32.totalorder %v2137_v40, 0  ;;  %v2052_v12 = vshrl.u32 %v2048_v43, 16  ;;  %v2054_v45 = vshrl.u32 %v2049_v49, 16 }
 0x1ec   : > { %v2041_v18 = vadd.s32 %v2040_v30, %v2030_v56  ;;  %vm2059_vm9 = vc.u32 %v2057_v16, %v2053_v4  ;;  %v2139_v50 = vsel %vm2138_vm8, %v2137_v40, 0  ;;  %v7381_v15 = vadd.s32 %v2057_v16, %v2053_v4 }
 0x1ed   : > { %v1938_v1 = vmul.f32 %v1937_v14, %v1935_v36  ;;  %v2060_v47 = vsel %vm2059_vm9, 1, %v5768_v33  ;;  %v2141_v63 = vand.u32 31, %v2139_v50  ;;  %v2134_v21 = vand.u32 8388607, %v2127_v53 }
 0x1ee   : > { %v7383_v48 = vadd.s32 %v2041_v18, %v2032_v25  ;;  %v2062_v37 = vadd.s32 %v2060_v47, %v2058_v31  ;;  %v1961_v2 = vadd.s32 3, %v1944_v13  ;;  %v2065_v6 = vmul.u32 %v7317_v27, %v2011_v19 }
 0x1ef   : > { %v1939_v20 = vxor.u32 2147483648, %v1938_v1  ;;  %v7387_v46 = vsub.s32 32, %v2141_v63  ;;  %v7390_v62 = vshrl.u32 %v2139_v50, 5  ;;  %v2144_v49 = vshll.u32 %v9991_v11, %v2141_v63 }
 0x1f0   : > { %v2063_v43 = vadd.s32 %v2062_v37, %v2052_v12  ;;  %vm2067_vm10 = vc.u32 %v7383_v48, %v7381_v15  ;;  %v2147_v10 = vshll.u32 %v9992_v34, %v2141_v63  ;;  %v2153_v32 = vshll.u32 %v9994_v9, %v2141_v63 }
 0x1f1   : > { %v1940_v28 = vsel %vm1819_vm1, %v1939_v20, %v1938_v1  ;;  %v2148_v27 = vshrl.u32 %v9993_v22, %v7387_v46  ;;  %v2150_v40 = vshll.u32 %v9993_v22, %v2141_v63  ;;  %v2151_v7 = vshrl.u32 %v9994_v9, %v7387_v46 }
 0x1f2   : > { %v1943_v5 = vsel %vm7338_vm3, %v6178_v38, %v1940_v28  ;;  %v2064_v13 = vadd.s32 %v2063_v43, %v2054_v45  ;;  %v2154_v17 = vshrl.u32 %v9995_v44, %v7387_v46  ;;  %v2145_v51 = vshrl.u32 %v9992_v34, %v7387_v46 }
 0x1f3   : > { %v1945_v3 = vmul.f32 %v1943_v5, %v1943_v5  ;;  %v2156_v42 = vshll.u32 %v9995_v44, %v2141_v63  ;;  %v2157_v56 = vshrl.u32 %v9996_v8, %v7387_v46  ;;  %v2135_v35 = vor.u32 8388608, %v2134_v21 }
 0x1f4   : > { %v2068_v61 = vadd.s32 1, %v2064_v13  ;;  %v7417_v29 = vor.u32 %v2148_v27, %v2147_v10  ;;  %v2155_v25 = vor.u32 %v2154_v17, %v2153_v32  ;;  %v2152_v19 = vor.u32 %v2151_v7, %v2150_v40 }
 0x1f5   : > { %v1946_v0 = vmul.f32 -0.001358992, %v1945_v3  ;;  %v1953_v4 = vmul.f32 -0.00019511016, %v1945_v3  ;;  %v2158_v30 = vor.u32 %v2157_v56, %v2156_v42  ;;  %v1962_v31 = vand.u32 3, %v1961_v2 }
 0x1f6   : > { %v2069_v14 = vsel %vm2067_vm10, %v2068_v61, %v2064_v13  ;;  %v2146_v18 = vor.u32 %v2145_v51, %v2144_v49  ;;  %vm2159_vm11 = vcmp.lt.s32.totalorder %v7390_v62, 1  ;;  %vm2162_vm12 = vcmp.lt.s32.totalorder %v7390_v62, 4 }
 0x1f7   : > { %v1947_v54 = vadd.f32 0.041655596, %v1946_v0  ;;  %v1954_v16 = vadd.f32 0.008332121, %v1953_v4  ;;  %v2070_v36 = vadd.s32 %v2069_v14, %v2065_v6  ;;  %vm2161_vm13 = vcmp.lt.s32.totalorder %v7390_v62, 3 }
 0x1f8   : > { %vm2160_vm14 = vcmp.lt.s32.totalorder %v7390_v62, 2  ;;  %v2168_v47 = vsel %vm2162_vm12, %v2155_v25, 920167782  ;;  %v2172_v63 = vsel %vm2162_vm12, %v2158_v30, 1326507024  ;;  %v7427_v45 = vshll.u32 %v2135_v35, 8 }
 0x1f9   : > { %v1948_v12 = vmul.f32 %v1947_v54, %v1945_v3  ;;  %v1955_v50 = vmul.f32 %v1954_v16, %v1945_v3  ;;  %v2071_v1 = vadd.s32 536870912, %v2070_v36  ;;  %v2171_v2 = vsel %vm2159_vm11, %v7417_v29, %v2152_v19 }
 0x1fa   : > { %vm1960_vm15 = vweird.f32 %v6178_v38  ;;  %vm1963_vm0 = vcmp.lt.s32.totalorder %v1962_v31, 2  ;;  %v2167_v43 = vsel %vm2159_vm11, %v2146_v18, %v7417_v29  ;;  %v2173_v6 = vsel %vm2161_vm13, %v2155_v25, %v2172_v63 }
 0x1fb   : > { %v1949_v37 = vadd.f32 -0.4999988, %v1948_v12  ;;  %v1956_v20 = vadd.f32 -0.16666654, %v1955_v50  ;;  %v7429_v21 = vshrl.u32 %v2071_v1, 30  ;;  %v2169_v13 = vsel %vm2161_vm13, %v2152_v19, %v2168_v47 }
 0x1fc   : > { %vm1964_vm1 = vcmp.eq.s32.totalorder %v1962_v31, 0  ;;  %v2174_v27 = vsel %vm2160_vm14, %v2171_v2, %v2173_v6  ;;  %v2176_v32 = vand.u32 65535, %v7427_v45  ;;  %v2177_v40 = vshrl.u32 %v7427_v45, 16 }
 0x1fd   : > { %v1950_v28 = vmul.f32 %v1949_v37, %v1945_v3  ;;  %v1957_v49 = vmul.f32 %v1956_v20, %v1945_v3  ;;  %v2073_v10 = vshll.u32 %v7429_v21, 30  ;;  %vm1967_vm2 = vcmp.eq.s32.totalorder %v1962_v31, 2 }
 0x1fe   : > { %v2143_v3 = vshrl.u32 %v9991_v11, %v7387_v46  ;;  %v2170_v51 = vsel %vm2160_vm14, %v2167_v43, %v2169_v13  ;;  %v2178_v42 = vand.u32 65535, %v2174_v27  ;;  %v2179_v56 = vshrl.u32 %v2174_v27, 16 }
 0x1ff   : > { %v1951_v7 = vadd.f32 1.0, %v1950_v28  ;;  %v1958_v17 = vadd.f32 1.0, %v1957_v49  ;;  %v2074_v61 = vsub.s32 %v2070_v36, %v2073_v10  ;;  %v2066_v14 = vadd.s32 %v7381_v15, %v7383_v48 }
 0x200   : > { %v2180_v25 = vmul.u32 %v2178_v42, %v2176_v32  ;;  %v2181_v30 = vmul.u32 %v2179_v56, %v2176_v32  ;;  %v7453_v54 = vmul.u32 %v2178_v42, %v2177_v40  ;;  %v2201_v46 = vshrl.u32 %v2170_v51, 16 }
 0x201   : > { %v1959_v0 = vmul.f32 %v1958_v17, %v1943_v5  ;;  %v1968_v4 = vxor.u32 2147483648, %v1951_v7  ;;  %vm2075_vm3 = vcmp.lt.s32.totalorder %v2074_v61, 0  ;;  %v2076_v35 = vsub.s32 0, %v2074_v61 }
 0x202   : > { %v2183_v1 = vmul.u32 %v2179_v56, %v2177_v40  ;;  %v2184_v47 = vshll.u32 %v2181_v30, 16  ;;  %v2186_v63 = vshll.u32 %v7453_v54, 16  ;;  %v2163_v37 = vsel %vm2159_vm11, %v2143_v3, %v2146_v18 }
 0x203   : > { %v1965_v16 = vxor.u32 2147483648, %v1959_v0  ;;  %v1969_v36 = vsel %vm1967_vm2, %v1968_v4, %v1959_v0  ;;  %v2077_v12 = vsel %vm2075_vm3, %v2076_v35, %v2074_v61  ;;  %v2164_v15 = vsel %vm2162_vm12, %v2152_v19, 2102212464 }
 0x204   : > { %v2078_v50 = vclz %v2077_v12  ;;  %v2200_v48 = vand.u32 65535, %v2170_v51  ;;  %vm2188_vm4 = vc.u32 %v2180_v25, %v2184_v47  ;;  %v2190_v43 = vadd.s32 %v2184_v47, %v2180_v25 }
 0x205   : > { %v1966_v5 = vsel %vm1964_vm1, %v1951_v7, %v1965_v16  ;;  %vm1974_vm5 = vcmp.lt.s32.totalorder %v6164_v41, 0  ;;  %v2189_v28 = vsel %vm2188_vm4, 1, %v5768_v33  ;;  %v2203_v49 = vmul.u32 %v2201_v46, %v2176_v32 }
 0x206   : > { %v1970_v20 = vsel %vm1963_vm0, %v1966_v5, %v1969_v36  ;;  %v5531_v2 = vadd.s32 4294967294, %v2078_v50  ;;  %v2282_v18 = vand.u32 2147483647, %v6167_v52  ;;  %v2185_v10 = vshrl.u32 %v2181_v30, 16 }
 0x207   : > { %v1971_v6 = vsel %vm1960_vm15, nan, %v1970_v20  ;;  %v2191_v13 = vadd.s32 %v2189_v28, %v2183_v1  ;;  %vm2192_vm7 = vc.u32 %v2190_v43, %v2186_v63  ;;  %v2202_v27 = vmul.u32 %v2200_v48, %v2176_v32 }
 0x208   : > { %vm5532_vm6 = vcmp.lt.s32.totalorder %v5531_v2, 0  ;;  %5391 = vst [vmem:[%s6492_s26 + $0x48] sm:$0xff] %v1971_v6  ;;  %v2193_v31 = vsel %vm2192_vm7, 1, %v5768_v33  ;;  %v2204_v7 = vmul.u32 %v2200_v48, %v2177_v40  ;;  %v2165_v42 = vsel %vm2161_vm13, %v7417_v29, %v2164_v15 }
 0x209   : > { %v2081_v19 = vsel %vm5532_vm6, 0, %v5531_v2  ;;  %v2195_v51 = vadd.s32 %v2193_v31, %v2191_v13  ;;  %v2205_v56 = vmul.u32 %v2201_v46, %v2177_v40  ;;  %v2206_v0 = vshll.u32 %v2203_v49, 16 }
 0x20a   : > { %v2082_v17 = vsub.s32 32, %v2081_v19  ;;  %v2083_v38 = vshll.u32 %v2074_v61, %v2081_v19  ;;  %v2086_v3 = vsub.s32 4294967266, %v2081_v19  ;;  %v2285_v4 = vand.u32 2139095040, %v6167_v52 }
 0x20b   : > { %v2096_v30 = vsub.s32 4, %v7429_v21  ;;  %v2289_v32 = vand.u32 8388607, %v2282_v18  ;;  %v2187_v16 = vshrl.u32 %v7453_v54, 16  ;;  %v2208_v61 = vshll.u32 %v2204_v7, 16 }
 0x20c   : > { %v2084_v35 = vshrl.u32 %v2066_v14, %v2082_v17  ;;  %v2087_v25 = vadd.s32 127, %v2086_v3  ;;  %vm2210_vm8 = vc.u32 %v2202_v27, %v2206_v0  ;;  %v2212_v36 = vadd.s32 %v2206_v0, %v2202_v27 }
 0x20d   : > { %v2196_v1 = vadd.s32 %v2195_v51, %v2185_v10  ;;  %v2211_v29 = vsel %vm2210_vm8, 1, %v5768_v33  ;;  %v2207_v40 = vshrl.u32 %v2203_v49, 16  ;;  %v2286_v14 = vshrl.u32 %v2285_v4, 23 }
 0x20e   : > { %v2085_v12 = vor.u32 %v2084_v35, %v2083_v38  ;;  %v2088_v50 = vshll.u32 %v2087_v25, 23  ;;  %v2213_v46 = vadd.s32 %v2211_v29, %v2205_v56  ;;  %vm2214_vm9 = vc.u32 %v2212_v36, %v2208_v61 }
 0x20f   : > { %v2097_v5 = vsel %vm1974_vm5, %v2096_v30, %v7429_v21  ;;  %v2215_v54 = vsel %vm2214_vm9, 1, %v5768_v33  ;;  %vm7484_vm10 = vcmp.le.f32.partialorder %v1972_v23, 0.7853982  ;;  %v2209_v48 = vshrl.u32 %v2204_v7, 16 }
 0x210   : > { %v2089_v47 = vor.u32 4788187, %v2088_v50  ;;  %v2092_v63 = vcvt.s32.f32 %v2085_v12  ;;  %v2217_v20 = vadd.s32 %v2215_v54, %v2213_v46  ;;  %v5536_v2 = vadd.s32 4294967169, %v2286_v14 }
 0x211   : > { %v2166_v6 = vsel %vm2160_vm14, %v2163_v37, %v2165_v42  ;;  %v7490_v28 = vadd.s32 %v2196_v1, %v2187_v16  ;;  %v7492_v49 = vadd.s32 %v2212_v36, %v2208_v61  ;;  %v2099_v21 = vsel %vm7484_vm10, 0, %v2097_v5 }
 0x212   : > { %v2090_v43 = vand.u32 2147483647, %v2089_v47  ;;  %v2218_v10 = vadd.s32 %v2217_v20, %v2207_v40  ;;  %v2290_v13 = vor.u32 8388608, %v2289_v32  ;;  %v2292_v23 = vadd.s32 1, %v5536_v2 }
 0x213   : > { %v2220_v27 = vmul.u32 %v7427_v45, %v2166_v6  ;;  %v2116_v17 = vadd.s32 3, %v2099_v21  ;;  %vm2222_vm12 = vc.u32 %v7490_v28, %v7492_v49  ;;  %v2437_v32 = vand.u32 2147483647, %v6182_v24 }
 0x214   : > { %v2093_v19 = vmul.f32 %v2092_v63, %v2090_v43  ;;  %v2219_v31 = vadd.s32 %v2218_v10, %v2209_v48  ;;  %vm2293_vm11 = vcmp.gt.s32.totalorder %v2292_v23, 0  ;;  %v7499_v3 = vshll.u32 %v2290_v13, 8 }
 0x215   : > { %v2294_v62 = vsel %vm2293_vm11, %v2292_v23, 0  ;;  %v7512_v4 = vand.u32 3, %v2116_v17  ;;  %v2440_v16 = vand.u32 2139095040, %v6182_v24  ;;  %vm2129_vm0 = vcmp.lt.s32.totalorder %v6180_v55, 0 }
 0x216   : > { %v2094_v7 = vxor.u32 2147483648, %v2093_v19  ;;  %v2223_v37 = vadd.s32 1, %v2219_v31  ;;  %v2296_v38 = vand.u32 31, %v2294_v62  ;;  %v7514_v25 = vshrl.u32 %v2294_v62, 5 }
 0x217   : > { %v7517_v30 = vand.u32 65535, %v7499_v3  ;;  %vm2122_vm13 = vcmp.eq.s32.totalorder %v7512_v4, 2  ;;  %v2441_v21 = vshrl.u32 %v2440_v16, 23  ;;  %vm2119_vm14 = vcmp.eq.s32.totalorder %v7512_v4, 0 }
 0x218   : > { %v2095_v51 = vsel %vm1974_vm5, %v2094_v7, %v2093_v19  ;;  %v2224_v45 = vsel %vm2222_vm12, %v2223_v37, %v2219_v31  ;;  %v7508_v56 = vsub.s32 32, %v2296_v38  ;;  %v2302_v50 = vshll.u32 %v9992_v34, %v2296_v38 }
 0x219   : > { %v7506_v42 = vsel %vm7484_vm10, %v6164_v41, %v2095_v51  ;;  %v2225_v35 = vadd.s32 %v2224_v45, %v2220_v27  ;;  %v2305_v29 = vshll.u32 %v9993_v22, %v2296_v38  ;;  %v2308_v46 = vshll.u32 %v9994_v9, %v2296_v38 }
 0x21a   : > { %v2100_v0 = vmul.f32 %v7506_v42, %v7506_v42  ;;  %v2303_v1 = vshrl.u32 %v9993_v22, %v7508_v56  ;;  %v2306_v40 = vshrl.u32 %v9994_v9, %v7508_v56  ;;  %v2309_v5 = vshrl.u32 %v9995_v44, %v7508_v56 }
 0x21b   : > { %v2226_v12 = vadd.s32 536870912, %v2225_v35  ;;  %v2299_v54 = vshll.u32 %v9991_v11, %v2296_v38  ;;  %v2300_v15 = vshrl.u32 %v9992_v34, %v7508_v56  ;;  %v2311_v48 = vshll.u32 %v9995_v44, %v2296_v38 }
 0x21c   : > { %v2101_v61 = vmul.f32 -0.001358992, %v2100_v0  ;;  %v2108_v36 = vmul.f32 -0.00019511016, %v2100_v0  ;;  %v2312_v20 = vshrl.u32 %v9996_v8, %v7508_v56  ;;  %v7538_v10 = vor.u32 %v2303_v1, %v2302_v50 }
 0x21d   : > { %v2227_v63 = vshrl.u32 %v2226_v12, 30  ;;  %v7540_v13 = vor.u32 %v2306_v40, %v2305_v29  ;;  %v2310_v23 = vor.u32 %v2309_v5, %v2308_v46  ;;  %vm2118_vm15 = vcmp.lt.s32.totalorder %v7512_v4, 2 }
 0x21e   : > { %v2102_v14 = vadd.f32 0.041655596, %v2101_v61  ;;  %v2109_v47 = vadd.f32 0.008332121, %v2108_v36  ;;  %v2313_v19 = vor.u32 %v2312_v20, %v2311_v48  ;;  %vm2314_vm1 = vcmp.lt.s32.totalorder %v7514_v25, 1 }
 0x21f   : > { %v2228_v6 = vshll.u32 %v2227_v63, 30  ;;  %vm2115_vm2 = vweird.f32 %v6164_v41  ;;  %v7546_v17 = vor.u32 %v2300_v15, %v2299_v54  ;;  %vm2316_vm3 = vcmp.lt.s32.totalorder %v7514_v25, 3 }
 0x220   : > { %v2103_v2 = vmul.f32 %v2102_v14, %v2100_v0  ;;  %v2110_v43 = vmul.f32 %v2109_v47, %v2100_v0  ;;  %vm2317_vm4 = vcmp.lt.s32.totalorder %v7514_v25, 4  ;;  %v7551_v62 = vshrl.u32 %v7499_v3, 16 }
 0x221   : > { %v2229_v7 = vsub.s32 %v2225_v35, %v2228_v6  ;;  %vm2315_vm6 = vcmp.lt.s32.totalorder %v7514_v25, 2  ;;  %v2323_v45 = vsel %vm2317_vm4, %v2310_v23, 920167782  ;;  %v2326_v35 = vsel %vm2314_vm1, %v7538_v10, %v7540_v13 }
 0x222   : > { %v2104_v31 = vadd.f32 -0.4999988, %v2103_v2  ;;  %v2111_v27 = vadd.f32 -0.16666654, %v2110_v43  ;;  %v2327_v16 = vsel %vm2317_vm4, %v2313_v19, 1326507024  ;;  %v2322_v40 = vsel %vm2314_vm1, %v7546_v17, %v7538_v10 }
 0x223   : > { %vm2230_vm5 = vcmp.lt.s32.totalorder %v2229_v7, 0  ;;  %v2231_v51 = vsub.s32 0, %v2229_v7  ;;  %v5539_v50 = vadd.s32 4294967169, %v2441_v21  ;;  %vm7564_vm7 = vcmp.le.f32.partialorder %v2127_v53, 0.7853982 }
 0x224   : > { %v2105_v37 = vmul.f32 %v2104_v31, %v2100_v0  ;;  %v2112_v38 = vmul.f32 %v2111_v27, %v2100_v0  ;;  %v2251_v29 = vsub.s32 4, %v2227_v63  ;;  %v2328_v46 = vsel %vm2316_vm3, %v2310_v23, %v2327_v16 }
 0x225   : > { %v2232_v12 = vsel %vm2230_vm5, %v2231_v51, %v2229_v7  ;;  %v2324_v53 = vsel %vm2316_vm3, %v7540_v13, %v2323_v45  ;;  %v2329_v5 = vsel %vm2315_vm6, %v2326_v35, %v2328_v46  ;;  %v2221_v54 = vadd.s32 %v7492_v49, %v7490_v28 }
 0x226   : > { %v2106_v61 = vadd.f32 1.0, %v2105_v37  ;;  %v2113_v36 = vadd.f32 1.0, %v2112_v38  ;;  %v2233_v1 = vclz %v2232_v12  ;;  %v2333_v48 = vand.u32 65535, %v2329_v5 }
 0x227   : > { %v2334_v20 = vshrl.u32 %v2329_v5, 16  ;;  %v2447_v6 = vadd.s32 1, %v5539_v50  ;;  %v2252_v21 = vsel %vm2129_vm0, %v2251_v29, %v2227_v63  ;;  %v2325_v23 = vsel %vm2315_vm6, %v2322_v40, %v2324_v53 }
 0x228   : > { %v2114_v14 = vmul.f32 %v2113_v36, %v7506_v42  ;;  %v2123_v47 = vxor.u32 2147483648, %v2106_v61  ;;  %v5534_v15 = vadd.s32 4294967294, %v2233_v1  ;;  %v7586_v42 = vand.u32 8388607, %v2437_v32 }
 0x229   : > { %v2336_v28 = vmul.u32 %v2334_v20, %v7517_v30  ;;  %v2335_v31 = vmul.u32 %v2333_v48, %v7517_v30  ;;  %v2337_v27 = vmul.u32 %v2333_v48, %v7551_v62  ;;  %v2298_v35 = vshrl.u32 %v9991_v11, %v7508_v56 }
 0x22a   : > { %v2120_v2 = vxor.u32 2147483648, %v2114_v14  ;;  %v2124_v43 = vsel %vm2122_vm13, %v2123_v47, %v2114_v14  ;;  %vm5535_vm8 = vcmp.lt.s32.totalorder %v5534_v15, 0  ;;  %v2355_v16 = vand.u32 65535, %v2325_v23 }
 0x22b   : > { %v2236_v19 = vsel %vm5535_vm8, 0, %v5534_v15  ;;  %v2338_v50 = vmul.u32 %v2334_v20, %v7551_v62  ;;  %v2339_v1 = vshll.u32 %v2336_v28, 16  ;;  %v2254_v4 = vsel %vm7564_vm7, 0, %v2252_v21 }
 0x22c   : > { %v2121_v49 = vsel %vm2119_vm14, %v2106_v61, %v2120_v2  ;;  %v2237_v38 = vsub.s32 32, %v2236_v19  ;;  %v2238_v51 = vshll.u32 %v2229_v7, %v2236_v19  ;;  %v2241_v63 = vsub.s32 4294967266, %v2236_v19 }
 0x22d   : > { %v2125_v37 = vsel %vm2118_vm15, %v2121_v49, %v2124_v43  ;;  %v2356_v61 = vshrl.u32 %v2325_v23, 16  ;;  %v2319_v7 = vsel %vm2317_vm4, %v7540_v13, 2102212464  ;;  %v2340_v41 = vshrl.u32 %v2336_v28, 16 }
 0x22e   : > { %v2126_v45 = vsel %vm2115_vm2, nan, %v2125_v37  ;;  %v2239_v36 = vshrl.u32 %v2221_v54, %v2237_v38  ;;  %v2242_v12 = vadd.s32 127, %v2241_v63  ;;  %v2341_v29 = vshll.u32 %v2337_v27, 16 }
 0x22f   : > { %5392 = vst [vmem:[%s6492_s26 + $0x50] sm:$0xff] %v2126_v45  ;;  %vm2343_vm9 = vc.u32 %v2335_v31, %v2339_v1  ;;  %v2345_v56 = vadd.s32 %v2339_v1, %v2335_v31  ;;  %v2357_v47 = vmul.u32 %v2355_v16, %v7517_v30  ;;  %v2358_v53 = vmul.u32 %v2356_v61, %v7517_v30 }
 0x230   : > { %v2240_v40 = vor.u32 %v2239_v36, %v2238_v51  ;;  %v2243_v46 = vshll.u32 %v2242_v12, 23  ;;  %v2344_v14 = vsel %vm2343_vm9, 1, %v5768_v33  ;;  %v2359_v5 = vmul.u32 %v2355_v16, %v7551_v62 }
 0x231   : > { %v2346_v48 = vadd.s32 %v2344_v14, %v2338_v50  ;;  %vm2347_vm10 = vc.u32 %v2345_v56, %v2341_v29  ;;  %v2360_v20 = vmul.u32 %v2356_v61, %v7551_v62  ;;  %v2361_v2 = vshll.u32 %v2358_v53, 16 }
 0x232   : > { %v2244_v54 = vor.u32 4788187, %v2243_v46  ;;  %v2247_v15 = vcvt.s32.f32 %v2240_v40  ;;  %v2348_v13 = vsel %vm2347_vm10, 1, %v5768_v33  ;;  %v2363_v43 = vshll.u32 %v2359_v5, 16 }
 0x233   : > { %v2318_v23 = vsel %vm2314_vm1, %v2298_v35, %v7546_v17  ;;  %v2320_v30 = vsel %vm2316_vm3, %v7538_v10, %v2319_v7  ;;  %v2350_v28 = vadd.s32 %v2348_v13, %v2346_v48  ;;  %v2342_v49 = vshrl.u32 %v2337_v27, 16 }
 0x234   : > { %v2245_v21 = vand.u32 2147483647, %v2244_v54  ;;  %vm2365_vm11 = vc.u32 %v2357_v47, %v2361_v2  ;;  %v2367_v19 = vadd.s32 %v2361_v2, %v2357_v47  ;;  %vm2448_vm12 = vcmp.gt.s32.totalorder %v2447_v6, 0 }
 0x235   : > { %v2351_v37 = vadd.s32 %v2350_v28, %v2340_v41  ;;  %v2366_v62 = vsel %vm2365_vm11, 1, %v5768_v33  ;;  %v2449_v38 = vsel %vm2448_vm12, %v2447_v6, 0  ;;  %v2362_v51 = vshrl.u32 %v2358_v53, 16 }
 0x236   : > { %v2248_v31 = vmul.f32 %v2247_v15, %v2245_v21  ;;  %v2368_v63 = vadd.s32 %v2366_v62, %v2360_v20  ;;  %vm2369_vm13 = vc.u32 %v2367_v19, %v2363_v43  ;;  %v2445_v35 = vor.u32 8388608, %v7586_v42 }
 0x237   : > { %v2370_v17 = vsel %vm2369_vm13, 1, %v5768_v33  ;;  %v2451_v16 = vand.u32 31, %v2449_v38  ;;  %v2271_v10 = vadd.s32 3, %v2254_v4  ;;  %v2321_v27 = vsel %vm2315_vm6, %v2318_v23, %v2320_v30 }
 0x238   : > { %v2249_v45 = vxor.u32 2147483648, %v2248_v31  ;;  %v2364_v61 = vshrl.u32 %v2359_v5, 16  ;;  %v2372_v36 = vadd.s32 %v2370_v17, %v2368_v63  ;;  %v7629_v50 = vadd.s32 %v2351_v37, %v2342_v49 }
 0x239   : > { %v7631_v6 = vadd.s32 %v2367_v19, %v2363_v43  ;;  %v7633_v1 = vsub.s32 32, %v2451_v16  ;;  %v7638_v4 = vshrl.u32 %v2449_v38, 5  ;;  %v2454_v25 = vshll.u32 %v9991_v11, %v2451_v16 }
 0x23a   : > { %v2250_v12 = vsel %vm2129_vm0, %v2249_v45, %v2248_v31  ;;  %v2373_v7 = vadd.s32 %v2372_v36, %v2362_v51  ;;  %v2457_v40 = vshll.u32 %v9992_v34, %v2451_v16  ;;  %v2460_v14 = vshll.u32 %v9993_v22, %v2451_v16 }
 0x23b   : > { %v2253_v42 = vsel %vm7564_vm7, %v6180_v55, %v2250_v12  ;;  %v2455_v29 = vshrl.u32 %v9992_v34, %v7633_v1  ;;  %v2458_v46 = vshrl.u32 %v9993_v22, %v7633_v1  ;;  %v2461_v0 = vshrl.u32 %v9994_v9, %v7633_v1 }
 0x23c   : > { %v2255_v41 = vmul.f32 %v2253_v42, %v2253_v42  ;;  %v2374_v56 = vadd.s32 %v2373_v7, %v2364_v61  ;;  %v2463_v47 = vshll.u32 %v9994_v9, %v2451_v16  ;;  %v2375_v54 = vmul.u32 %v7499_v3, %v2321_v27 }
 0x23d   : > { %vm2377_vm14 = vc.u32 %v7629_v50, %v7631_v6  ;;  %v7653_v48 = vor.u32 %v2455_v29, %v2454_v25  ;;  %v2464_v13 = vshrl.u32 %v9995_v44, %v7633_v1  ;;  %v2466_v20 = vshll.u32 %v9995_v44, %v2451_v16 }
 0x23e   : > { %v2256_v53 = vmul.f32 -0.001358992, %v2255_v41  ;;  %v2263_v5 = vmul.f32 -0.00019511016, %v2255_v41  ;;  %v2378_v15 = vadd.s32 1, %v2374_v56  ;;  %v7658_v21 = vor.u32 %v2458_v46, %v2457_v40 }
 0x23f   : > { %v2467_v23 = vshrl.u32 %v9996_v8, %v7633_v1  ;;  %v7662_v3 = vor.u32 %v2461_v0, %v2460_v14  ;;  %v2465_v28 = vor.u32 %v2464_v13, %v2463_v47  ;;  %vm2469_vm15 = vcmp.lt.s32.totalorder %v7638_v4, 1 }
 0x240   : > { %v2257_v2 = vadd.f32 0.041655596, %v2256_v53  ;;  %v2264_v43 = vadd.f32 0.008332121, %v2263_v5  ;;  %v2379_v30 = vsel %vm2377_vm14, %v2378_v15, %v2374_v56  ;;  %vm2472_vm0 = vcmp.lt.s32.totalorder %v7638_v4, 4 }
 0x241   : > { %v2380_v31 = vadd.s32 %v2379_v30, %v2375_v54  ;;  %v2272_v37 = vand.u32 3, %v2271_v10  ;;  %v2468_v62 = vor.u32 %v2467_v23, %v2466_v20  ;;  %vm2470_vm1 = vcmp.lt.s32.totalorder %v7638_v4, 2 }
 0x242   : > { %v2258_v49 = vmul.f32 %v2257_v2, %v2255_v41  ;;  %v2265_v19 = vmul.f32 %v2264_v43, %v2255_v41  ;;  %vm2471_vm2 = vcmp.lt.s32.totalorder %v7638_v4, 3  ;;  %v2477_v45 = vsel %vm2469_vm15, %v7653_v48, %v7658_v21 }
 0x243   : > { %v2381_v63 = vadd.s32 536870912, %v2380_v31  ;;  %v2478_v17 = vsel %vm2472_vm0, %v2465_v28, 920167782  ;;  %v2481_v16 = vsel %vm2469_vm15, %v7658_v21, %v7662_v3  ;;  %v2482_v10 = vsel %vm2472_vm0, %v2468_v62, 1326507024 }
 0x244   : > { %v2259_v38 = vadd.f32 -0.4999988, %v2258_v49  ;;  %v2266_v51 = vadd.f32 -0.16666654, %v2265_v19  ;;  %v7680_v27 = vshll.u32 %v2445_v35, 8  ;;  %v2479_v7 = vsel %vm2471_vm2, %v7662_v3, %v2478_v17 }
 0x245   : > { %v7682_v12 = vshrl.u32 %v2381_v63, 30  ;;  %v2480_v25 = vsel %vm2470_vm1, %v2477_v45, %v2479_v7  ;;  %v2483_v29 = vsel %vm2471_vm2, %v2465_v28, %v2482_v10  ;;  %vm2277_vm3 = vcmp.eq.s32.totalorder %v2272_v37, 2 }
 0x246   : > { %v2260_v61 = vmul.f32 %v2259_v38, %v2255_v41  ;;  %v2267_v36 = vmul.f32 %v2266_v51, %v2255_v41  ;;  %v2484_v35 = vsel %vm2470_vm1, %v2481_v16, %v2483_v29  ;;  %v2486_v41 = vand.u32 65535, %v7680_v27 }
 0x247   : > { %v2383_v56 = vshll.u32 %v7682_v12, 30  ;;  %v2487_v14 = vshrl.u32 %v7680_v27, 16  ;;  %v2511_v5 = vshrl.u32 %v2480_v25, 16  ;;  %vm2273_vm4 = vcmp.lt.s32.totalorder %v2272_v37, 2 }
 0x248   : > { %v2261_v40 = vadd.f32 1.0, %v2260_v61  ;;  %v2268_v46 = vadd.f32 1.0, %v2267_v36  ;;  %vm2274_vm5 = vcmp.eq.s32.totalorder %v2272_v37, 0  ;;  %v2488_v54 = vand.u32 65535, %v2484_v35 }
 0x249   : > { %v2384_v53 = vsub.s32 %v2380_v31, %v2383_v56  ;;  %v2489_v15 = vshrl.u32 %v2484_v35, 16  ;;  %vm2270_vm7 = vweird.f32 %v6180_v55  ;;  %v2510_v49 = vand.u32 65535, %v2480_v25 }
 0x24a   : > { %v2269_v0 = vmul.f32 %v2268_v46, %v2253_v42  ;;  %v2278_v47 = vxor.u32 2147483648, %v2261_v40  ;;  %v2490_v43 = vmul.u32 %v2488_v54, %v2486_v41  ;;  %v7697_v30 = vmul.u32 %v2488_v54, %v2487_v14 }
 0x24b   : > { %vm2385_vm6 = vcmp.lt.s32.totalorder %v2384_v53, 0  ;;  %v2386_v2 = vsub.s32 0, %v2384_v53  ;;  %v2491_v23 = vmul.u32 %v2489_v15, %v2486_v41  ;;  %v7699_v19 = vmul.u32 %v2511_v5, %v2486_v41 }
 0x24c   : > { %v2275_v13 = vxor.u32 2147483648, %v2269_v0  ;;  %v2279_v20 = vsel %vm2277_vm3, %v2278_v47, %v2269_v0  ;;  %v2493_v38 = vmul.u32 %v2489_v15, %v2487_v14  ;;  %v2376_v45 = vadd.s32 %v7631_v6, %v7629_v50 }
 0x24d   : > { %v2387_v42 = vsel %vm2385_vm6, %v2386_v2, %v2384_v53  ;;  %v2494_v51 = vshll.u32 %v2491_v23, 16  ;;  %v2496_v55 = vshll.u32 %v7697_v30, 16  ;;  %v2453_v16 = vshrl.u32 %v9991_v11, %v7633_v1 }
 0x24e   : > { %v2276_v28 = vsel %vm2274_vm5, %v2261_v40, %v2275_v13  ;;  %v2388_v62 = vclz %v2387_v42  ;;  %v2512_v37 = vmul.u32 %v2510_v49, %v2486_v41  ;;  %v2514_v36 = vmul.u32 %v2510_v49, %v2487_v14 }
 0x24f   : > { %v2280_v31 = vsel %vm2273_vm4, %v2276_v28, %v2279_v20  ;;  %vm2498_vm8 = vc.u32 %v2490_v43, %v2494_v51  ;;  %v2500_v10 = vadd.s32 %v2494_v51, %v2490_v43  ;;  %v2516_v7 = vshll.u32 %v7699_v19, 16 }
 0x250   : > { %v2281_v63 = vsel %vm2270_vm7, nan, %v2280_v31  ;;  %v5537_v17 = vadd.s32 4294967294, %v2388_v62  ;;  %v2499_v61 = vsel %vm2498_vm8, 1, %v5768_v33  ;;  %v2474_v50 = vsel %vm2472_vm0, %v7662_v3, 2102212464 }
 0x251   : > { %5393 = vst [vmem:[%s6492_s26 + $0x58] sm:$0xff] %v2281_v63  ;;  %v2501_v6 = vadd.s32 %v2499_v61, %v2493_v38  ;;  %vm2502_vm10 = vc.u32 %v2500_v10, %v2496_v55  ;;  %v2495_v29 = vshrl.u32 %v2491_v23, 16  ;;  %v2515_v40 = vmul.u32 %v2511_v5, %v2487_v14 }
 0x252   : > { %vm5538_vm9 = vcmp.lt.s32.totalorder %v5537_v17, 0  ;;  %v2503_v1 = vsel %vm2502_vm10, 1, %v5768_v33  ;;  %vm2284_vm11 = vcmp.lt.s32.totalorder %v6167_v52, 0  ;;  %v2473_v41 = vsel %vm2469_vm15, %v2453_v16, %v7653_v48 }
 0x253   : > { %v2391_v25 = vsel %vm5538_vm9, 0, %v5537_v17  ;;  %v2505_v0 = vadd.s32 %v2503_v1, %v2501_v6  ;;  %v2518_v47 = vshll.u32 %v2514_v36, 16  ;;  %vm2520_vm12 = vc.u32 %v2512_v37, %v2516_v7 }
 0x254   : > { %v2392_v46 = vsub.s32 32, %v2391_v25  ;;  %v2393_v56 = vshll.u32 %v2384_v53, %v2391_v25  ;;  %v2396_v35 = vsub.s32 4294967266, %v2391_v25  ;;  %v2406_v15 = vsub.s32 4, %v7682_v12 }
 0x255   : > { %v2521_v13 = vsel %vm2520_vm12, 1, %v5768_v33  ;;  %v2475_v14 = vsel %vm2471_vm2, %v7658_v21, %v2474_v50  ;;  %v2522_v53 = vadd.s32 %v2516_v7, %v2512_v37  ;;  %v2595_v20 = vand.u32 2139095040, %v6185_v57 }
 0x256   : > { %v2394_v3 = vshrl.u32 %v2376_v45, %v2392_v46  ;;  %v2397_v54 = vadd.s32 127, %v2396_v35  ;;  %v2523_v5 = vadd.s32 %v2521_v13, %v2515_v40  ;;  %v2497_v48 = vshrl.u32 %v7697_v30, 16 }
 0x257   : > { %v2506_v23 = vadd.s32 %v2505_v0, %v2495_v29  ;;  %v2517_v28 = vshrl.u32 %v7699_v19, 16  ;;  %vm2524_vm13 = vc.u32 %v2522_v53, %v2518_v47  ;;  %v2592_v42 = vand.u32 2147483647, %v6185_v57 }
 0x258   : > { %v2395_v2 = vor.u32 %v2394_v3, %v2393_v56  ;;  %v2398_v43 = vshll.u32 %v2397_v54, 23  ;;  %v2596_v49 = vshrl.u32 %v2595_v20, 23  ;;  %v2407_v21 = vsel %vm2284_vm11, %v2406_v15, %v7682_v12 }
 0x259   : > { %v2525_v38 = vsel %vm2524_vm13, 1, %v5768_v33  ;;  %vm7733_vm14 = vcmp.le.f32.partialorder %v2282_v18, 0.7853982  ;;  %v2519_v30 = vshrl.u32 %v2514_v36, 16  ;;  %v2476_v55 = vsel %vm2470_vm1, %v2473_v41, %v2475_v14 }
 0x25a   : > { %v2399_v31 = vor.u32 4788187, %v2398_v43  ;;  %v2402_v62 = vcvt.s32.f32 %v2395_v2  ;;  %v2527_v19 = vadd.s32 %v2525_v38, %v2523_v5  ;;  %v5542_v63 = vadd.s32 4294967169, %v2596_v49 }
 0x25b   : > { %v2507_v17 = vadd.s32 %v2506_v23, %v2497_v48  ;;  %v2526_v16 = vadd.s32 %v2522_v53, %v2518_v47  ;;  %v2409_v12 = vsel %vm7733_vm14, 0, %v2407_v21  ;;  %v2599_v61 = vand.u32 8388607, %v2592_v42 }
 0x25c   : > { %v2400_v45 = vand.u32 2147483647, %v2399_v31  ;;  %v2528_v10 = vadd.s32 %v2527_v19, %v2517_v28  ;;  %v2602_v18 = vadd.s32 1, %v5542_v63  ;;  %v2530_v36 = vmul.u32 %v7680_v27, %v2476_v55 }
 0x25d   : > { %v2426_v6 = vadd.s32 3, %v2409_v12  ;;  %vm2532_vm0 = vc.u32 %v2507_v17, %v2526_v16  ;;  %v2600_v29 = vor.u32 8388608, %v2599_v61  ;;  %v2750_v40 = vand.u32 2139095040, %v6187_v58 }
 0x25e   : > { %v2403_v37 = vmul.f32 %v2402_v62, %v2400_v45  ;;  %v2529_v7 = vadd.s32 %v2528_v10, %v2519_v30  ;;  %vm2603_vm15 = vcmp.gt.s32.totalorder %v2602_v18, 0  ;;  %v2747_v3 = vand.u32 2147483647, %v6187_v58 }
 0x25f   : > { %v2604_v4 = vsel %vm2603_vm15, %v2602_v18, 0  ;;  %v7756_v41 = vand.u32 3, %v2426_v6  ;;  %v7759_v54 = vadd.s32 %v2526_v16, %v2507_v17  ;;  %v7763_v13 = vshll.u32 %v2600_v29, 8 }
 0x260   : > { %v2404_v50 = vxor.u32 2147483648, %v2403_v37  ;;  %v2533_v25 = vadd.s32 1, %v2529_v7  ;;  %v2606_v1 = vand.u32 31, %v2604_v4  ;;  %v7761_v15 = vshrl.u32 %v2604_v4, 5 }
 0x261   : > { %v2751_v14 = vshrl.u32 %v2750_v40, 23  ;;  %vm2432_vm1 = vcmp.eq.s32.totalorder %v7756_v41, 2  ;;  %v7785_v17 = vand.u32 65535, %v7763_v13  ;;  %vm2429_vm2 = vcmp.eq.s32.totalorder %v7756_v41, 0 }
 0x262   : > { %v2405_v46 = vsel %vm2284_vm11, %v2404_v50, %v2403_v37  ;;  %v2534_v35 = vsel %vm2532_vm0, %v2533_v25, %v2529_v7  ;;  %v7752_v27 = vsub.s32 32, %v2606_v1  ;;  %v2612_v2 = vshll.u32 %v9992_v34, %v2606_v1 }
 0x263   : > { %v7750_v56 = vsel %vm7733_vm14, %v6167_v52, %v2405_v46  ;;  %v2535_v47 = vadd.s32 %v2534_v35, %v2530_v36  ;;  %v2615_v48 = vshll.u32 %v9993_v22, %v2606_v1  ;;  %v2618_v28 = vshll.u32 %v9994_v9, %v2606_v1 }
 0x264   : > { %v2410_v0 = vmul.f32 %v7750_v56, %v7750_v56  ;;  %v2613_v43 = vshrl.u32 %v9993_v22, %v7752_v27  ;;  %v2616_v23 = vshrl.u32 %v9994_v9, %v7752_v27  ;;  %v2619_v21 = vshrl.u32 %v9995_v44, %v7752_v27 }
 0x265   : > { %v2536_v20 = vadd.s32 536870912, %v2535_v47  ;;  %v2609_v38 = vshll.u32 %v9991_v11, %v2606_v1  ;;  %v2610_v51 = vshrl.u32 %v9992_v34, %v7752_v27  ;;  %v2621_v30 = vshll.u32 %v9995_v44, %v2606_v1 }
 0x266   : > { %v2411_v53 = vmul.f32 -0.001358992, %v2410_v0  ;;  %v2418_v5 = vmul.f32 -0.00019511016, %v2410_v0  ;;  %v2622_v19 = vshrl.u32 %v9996_v8, %v7752_v27  ;;  %v7788_v16 = vor.u32 %v2613_v43, %v2612_v2 }
 0x267   : > { %v7772_v62 = vshrl.u32 %v2536_v20, 30  ;;  %v2617_v12 = vor.u32 %v2616_v23, %v2615_v48  ;;  %v2620_v10 = vor.u32 %v2619_v21, %v2618_v28  ;;  %vm2428_vm3 = vcmp.lt.s32.totalorder %v7756_v41, 2 }
 0x268   : > { %v2412_v49 = vadd.f32 0.041655596, %v2411_v53  ;;  %v2419_v31 = vadd.f32 0.008332121, %v2418_v5  ;;  %v2623_v61 = vor.u32 %v2622_v19, %v2621_v30  ;;  %vm2624_vm4 = vcmp.lt.s32.totalorder %v7761_v15, 1 }
 0x269   : > { %v2538_v55 = vshll.u32 %v7772_v62, 30  ;;  %vm2425_vm5 = vweird.f32 %v6167_v52  ;;  %v2611_v36 = vor.u32 %v2610_v51, %v2609_v38  ;;  %vm2626_vm6 = vcmp.lt.s32.totalorder %v7761_v15, 3 }
 0x26a   : > { %v2413_v63 = vmul.f32 %v2412_v49, %v2410_v0  ;;  %v2420_v45 = vmul.f32 %v2419_v31, %v2410_v0  ;;  %vm2627_vm7 = vcmp.lt.s32.totalorder %v7761_v15, 4  ;;  %v5545_v50 = vadd.s32 4294967169, %v2751_v14 }
 0x26b   : > { %v7791_v7 = vsub.s32 %v2535_v47, %v2538_v55  ;;  %vm2439_vm9 = vcmp.lt.s32.totalorder %v6182_v24, 0  ;;  %vm2625_vm10 = vcmp.lt.s32.totalorder %v7761_v15, 2  ;;  %v2633_v29 = vsel %vm2627_vm7, %v2620_v10, 920167782 }
 0x26c   : > { %v2414_v18 = vadd.f32 -0.4999988, %v2413_v63  ;;  %v2421_v37 = vadd.f32 -0.16666654, %v2420_v45  ;;  %v2636_v1 = vsel %vm2624_vm4, %v7788_v16, %v2617_v12  ;;  %v2637_v40 = vsel %vm2627_vm7, %v2623_v61, 1326507024 }
 0x26d   : > { %vm2540_vm8 = vcmp.lt.s32.totalorder %v7791_v7, 0  ;;  %v2541_v25 = vsub.s32 0, %v7791_v7  ;;  %v2642_v47 = vshrl.u32 %v7763_v13, 16  ;;  %v2632_v53 = vsel %vm2624_vm4, %v2611_v36, %v7788_v16 }
 0x26e   : > { %v2415_v6 = vmul.f32 %v2414_v18, %v2410_v0  ;;  %v2422_v4 = vmul.f32 %v2421_v37, %v2410_v0  ;;  %v2638_v5 = vsel %vm2626_vm6, %v2620_v10, %v2637_v40  ;;  %v7815_v20 = vadd.s32 1, %v5545_v50 }
 0x26f   : > { %v2542_v0 = vsel %vm2540_vm8, %v2541_v25, %v7791_v7  ;;  %v2634_v48 = vsel %vm2626_vm6, %v2617_v12, %v2633_v29  ;;  %v2639_v23 = vsel %vm2625_vm10, %v2636_v1, %v2638_v5  ;;  %v7824_v21 = vand.u32 8388607, %v2747_v3 }
 0x270   : > { %v2416_v46 = vadd.f32 1.0, %v2415_v6  ;;  %v2423_v35 = vadd.f32 1.0, %v2422_v4  ;;  %v2543_v14 = vclz %v2542_v0  ;;  %v2643_v49 = vand.u32 65535, %v2639_v23 }
 0x271   : > { %v2644_v31 = vshrl.u32 %v2639_v23, 16  ;;  %v2608_v30 = vshrl.u32 %v9991_v11, %v7752_v27  ;;  %v2629_v19 = vsel %vm2627_vm7, %v2617_v12, 2102212464  ;;  %v2635_v63 = vsel %vm2625_vm10, %v2632_v53, %v2634_v48 }
 0x272   : > { %v2424_v2 = vmul.f32 %v2423_v35, %v7750_v56  ;;  %v2433_v43 = vxor.u32 2147483648, %v2416_v46  ;;  %v5540_v28 = vadd.s32 4294967294, %v2543_v14  ;;  %v2561_v56 = vsub.s32 4, %v7772_v62 }
 0x273   : > { %v2646_v45 = vmul.u32 %v2644_v31, %v7785_v17  ;;  %vm2758_vm12 = vcmp.gt.s32.totalorder %v7815_v20, 0  ;;  %vm7841_vm13 = vcmp.le.f32.partialorder %v2437_v32, 0.7853982  ;;  %v2645_v12 = vmul.u32 %v2643_v49, %v7785_v17 }
 0x274   : > { %v2430_v38 = vxor.u32 2147483648, %v2424_v2  ;;  %v2434_v51 = vsel %vm2432_vm1, %v2433_v43, %v2424_v2  ;;  %vm5541_vm11 = vcmp.lt.s32.totalorder %v5540_v28, 0  ;;  %v2647_v61 = vmul.u32 %v2643_v49, %v2642_v47 }
 0x275   : > { %v2546_v27 = vsel %vm5541_vm11, 0, %v5540_v28  ;;  %v2562_v32 = vsel %vm2439_vm9, %v2561_v56, %v7772_v62  ;;  %v2665_v25 = vand.u32 65535, %v2635_v63  ;;  %v2666_v29 = vshrl.u32 %v2635_v63, 16 }
 0x276   : > { %v2431_v55 = vsel %vm2429_vm2, %v2416_v46, %v2430_v38  ;;  %v2547_v37 = vsub.s32 32, %v2546_v27  ;;  %v2548_v50 = vshll.u32 %v7791_v7, %v2546_v27  ;;  %v2551_v6 = vsub.s32 4294967266, %v2546_v27 }
 0x277   : > { %v2435_v18 = vsel %vm2428_vm3, %v2431_v55, %v2434_v51  ;;  %v2648_v46 = vmul.u32 %v2644_v31, %v2642_v47  ;;  %v2649_v35 = vshll.u32 %v2646_v45, 16  ;;  %v2628_v41 = vsel %vm2624_vm4, %v2608_v30, %v2611_v36 }
 0x278   : > { %v2436_v4 = vsel %vm2425_vm5, nan, %v2435_v18  ;;  %v2549_v1 = vshrl.u32 %v7759_v54, %v2547_v37  ;;  %v2552_v40 = vadd.s32 127, %v2551_v6  ;;  %v2630_v52 = vsel %vm2626_vm6, %v7788_v16, %v2629_v19 }
 0x279   : > { %5394 = vst [vmem:[%s6492_s26 + $0x60] sm:$0xff] %v2436_v4  ;;  %v2650_v7 = vshrl.u32 %v2646_v45, 16  ;;  %v2651_v0 = vshll.u32 %v2647_v61, 16  ;;  %vm2653_vm14 = vc.u32 %v2645_v12, %v2649_v35  ;;  %v2655_v62 = vadd.s32 %v2649_v35, %v2645_v12 }
 0x27a   : > { %v2550_v14 = vor.u32 %v2549_v1, %v2548_v50  ;;  %v2553_v53 = vshll.u32 %v2552_v40, 23  ;;  %v2654_v5 = vsel %vm2653_vm14, 1, %v5768_v33  ;;  %v2667_v54 = vmul.u32 %v2665_v25, %v7785_v17 }
 0x27b   : > { %v2668_v2 = vmul.u32 %v2666_v29, %v7785_v17  ;;  %v2669_v43 = vmul.u32 %v2665_v25, %v2642_v47  ;;  %v2656_v36 = vadd.s32 %v2654_v5, %v2648_v46  ;;  %vm2657_vm15 = vc.u32 %v2655_v62, %v2651_v0 }
 0x27c   : > { %v2554_v48 = vor.u32 4788187, %v2553_v53  ;;  %v2557_v23 = vcvt.s32.f32 %v2550_v14  ;;  %v2658_v28 = vsel %vm2657_vm15, 1, %v5768_v33  ;;  %v2670_v16 = vmul.u32 %v2666_v29, %v2642_v47 }
 0x27d   : > { %v2671_v49 = vshll.u32 %v2668_v2, 16  ;;  %v2673_v31 = vshll.u32 %v2669_v43, 16  ;;  %v2564_v51 = vsel %vm7841_vm13, 0, %v2562_v32  ;;  %v2660_v56 = vadd.s32 %v2658_v28, %v2656_v36 }
 0x27e   : > { %v2555_v38 = vand.u32 2147483647, %v2554_v48  ;;  %v2755_v30 = vor.u32 8388608, %v7824_v21  ;;  %v2631_v17 = vsel %vm2625_vm10, %v2628_v41, %v2630_v52  ;;  %v2759_v63 = vsel %vm2758_vm12, %v7815_v20, 0 }
 0x27f   : > { %vm2675_vm0 = vc.u32 %v2667_v54, %v2671_v49  ;;  %v2677_v19 = vadd.s32 %v2671_v49, %v2667_v54  ;;  %v2652_v47 = vshrl.u32 %v2647_v61, 16  ;;  %v2661_v55 = vadd.s32 %v2660_v56, %v2650_v7 }
 0x280   : > { %v2558_v45 = vmul.f32 %v2557_v23, %v2555_v38  ;;  %v2676_v27 = vsel %vm2675_vm0, 1, %v5768_v33  ;;  %v2672_v12 = vshrl.u32 %v2668_v2, 16  ;;  %v2761_v37 = vand.u32 31, %v2759_v63 }
 0x281   : > { %v2678_v18 = vadd.s32 %v2676_v27, %v2670_v16  ;;  %vm2679_vm1 = vc.u32 %v2677_v19, %v2673_v31  ;;  %v2581_v21 = vadd.s32 3, %v2564_v51  ;;  %v2674_v6 = vshrl.u32 %v2669_v43, 16 }
 0x282   : > { %v2559_v50 = vxor.u32 2147483648, %v2558_v45  ;;  %v2680_v15 = vsel %vm2679_vm1, 1, %v5768_v33  ;;  %v2685_v32 = vmul.u32 %v7763_v13, %v2631_v17  ;;  %v7876_v25 = vshrl.u32 %v2759_v63, 5 }
 0x283   : > { %v2682_v4 = vadd.s32 %v2680_v15, %v2678_v18  ;;  %v7878_v20 = vsub.s32 32, %v2761_v37  ;;  %v7882_v29 = vadd.s32 %v2661_v55, %v2652_v47  ;;  %v7884_v1 = vadd.s32 %v2677_v19, %v2673_v31 }
 0x284   : > { %v2560_v61 = vsel %vm2439_vm9, %v2559_v50, %v2558_v45  ;;  %v2764_v40 = vshll.u32 %v9991_v11, %v2761_v37  ;;  %v2767_v41 = vshll.u32 %v9992_v34, %v2761_v37  ;;  %v2770_v0 = vshll.u32 %v9993_v22, %v2761_v37 }
 0x285   : > { %v2563_v46 = vsel %vm7841_vm13, %v6182_v24, %v2560_v61  ;;  %v2683_v35 = vadd.s32 %v2682_v4, %v2672_v12  ;;  %v2765_v13 = vshrl.u32 %v9992_v34, %v7878_v20  ;;  %v2768_v7 = vshrl.u32 %v9993_v22, %v7878_v20 }
 0x286   : > { %v2565_v52 = vmul.f32 %v2563_v46, %v2563_v46  ;;  %v2773_v14 = vshll.u32 %v9994_v9, %v2761_v37  ;;  %v2771_v62 = vshrl.u32 %v9994_v9, %v7878_v20  ;;  %v2774_v10 = vshrl.u32 %v9995_v44, %v7878_v20 }
 0x287   : > { %v2684_v53 = vadd.s32 %v2683_v35, %v2674_v6  ;;  %v2776_v5 = vshll.u32 %v9995_v44, %v2761_v37  ;;  %vm2687_vm2 = vc.u32 %v7882_v29, %v7884_v1  ;;  %v7904_v43 = vor.u32 %v2765_v13, %v2764_v40 }
 0x288   : > { %v2566_v54 = vmul.f32 -0.001358992, %v2565_v52  ;;  %v2573_v2 = vmul.f32 -0.00019511016, %v2565_v52  ;;  %v7906_v23 = vor.u32 %v2768_v7, %v2767_v41  ;;  %v2775_v36 = vor.u32 %v2774_v10, %v2773_v14 }
 0x289   : > { %v2688_v48 = vadd.s32 1, %v2684_v53  ;;  %v2777_v28 = vshrl.u32 %v9996_v8, %v7878_v20  ;;  %vm2779_vm3 = vcmp.lt.s32.totalorder %v7876_v25, 1  ;;  %vm2782_vm4 = vcmp.lt.s32.totalorder %v7876_v25, 4 }
 0x28a   : > { %v2567_v16 = vadd.f32 0.041655596, %v2566_v54  ;;  %v2574_v49 = vadd.f32 0.008332121, %v2573_v2  ;;  %v7912_v38 = vor.u32 %v2771_v62, %v2770_v0  ;;  %v7914_v56 = vshll.u32 %v2755_v30, 8 }
 0x28b   : > { %v2689_v31 = vsel %vm2687_vm2, %v2688_v48, %v2684_v53  ;;  %v2778_v51 = vor.u32 %v2777_v28, %v2776_v5  ;;  %vm2781_vm5 = vcmp.lt.s32.totalorder %v7876_v25, 3  ;;  %vm2780_vm6 = vcmp.lt.s32.totalorder %v7876_v25, 2 }
 0x28c   : > { %v2568_v17 = vmul.f32 %v2567_v16, %v2565_v52  ;;  %v2575_v19 = vmul.f32 %v2574_v49, %v2565_v52  ;;  %v2690_v63 = vadd.s32 %v2689_v31, %v2685_v32  ;;  %v2787_v45 = vsel %vm2779_vm3, %v7904_v43, %v7906_v23 }
 0x28d   : > { %v2788_v47 = vsel %vm2782_vm4, %v2775_v36, 920167782  ;;  %v2582_v12 = vand.u32 3, %v2581_v21  ;;  %v2791_v37 = vsel %vm2779_vm3, %v7906_v23, %v7912_v38  ;;  %v2792_v50 = vsel %vm2782_vm4, %v2778_v51, 1326507024 }
 0x28e   : > { %v2569_v55 = vadd.f32 -0.4999988, %v2568_v17  ;;  %v2576_v27 = vadd.f32 -0.16666654, %v2575_v19  ;;  %v2691_v30 = vadd.s32 536870912, %v2690_v63  ;;  %v2789_v18 = vsel %vm2781_vm5, %v7912_v38, %v2788_v47 }
 0x28f   : > { %v2796_v6 = vand.u32 65535, %v7914_v56  ;;  %v2790_v21 = vsel %vm2780_vm6, %v2787_v45, %v2789_v18  ;;  %v2793_v61 = vsel %vm2781_vm5, %v2775_v36, %v2792_v50  ;;  %vm2580_vm7 = vweird.f32 %v6182_v24 }
 0x290   : > { %v2570_v15 = vmul.f32 %v2569_v55, %v2565_v52  ;;  %v2577_v4 = vmul.f32 %v2576_v27, %v2565_v52  ;;  %v7934_v32 = vshrl.u32 %v2691_v30, 30  ;;  %v2821_v40 = vshrl.u32 %v2790_v21, 16 }
 0x291   : > { %vm2587_vm8 = vcmp.eq.s32.totalorder %v2582_v12, 2  ;;  %v2794_v7 = vsel %vm2780_vm6, %v2791_v37, %v2793_v61  ;;  %v2797_v52 = vshrl.u32 %v7914_v56, 16  ;;  %v2820_v0 = vand.u32 65535, %v2790_v21 }
 0x292   : > { %v2571_v35 = vadd.f32 1.0, %v2570_v15  ;;  %v2578_v13 = vadd.f32 1.0, %v2577_v4  ;;  %v2693_v41 = vshll.u32 %v7934_v32, 30  ;;  %v7945_v10 = vmul.u32 %v2821_v40, %v2796_v6 }
 0x293   : > { %vm2583_vm9 = vcmp.lt.s32.totalorder %v2582_v12, 2  ;;  %vm2584_vm10 = vcmp.eq.s32.totalorder %v2582_v12, 0  ;;  %v2798_v5 = vand.u32 65535, %v2794_v7  ;;  %v2799_v54 = vshrl.u32 %v2794_v7, 16 }
 0x294   : > { %v2579_v14 = vmul.f32 %v2578_v13, %v2563_v46  ;;  %v2588_v53 = vxor.u32 2147483648, %v2571_v35  ;;  %v2694_v62 = vsub.s32 %v2690_v63, %v2693_v41  ;;  %v2822_v31 = vmul.u32 %v2820_v0, %v2796_v6 }
 0x295   : > { %v2800_v28 = vmul.u32 %v2798_v5, %v2796_v6  ;;  %v2801_v16 = vmul.u32 %v2799_v54, %v2796_v6  ;;  %v2802_v49 = vmul.u32 %v2798_v5, %v2797_v52  ;;  %v7947_v46 = vmul.u32 %v2820_v0, %v2797_v52 }
 0x296   : > { %v2585_v2 = vxor.u32 2147483648, %v2579_v14  ;;  %v2589_v48 = vsel %vm2587_vm8, %v2588_v53, %v2579_v14  ;;  %vm2695_vm11 = vcmp.lt.s32.totalorder %v2694_v62, 0  ;;  %v2696_v36 = vsub.s32 0, %v2694_v62 }
 0x297   : > { %v2826_v19 = vshll.u32 %v7945_v10, 16  ;;  %v2803_v47 = vmul.u32 %v2799_v54, %v2797_v52  ;;  %v2804_v55 = vshll.u32 %v2801_v16, 16  ;;  %v2686_v30 = vadd.s32 %v7884_v1, %v7882_v29 }
 0x298   : > { %v2586_v51 = vsel %vm2584_vm10, %v2571_v35, %v2585_v2  ;;  %v2697_v17 = vsel %vm2695_vm11, %v2696_v36, %v2694_v62  ;;  %v2763_v18 = vshrl.u32 %v9991_v11, %v7878_v20  ;;  %v2806_v37 = vshll.u32 %v2802_v49, 16 }
 0x299   : > { %v2590_v63 = vsel %vm2583_vm9, %v2586_v51, %v2589_v48  ;;  %v2698_v45 = vclz %v2697_v17  ;;  %vm2808_vm12 = vc.u32 %v2800_v28, %v2804_v55  ;;  %v2810_v6 = vadd.s32 %v2804_v55, %v2800_v28 }
 0x29a   : > { %v2591_v27 = vsel %vm2580_vm7, nan, %v2590_v63  ;;  %v2825_v15 = vmul.u32 %v2821_v40, %v2797_v52  ;;  %v2805_v12 = vshrl.u32 %v2801_v16, 16  ;;  %v2809_v4 = vsel %vm2808_vm12, 1, %v5768_v33 }
 0x29b   : > { %v5543_v50 = vadd.s32 4294967294, %v2698_v45  ;;  %5395 = vst [vmem:[%s6492_s26 + $0x68] sm:$0xff] %v2591_v27  ;;  %v2828_v21 = vshll.u32 %v7947_v46, 16  ;;  %vm2830_vm13 = vc.u32 %v2822_v31, %v2826_v19  ;;  %vm2594_vm14 = vcmp.lt.s32.totalorder %v6185_v57, 0 }
 0x29c   : > { %v2811_v24 = vadd.s32 %v2809_v4, %v2803_v47  ;;  %vm2812_vm0 = vc.u32 %v2810_v6, %v2806_v37  ;;  %v2832_v29 = vadd.s32 %v2826_v19, %v2822_v31  ;;  %v2784_v20 = vsel %vm2782_vm4, %v7912_v38, 2102212464 }
 0x29d   : > { %vm5544_vm15 = vcmp.lt.s32.totalorder %v5543_v50, 0  ;;  %v2813_v61 = vsel %vm2812_vm0, 1, %v5768_v33  ;;  %v2831_v40 = vsel %vm2830_vm13, 1, %v5768_v33  ;;  %v2783_v52 = vsel %vm2779_vm3, %v2763_v18, %v7904_v43 }
 0x29e   : > { %v2701_v1 = vsel %vm5544_vm15, 0, %v5543_v50  ;;  %v2815_v7 = vadd.s32 %v2813_v61, %v2811_v24  ;;  %v2807_v0 = vshrl.u32 %v2802_v49, 16  ;;  %v2827_v14 = vshrl.u32 %v7945_v10, 16 }
 0x29f   : > { %v2702_v35 = vsub.s32 32, %v2701_v1  ;;  %v2703_v13 = vshll.u32 %v2694_v62, %v2701_v1  ;;  %v2706_v41 = vsub.s32 4294967266, %v2701_v1  ;;  %v2833_v53 = vadd.s32 %v2831_v40, %v2825_v15 }
 0x2a0   : > { %v2816_v2 = vadd.s32 %v2815_v7, %v2805_v12  ;;  %vm2834_vm1 = vc.u32 %v2832_v29, %v2828_v21  ;;  %v2716_v38 = vsub.s32 4, %v7934_v32  ;;  %v2785_v62 = vsel %vm2781_vm5, %v7906_v23, %v2784_v20 }
 0x2a1   : > { %v2704_v5 = vshrl.u32 %v2686_v30, %v2702_v35  ;;  %v2707_v54 = vadd.s32 127, %v2706_v41  ;;  %v2835_v48 = vsel %vm2834_vm1, 1, %v5768_v33  ;;  %v2902_v36 = vand.u32 2147483647, %v6190_v26 }
 0x2a2   : > { %v2829_v16 = vshrl.u32 %v7947_v46, 16  ;;  %v2837_v10 = vadd.s32 %v2835_v48, %v2833_v53  ;;  %v2817_v49 = vadd.s32 %v2816_v2, %v2807_v0  ;;  %v2836_v31 = vadd.s32 %v2832_v29, %v2828_v21 }
 0x2a3   : > { %v2705_v28 = vor.u32 %v2704_v5, %v2703_v13  ;;  %v2708_v43 = vshll.u32 %v2707_v54, 23  ;;  %v2905_v51 = vand.u32 2139095040, %v6190_v26  ;;  %v3060_v17 = vand.u32 2139095040, %v6192_v39 }
 0x2a4   : > { %v2786_v23 = vsel %vm2780_vm6, %v2783_v52, %v2785_v62  ;;  %v2838_v45 = vadd.s32 %v2837_v10, %v2827_v14  ;;  %v2717_v47 = vsel %vm2594_vm14, %v2716_v38, %v7934_v32  ;;  %v2909_v46 = vand.u32 8388607, %v2902_v36 }
 0x2a5   : > { %v2709_v19 = vor.u32 4788187, %v2708_v43  ;;  %v2712_v63 = vcvt.s32.f32 %v2705_v28  ;;  %v2906_v55 = vshrl.u32 %v2905_v51, 23  ;;  %v3061_v27 = vshrl.u32 %v3060_v17, 23 }
 0x2a6   : > { %vm7988_vm2 = vcmp.le.f32.partialorder %v2592_v42, 0.7853982  ;;  %v2839_v37 = vadd.s32 %v2838_v45, %v2829_v16  ;;  %v2840_v25 = vmul.u32 %v7914_v56, %v2786_v23  ;;  %vm2842_vm3 = vc.u32 %v2817_v49, %v2836_v31 }
 0x2a7   : > { %v2710_v18 = vand.u32 2147483647, %v2709_v19  ;;  %v5548_v50 = vadd.s32 4294967169, %v2906_v55  ;;  %v5551_v6 = vadd.s32 4294967169, %v3061_v27  ;;  %v2719_v32 = vsel %vm7988_vm2, 0, %v2717_v47 }
 0x2a8   : > { %v2843_v12 = vadd.s32 1, %v2839_v37  ;;  %v2910_v4 = vor.u32 8388608, %v2909_v46  ;;  %v2736_v42 = vadd.s32 3, %v2719_v32  ;;  %v3057_v40 = vand.u32 2147483647, %v6192_v39 }
 0x2a9   : > { %v2713_v15 = vmul.f32 %v2712_v63, %v2710_v18  ;;  %v2912_v21 = vadd.s32 1, %v5548_v50  ;;  %v3067_v20 = vadd.s32 1, %v5551_v6  ;;  %v8007_v54 = vadd.s32 %v2836_v31, %v2817_v49 }
 0x2aa   : > { %v2844_v29 = vsel %vm2842_vm3, %v2843_v12, %v2839_v37  ;;  %v8001_v7 = vshll.u32 %v2910_v4, 8  ;;  %v8003_v0 = vand.u32 3, %v2736_v42  ;;  %v8018_v28 = vand.u32 8388607, %v3057_v40 }
 0x2ab   : > { %v2714_v24 = vxor.u32 2147483648, %v2713_v15  ;;  %v2845_v1 = vadd.s32 %v2844_v29, %v2840_v25  ;;  %vm2913_vm4 = vcmp.gt.s32.totalorder %v2912_v21, 0  ;;  %vm3068_vm5 = vcmp.gt.s32.totalorder %v3067_v20, 0 }
 0x2ac   : > { %v2914_v56 = vsel %vm2913_vm4, %v2912_v21, 0  ;;  %v8011_v62 = vand.u32 65535, %v8001_v7  ;;  %v8014_v48 = vshrl.u32 %v8001_v7, 16  ;;  %v8022_v51 = vsel %vm3068_vm5, %v3067_v20, 0 }
 0x2ad   : > { %v2715_v61 = vsel %vm2594_vm14, %v2714_v24, %v2713_v15  ;;  %v2846_v13 = vadd.s32 536870912, %v2845_v1  ;;  %v2916_v41 = vand.u32 31, %v2914_v56  ;;  %v8020_v10 = vshrl.u32 %v2914_v56, 5 }
 0x2ae   : > { %v2718_v35 = vsel %vm7988_vm2, %v6185_v57, %v2715_v61  ;;  %vm2742_vm6 = vcmp.eq.s32.totalorder %v8003_v0, 2  ;;  %v8030_v19 = vshrl.u32 %v8022_v51, 5  ;;  %vm2739_vm7 = vcmp.eq.s32.totalorder %v8003_v0, 0 }
 0x2af   : > { %v2720_v52 = vmul.f32 %v2718_v35, %v2718_v35  ;;  %v8005_v14 = vshrl.u32 %v2846_v13, 30  ;;  %v2917_v2 = vsub.s32 32, %v2916_v41  ;;  %v2919_v31 = vshll.u32 %v9991_v11, %v2916_v41 }
 0x2b0   : > { %v2922_v17 = vshll.u32 %v9992_v34, %v2916_v41  ;;  %v2928_v45 = vshll.u32 %v9994_v9, %v2916_v41  ;;  %vm2738_vm9 = vcmp.lt.s32.totalorder %v8003_v0, 2  ;;  %vm2749_vm10 = vcmp.lt.s32.totalorder %v6187_v58, 0 }
 0x2b1   : > { %v2721_v53 = vmul.f32 -0.001358992, %v2720_v52  ;;  %v2728_v5 = vmul.f32 -0.00019511016, %v2720_v52  ;;  %v2848_v38 = vshll.u32 %v8005_v14, 30  ;;  %v2929_v47 = vshrl.u32 %v9995_v44, %v2917_v2 }
 0x2b2   : > { %v2920_v46 = vshrl.u32 %v9992_v34, %v2917_v2  ;;  %v2923_v27 = vshrl.u32 %v9993_v22, %v2917_v2  ;;  %v2931_v37 = vshll.u32 %v9995_v44, %v2916_v41  ;;  %v2932_v25 = vshrl.u32 %v9996_v8, %v2917_v2 }
 0x2b3   : > { %v2722_v43 = vadd.f32 0.041655596, %v2721_v53  ;;  %v2729_v16 = vadd.f32 0.008332121, %v2728_v5  ;;  %v8025_v49 = vsub.s32 %v2845_v1, %v2848_v38  ;;  %vm2735_vm11 = vweird.f32 %v6185_v57 }
 0x2b4   : > { %v2871_v6 = vsub.s32 4, %v8005_v14  ;;  %v2925_v15 = vshll.u32 %v9993_v22, %v2916_v41  ;;  %v2926_v32 = vshrl.u32 %v9994_v9, %v2917_v2  ;;  %v2930_v24 = vor.u32 %v2929_v47, %v2928_v45 }
 0x2b5   : > { %v2723_v63 = vmul.f32 %v2722_v43, %v2720_v52  ;;  %v2730_v23 = vmul.f32 %v2729_v16, %v2720_v52  ;;  %vm2850_vm8 = vcmp.lt.s32.totalorder %v8025_v49, 0  ;;  %v2851_v55 = vsub.s32 0, %v8025_v49 }
 0x2b6   : > { %v2921_v29 = vor.u32 %v2920_v46, %v2919_v31  ;;  %v2924_v42 = vor.u32 %v2923_v27, %v2922_v17  ;;  %v2933_v1 = vor.u32 %v2932_v25, %v2931_v37  ;;  %vm2937_vm12 = vcmp.lt.s32.totalorder %v8020_v10, 4 }
 0x2b7   : > { %v2724_v30 = vadd.f32 -0.4999988, %v2723_v63  ;;  %v2731_v18 = vadd.f32 -0.16666654, %v2730_v23  ;;  %v2852_v50 = vsel %vm2850_vm8, %v2851_v55, %v8025_v49  ;;  %vm2934_vm13 = vcmp.lt.s32.totalorder %v8020_v10, 1 }
 0x2b8   : > { %v2853_v21 = vclz %v2852_v50  ;;  %vm8052_vm14 = vcmp.le.f32.partialorder %v2747_v3, 0.7853982  ;;  %v2918_v41 = vshrl.u32 %v9991_v11, %v2917_v2  ;;  %vm2935_vm15 = vcmp.lt.s32.totalorder %v8020_v10, 2 }
 0x2b9   : > { %v2725_v12 = vmul.f32 %v2724_v30, %v2720_v52  ;;  %v2732_v4 = vmul.f32 %v2731_v18, %v2720_v52  ;;  %v2927_v52 = vor.u32 %v2926_v32, %v2925_v15  ;;  %vm2936_vm0 = vcmp.lt.s32.totalorder %v8020_v10, 3 }
 0x2ba   : > { %v5546_v56 = vadd.s32 4294967294, %v2853_v21  ;;  %v2943_v38 = vsel %vm2937_vm12, %v2930_v24, 920167782  ;;  %v2942_v16 = vsel %vm2934_vm13, %v2921_v29, %v2924_v42  ;;  %v2947_v2 = vsel %vm2937_vm12, %v2933_v1, 1326507024 }
 0x2bb   : > { %v2726_v20 = vadd.f32 1.0, %v2725_v12  ;;  %v2733_v61 = vadd.f32 1.0, %v2732_v4  ;;  %v2939_v3 = vsel %vm2937_vm12, %v2927_v52, 2102212464  ;;  %v2872_v45 = vsel %vm2749_vm10, %v2871_v6, %v8005_v14 }
 0x2bc   : > { %vm5547_vm1 = vcmp.lt.s32.totalorder %v5546_v56, 0  ;;  %v2944_v47 = vsel %vm2936_vm0, %v2927_v52, %v2943_v38  ;;  %v2946_v55 = vsel %vm2934_vm13, %v2924_v42, %v2927_v52  ;;  %v2948_v30 = vsel %vm2936_vm0, %v2930_v24, %v2947_v2 }
 0x2bd   : > { %v2734_v53 = vmul.f32 %v2733_v61, %v2718_v35  ;;  %v2743_v5 = vxor.u32 2147483648, %v2726_v20  ;;  %v2856_v43 = vsel %vm5547_vm1, 0, %v5546_v56  ;;  %v2940_v37 = vsel %vm2936_vm0, %v2924_v42, %v2939_v3 }
 0x2be   : > { %v2857_v35 = vsub.s32 32, %v2856_v43  ;;  %v2858_v63 = vshll.u32 %v8025_v49, %v2856_v43  ;;  %v2861_v23 = vsub.s32 4294967266, %v2856_v43  ;;  %v2938_v49 = vsel %vm2934_vm13, %v2918_v41, %v2921_v29 }
 0x2bf   : > { %v2740_v31 = vxor.u32 2147483648, %v2734_v53  ;;  %v2744_v17 = vsel %vm2742_vm6, %v2743_v5, %v2734_v53  ;;  %v2945_v25 = vsel %vm2935_vm15, %v2942_v16, %v2944_v47  ;;  %v2949_v6 = vsel %vm2935_vm15, %v2946_v55, %v2948_v30 }
 0x2c0   : > { %v2859_v27 = vshrl.u32 %v8007_v54, %v2857_v35  ;;  %v2862_v18 = vadd.s32 127, %v2861_v23  ;;  %v8095_v15 = vand.u32 31, %v8022_v51  ;;  %v2953_v0 = vand.u32 65535, %v2949_v6 }
 0x2c1   : > { %v2741_v46 = vsel %vm2739_vm7, %v2726_v20, %v2740_v31  ;;  %v2954_v12 = vshrl.u32 %v2949_v6, 16  ;;  %v2975_v4 = vand.u32 65535, %v2945_v25  ;;  %v2874_v24 = vsel %vm8052_vm14, 0, %v2872_v45 }
 0x2c2   : > { %v2745_v14 = vsel %vm2738_vm9, %v2741_v46, %v2744_v17  ;;  %v2860_v54 = vor.u32 %v2859_v27, %v2858_v63  ;;  %v2863_v32 = vshll.u32 %v2862_v18, 23  ;;  %v8102_v57 = vsel %vm2935_vm15, %v2938_v49, %v2940_v37 }
 0x2c3   : > { %v2746_v50 = vsel %vm2735_vm11, nan, %v2745_v14  ;;  %v2976_v29 = vshrl.u32 %v2945_v25, 16  ;;  %v2955_v1 = vmul.u32 %v2953_v0, %v8011_v62  ;;  %v2956_v51 = vmul.u32 %v2954_v12, %v8011_v62 }
 0x2c4   : > { %5396 = vst [vmem:[%s6492_s26 + $0x70] sm:$0xff] %v2746_v50  ;;  %v2867_v21 = vcvt.s32.f32 %v2860_v54  ;;  %v2864_v42 = vor.u32 4788187, %v2863_v32  ;;  %v2957_v20 = vmul.u32 %v2953_v0, %v8014_v48  ;;  %v2977_v61 = vmul.u32 %v2975_v4, %v8011_v62 }
 0x2c5   : > { %v2978_v56 = vmul.u32 %v2976_v29, %v8011_v62  ;;  %v2979_v41 = vmul.u32 %v2975_v4, %v8014_v48  ;;  %v8111_v52 = vsub.s32 32, %v8095_v15  ;;  %v2958_v53 = vmul.u32 %v2954_v12, %v8014_v48 }
 0x2c6   : > { %v2865_v10 = vand.u32 2147483647, %v2864_v42  ;;  %v2959_v5 = vshll.u32 %v2956_v51, 16  ;;  %v2961_v38 = vshll.u32 %v2957_v20, 16  ;;  %v8114_v43 = vadd.s32 3, %v2874_v24 }
 0x2c7   : > { %v2980_v3 = vmul.u32 %v2976_v29, %v8014_v48  ;;  %v2981_v16 = vshll.u32 %v2978_v56, 16  ;;  %v2995_v2 = vmul.u32 %v8001_v7, %v8102_v57  ;;  %v2983_v17 = vshll.u32 %v2979_v41, 16 }
 0x2c8   : > { %v2868_v31 = vmul.f32 %v2867_v21, %v2865_v10  ;;  %vm2963_vm2 = vc.u32 %v2955_v1, %v2959_v5  ;;  %v2965_v62 = vadd.s32 %v2959_v5, %v2955_v1  ;;  %v2960_v35 = vshrl.u32 %v2956_v51, 16 }
 0x2c9   : > { %v2964_v63 = vsel %vm2963_vm2, 1, %v5768_v33  ;;  %vm2985_vm3 = vc.u32 %v2977_v61, %v2981_v16  ;;  %v2987_v23 = vadd.s32 %v2981_v16, %v2977_v61  ;;  %v2982_v46 = vshrl.u32 %v2978_v56, 16 }
 0x2ca   : > { %v2869_v45 = vxor.u32 2147483648, %v2868_v31  ;;  %v2966_v47 = vadd.s32 %v2964_v63, %v2958_v53  ;;  %vm2967_vm4 = vc.u32 %v2965_v62, %v2961_v38  ;;  %v2986_v55 = vsel %vm2985_vm3, 1, %v5768_v33 }
 0x2cb   : > { %v2968_v48 = vsel %vm2967_vm4, 1, %v5768_v33  ;;  %v2988_v27 = vadd.s32 %v2986_v55, %v2980_v3  ;;  %vm2989_vm5 = vc.u32 %v2987_v23, %v2983_v17  ;;  %v2962_v49 = vshrl.u32 %v2957_v20, 16 }
 0x2cc   : > { %v2870_v7 = vsel %vm2749_vm10, %v2869_v45, %v2868_v31  ;;  %v2970_v30 = vadd.s32 %v2968_v48, %v2966_v47  ;;  %v2990_v14 = vsel %vm2989_vm5, 1, %v5768_v33  ;;  %v2984_v37 = vshrl.u32 %v2979_v41, 16 }
 0x2cd   : > { %v2873_v18 = vsel %vm8052_vm14, %v6187_v58, %v2870_v7  ;;  %v8128_v25 = vadd.s32 %v2987_v23, %v2983_v17  ;;  %v2992_v50 = vadd.s32 %v2990_v14, %v2988_v27  ;;  %v3074_v32 = vshll.u32 %v9991_v11, %v8095_v15 }
 0x2ce   : > { %v2875_v54 = vmul.f32 %v2873_v18, %v2873_v18  ;;  %v2971_v6 = vadd.s32 %v2970_v30, %v2960_v35  ;;  %v3075_v0 = vshrl.u32 %v9992_v34, %v8111_v52  ;;  %v3077_v4 = vshll.u32 %v9992_v34, %v8095_v15 }
 0x2cf   : > { %v2993_v12 = vadd.s32 %v2992_v50, %v2982_v46  ;;  %v3078_v13 = vshrl.u32 %v9993_v22, %v8111_v52  ;;  %v3083_v21 = vshll.u32 %v9994_v9, %v8095_v15  ;;  %v3080_v42 = vshll.u32 %v9993_v22, %v8095_v15 }
 0x2d0   : > { %v2876_v24 = vmul.f32 -0.001358992, %v2875_v54  ;;  %v2883_v57 = vmul.f32 -0.00019511016, %v2875_v54  ;;  %v8140_v29 = vadd.s32 %v2971_v6, %v2962_v49  ;;  %v3081_v51 = vshrl.u32 %v9994_v9, %v8111_v52 }
 0x2d1   : > { %v2994_v1 = vadd.s32 %v2993_v12, %v2984_v37  ;;  %v3084_v20 = vshrl.u32 %v9995_v44, %v8111_v52  ;;  %v3086_v61 = vshll.u32 %v9995_v44, %v8095_v15  ;;  %v8152_v10 = vor.u32 %v3075_v0, %v3074_v32 }
 0x2d2   : > { %v2877_v56 = vadd.f32 0.041655596, %v2876_v24  ;;  %v2884_v41 = vadd.f32 0.008332121, %v2883_v57  ;;  %vm2997_vm6 = vc.u32 %v8140_v29, %v8128_v25  ;;  %v8154_v5 = vor.u32 %v3078_v13, %v3077_v4 }
 0x2d3   : > { %v2998_v53 = vadd.s32 1, %v2994_v1  ;;  %v3085_v38 = vor.u32 %v3084_v20, %v3083_v21  ;;  %v3087_v3 = vshrl.u32 %v9996_v8, %v8111_v52  ;;  %v3065_v62 = vor.u32 8388608, %v8018_v28 }
 0x2d4   : > { %v2878_v16 = vmul.f32 %v2877_v56, %v2875_v54  ;;  %v2885_v31 = vmul.f32 %v2884_v41, %v2875_v54  ;;  %vm3089_vm7 = vcmp.lt.s32.totalorder %v8030_v19, 1  ;;  %v3082_v17 = vor.u32 %v3081_v51, %v3080_v42 }
 0x2d5   : > { %v2999_v15 = vsel %vm2997_vm6, %v2998_v53, %v2994_v1  ;;  %v3088_v35 = vor.u32 %v3087_v3, %v3086_v61  ;;  %vm3092_vm8 = vcmp.lt.s32.totalorder %v8030_v19, 4  ;;  %vm3091_vm9 = vcmp.lt.s32.totalorder %v8030_v19, 3 }
 0x2d6   : > { %v2879_v63 = vadd.f32 -0.4999988, %v2878_v16  ;;  %v2886_v23 = vadd.f32 -0.16666654, %v2885_v31  ;;  %v3000_v45 = vadd.s32 %v2999_v15, %v2995_v2  ;;  %v2892_v47 = vand.u32 3, %v8114_v43 }
 0x2d7   : > { %vm3090_vm10 = vcmp.lt.s32.totalorder %v8030_v19, 2  ;;  %v3097_v28 = vsel %vm3089_vm7, %v8152_v10, %v8154_v5  ;;  %v3098_v55 = vsel %vm3092_vm8, %v3085_v38, 920167782  ;;  %v3101_v43 = vsel %vm3089_vm7, %v8154_v5, %v3082_v17 }
 0x2d8   : > { %v2880_v48 = vmul.f32 %v2879_v63, %v2875_v54  ;;  %v2887_v46 = vmul.f32 %v2886_v23, %v2875_v54  ;;  %v3001_v27 = vadd.s32 536870912, %v3000_v45  ;;  %v3099_v2 = vsel %vm3091_vm9, %v3082_v17, %v3098_v55 }
 0x2d9   : > { %v3102_v7 = vsel %vm3092_vm8, %v3088_v35, 1326507024  ;;  %v3100_v37 = vsel %vm3090_vm10, %v3097_v28, %v3099_v2  ;;  %vm2893_vm11 = vcmp.lt.s32.totalorder %v2892_v47, 2  ;;  %vm2897_vm12 = vcmp.eq.s32.totalorder %v2892_v47, 2 }
 0x2da   : > { %v2881_v49 = vadd.f32 1.0, %v2880_v48  ;;  %v2888_v30 = vadd.f32 1.0, %v2887_v46  ;;  %v8177_v14 = vshrl.u32 %v3001_v27, 30  ;;  %v3103_v50 = vsel %vm3091_vm9, %v3085_v38, %v3102_v7 }
 0x2db   : > { %v8183_v54 = vshll.u32 %v3065_v62, 8  ;;  %v3131_v12 = vshrl.u32 %v3100_v37, 16  ;;  %vm2894_vm13 = vcmp.eq.s32.totalorder %v2892_v47, 0  ;;  %v3104_v4 = vsel %vm3090_vm10, %v3101_v43, %v3103_v50 }
 0x2dc   : > { %v2889_v6 = vmul.f32 %v2888_v30, %v2873_v18  ;;  %v2898_v32 = vxor.u32 2147483648, %v2881_v49  ;;  %v3003_v0 = vshll.u32 %v8177_v14, 30  ;;  %v3130_v1 = vand.u32 65535, %v3100_v37 }
 0x2dd   : > { %v3106_v13 = vand.u32 65535, %v8183_v54  ;;  %v3107_v21 = vshrl.u32 %v8183_v54, 16  ;;  %vm2890_vm14 = vweird.f32 %v6187_v58  ;;  %v3108_v51 = vand.u32 65535, %v3104_v4 }
 0x2de   : > { %v2895_v24 = vxor.u32 2147483648, %v2889_v6  ;;  %v2899_v57 = vsel %vm2897_vm12, %v2898_v32, %v2889_v6  ;;  %v3004_v42 = vsub.s32 %v3000_v45, %v3003_v0  ;;  %v3109_v18 = vshrl.u32 %v3104_v4, 16 }
 0x2df   : > { %v8191_v56 = vmul.u32 %v3131_v12, %v3106_v13  ;;  %v3110_v53 = vmul.u32 %v3108_v51, %v3106_v13  ;;  %v3112_v3 = vmul.u32 %v3108_v51, %v3107_v21  ;;  %v3132_v62 = vmul.u32 %v3130_v1, %v3106_v13 }
 0x2e0   : > { %v2896_v20 = vsel %vm2894_vm13, %v2881_v49, %v2895_v24  ;;  %vm3005_vm15 = vcmp.lt.s32.totalorder %v3004_v42, 0  ;;  %v3006_v61 = vsub.s32 0, %v3004_v42  ;;  %v3111_v38 = vmul.u32 %v3109_v18, %v3106_v13 }
 0x2e1   : > { %v2900_v41 = vsel %vm2893_vm11, %v2896_v20, %v2899_v57  ;;  %v3113_v35 = vmul.u32 %v3109_v18, %v3107_v21  ;;  %v3116_v58 = vshll.u32 %v3112_v3, 16  ;;  %v2996_v23 = vadd.s32 %v8128_v25, %v8140_v29 }
 0x2e2   : > { %v2901_v16 = vsel %vm2890_vm14, nan, %v2900_v41  ;;  %v3007_v31 = vsel %vm3005_vm15, %v3006_v61, %v3004_v42  ;;  %v3114_v63 = vshll.u32 %v3111_v38, 16  ;;  %v3073_v45 = vshrl.u32 %v9991_v11, %v8111_v52 }
 0x2e3   : > { %v3008_v15 = vclz %v3007_v31  ;;  %5397 = vst [vmem:[%s6492_s26 + $0x78] sm:$0xff] %v2901_v16  ;;  %v3134_v28 = vmul.u32 %v3130_v1, %v3107_v21  ;;  %v3136_v47 = vshll.u32 %v8191_v56, 16  ;;  %v3094_v48 = vsel %vm3092_vm8, %v3082_v17, 2102212464 }
 0x2e4   : > { %vm3118_vm0 = vc.u32 %v3110_v53, %v3114_v63  ;;  %v3120_v46 = vadd.s32 %v3114_v63, %v3110_v53  ;;  %v3026_v27 = vsub.s32 4, %v8177_v14  ;;  %v3115_v2 = vshrl.u32 %v3111_v38, 16 }
 0x2e5   : > { %v5549_v55 = vadd.s32 4294967294, %v3008_v15  ;;  %v3119_v43 = vsel %vm3118_vm0, 1, %v5768_v33  ;;  %vm3140_vm1 = vc.u32 %v3132_v62, %v3136_v47  ;;  %v3135_v29 = vmul.u32 %v3131_v12, %v3107_v21 }
 0x2e6   : > { %v3121_v25 = vadd.s32 %v3119_v43, %v3113_v35  ;;  %vm3122_vm3 = vc.u32 %v3120_v46, %v3116_v58  ;;  %v3138_v49 = vshll.u32 %v3134_v28, 16  ;;  %v3141_v30 = vsel %vm3140_vm1, 1, %v5768_v33 }
 0x2e7   : > { %vm5550_vm2 = vcmp.lt.s32.totalorder %v5549_v55, 0  ;;  %v3123_v7 = vsel %vm3122_vm3, 1, %v5768_v33  ;;  %vm2904_vm4 = vcmp.lt.s32.totalorder %v6190_v26, 0  ;;  %v3093_v32 = vsel %vm3089_vm7, %v3073_v45, %v8152_v10 }
 0x2e8   : > { %v3011_v52 = vsel %vm5550_vm2, 0, %v5549_v55  ;;  %v3125_v6 = vadd.s32 %v3123_v7, %v3121_v25  ;;  %v3117_v0 = vshrl.u32 %v3112_v3, 16  ;;  %v3142_v4 = vadd.s32 %v3136_v47, %v3132_v62 }
 0x2e9   : > { %v3012_v37 = vsub.s32 32, %v3011_v52  ;;  %v3013_v17 = vshll.u32 %v3004_v42, %v3011_v52  ;;  %v3016_v50 = vsub.s32 4294967266, %v3011_v52  ;;  %v3143_v24 = vadd.s32 %v3141_v30, %v3135_v29 }
 0x2ea   : > { %v3126_v21 = vadd.s32 %v3125_v6, %v3115_v2  ;;  %v3095_v57 = vsel %vm3091_vm9, %v8154_v5, %v3094_v48  ;;  %v3137_v42 = vshrl.u32 %v8191_v56, 16  ;;  %vm3144_vm5 = vc.u32 %v3142_v4, %v3138_v49 }
 0x2eb   : > { %v3014_v13 = vshrl.u32 %v2996_v23, %v3012_v37  ;;  %v3017_v12 = vadd.s32 127, %v3016_v50  ;;  %v3215_v1 = vand.u32 2139095040, %v6195_v59  ;;  %v3027_v10 = vsel %vm2904_vm4, %v3026_v27, %v8177_v14 }
 0x2ec   : > { %v3145_v20 = vsel %vm3144_vm5, 1, %v5768_v33  ;;  %vm8221_vm6 = vcmp.le.f32.partialorder %v2902_v36, 0.7853982  ;;  %v3139_v5 = vshrl.u32 %v3134_v28, 16  ;;  %v8225_v3 = vadd.s32 %v3126_v21, %v3117_v0 }
 0x2ed   : > { %v3015_v51 = vor.u32 %v3014_v13, %v3013_v17  ;;  %v3018_v18 = vshll.u32 %v3017_v12, 23  ;;  %v3147_v41 = vadd.s32 %v3145_v20, %v3143_v24  ;;  %v3216_v56 = vshrl.u32 %v3215_v1, 23 }
 0x2ee   : > { %v8227_v16 = vadd.s32 %v3142_v4, %v3138_v49  ;;  %v3029_v14 = vsel %vm8221_vm6, 0, %v3027_v10  ;;  %v3096_v31 = vsel %vm3090_vm10, %v3093_v32, %v3095_v57  ;;  %v3212_v47 = vand.u32 2147483647, %v6195_v59 }
 0x2ef   : > { %v3019_v53 = vor.u32 4788187, %v3018_v18  ;;  %v3022_v38 = vcvt.s32.f32 %v3015_v51  ;;  %v3148_v62 = vadd.s32 %v3147_v41, %v3137_v42  ;;  %v5554_v36 = vadd.s32 4294967169, %v3216_v56 }
 0x2f0   : > { %v3046_v23 = vadd.s32 3, %v3029_v14  ;;  %v3150_v45 = vmul.u32 %v8183_v54, %v3096_v31  ;;  %vm3152_vm7 = vc.u32 %v8225_v3, %v8227_v16  ;;  %v3219_v25 = vand.u32 8388607, %v3212_v47 }
 0x2f1   : > { %v3020_v15 = vand.u32 2147483647, %v3019_v53  ;;  %v3149_v35 = vadd.s32 %v3148_v62, %v3139_v5  ;;  %v3222_v63 = vadd.s32 1, %v5554_v36  ;;  %v3367_v52 = vand.u32 2147483647, %v6197_v60 }
 0x2f2   : > { %v8239_v2 = vand.u32 3, %v3046_v23  ;;  %v3370_v37 = vand.u32 2139095040, %v6197_v60  ;;  %v3220_v10 = vor.u32 8388608, %v3219_v25  ;;  %vm3059_vm10 = vcmp.lt.s32.totalorder %v6192_v39, 0 }
 0x2f3   : > { %v3023_v58 = vmul.f32 %v3022_v38, %v3020_v15  ;;  %v3153_v28 = vadd.s32 1, %v3149_v35  ;;  %vm3223_vm8 = vcmp.gt.s32.totalorder %v3222_v63, 0  ;;  %vm3045_vm0 = vweird.f32 %v6190_v26 }
 0x2f4   : > { %v3224_v48 = vsel %vm3223_vm8, %v3222_v63, 0  ;;  %vm3052_vm9 = vcmp.eq.s32.totalorder %v8239_v2, 2  ;;  %v3371_v41 = vshrl.u32 %v3370_v37, 23  ;;  %vm3049_vm11 = vcmp.eq.s32.totalorder %v8239_v2, 0 }
 0x2f5   : > { %v3024_v55 = vxor.u32 2147483648, %v3023_v58  ;;  %v3154_v19 = vsel %vm3152_vm7, %v3153_v28, %v3149_v35  ;;  %v3226_v46 = vand.u32 31, %v3224_v48  ;;  %v8263_v21 = vshrl.u32 %v3224_v48, 5 }
 0x2f6   : > { %v3155_v43 = vadd.s32 %v3154_v19, %v3150_v45  ;;  %vm3048_vm14 = vcmp.lt.s32.totalorder %v8239_v2, 2  ;;  %vm8288_vm1 = vcmp.le.f32.partialorder %v3057_v40, 0.7853982  ;;  %v8297_v45 = vshll.u32 %v3220_v10, 8 }
 0x2f7   : > { %v3025_v27 = vsel %vm2904_vm4, %v3024_v55, %v3023_v58  ;;  %v8248_v29 = vsub.s32 32, %v3226_v46  ;;  %v3229_v30 = vshll.u32 %v9991_v11, %v3226_v46  ;;  %v3232_v50 = vshll.u32 %v9992_v34, %v3226_v46 }
 0x2f8   : > { %v8244_v54 = vsel %vm8221_vm6, %v6190_v26, %v3025_v27  ;;  %v3156_v49 = vadd.s32 536870912, %v3155_v43  ;;  %v3238_v32 = vshll.u32 %v9994_v9, %v3226_v46  ;;  %v3235_v24 = vshll.u32 %v9993_v22, %v3226_v46 }
 0x2f9   : > { %v3030_v7 = vmul.f32 %v8244_v54, %v8244_v54  ;;  %v3230_v17 = vshrl.u32 %v9992_v34, %v8248_v29  ;;  %v3233_v6 = vshrl.u32 %v9993_v22, %v8248_v29  ;;  %v3239_v12 = vshrl.u32 %v9995_v44, %v8248_v29 }
 0x2fa   : > { %v3157_v13 = vshrl.u32 %v3156_v49, 30  ;;  %v3236_v57 = vshrl.u32 %v9994_v9, %v8248_v29  ;;  %v3241_v42 = vshll.u32 %v9995_v44, %v3226_v46  ;;  %v3242_v5 = vshrl.u32 %v9996_v8, %v8248_v29 }
 0x2fb   : > { %v3031_v0 = vmul.f32 -0.001358992, %v3030_v7  ;;  %v3038_v4 = vmul.f32 -0.00019511016, %v3030_v7  ;;  %v8270_v20 = vor.u32 %v3230_v17, %v3229_v30  ;;  %v3240_v61 = vor.u32 %v3239_v12, %v3238_v32 }
 0x2fc   : > { %v3158_v18 = vshll.u32 %v3157_v13, 30  ;;  %v8277_v14 = vor.u32 %v3233_v6, %v3232_v50  ;;  %v3237_v31 = vor.u32 %v3236_v57, %v3235_v24  ;;  %v3243_v62 = vor.u32 %v3242_v5, %v3241_v42 }
 0x2fd   : > { %v3032_v1 = vadd.f32 0.041655596, %v3031_v0  ;;  %v3039_v51 = vadd.f32 0.008332121, %v3038_v4  ;;  %vm3244_vm12 = vcmp.lt.s32.totalorder %v8263_v21, 1  ;;  %vm3247_vm13 = vcmp.lt.s32.totalorder %v8263_v21, 4 }
 0x2fe   : > { %v8275_v38 = vsub.s32 %v3155_v43, %v3158_v18  ;;  %v3151_v58 = vadd.s32 %v8227_v16, %v8225_v3  ;;  %vm3246_vm2 = vcmp.lt.s32.totalorder %v8263_v21, 3  ;;  %v3253_v23 = vsel %vm3247_vm13, %v3240_v61, 920167782 }
 0x2ff   : > { %v3033_v56 = vmul.f32 %v3032_v1, %v3030_v7  ;;  %v3040_v53 = vmul.f32 %v3039_v51, %v3030_v7  ;;  %v5557_v19 = vadd.s32 4294967169, %v3371_v41  ;;  %v3181_v40 = vsub.s32 4, %v3157_v13 }
 0x300   : > { %vm3160_vm15 = vcmp.lt.s32.totalorder %v8275_v38, 0  ;;  %v3161_v35 = vsub.s32 0, %v8275_v38  ;;  %vm3245_vm3 = vcmp.lt.s32.totalorder %v8263_v21, 2  ;;  %v3252_v3 = vsel %vm3244_vm12, %v8270_v20, %v8277_v14 }
 0x301   : > { %v3034_v36 = vadd.f32 -0.4999988, %v3033_v56  ;;  %v3041_v15 = vadd.f32 -0.16666654, %v3040_v53  ;;  %v3254_v43 = vsel %vm3246_vm2, %v3237_v31, %v3253_v23  ;;  %v3257_v25 = vsel %vm3247_vm13, %v3243_v62, 1326507024 }
 0x302   : > { %v3162_v48 = vsel %vm3160_vm15, %v3161_v35, %v8275_v38  ;;  %v3256_v49 = vsel %vm3244_vm12, %v8277_v14, %v3237_v31  ;;  %v3258_v30 = vsel %vm3246_vm2, %v3240_v61, %v3257_v25  ;;  %v3261_v37 = vand.u32 65535, %v8297_v45 }
 0x303   : > { %v3035_v28 = vmul.f32 %v3034_v36, %v3030_v7  ;;  %v3042_v55 = vmul.f32 %v3041_v15, %v3030_v7  ;;  %v3163_v46 = vclz %v3162_v48  ;;  %v3262_v6 = vshrl.u32 %v8297_v45, 16 }
 0x304   : > { %v8317_v32 = vadd.s32 1, %v5557_v19  ;;  %v8321_v0 = vsel %vm3059_vm10, %v3181_v40, %v3157_v13  ;;  %v3228_v4 = vshrl.u32 %v9991_v11, %v8248_v29  ;;  %v3255_v12 = vsel %vm3245_vm3, %v3252_v3, %v3254_v43 }
 0x305   : > { %v3036_v16 = vadd.f32 1.0, %v3035_v28  ;;  %v3043_v27 = vadd.f32 1.0, %v3042_v55  ;;  %v5552_v7 = vadd.s32 4294967294, %v3163_v46  ;;  %v3259_v42 = vsel %vm3245_vm3, %v3256_v49, %v3258_v30 }
 0x306   : > { %v3263_v13 = vand.u32 65535, %v3259_v42  ;;  %v3184_v29 = vsel %vm8288_vm1, 0, %v8321_v0  ;;  %v3285_v61 = vand.u32 65535, %v3255_v12  ;;  %v3286_v5 = vshrl.u32 %v3255_v12, 16 }
 0x307   : > { %v3044_v17 = vmul.f32 %v3043_v27, %v8244_v54  ;;  %v3053_v50 = vxor.u32 2147483648, %v3036_v16  ;;  %vm5553_vm4 = vcmp.lt.s32.totalorder %v5552_v7, 0  ;;  %v3264_v62 = vshrl.u32 %v3259_v42, 16 }
 0x308   : > { %v3166_v57 = vsel %vm5553_vm4, 0, %v5552_v7  ;;  %v3248_v36 = vsel %vm3244_vm12, %v3228_v4, %v8270_v20  ;;  %v3249_v15 = vsel %vm3247_vm13, %v3237_v31, 2102212464  ;;  %v3267_v35 = vmul.u32 %v3263_v13, %v3262_v6 }
 0x309   : > { %v3050_v24 = vxor.u32 2147483648, %v3044_v17  ;;  %v3054_v54 = vsel %vm3052_vm9, %v3053_v50, %v3044_v17  ;;  %v3167_v1 = vsub.s32 32, %v3166_v57  ;;  %v3168_v51 = vshll.u32 %v8275_v38, %v3166_v57 }
 0x30a   : > { %v3171_v18 = vsub.s32 4294967266, %v3166_v57  ;;  %v3265_v55 = vmul.u32 %v3263_v13, %v3261_v37  ;;  %v3266_v48 = vmul.u32 %v3264_v62, %v3261_v37  ;;  %v3268_v2 = vmul.u32 %v3264_v62, %v3262_v6 }
 0x30b   : > { %v3051_v10 = vsel %vm3049_vm11, %v3036_v16, %v3050_v24  ;;  %v3169_v56 = vshrl.u32 %v3151_v58, %v3167_v1  ;;  %v3287_v58 = vmul.u32 %v3285_v61, %v3261_v37  ;;  %v3288_v19 = vmul.u32 %v3286_v5, %v3261_v37 }
 0x30c   : > { %v3055_v41 = vsel %vm3048_vm14, %v3051_v10, %v3054_v54  ;;  %v3172_v53 = vadd.s32 127, %v3171_v18  ;;  %v3289_v46 = vmul.u32 %v3285_v61, %v3262_v6  ;;  %v3269_v3 = vshll.u32 %v3266_v48, 16 }
 0x30d   : > { %v3056_v38 = vsel %vm3045_vm0, nan, %v3055_v41  ;;  %v3170_v23 = vor.u32 %v3169_v56, %v3168_v51  ;;  %v3271_v16 = vshll.u32 %v3267_v35, 16  ;;  %v3250_v20 = vsel %vm3246_vm2, %v8277_v14, %v3249_v15 }
 0x30e   : > { %v3173_v28 = vshll.u32 %v3172_v53, 23  ;;  %5398 = vst [vmem:[%s6492_s26 + $0x80] sm:$0xff] %v3056_v38  ;;  %v3290_v27 = vmul.u32 %v3286_v5, %v3262_v6  ;;  %v3291_v31 = vshll.u32 %v3288_v19, 16  ;;  %v3293_v43 = vshll.u32 %v3289_v46, 16 }
 0x30f   : > { %v3177_v26 = vcvt.s32.f32 %v3170_v23  ;;  %v3272_v7 = vshrl.u32 %v3267_v35, 16  ;;  %vm3273_vm5 = vc.u32 %v3265_v55, %v3269_v3  ;;  %v3275_v49 = vadd.s32 %v3269_v3, %v3265_v55 }
 0x310   : > { %v3174_v40 = vor.u32 4788187, %v3173_v28  ;;  %v3270_v30 = vshrl.u32 %v3266_v48, 16  ;;  %v3274_v17 = vsel %vm3273_vm5, 1, %v5768_v33  ;;  %vm3295_vm6 = vc.u32 %v3287_v58, %v3291_v31 }
 0x311   : > { %v3297_v37 = vadd.s32 %v3291_v31, %v3287_v58  ;;  %v3276_v0 = vadd.s32 %v3274_v17, %v3268_v2  ;;  %vm3277_vm7 = vc.u32 %v3275_v49, %v3271_v16  ;;  %v3296_v4 = vsel %vm3295_vm6, 1, %v5768_v33 }
 0x312   : > { %v3175_v25 = vand.u32 2147483647, %v3174_v40  ;;  %v3278_v12 = vsel %vm3277_vm7, 1, %v5768_v33  ;;  %v3292_v14 = vshrl.u32 %v3288_v19, 16  ;;  %v3298_v6 = vadd.s32 %v3296_v4, %v3290_v27 }
 0x313   : > { %vm3299_vm8 = vc.u32 %v3297_v37, %v3293_v43  ;;  %v3280_v54 = vadd.s32 %v3278_v12, %v3276_v0  ;;  %vm3378_vm9 = vcmp.gt.s32.totalorder %v8317_v32, 0  ;;  %v3251_v42 = vsel %vm3245_vm3, %v3248_v36, %v3250_v20 }
 0x314   : > { %v3178_v50 = vmul.f32 %v3177_v26, %v3175_v25  ;;  %v3300_v57 = vsel %vm3299_vm8, 1, %v5768_v33  ;;  %v3294_v1 = vshrl.u32 %v3289_v46, 16  ;;  %v3379_v18 = vsel %vm3378_vm9, %v8317_v32, 0 }
 0x315   : > { %v3302_v51 = vadd.s32 %v3300_v57, %v3298_v6  ;;  %v3281_v10 = vadd.s32 %v3280_v54, %v3270_v30  ;;  %v8360_v61 = vadd.s32 %v3297_v37, %v3293_v43  ;;  %v3381_v5 = vand.u32 31, %v3379_v18 }
 0x316   : > { %v3179_v24 = vxor.u32 2147483648, %v3178_v50  ;;  %v3374_v21 = vand.u32 8388607, %v3367_v52  ;;  %v3201_v32 = vadd.s32 3, %v3184_v29  ;;  %v3305_v15 = vmul.u32 %v8297_v45, %v3251_v42 }
 0x317   : > { %v3303_v56 = vadd.s32 %v3302_v51, %v3292_v14  ;;  %v8365_v62 = vadd.s32 %v3281_v10, %v3272_v7  ;;  %v8369_v38 = vsub.s32 32, %v3381_v5  ;;  %v8372_v35 = vshrl.u32 %v3379_v18, 5 }
 0x318   : > { %v3180_v13 = vsel %vm3059_vm10, %v3179_v24, %v3178_v50  ;;  %v3384_v63 = vshll.u32 %v9991_v11, %v3381_v5  ;;  %v3387_v2 = vshll.u32 %v9992_v34, %v3381_v5  ;;  %v3393_v29 = vshll.u32 %v9994_v9, %v3381_v5 }
 0x319   : > { %v3183_v41 = vsel %vm8288_vm1, %v6192_v39, %v3180_v13  ;;  %v3304_v36 = vadd.s32 %v3303_v56, %v3294_v1  ;;  %vm3307_vm10 = vc.u32 %v8365_v62, %v8360_v61  ;;  %v3385_v48 = vshrl.u32 %v9992_v34, %v8369_v38 }
 0x31a   : > { %v3185_v53 = vmul.f32 %v3183_v41, %v3183_v41  ;;  %v3388_v45 = vshrl.u32 %v9993_v22, %v8369_v38  ;;  %v3394_v46 = vshrl.u32 %v9995_v44, %v8369_v38  ;;  %v3390_v26 = vshll.u32 %v9993_v22, %v3381_v5 }
 0x31b   : > { %v3308_v55 = vadd.s32 1, %v3304_v36  ;;  %v3391_v3 = vshrl.u32 %v9994_v9, %v8369_v38  ;;  %v3396_v16 = vshll.u32 %v9995_v44, %v3381_v5  ;;  %v3375_v43 = vor.u32 8388608, %v3374_v21 }
 0x31c   : > { %v3186_v23 = vmul.f32 -0.001358992, %v3185_v53  ;;  %v3193_v28 = vmul.f32 -0.00019511016, %v3185_v53  ;;  %v3202_v25 = vand.u32 3, %v3201_v32  ;;  %v8389_v7 = vor.u32 %v3385_v48, %v3384_v63 }
 0x31d   : > { %v3309_v40 = vsel %vm3307_vm10, %v3308_v55, %v3304_v36  ;;  %v3395_v49 = vor.u32 %v3394_v46, %v3393_v29  ;;  %v3397_v30 = vshrl.u32 %v9996_v8, %v8369_v38  ;;  %v8393_v0 = vor.u32 %v3388_v45, %v3387_v2 }
 0x31e   : > { %v3187_v58 = vadd.f32 0.041655596, %v3186_v23  ;;  %v3194_v19 = vadd.f32 0.008332121, %v3193_v28  ;;  %v3310_v31 = vadd.s32 %v3309_v40, %v3305_v15  ;;  %v8395_v4 = vor.u32 %v3391_v3, %v3390_v26 }
 0x31f   : > { %v3398_v12 = vor.u32 %v3397_v30, %v3396_v16  ;;  %vm3399_vm11 = vcmp.lt.s32.totalorder %v8372_v35, 1  ;;  %vm3402_vm12 = vcmp.lt.s32.totalorder %v8372_v35, 4  ;;  %vm3401_vm13 = vcmp.lt.s32.totalorder %v8372_v35, 3 }
 0x320   : > { %v3188_v20 = vmul.f32 %v3187_v58, %v3185_v53  ;;  %v3195_v27 = vmul.f32 %v3194_v19, %v3185_v53  ;;  %v3311_v50 = vadd.s32 536870912, %v3310_v31  ;;  %vm3203_vm14 = vcmp.lt.s32.totalorder %v3202_v25, 2 }
 0x321   : > { %vm3400_vm15 = vcmp.lt.s32.totalorder %v8372_v35, 2  ;;  %v3408_v54 = vsel %vm3402_vm12, %v3395_v49, 920167782  ;;  %v8405_v57 = vshll.u32 %v3375_v43, 8  ;;  %v3407_v18 = vsel %vm3399_vm11, %v8389_v7, %v8393_v0 }
 0x322   : > { %v3189_v17 = vadd.f32 -0.4999988, %v3188_v20  ;;  %v3196_v37 = vadd.f32 -0.16666654, %v3195_v27  ;;  %v8399_v24 = vshrl.u32 %v3311_v50, 30  ;;  %vm3204_vm0 = vcmp.eq.s32.totalorder %v3202_v25, 0 }
 0x323   : > { %vm3207_vm1 = vcmp.eq.s32.totalorder %v3202_v25, 2  ;;  %v3409_v13 = vsel %vm3401_vm13, %v8395_v4, %v3408_v54  ;;  %v3412_v10 = vsel %vm3402_vm12, %v3398_v12, 1326507024  ;;  %v3411_v21 = vsel %vm3399_vm11, %v8393_v0, %v8395_v4 }
 0x324   : > { %v3190_v14 = vmul.f32 %v3189_v17, %v3185_v53  ;;  %v3197_v6 = vmul.f32 %v3196_v37, %v3185_v53  ;;  %v3313_v51 = vshll.u32 %v8399_v24, 30  ;;  %v3410_v32 = vsel %vm3400_vm15, %v3407_v18, %v3409_v13 }
 0x325   : > { %v3413_v36 = vsel %vm3401_vm13, %v3395_v49, %v3412_v10  ;;  %v3416_v15 = vand.u32 65535, %v8405_v57  ;;  %v3417_v23 = vshrl.u32 %v8405_v57, 16  ;;  %vm3200_vm3 = vweird.f32 %v6192_v39 }
 0x326   : > { %v3191_v42 = vadd.f32 1.0, %v3190_v14  ;;  %v3198_v1 = vadd.f32 1.0, %v3197_v6  ;;  %v3314_v53 = vsub.s32 %v3310_v31, %v3313_v51  ;;  %v3414_v55 = vsel %vm3400_vm15, %v3411_v21, %v3413_v36  ;;  %v10038_v31 = vld [vmem:[#allocation12_spill] sm:$0xff] }
 0x327   : > { %v3441_v48 = vshrl.u32 %v3410_v32, 16  ;;  %v3418_v58 = vand.u32 65535, %v3414_v55  ;;  %v3419_v19 = vshrl.u32 %v3414_v55, 16  ;;  %v3440_v40 = vand.u32 65535, %v3410_v32 }
 0x328   : > { %v3199_v5 = vmul.f32 %v3198_v1, %v3183_v41  ;;  %v3208_v56 = vxor.u32 2147483648, %v3191_v42  ;;  %vm3315_vm2 = vcmp.lt.s32.totalorder %v3314_v53, 0  ;;  %v3316_v41 = vsub.s32 0, %v3314_v53 }
 0x329   : > { %v8432_v26 = vmul.u32 %v3441_v48, %v3416_v15  ;;  %v3420_v16 = vmul.u32 %v3418_v58, %v3416_v15  ;;  %v3421_v20 = vmul.u32 %v3419_v19, %v3416_v15  ;;  %v3422_v39 = vmul.u32 %v3418_v58, %v3417_v23 }
 0x32a   : > { %v3205_v28 = vxor.u32 2147483648, %v3199_v5  ;;  %v3209_v63 = vsel %vm3207_vm1, %v3208_v56, %v3199_v5  ;;  %v3317_v29 = vsel %vm3315_vm2, %v3316_v41, %v3314_v53  ;;  %vm3214_vm4 = vcmp.lt.s32.totalorder %v6195_v59, 0 }
 0x32b   : > { %v3318_v46 = vclz %v3317_v29  ;;  %v3522_v43 = vand.u32 2147483647, %v10038_v31  ;;  %v3306_v49 = vadd.s32 %v8360_v61, %v8365_v62  ;;  %v3383_v25 = vshrl.u32 %v9991_v11, %v8369_v38 }
 0x32c   : > { %v3206_v2 = vsel %vm3204_vm0, %v3191_v42, %v3205_v28  ;;  %v3423_v30 = vmul.u32 %v3419_v19, %v3417_v23  ;;  %v3424_v17 = vshll.u32 %v3421_v20, 16  ;;  %v3426_v37 = vshll.u32 %v3422_v39, 16 }
 0x32d   : > { %v3210_v45 = vsel %vm3203_vm14, %v3206_v2, %v3209_v63  ;;  %v5555_v27 = vadd.s32 4294967294, %v3318_v46  ;;  %v3442_v50 = vmul.u32 %v3440_v40, %v3416_v15  ;;  %v3444_v12 = vmul.u32 %v3440_v40, %v3417_v23 }
 0x32e   : > { %v3211_v3 = vsel %vm3200_vm3, nan, %v3210_v45  ;;  %vm8443_vm6 = vcmp.le.f32.partialorder %v3212_v47, 0.7853982  ;;  %vm3428_vm7 = vc.u32 %v3420_v16, %v3424_v17  ;;  %v3430_v54 = vadd.s32 %v3424_v17, %v3420_v16 }
 0x32f   : > { %5399 = vst [vmem:[%s6492_s26 + $0x88] sm:$0xff] %v3211_v3  ;;  %vm5556_vm5 = vcmp.lt.s32.totalorder %v5555_v27, 0  ;;  %v3446_v61 = vshll.u32 %v8432_v26, 16  ;;  %v3429_v1 = vsel %vm3428_vm7, 1, %v5768_v33  ;;  %v3336_v51 = vsub.s32 4, %v8399_v24 }
 0x330   : > { %v3321_v6 = vsel %vm5556_vm5, 0, %v5555_v27  ;;  %v3431_v18 = vadd.s32 %v3429_v1, %v3423_v30  ;;  %v3445_v13 = vmul.u32 %v3441_v48, %v3417_v23  ;;  %v3525_v10 = vand.u32 2139095040, %v10038_v31 }
 0x331   : > { %v3322_v62 = vsub.s32 32, %v3321_v6  ;;  %v3323_v42 = vshll.u32 %v3314_v53, %v3321_v6  ;;  %v3326_v38 = vsub.s32 4294967266, %v3321_v6  ;;  %v3425_v56 = vshrl.u32 %v3421_v20, 16 }
 0x332   : > { %vm3432_vm8 = vc.u32 %v3430_v54, %v3426_v37  ;;  %v3404_v21 = vsel %vm3402_vm12, %v8395_v4, 2102212464  ;;  %v3448_v53 = vshll.u32 %v3444_v12, 16  ;;  %vm3450_vm9 = vc.u32 %v3442_v50, %v3446_v61 }
 0x333   : > { %v3324_v47 = vshrl.u32 %v3306_v49, %v3322_v62  ;;  %v3327_v5 = vadd.s32 127, %v3326_v38  ;;  %v3433_v32 = vsel %vm3432_vm8, 1, %v5768_v33  ;;  %v3451_v63 = vsel %vm3450_vm9, 1, %v5768_v33 }
 0x334   : > { %v3435_v28 = vadd.s32 %v3433_v32, %v3431_v18  ;;  %v3337_v23 = vsel %vm3214_vm4, %v3336_v51, %v8399_v24  ;;  %v3452_v41 = vadd.s32 %v3446_v61, %v3442_v50  ;;  %v3453_v55 = vadd.s32 %v3451_v63, %v3445_v13  ;;  %v10041_v13 = vld [vmem:[#allocation13_spill] sm:$0xff] }
 0x335   : > { %v3325_v36 = vor.u32 %v3324_v47, %v3323_v42  ;;  %v3328_v15 = vshll.u32 %v3327_v5, 23  ;;  %v3526_v48 = vshrl.u32 %v3525_v10, 23  ;;  %v3427_v58 = vshrl.u32 %v3422_v39, 16 }
 0x336   : > { %v3436_v4 = vadd.s32 %v3435_v28, %v3425_v56  ;;  %v3403_v19 = vsel %vm3399_vm11, %v3383_v25, %v8389_v7  ;;  %v3447_v45 = vshrl.u32 %v8432_v26, 16  ;;  %vm3454_vm10 = vc.u32 %v3452_v41, %v3448_v53 }
 0x337   : > { %v3329_v2 = vor.u32 4788187, %v3328_v15  ;;  %v3332_v29 = vcvt.s32.f32 %v3325_v36  ;;  %v5560_v46 = vadd.s32 4294967169, %v3526_v48  ;;  %v3339_v3 = vsel %vm8443_vm6, 0, %v3337_v23 }
 0x338   : > { %v3405_v24 = vsel %vm3401_vm13, %v8393_v0, %v3404_v21  ;;  %v3455_v16 = vsel %vm3454_vm10, 1, %v5768_v33  ;;  %v3449_v20 = vshrl.u32 %v3444_v12, 16  ;;  %v8469_v30 = vadd.s32 %v3436_v4, %v3427_v58 }
 0x339   : > { %v3330_v40 = vand.u32 2147483647, %v3329_v2  ;;  %v3457_v39 = vadd.s32 %v3455_v16, %v3453_v55  ;;  %v3532_v27 = vadd.s32 1, %v5560_v46  ;;  %v8471_v7 = vadd.s32 %v3452_v41, %v3448_v53 }
 0x33a   : > { %v3356_v26 = vadd.s32 3, %v3339_v3  ;;  %v3406_v25 = vsel %vm3400_vm15, %v3403_v19, %v3405_v24  ;;  %v3529_v0 = vand.u32 8388607, %v3522_v43  ;;  %v3680_v63 = vand.u32 2139095040, %v10041_v13 }
 0x33b   : > { %v3333_v49 = vmul.f32 %v3332_v29, %v3330_v40  ;;  %v3458_v17 = vadd.s32 %v3457_v39, %v3447_v45  ;;  %vm3533_vm11 = vcmp.gt.s32.totalorder %v3532_v27, 0  ;;  %v3460_v61 = vmul.u32 %v8405_v57, %v3406_v25 }
 0x33c   : > { %v3534_v50 = vsel %vm3533_vm11, %v3532_v27, 0  ;;  %vm3462_vm12 = vc.u32 %v8469_v30, %v8471_v7  ;;  %v8487_v62 = vand.u32 3, %v3356_v26  ;;  %v3530_v51 = vor.u32 8388608, %v3529_v0 }
 0x33d   : > { %v3334_v37 = vxor.u32 2147483648, %v3333_v49  ;;  %v3459_v6 = vadd.s32 %v3458_v17, %v3449_v20  ;;  %v3536_v12 = vand.u32 31, %v3534_v50  ;;  %v3677_v57 = vand.u32 2147483647, %v10041_v13 }
 0x33e   : > { %v8497_v36 = vshrl.u32 %v3534_v50, 5  ;;  %vm3362_vm13 = vcmp.eq.s32.totalorder %v8487_v62, 2  ;;  %vm3359_vm14 = vcmp.eq.s32.totalorder %v8487_v62, 0  ;;  %v8513_v24 = vshll.u32 %v3530_v51, 8 }
 0x33f   : > { %v3335_v54 = vsel %vm3214_vm4, %v3334_v37, %v3333_v49  ;;  %v3463_v42 = vadd.s32 1, %v3459_v6  ;;  %v3537_v38 = vsub.s32 32, %v3536_v12  ;;  %v3539_v18 = vshll.u32 %v9991_v11, %v3536_v12 }
 0x340   : > { %v8485_v35 = vsel %vm8443_vm6, %v6195_v59, %v3335_v54  ;;  %v3542_v5 = vshll.u32 %v9992_v34, %v3536_v12  ;;  %v3548_v53 = vshll.u32 %v9994_v9, %v3536_v12  ;;  %v3545_v15 = vshll.u32 %v9993_v22, %v3536_v12 }
 0x341   : > { %v3340_v1 = vmul.f32 %v8485_v35, %v8485_v35  ;;  %v3464_v10 = vsel %vm3462_vm12, %v3463_v42, %v3459_v6  ;;  %v3540_v47 = vshrl.u32 %v9992_v34, %v3537_v38  ;;  %v3543_v14 = vshrl.u32 %v9993_v22, %v3537_v38 }
 0x342   : > { %v3465_v32 = vadd.s32 %v3464_v10, %v3460_v61  ;;  %v3546_v28 = vshrl.u32 %v9994_v9, %v3537_v38  ;;  %v3549_v48 = vshrl.u32 %v9995_v44, %v3537_v38  ;;  %v3551_v58 = vshll.u32 %v9995_v44, %v3536_v12 }
 0x343   : > { %v3341_v56 = vmul.f32 -0.001358992, %v3340_v1  ;;  %v3348_v21 = vmul.f32 -0.00019511016, %v3340_v1  ;;  %v3541_v2 = vor.u32 %v3540_v47, %v3539_v18  ;;  %v8504_v29 = vor.u32 %v3543_v14, %v3542_v5 }
 0x344   : > { %v3466_v55 = vadd.s32 536870912, %v3465_v32  ;;  %v3552_v4 = vshrl.u32 %v9996_v8, %v3537_v38  ;;  %v3550_v40 = vor.u32 %v3549_v48, %v3548_v53  ;;  %v8509_v3 = vor.u32 %v3546_v28, %v3545_v15 }
 0x345   : > { %v3342_v23 = vadd.f32 0.041655596, %v3341_v56  ;;  %v3349_v41 = vadd.f32 0.008332121, %v3348_v21  ;;  %vm3554_vm15 = vcmp.lt.s32.totalorder %v8497_v36, 1  ;;  %vm3557_vm0 = vcmp.lt.s32.totalorder %v8497_v36, 4 }
 0x346   : > { %v3467_v46 = vshrl.u32 %v3466_v55, 30  ;;  %vm3358_vm1 = vcmp.lt.s32.totalorder %v8487_v62, 2  ;;  %vm3556_vm2 = vcmp.lt.s32.totalorder %v8497_v36, 3  ;;  %vm3355_vm3 = vweird.f32 %v6195_v59 }
 0x347   : > { %v3343_v19 = vmul.f32 %v3342_v23, %v3340_v1  ;;  %v3350_v45 = vmul.f32 %v3349_v41, %v3340_v1  ;;  %v3553_v27 = vor.u32 %v3552_v4, %v3551_v58  ;;  %vm3555_vm4 = vcmp.lt.s32.totalorder %v8497_v36, 2 }
 0x348   : > { %v3468_v39 = vshll.u32 %v3467_v46, 30  ;;  %v3563_v49 = vsel %vm3557_vm0, %v3550_v40, 920167782  ;;  %v3681_v26 = vshrl.u32 %v3680_v63, 23  ;;  %vm3369_vm5 = vcmp.lt.s32.totalorder %v6197_v60, 0 }
 0x349   : > { %v3344_v16 = vadd.f32 -0.4999988, %v3343_v19  ;;  %v3351_v20 = vadd.f32 -0.16666654, %v3350_v45  ;;  %v3562_v0 = vsel %vm3554_vm15, %v3541_v2, %v8504_v29  ;;  %v3564_v50 = vsel %vm3556_vm2, %v8509_v3, %v3563_v49 }
 0x34a   : > { %v3469_v37 = vsub.s32 %v3465_v32, %v3468_v39  ;;  %v3566_v6 = vsel %vm3554_vm15, %v8504_v29, %v8509_v3  ;;  %v3571_v12 = vand.u32 65535, %v8513_v24  ;;  %v3572_v54 = vshrl.u32 %v8513_v24, 16 }
 0x34b   : > { %v3345_v25 = vmul.f32 %v3344_v16, %v3340_v1  ;;  %v3352_v17 = vmul.f32 %v3351_v20, %v3340_v1  ;;  %vm8536_vm7 = vcmp.le.f32.partialorder %v3367_v52, 0.7853982  ;;  %v3538_v18 = vshrl.u32 %v9991_v11, %v3537_v38 }
 0x34c   : > { %vm3470_vm6 = vcmp.lt.s32.totalorder %v3469_v37, 0  ;;  %v3471_v1 = vsub.s32 0, %v3469_v37  ;;  %v3565_v10 = vsel %vm3555_vm4, %v3562_v0, %v3564_v50  ;;  %v3567_v47 = vsel %vm3557_vm0, %v3553_v27, 1326507024 }
 0x34d   : > { %v3346_v61 = vadd.f32 1.0, %v3345_v25  ;;  %v3353_v42 = vadd.f32 1.0, %v3352_v17  ;;  %v5563_v5 = vadd.s32 4294967169, %v3681_v26  ;;  %v3568_v32 = vsel %vm3556_vm2, %v3550_v40, %v3567_v47 }
 0x34e   : > { %v3472_v21 = vsel %vm3470_vm6, %v3471_v1, %v3469_v37  ;;  %v3491_v53 = vsub.s32 4, %v3467_v46  ;;  %v3569_v15 = vsel %vm3555_vm4, %v3566_v6, %v3568_v32  ;;  %v3596_v38 = vshrl.u32 %v3565_v10, 16 }
 0x34f   : > { %v3354_v14 = vmul.f32 %v3353_v42, %v8485_v35  ;;  %v3363_v56 = vxor.u32 2147483648, %v3346_v61  ;;  %v3473_v52 = vclz %v3472_v21  ;;  %v3573_v23 = vand.u32 65535, %v3569_v15 }
 0x350   : > { %v3574_v41 = vshrl.u32 %v3569_v15, 16  ;;  %v3461_v35 = vadd.s32 %v8471_v7, %v8469_v30  ;;  %v8556_v48 = vand.u32 8388607, %v3677_v57  ;;  %v3687_v58 = vadd.s32 1, %v5563_v5 }
 0x351   : > { %v3360_v28 = vxor.u32 2147483648, %v3354_v14  ;;  %v3364_v63 = vsel %vm3362_vm13, %v3363_v56, %v3354_v14  ;;  %v5558_v55 = vadd.s32 4294967294, %v3473_v52  ;;  %v3558_v19 = vsel %vm3554_vm15, %v3538_v18, %v3541_v2 }
 0x352   : > { %v3576_v45 = vmul.u32 %v3574_v41, %v3571_v12  ;;  %v3595_v40 = vand.u32 65535, %v3565_v10  ;;  %v3492_v30 = vsel %vm3369_vm5, %v3491_v53, %v3467_v46  ;;  %v3577_v7 = vmul.u32 %v3573_v23, %v3572_v54 }
 0x353   : > { %v3361_v4 = vsel %vm3359_vm14, %v3346_v61, %v3360_v28  ;;  %vm5559_vm8 = vcmp.lt.s32.totalorder %v5558_v55, 0  ;;  %v3575_v27 = vmul.u32 %v3573_v23, %v3571_v12  ;;  %v3598_v49 = vmul.u32 %v3596_v38, %v3571_v12 }
 0x354   : > { %v3365_v16 = vsel %vm3358_vm1, %v3361_v4, %v3364_v63  ;;  %v3476_v39 = vsel %vm5559_vm8, 0, %v5558_v55  ;;  %v3579_v2 = vshll.u32 %v3576_v45, 16  ;;  %v3494_v62 = vsel %vm8536_vm7, 0, %v3492_v30 }
 0x355   : > { %v3366_v20 = vsel %vm3355_vm3, nan, %v3365_v16  ;;  %v3477_v26 = vsub.s32 32, %v3476_v39  ;;  %v3478_v25 = vshll.u32 %v3469_v37, %v3476_v39  ;;  %v3481_v17 = vsub.s32 4294967266, %v3476_v39 }
 0x356   : > { %5400 = vst [vmem:[%s6492_s26 + $0x90] sm:$0xff] %v3366_v20  ;;  %v3559_v0 = vsel %vm3557_vm0, %v8509_v3, 2102212464  ;;  %v3578_v46 = vmul.u32 %v3574_v41, %v3572_v54  ;;  %v3599_v50 = vmul.u32 %v3595_v40, %v3572_v54  ;;  %v3581_v61 = vshll.u32 %v3577_v7, 16 }
 0x357   : > { %v3479_v6 = vshrl.u32 %v3461_v35, %v3477_v26  ;;  %v3482_v59 = vadd.s32 127, %v3481_v17  ;;  %v3597_v42 = vmul.u32 %v3595_v40, %v3571_v12  ;;  %vm3583_vm9 = vc.u32 %v3575_v27, %v3579_v2 }
 0x358   : > { %v3585_v1 = vadd.s32 %v3579_v2, %v3575_v27  ;;  %v3601_v18 = vshll.u32 %v3598_v49, 16  ;;  %vm3688_vm10 = vcmp.gt.s32.totalorder %v3687_v58, 0  ;;  %v3584_v47 = vsel %vm3583_vm9, 1, %v5768_v33 }
 0x359   : > { %v3480_v37 = vor.u32 %v3479_v6, %v3478_v25  ;;  %v3483_v10 = vshll.u32 %v3482_v59, 23  ;;  %v3600_v5 = vmul.u32 %v3596_v38, %v3572_v54  ;;  %v3580_v14 = vshrl.u32 %v3576_v45, 16 }
 0x35a   : > { %v3586_v56 = vadd.s32 %v3584_v47, %v3578_v46  ;;  %vm3587_vm11 = vc.u32 %v3585_v1, %v3581_v61  ;;  %v3603_v21 = vshll.u32 %v3599_v50, 16  ;;  %vm3605_vm12 = vc.u32 %v3597_v42, %v3601_v18 }
 0x35b   : > { %v3484_v3 = vor.u32 4788187, %v3483_v10  ;;  %v3487_v32 = vcvt.s32.f32 %v3480_v37  ;;  %v3588_v52 = vsel %vm3587_vm11, 1, %v5768_v33  ;;  %v3560_v12 = vsel %vm3556_vm2, %v8504_v29, %v3559_v0 }
 0x35c   : > { %v3590_v53 = vadd.s32 %v3588_v52, %v3586_v56  ;;  %v3606_v15 = vsel %vm3605_vm12, 1, %v5768_v33  ;;  %v3607_v28 = vadd.s32 %v3601_v18, %v3597_v42  ;;  %v3582_v23 = vshrl.u32 %v3577_v7, 16 }
 0x35d   : > { %v3485_v63 = vand.u32 2147483647, %v3484_v3  ;;  %v3608_v54 = vadd.s32 %v3606_v15, %v3600_v5  ;;  %v3689_v38 = vsel %vm3688_vm10, %v3687_v58, 0  ;;  %v3602_v35 = vshrl.u32 %v3598_v49, 16 }
 0x35e   : > { %v3591_v41 = vadd.s32 %v3590_v53, %v3580_v14  ;;  %vm3609_vm13 = vc.u32 %v3607_v28, %v3603_v21  ;;  %v3685_v55 = vor.u32 8388608, %v8556_v48  ;;  %v3561_v45 = vsel %vm3555_vm4, %v3558_v19, %v3560_v12 }
 0x35f   : > { %v3488_v4 = vmul.f32 %v3487_v32, %v3485_v63  ;;  %v3610_v29 = vsel %vm3609_vm13, 1, %v5768_v33  ;;  %v3691_v40 = vand.u32 31, %v3689_v38  ;;  %v3511_v16 = vadd.s32 3, %v3494_v62 }
 0x360   : > { %v3604_v30 = vshrl.u32 %v3599_v50, 16  ;;  %v8585_v20 = vadd.s32 %v3607_v28, %v3603_v21  ;;  %v3612_v7 = vadd.s32 %v3610_v29, %v3608_v54  ;;  %v8587_v27 = vadd.s32 %v3591_v41, %v3582_v23 }
 0x361   : > { %v3489_v39 = vxor.u32 2147483648, %v3488_v4  ;;  %v8589_v58 = vsub.s32 32, %v3691_v40  ;;  %v3694_v49 = vshll.u32 %v9991_v11, %v3691_v40  ;;  %v3615_v26 = vmul.u32 %v8513_v24, %v3561_v45 }
 0x362   : > { %v3613_v48 = vadd.s32 %v3612_v7, %v3602_v35  ;;  %v8593_v36 = vshrl.u32 %v3689_v38, 5  ;;  %v3697_v19 = vshll.u32 %v9992_v34, %v3691_v40  ;;  %v3700_v62 = vshll.u32 %v9993_v22, %v3691_v40 }
 0x363   : > { %v3490_v25 = vsel %vm3369_vm5, %v3489_v39, %v3488_v4  ;;  %v3695_v17 = vshrl.u32 %v9992_v34, %v8589_v58  ;;  %v3698_v2 = vshrl.u32 %v9993_v22, %v8589_v58  ;;  %v3701_v46 = vshrl.u32 %v9994_v9, %v8589_v58 }
 0x364   : > { %v3493_v0 = vsel %vm8536_vm7, %v6197_v60, %v3490_v25  ;;  %v3614_v24 = vadd.s32 %v3613_v48, %v3604_v30  ;;  %v3703_v50 = vshll.u32 %v9994_v9, %v3691_v40  ;;  %vm3617_vm14 = vc.u32 %v8587_v27, %v8585_v20 }
 0x365   : > { %v3495_v6 = vmul.f32 %v3493_v0, %v3493_v0  ;;  %v8611_v59 = vor.u32 %v3695_v17, %v3694_v49  ;;  %v3704_v61 = vshrl.u32 %v9995_v44, %v8589_v58  ;;  %v8615_v1 = vor.u32 %v3698_v2, %v3697_v19 }
 0x366   : > { %v3618_v42 = vadd.s32 1, %v3614_v24  ;;  %v3706_v51 = vshll.u32 %v9995_v44, %v3691_v40  ;;  %v3707_v18 = vshrl.u32 %v9996_v8, %v8589_v58  ;;  %vm3709_vm15 = vcmp.lt.s32.totalorder %v8593_v36, 1 }
 0x367   : > { %v3496_v37 = vmul.f32 -0.001358992, %v3495_v6  ;;  %v3503_v10 = vmul.f32 -0.00019511016, %v3495_v6  ;;  %v3705_v47 = vor.u32 %v3704_v61, %v3703_v50  ;;  %v8621_v14 = vor.u32 %v3701_v46, %v3700_v62 }
 0x368   : > { %v3619_v5 = vsel %vm3617_vm14, %v3618_v42, %v3614_v24  ;;  %v3708_v56 = vor.u32 %v3707_v18, %v3706_v51  ;;  %vm3712_vm0 = vcmp.lt.s32.totalorder %v8593_v36, 4  ;;  %vm3711_vm1 = vcmp.lt.s32.totalorder %v8593_v36, 3 }
 0x369   : > { %v3497_v21 = vadd.f32 0.041655596, %v3496_v37  ;;  %v3504_v3 = vadd.f32 0.008332121, %v3503_v10  ;;  %v3620_v32 = vadd.s32 %v3619_v5, %v3615_v26  ;;  %vm3710_vm2 = vcmp.lt.s32.totalorder %v8593_v36, 2 }
 0x36a   : > { %v3717_v52 = vsel %vm3709_vm15, %v8611_v59, %v8615_v1  ;;  %v3718_v12 = vsel %vm3712_vm0, %v3705_v47, 920167782  ;;  %v8632_v53 = vshll.u32 %v3685_v55, 8  ;;  %v3512_v23 = vand.u32 3, %v3511_v16 }
 0x36b   : > { %v3498_v15 = vmul.f32 %v3497_v21, %v3495_v6  ;;  %v3505_v28 = vmul.f32 %v3504_v3, %v3495_v6  ;;  %v3621_v63 = vadd.s32 536870912, %v3620_v32  ;;  %v3719_v54 = vsel %vm3711_vm1, %v8621_v14, %v3718_v12 }
 0x36c   : > { %v3721_v38 = vsel %vm3709_vm15, %v8615_v1, %v8621_v14  ;;  %v3722_v41 = vsel %vm3712_vm0, %v3708_v56, 1326507024  ;;  %v3720_v45 = vsel %vm3710_vm2, %v3717_v52, %v3719_v54  ;;  %v3726_v40 = vand.u32 65535, %v8632_v53 }
 0x36d   : > { %v3499_v35 = vadd.f32 -0.4999988, %v3498_v15  ;;  %v3506_v4 = vadd.f32 -0.16666654, %v3505_v28  ;;  %v8643_v55 = vshrl.u32 %v3621_v63, 30  ;;  %v3723_v29 = vsel %vm3711_vm1, %v3705_v47, %v3722_v41 }
 0x36e   : > { %v3751_v16 = vshrl.u32 %v3720_v45, 16  ;;  %vm3510_vm3 = vweird.f32 %v6197_v60  ;;  %vm3513_vm4 = vcmp.lt.s32.totalorder %v3512_v23, 2  ;;  %v3724_v49 = vsel %vm3710_vm2, %v3721_v38, %v3723_v29 }
 0x36f   : > { %v3500_v30 = vmul.f32 %v3499_v35, %v3495_v6  ;;  %v3507_v7 = vmul.f32 %v3506_v4, %v3495_v6  ;;  %v3623_v39 = vshll.u32 %v8643_v55, 30  ;;  %v3727_v48 = vshrl.u32 %v8632_v53, 16 }
 0x370   : > { %vm3517_vm5 = vcmp.eq.s32.totalorder %v3512_v23, 2  ;;  %v3728_v17 = vand.u32 65535, %v3724_v49  ;;  %v3729_v2 = vshrl.u32 %v3724_v49, 16  ;;  %v3750_v62 = vand.u32 65535, %v3720_v45 }
 0x371   : > { %v3501_v26 = vadd.f32 1.0, %v3500_v30  ;;  %v3508_v19 = vadd.f32 1.0, %v3507_v7  ;;  %v3624_v25 = vsub.s32 %v3620_v32, %v3623_v39  ;;  %v8655_v24 = vmul.u32 %v3751_v16, %v3726_v40 }
 0x372   : > { %vm3514_vm7 = vcmp.eq.s32.totalorder %v3512_v23, 0  ;;  %v3730_v61 = vmul.u32 %v3728_v17, %v3726_v40  ;;  %v3731_v42 = vmul.u32 %v3729_v2, %v3726_v40  ;;  %v3732_v51 = vmul.u32 %v3728_v17, %v3727_v48 }
 0x373   : > { %v3509_v46 = vmul.f32 %v3508_v19, %v3493_v0  ;;  %v3518_v50 = vxor.u32 2147483648, %v3501_v26  ;;  %vm3625_vm6 = vcmp.lt.s32.totalorder %v3624_v25, 0  ;;  %v3626_v6 = vsub.s32 0, %v3624_v25 }
 0x374   : > { %vm3524_vm8 = vcmp.lt.s32.totalorder %v10038_v31, 0  ;;  %v3616_v10 = vadd.s32 %v8585_v20, %v8587_v27  ;;  %v3733_v56 = vmul.u32 %v3729_v2, %v3727_v48  ;;  %v3734_v21 = vshll.u32 %v3731_v42, 16 }
 0x375   : > { %v3515_v18 = vxor.u32 2147483648, %v3509_v46  ;;  %v3519_v37 = vsel %vm3517_vm5, %v3518_v50, %v3509_v46  ;;  %v3627_v47 = vsel %vm3625_vm6, %v3626_v6, %v3624_v25  ;;  %v3736_v3 = vshll.u32 %v3732_v51, 16 }
 0x376   : > { %v3628_v5 = vclz %v3627_v47  ;;  %v3752_v32 = vmul.u32 %v3750_v62, %v3726_v40  ;;  %v3754_v52 = vmul.u32 %v3750_v62, %v3727_v48  ;;  %v3756_v12 = vshll.u32 %v8655_v24, 16  ;;  %v10046_v62 = vld [vmem:[#allocation14_spill] sm:$0xff] }
 0x377   : > { %v3516_v0 = vsel %vm3514_vm7, %v3501_v26, %v3515_v18  ;;  %vm3738_vm9 = vc.u32 %v3730_v61, %v3734_v21  ;;  %v3740_v63 = vadd.s32 %v3734_v21, %v3730_v61  ;;  %v3646_v20 = vsub.s32 4, %v8643_v55 }
 0x378   : > { %v3520_v15 = vsel %vm3513_vm4, %v3516_v0, %v3519_v37  ;;  %v5561_v28 = vadd.s32 4294967294, %v3628_v5  ;;  %v3739_v27 = vsel %vm3738_vm9, 1, %v5768_v33  ;;  %v3755_v38 = vmul.u32 %v3751_v16, %v3727_v48 }
 0x379   : > { %v3521_v54 = vsel %vm3510_vm3, nan, %v3520_v15  ;;  %v3735_v41 = vshrl.u32 %v3731_v42, 16  ;;  %v3741_v35 = vadd.s32 %v3739_v27, %v3733_v56  ;;  %vm3742_vm11 = vc.u32 %v3740_v63, %v3736_v3 }
 0x37a   : > { %vm5562_vm10 = vcmp.lt.s32.totalorder %v5561_v28, 0  ;;  %5401 = vst [vmem:[%s6492_s26 + $0x98] sm:$0xff] %v3521_v54  ;;  %v3743_v23 = vsel %vm3742_vm11, 1, %v5768_v33  ;;  %v3758_v45 = vshll.u32 %v3754_v52, 16  ;;  %vm3760_vm12 = vc.u32 %v3752_v32, %v3756_v12 }
 0x37b   : > { %v3631_v4 = vsel %vm5562_vm10, 0, %v5561_v28  ;;  %v3745_v60 = vadd.s32 %v3743_v23, %v3741_v35  ;;  %vm8670_vm13 = vcmp.le.f32.partialorder %v3522_v43, 0.7853982  ;;  %v3693_v16 = vshrl.u32 %v9991_v11, %v8589_v58  ;;  %v10047_v23 = vld [vmem:[#allocation15_spill] sm:$0xff] }
 0x37c   : > { %v3632_v29 = vsub.s32 32, %v3631_v4  ;;  %v3633_v40 = vshll.u32 %v3624_v25, %v3631_v4  ;;  %v3636_v30 = vsub.s32 4294967266, %v3631_v4  ;;  %v3714_v39 = vsel %vm3712_vm0, %v8621_v14, 2102212464 }
 0x37d   : > { %v3761_v49 = vsel %vm3760_vm12, 1, %v5768_v33  ;;  %v3647_v19 = vsel %vm3524_vm8, %v3646_v20, %v8643_v55  ;;  %v3762_v25 = vadd.s32 %v3756_v12, %v3752_v32  ;;  %v3737_v43 = vshrl.u32 %v3732_v51, 16 }
 0x37e   : > { %v3634_v48 = vshrl.u32 %v3616_v10, %v3632_v29  ;;  %v3637_v26 = vadd.s32 127, %v3636_v30  ;;  %v3746_v17 = vadd.s32 %v3745_v60, %v3735_v41  ;;  %v3763_v2 = vadd.s32 %v3761_v49, %v3755_v38 }
 0x37f   : > { %v3835_v46 = vand.u32 2139095040, %v10046_v62  ;;  %v3757_v6 = vshrl.u32 %v8655_v24, 16  ;;  %vm3764_vm14 = vc.u32 %v3762_v25, %v3758_v45  ;;  %v3713_v14 = vsel %vm3709_vm15, %v3693_v16, %v8611_v59 }
 0x380   : > { %v3635_v50 = vor.u32 %v3634_v48, %v3633_v40  ;;  %v3638_v58 = vshll.u32 %v3637_v26, 23  ;;  %v3715_v61 = vsel %vm3711_vm1, %v8615_v1, %v3714_v39  ;;  %v3765_v55 = vsel %vm3764_vm14, 1, %v5768_v33 }
 0x381   : > { %v3836_v42 = vshrl.u32 %v3835_v46, 23  ;;  %v3759_v37 = vshrl.u32 %v3754_v52, 16  ;;  %v3767_v10 = vadd.s32 %v3765_v55, %v3763_v2  ;;  %v3649_v47 = vsel %vm8670_vm13, 0, %v3647_v19 }
 0x382   : > { %v3639_v51 = vor.u32 4788187, %v3638_v58  ;;  %v3642_v18 = vcvt.s32.f32 %v3635_v50  ;;  %v8694_v24 = vadd.s32 %v3746_v17, %v3737_v43  ;;  %v8696_v5 = vadd.s32 %v3762_v25, %v3758_v45 }
 0x383   : > { %v5566_v56 = vadd.s32 4294967169, %v3836_v42  ;;  %v3716_v21 = vsel %vm3710_vm2, %v3713_v14, %v3715_v61  ;;  %v3768_v1 = vadd.s32 %v3767_v10, %v3757_v6  ;;  %v3832_v3 = vand.u32 2147483647, %v10046_v62 }
 0x384   : > { %v3640_v59 = vand.u32 2147483647, %v3639_v51  ;;  %v3666_v12 = vadd.s32 3, %v3649_v47  ;;  %v3770_v15 = vmul.u32 %v8632_v53, %v3716_v21  ;;  %vm3772_vm15 = vc.u32 %v8694_v24, %v8696_v5 }
 0x385   : > { %v3842_v0 = vadd.s32 1, %v5566_v56  ;;  %v3769_v52 = vadd.s32 %v3768_v1, %v3759_v37  ;;  %v3839_v54 = vand.u32 8388607, %v3832_v3  ;;  %v3987_v45 = vand.u32 2147483647, %v10047_v23 }
 0x386   : > { %v3643_v32 = vmul.f32 %v3642_v18, %v3640_v59  ;;  %v8708_v38 = vand.u32 3, %v3666_v12  ;;  %v3990_v46 = vand.u32 2139095040, %v10047_v23  ;;  %vm3679_vm10 = vcmp.lt.s32.totalorder %v10041_v13, 0 }
 0x387   : > { %vm3843_vm0 = vcmp.gt.s32.totalorder %v3842_v0, 0  ;;  %v3773_v63 = vadd.s32 1, %v3769_v52  ;;  %v3840_v40 = vor.u32 8388608, %v3839_v54  ;;  %vm8779_vm11 = vcmp.le.f32.partialorder %v3677_v57, 0.7853982 }
 0x388   : > { %v3644_v28 = vxor.u32 2147483648, %v3643_v32  ;;  %v3844_v36 = vsel %vm3843_vm0, %v3842_v0, 0  ;;  %vm3672_vm1 = vcmp.eq.s32.totalorder %v8708_v38, 2  ;;  %vm3669_vm3 = vcmp.eq.s32.totalorder %v8708_v38, 0 }
 0x389   : > { %v3846_v20 = vand.u32 31, %v3844_v36  ;;  %v3774_v41 = vsel %vm3772_vm15, %v3773_v63, %v3769_v52  ;;  %v8720_v30 = vshrl.u32 %v3844_v36, 5  ;;  %v8739_v14 = vshll.u32 %v3840_v40, 8 }
 0x38a   : > { %v3645_v27 = vsel %vm3524_vm8, %v3644_v28, %v3643_v32  ;;  %v3775_v35 = vadd.s32 %v3774_v41, %v3770_v15  ;;  %v3991_v59 = vshrl.u32 %v3990_v46, 23  ;;  %vm3668_vm5 = vcmp.lt.s32.totalorder %v8708_v38, 2 }
 0x38b   : > { %v8713_v53 = vsel %vm8670_vm13, %v10038_v31, %v3645_v27  ;;  %v8715_v4 = vsub.s32 32, %v3846_v20  ;;  %v3849_v60 = vshll.u32 %v9991_v11, %v3846_v20  ;;  %v3852_v7 = vshll.u32 %v9992_v34, %v3846_v20 }
 0x38c   : > { %v3650_v29 = vmul.f32 %v8713_v53, %v8713_v53  ;;  %v3776_v16 = vadd.s32 536870912, %v3775_v35  ;;  %v3858_v19 = vshll.u32 %v9994_v9, %v3846_v20  ;;  %v3855_v17 = vshll.u32 %v9993_v22, %v3846_v20 }
 0x38d   : > { %v3850_v39 = vshrl.u32 %v9992_v34, %v8715_v4  ;;  %v3853_v49 = vshrl.u32 %v9993_v22, %v8715_v4  ;;  %v3859_v25 = vshrl.u32 %v9995_v44, %v8715_v4  ;;  %v3856_v2 = vshrl.u32 %v9994_v9, %v8715_v4 }
 0x38e   : > { %v3651_v48 = vmul.f32 -0.001358992, %v3650_v29  ;;  %v3658_v26 = vmul.f32 -0.00019511016, %v3650_v29  ;;  %v8731_v43 = vshrl.u32 %v3776_v16, 30  ;;  %v3861_v42 = vshll.u32 %v9995_v44, %v3846_v20 }
 0x38f   : > { %v8737_v6 = vor.u32 %v3850_v39, %v3849_v60  ;;  %v8743_v55 = vor.u32 %v3853_v49, %v3852_v7  ;;  %v3862_v51 = vshrl.u32 %v9996_v8, %v8715_v4  ;;  %v3860_v10 = vor.u32 %v3859_v25, %v3858_v19 }
 0x390   : > { %v3652_v50 = vadd.f32 0.041655596, %v3651_v48  ;;  %v3659_v58 = vadd.f32 0.008332121, %v3658_v26  ;;  %v3778_v61 = vshll.u32 %v8731_v43, 30  ;;  %vm3864_vm2 = vcmp.lt.s32.totalorder %v8720_v30, 1 }
 0x391   : > { %v3857_v56 = vor.u32 %v3856_v2, %v3855_v17  ;;  %vm3867_vm4 = vcmp.lt.s32.totalorder %v8720_v30, 4  ;;  %vm3865_vm6 = vcmp.lt.s32.totalorder %v8720_v30, 2  ;;  %vm3866_vm7 = vcmp.lt.s32.totalorder %v8720_v30, 3 }
 0x392   : > { %v3653_v18 = vmul.f32 %v3652_v50, %v3650_v29  ;;  %v3660_v37 = vmul.f32 %v3659_v58, %v3650_v29  ;;  %v8750_v47 = vsub.s32 %v3775_v35, %v3778_v61  ;;  %vm3665_vm8 = vweird.f32 %v10038_v31 }
 0x393   : > { %v3863_v32 = vor.u32 %v3862_v51, %v3861_v42  ;;  %v3872_v12 = vsel %vm3864_vm2, %v8737_v6, %v8743_v55  ;;  %v3771_v28 = vadd.s32 %v8696_v5, %v8694_v24  ;;  %v3873_v63 = vsel %vm3867_vm4, %v3860_v10, 920167782 }
 0x394   : > { %v3654_v21 = vadd.f32 -0.4999988, %v3653_v18  ;;  %v3661_v1 = vadd.f32 -0.16666654, %v3660_v37  ;;  %vm3780_vm9 = vcmp.lt.s32.totalorder %v8750_v47, 0  ;;  %v3781_v0 = vsub.s32 0, %v8750_v47 }
 0x395   : > { %v3874_v36 = vsel %vm3866_vm7, %v3857_v56, %v3873_v63  ;;  %v5569_v20 = vadd.s32 4294967169, %v3991_v59  ;;  %v8773_v27 = vand.u32 8388607, %v3987_v45  ;;  %v3877_v5 = vsel %vm3867_vm4, %v3863_v32, 1326507024 }
 0x396   : > { %v3655_v52 = vmul.f32 %v3654_v21, %v3650_v29  ;;  %v3662_v15 = vmul.f32 %v3661_v1, %v3650_v29  ;;  %v3782_v54 = vsel %vm3780_vm9, %v3781_v0, %v8750_v47  ;;  %v3875_v40 = vsel %vm3865_vm6, %v3872_v12, %v3874_v36 }
 0x397   : > { %v3783_v29 = vclz %v3782_v54  ;;  %v3881_v60 = vand.u32 65535, %v8739_v14  ;;  %v3882_v16 = vshrl.u32 %v8739_v14, 16  ;;  %v3906_v39 = vshrl.u32 %v3875_v40, 16 }
 0x398   : > { %v3656_v41 = vadd.f32 1.0, %v3655_v52  ;;  %v3663_v35 = vadd.f32 1.0, %v3662_v15  ;;  %v3876_v26 = vsel %vm3864_vm2, %v8743_v55, %v3857_v56  ;;  %v3801_v57 = vsub.s32 4, %v8731_v43 }
 0x399   : > { %v5564_v48 = vadd.s32 4294967294, %v3783_v29  ;;  %v3848_v19 = vshrl.u32 %v9991_v11, %v8715_v4  ;;  %v3878_v25 = vsel %vm3866_vm7, %v3860_v10, %v3877_v5  ;;  %v3997_v17 = vadd.s32 1, %v5569_v20 }
 0x39a   : > { %v3664_v7 = vmul.f32 %v3663_v35, %v8713_v53  ;;  %v3673_v49 = vxor.u32 2147483648, %v3656_v41  ;;  %v3869_v53 = vsel %vm3867_vm4, %v3857_v56, 2102212464  ;;  %v3879_v58 = vsel %vm3865_vm6, %v3876_v26, %v3878_v25 }
 0x39b   : > { %vm5565_vm12 = vcmp.lt.s32.totalorder %v5564_v48, 0  ;;  %v3905_v61 = vand.u32 65535, %v3875_v40  ;;  %v3908_v42 = vmul.u32 %v3906_v39, %v3881_v60  ;;  %v3802_v56 = vsel %vm3679_vm10, %v3801_v57, %v8731_v43 }
 0x39c   : > { %v3670_v2 = vxor.u32 2147483648, %v3664_v7  ;;  %v3674_v46 = vsel %vm3672_vm1, %v3673_v49, %v3664_v7  ;;  %v3786_v50 = vsel %vm5565_vm12, 0, %v5564_v48  ;;  %v3868_v59 = vsel %vm3864_vm2, %v3848_v19, %v8737_v6 }
 0x39d   : > { %v3787_v51 = vsub.s32 32, %v3786_v50  ;;  %v3788_v18 = vshll.u32 %v8750_v47, %v3786_v50  ;;  %v3791_v37 = vsub.s32 4294967266, %v3786_v50  ;;  %v3870_v21 = vsel %vm3866_vm7, %v8743_v55, %v3869_v53 }
 0x39e   : > { %v3671_v4 = vsel %vm3669_vm3, %v3656_v41, %v3670_v2  ;;  %v3883_v32 = vand.u32 65535, %v3879_v58  ;;  %v3884_v38 = vshrl.u32 %v3879_v58, 16  ;;  %v3907_v12 = vmul.u32 %v3905_v61, %v3881_v60 }
 0x39f   : > { %v3675_v10 = vsel %vm3668_vm5, %v3671_v4, %v3674_v46  ;;  %v3789_v47 = vshrl.u32 %v3771_v28, %v3787_v51  ;;  %v3792_v0 = vadd.s32 127, %v3791_v37  ;;  %v3909_v52 = vmul.u32 %v3905_v61, %v3882_v16 }
 0x3a0   : > { %v3676_v1 = vsel %vm3665_vm8, nan, %v3675_v10  ;;  %v3911_v15 = vshll.u32 %v3908_v42, 16  ;;  %v3804_v6 = vsel %vm8779_vm11, 0, %v3802_v56  ;;  %v3887_v54 = vmul.u32 %v3883_v32, %v3882_v16 }
 0x3a1   : > { %5402 = vst [vmem:[%s6492_s26 + $0xa0] sm:$0xff] %v3676_v1  ;;  %v3790_v43 = vor.u32 %v3789_v47, %v3788_v18  ;;  %v3793_v63 = vshll.u32 %v3792_v0, 23  ;;  %v8823_v55 = vsel %vm3865_vm6, %v3868_v59, %v3870_v21  ;;  %v3885_v31 = vmul.u32 %v3883_v32, %v3881_v60 }
 0x3a2   : > { %v3886_v36 = vmul.u32 %v3884_v38, %v3881_v60  ;;  %v3910_v28 = vmul.u32 %v3906_v39, %v3882_v16  ;;  %v3888_v35 = vmul.u32 %v3884_v38, %v3882_v16  ;;  %v3913_v29 = vshll.u32 %v3909_v52, 16 }
 0x3a3   : > { %v3794_v20 = vor.u32 4788187, %v3793_v63  ;;  %v3797_v41 = vcvt.s32.f32 %v3790_v43  ;;  %v3891_v5 = vshll.u32 %v3887_v54, 16  ;;  %v3912_v7 = vshrl.u32 %v3908_v42, 16 }
 0x3a4   : > { %v3889_v40 = vshll.u32 %v3886_v36, 16  ;;  %vm3915_vm13 = vc.u32 %v3907_v12, %v3911_v15  ;;  %v3917_v26 = vadd.s32 %v3911_v15, %v3907_v12  ;;  %vm3998_vm14 = vcmp.gt.s32.totalorder %v3997_v17, 0 }
 0x3a5   : > { %v3795_v49 = vand.u32 2147483647, %v3794_v20  ;;  %v3916_v48 = vsel %vm3915_vm13, 1, %v5768_v33  ;;  %v3999_v19 = vsel %vm3998_vm14, %v3997_v17, 0  ;;  %v3890_v60 = vshrl.u32 %v3886_v36, 16 }
 0x3a6   : > { %vm3893_vm15 = vc.u32 %v3885_v31, %v3889_v40  ;;  %v3895_v30 = vadd.s32 %v3889_v40, %v3885_v31  ;;  %v3918_v57 = vadd.s32 %v3916_v48, %v3910_v28  ;;  %vm3919_vm0 = vc.u32 %v3917_v26, %v3913_v29 }
 0x3a7   : > { %v3798_v25 = vmul.f32 %v3797_v41, %v3795_v49  ;;  %v3894_v39 = vsel %vm3893_vm15, 1, %v5768_v33  ;;  %v3914_v2 = vshrl.u32 %v3909_v52, 16  ;;  %v3920_v46 = vsel %vm3919_vm0, 1, %v5768_v33 }
 0x3a8   : > { %v3896_v16 = vadd.s32 %v3894_v39, %v3888_v35  ;;  %vm3897_vm1 = vc.u32 %v3895_v30, %v3891_v5  ;;  %v3922_v58 = vadd.s32 %v3920_v46, %v3918_v57  ;;  %v4001_v61 = vand.u32 31, %v3999_v19 }
 0x3a9   : > { %v3799_v53 = vxor.u32 2147483648, %v3798_v25  ;;  %v3898_v50 = vsel %vm3897_vm1, 1, %v5768_v33  ;;  %v3821_v42 = vadd.s32 3, %v3804_v6  ;;  %v3892_v4 = vshrl.u32 %v3887_v54, 16 }
 0x3aa   : > { %v3900_v51 = vadd.s32 %v3898_v50, %v3896_v16  ;;  %v3925_v17 = vmul.u32 %v8739_v14, %v8823_v55  ;;  %v8833_v37 = vadd.s32 %v3917_v26, %v3913_v29  ;;  %v3923_v10 = vadd.s32 %v3922_v58, %v3912_v7 }
 0x3ab   : > { %v3800_v18 = vsel %vm3679_vm10, %v3799_v53, %v3798_v25  ;;  %v8835_v56 = vsub.s32 32, %v4001_v61  ;;  %v8840_v1 = vshrl.u32 %v3999_v19, 5  ;;  %v4004_v47 = vshll.u32 %v9991_v11, %v4001_v61 }
 0x3ac   : > { %v3803_v59 = vsel %vm8779_vm11, %v10041_v13, %v3800_v18  ;;  %v3901_v21 = vadd.s32 %v3900_v51, %v3890_v60  ;;  %v3924_v32 = vadd.s32 %v3923_v10, %v3914_v2  ;;  %v4007_v38 = vshll.u32 %v9992_v34, %v4001_v61 }
 0x3ad   : > { %v3805_v0 = vmul.f32 %v3803_v59, %v3803_v59  ;;  %v4005_v14 = vshrl.u32 %v9992_v34, %v8835_v56  ;;  %v4008_v52 = vshrl.u32 %v9993_v22, %v8835_v56  ;;  %v4010_v24 = vshll.u32 %v9993_v22, %v4001_v61 }
 0x3ae   : > { %v8846_v12 = vadd.s32 %v3901_v21, %v3892_v4  ;;  %v4011_v15 = vshrl.u32 %v9994_v9, %v8835_v56  ;;  %v3928_v6 = vadd.s32 1, %v3924_v32  ;;  %v4013_v54 = vshll.u32 %v9994_v9, %v4001_v61 }
 0x3af   : > { %v3806_v43 = vmul.f32 -0.001358992, %v3805_v0  ;;  %v3813_v63 = vmul.f32 -0.00019511016, %v3805_v0  ;;  %v8854_v55 = vand.u32 3, %v3821_v42  ;;  %v8858_v31 = vor.u32 %v4005_v14, %v4004_v47 }
 0x3b0   : > { %vm3927_vm2 = vc.u32 %v8846_v12, %v8833_v37  ;;  %vm4019_vm3 = vcmp.lt.s32.totalorder %v8840_v1, 1  ;;  %v4014_v41 = vshrl.u32 %v9995_v44, %v8835_v56  ;;  %v8863_v29 = vor.u32 %v4008_v52, %v4007_v38 }
 0x3b1   : > { %v3807_v36 = vadd.f32 0.041655596, %v3806_v43  ;;  %v3814_v28 = vadd.f32 0.008332121, %v3813_v63  ;;  %v3929_v20 = vsel %vm3927_vm2, %v3928_v6, %v3924_v32  ;;  %v4016_v40 = vshll.u32 %v9995_v44, %v4001_v61 }
 0x3b2   : > { %v3930_v35 = vadd.s32 %v3929_v20, %v3925_v17  ;;  %v4017_v5 = vshrl.u32 %v9996_v8, %v8835_v56  ;;  %v4012_v48 = vor.u32 %v4011_v15, %v4010_v24  ;;  %v4015_v26 = vor.u32 %v4014_v41, %v4013_v54 }
 0x3b3   : > { %v3808_v7 = vmul.f32 %v3807_v36, %v3805_v0  ;;  %v3815_v49 = vmul.f32 %v3814_v28, %v3805_v0  ;;  %vm4021_vm4 = vcmp.lt.s32.totalorder %v8840_v1, 3  ;;  %vm4022_vm5 = vcmp.lt.s32.totalorder %v8840_v1, 4 }
 0x3b4   : > { %v3931_v30 = vadd.s32 536870912, %v3930_v35  ;;  %v4018_v57 = vor.u32 %v4017_v5, %v4016_v40  ;;  %v3995_v60 = vor.u32 8388608, %v8773_v27  ;;  %vm4020_vm6 = vcmp.lt.s32.totalorder %v8840_v1, 2 }
 0x3b5   : > { %v3809_v19 = vadd.f32 -0.4999988, %v3808_v7  ;;  %v3816_v25 = vadd.f32 -0.16666654, %v3815_v49  ;;  %v4027_v16 = vsel %vm4019_vm3, %v8858_v31, %v8863_v29  ;;  %v4028_v2 = vsel %vm4022_vm5, %v4015_v26, 920167782 }
 0x3b6   : > { %v8871_v39 = vshrl.u32 %v3931_v30, 30  ;;  %v4029_v50 = vsel %vm4021_vm4, %v4012_v48, %v4028_v2  ;;  %v4031_v27 = vsel %vm4019_vm3, %v8863_v29, %v4012_v48  ;;  %vm3820_vm7 = vweird.f32 %v10041_v13 }
 0x3b7   : > { %v3810_v46 = vmul.f32 %v3809_v19, %v3805_v0  ;;  %v3817_v53 = vmul.f32 %v3816_v25, %v3805_v0  ;;  %vm3823_vm8 = vcmp.lt.s32.totalorder %v8854_v55, 2  ;;  %v4032_v61 = vsel %vm4022_vm5, %v4018_v57, 1326507024 }
 0x3b8   : > { %v3933_v58 = vshll.u32 %v8871_v39, 30  ;;  %v4033_v51 = vsel %vm4021_vm4, %v4015_v26, %v4032_v61  ;;  %v8892_v17 = vshll.u32 %v3995_v60, 8  ;;  %vm3827_vm9 = vcmp.eq.s32.totalorder %v8854_v55, 2 }
 0x3b9   : > { %v3811_v42 = vadd.f32 1.0, %v3810_v46  ;;  %v3818_v4 = vadd.f32 1.0, %v3817_v53  ;;  %v4030_v10 = vsel %vm4020_vm6, %v4027_v16, %v4029_v50  ;;  %v4034_v21 = vsel %vm4020_vm6, %v4031_v27, %v4033_v51 }
 0x3ba   : > { %v3934_v18 = vsub.s32 %v3930_v35, %v3933_v58  ;;  %vm3824_vm10 = vcmp.eq.s32.totalorder %v8854_v55, 0  ;;  %v4036_v32 = vand.u32 65535, %v8892_v17  ;;  %v4037_v38 = vshrl.u32 %v8892_v17, 16 }
 0x3bb   : > { %v3819_v47 = vmul.f32 %v3818_v4, %v3803_v59  ;;  %v3828_v0 = vxor.u32 2147483648, %v3811_v42  ;;  %v4038_v52 = vand.u32 65535, %v4034_v21  ;;  %v4039_v43 = vshrl.u32 %v4034_v21, 16 }
 0x3bc   : > { %vm3935_vm11 = vcmp.lt.s32.totalorder %v3934_v18, 0  ;;  %v3936_v14 = vsub.s32 0, %v3934_v18  ;;  %v4061_v63 = vshrl.u32 %v4030_v10, 16  ;;  %v4003_v54 = vshrl.u32 %v9991_v11, %v8835_v56 }
 0x3bd   : > { %v3825_v24 = vxor.u32 2147483648, %v3819_v47  ;;  %v3829_v15 = vsel %vm3827_vm9, %v3828_v0, %v3819_v47  ;;  %v4042_v36 = vmul.u32 %v4038_v52, %v4037_v38  ;;  %v4060_v59 = vand.u32 65535, %v4030_v10 }
 0x3be   : > { %v3937_v6 = vsel %vm3935_vm11, %v3936_v14, %v3934_v18  ;;  %v4040_v41 = vmul.u32 %v4038_v52, %v4036_v32  ;;  %v4041_v35 = vmul.u32 %v4039_v43, %v4036_v32  ;;  %v4063_v5 = vmul.u32 %v4061_v63, %v4036_v32 }
 0x3bf   : > { %v3826_v28 = vsel %vm3824_vm10, %v3811_v42, %v3825_v24  ;;  %v3938_v20 = vclz %v3937_v6  ;;  %v4043_v26 = vmul.u32 %v4039_v43, %v4037_v38  ;;  %vm3834_vm12 = vcmp.lt.s32.totalorder %v10046_v62, 0 }
 0x3c0   : > { %v3830_v40 = vsel %vm3823_vm8, %v3826_v28, %v3829_v15  ;;  %v4044_v30 = vshll.u32 %v4041_v35, 16  ;;  %v3926_v56 = vadd.s32 %v8833_v37, %v8846_v12  ;;  %v4023_v57 = vsel %vm4019_vm3, %v4003_v54, %v8858_v31  ;;  %v10050_v54 = vld [vmem:[#allocation16_spill] sm:$0xff] }
 0x3c1   : > { %v3831_v7 = vsel %vm3820_vm7, nan, %v3830_v40  ;;  %v5567_v49 = vadd.s32 4294967294, %v3938_v20  ;;  %v4024_v55 = vsel %vm4022_vm5, %v4012_v48, 2102212464  ;;  %v4046_v19 = vshll.u32 %v4042_v36, 16 }
 0x3c2   : > { %5403 = vst [vmem:[%s6492_s26 + $0xa8] sm:$0xff] %v3831_v7  ;;  %vm4048_vm14 = vc.u32 %v4040_v41, %v4044_v30  ;;  %v4050_v13 = vadd.s32 %v4044_v30, %v4040_v41  ;;  %v4064_v25 = vmul.u32 %v4060_v59, %v4037_v38  ;;  %v4062_v2 = vmul.u32 %v4060_v59, %v4036_v32 }
 0x3c3   : > { %vm5568_vm13 = vcmp.lt.s32.totalorder %v5567_v49, 0  ;;  %v4049_v16 = vsel %vm4048_vm14, 1, %v5768_v33  ;;  %v4066_v46 = vshll.u32 %v4063_v5, 16  ;;  %v3956_v31 = vsub.s32 4, %v8871_v39 }
 0x3c4   : > { %v3941_v60 = vsel %vm5568_vm13, 0, %v5567_v49  ;;  %v4051_v50 = vadd.s32 %v4049_v16, %v4043_v26  ;;  %v4045_v27 = vshrl.u32 %v4041_v35, 16  ;;  %vm4052_vm15 = vc.u32 %v4050_v13, %v4046_v19  ;;  %v10053_v19 = vld [vmem:[#allocation17_spill] sm:$0xff] }
 0x3c5   : > { %v3942_v53 = vsub.s32 32, %v3941_v60  ;;  %v3943_v37 = vshll.u32 %v3934_v18, %v3941_v60  ;;  %v3946_v12 = vsub.s32 4294967266, %v3941_v60  ;;  %v4065_v48 = vmul.u32 %v4061_v63, %v4037_v38 }
 0x3c6   : > { %v4053_v42 = vsel %vm4052_vm15, 1, %v5768_v33  ;;  %v4068_v4 = vshll.u32 %v4064_v25, 16  ;;  %v4025_v51 = vsel %vm4021_vm4, %v8863_v29, %v4024_v55  ;;  %vm4070_vm0 = vc.u32 %v4062_v2, %v4066_v46 }
 0x3c7   : > { %v3944_v58 = vshrl.u32 %v3926_v56, %v3942_v53  ;;  %v3947_v61 = vadd.s32 127, %v3946_v12  ;;  %v4055_v10 = vadd.s32 %v4053_v42, %v4051_v50  ;;  %v4072_v21 = vadd.s32 %v4066_v46, %v4062_v2 }
 0x3c8   : > { %v4047_v0 = vshrl.u32 %v4042_v36, 16  ;;  %v4071_v32 = vsel %vm4070_vm0, 1, %v5768_v33  ;;  %v4067_v52 = vshrl.u32 %v4063_v5, 16  ;;  %v3957_v43 = vsel %vm3834_vm12, %v3956_v31, %v8871_v39 }
 0x3c9   : > { %v3945_v18 = vor.u32 %v3944_v58, %v3943_v37  ;;  %v3948_v47 = vshll.u32 %v3947_v61, 23  ;;  %v4056_v14 = vadd.s32 %v4055_v10, %v4045_v27  ;;  %v4073_v38 = vadd.s32 %v4071_v32, %v4065_v48 }
 0x3ca   : > { %vm4074_vm1 = vc.u32 %v4072_v21, %v4068_v4  ;;  %v4069_v63 = vshrl.u32 %v4064_v25, 16  ;;  %v4142_v59 = vand.u32 2147483647, %v10050_v54  ;;  %v4145_v36 = vand.u32 2139095040, %v10050_v54 }
 0x3cb   : > { %v3949_v24 = vor.u32 4788187, %v3948_v47  ;;  %v3952_v15 = vcvt.s32.f32 %v3945_v18  ;;  %v4075_v29 = vsel %vm4074_vm1, 1, %v5768_v33  ;;  %v4057_v20 = vadd.s32 %v4056_v14, %v4047_v0 }
 0x3cc   : > { %v4077_v6 = vadd.s32 %v4075_v29, %v4073_v38  ;;  %v4076_v41 = vadd.s32 %v4072_v21, %v4068_v4  ;;  %vm8932_vm2 = vcmp.le.f32.partialorder %v3832_v3, 0.7853982  ;;  %v4026_v39 = vsel %vm4020_vm6, %v4023_v57, %v4025_v51 }
 0x3cd   : > { %v3950_v28 = vand.u32 2147483647, %v3949_v24  ;;  %v4146_v5 = vshrl.u32 %v4145_v36, 23  ;;  %v3959_v49 = vsel %vm8932_vm2, 0, %v3957_v43  ;;  %v4149_v56 = vand.u32 8388607, %v4142_v59 }
 0x3ce   : > { %v4078_v40 = vadd.s32 %v4077_v6, %v4067_v52  ;;  %v4080_v3 = vmul.u32 %v8892_v17, %v4026_v39  ;;  %vm4082_vm3 = vc.u32 %v4057_v20, %v4076_v41  ;;  %v4300_v13 = vand.u32 2139095040, %v10053_v19 }
 0x3cf   : > { %v3953_v7 = vmul.f32 %v3952_v15, %v3950_v28  ;;  %v5572_v30 = vadd.s32 4294967169, %v4146_v5  ;;  %v3976_v25 = vadd.s32 3, %v3959_v49  ;;  %v4150_v46 = vor.u32 8388608, %v4149_v56 }
 0x3d0   : > { %v4079_v26 = vadd.s32 %v4078_v40, %v4069_v63  ;;  %v4301_v17 = vshrl.u32 %v4300_v13, 23  ;;  %v8951_v61 = vadd.s32 %v4076_v41, %v4057_v20  ;;  %v4297_v51 = vand.u32 2147483647, %v10053_v19 }
 0x3d1   : > { %v3954_v55 = vxor.u32 2147483648, %v3953_v7  ;;  %v4152_v57 = vadd.s32 1, %v5572_v30  ;;  %v8949_v50 = vand.u32 3, %v3976_v25  ;;  %v8953_v4 = vshll.u32 %v4150_v46, 8 }
 0x3d2   : > { %v4083_v1 = vadd.s32 1, %v4079_v26  ;;  %v5575_v47 = vadd.s32 4294967169, %v4301_v17  ;;  %vm3975_vm8 = vweird.f32 %v10046_v62  ;;  %vm3989_vm10 = vcmp.lt.s32.totalorder %v10047_v23, 0 }
 0x3d3   : > { %v3955_v60 = vsel %vm3834_vm12, %v3954_v55, %v3953_v7  ;;  %vm4153_vm4 = vcmp.gt.s32.totalorder %v4152_v57, 0  ;;  %vm3982_vm5 = vcmp.eq.s32.totalorder %v8949_v50, 2  ;;  %vm3979_vm6 = vcmp.eq.s32.totalorder %v8949_v50, 0 }
 0x3d4   : > { %v3958_v16 = vsel %vm8932_vm2, %v10046_v62, %v3955_v60  ;;  %v4084_v2 = vsel %vm4082_vm3, %v4083_v1, %v4079_v26  ;;  %v4154_v12 = vsel %vm4153_vm4, %v4152_v57, 0  ;;  %vm3978_vm7 = vcmp.lt.s32.totalorder %v8949_v50, 2 }
 0x3d5   : > { %v3960_v53 = vmul.f32 %v3958_v16, %v3958_v16  ;;  %v4085_v37 = vadd.s32 %v4084_v2, %v4080_v3  ;;  %v4156_v31 = vand.u32 31, %v4154_v12  ;;  %v8959_v0 = vshrl.u32 %v4154_v12, 5 }
 0x3d6   : > { %v4307_v35 = vadd.s32 1, %v5575_v47  ;;  %v4191_v57 = vand.u32 65535, %v8953_v4  ;;  %v8987_v60 = vand.u32 8388607, %v4297_v51  ;;  %vm8993_vm15 = vcmp.le.f32.partialorder %v3987_v45, 0.7853982 }
 0x3d7   : > { %v3961_v27 = vmul.f32 -0.001358992, %v3960_v53  ;;  %v3968_v48 = vmul.f32 -0.00019511016, %v3960_v53  ;;  %v4086_v58 = vadd.s32 536870912, %v4085_v37  ;;  %v4157_v42 = vsub.s32 32, %v4156_v31 }
 0x3d8   : > { %v4159_v32 = vshll.u32 %v9991_v11, %v4156_v31  ;;  %v4168_v52 = vshll.u32 %v9994_v9, %v4156_v31  ;;  %v4162_v43 = vshll.u32 %v9992_v34, %v4156_v31  ;;  %v4165_v63 = vshll.u32 %v9993_v22, %v4156_v31 }
 0x3d9   : > { %v3962_v10 = vadd.f32 0.041655596, %v3961_v27  ;;  %v3969_v21 = vadd.f32 0.008332121, %v3968_v48  ;;  %v8956_v18 = vshrl.u32 %v4086_v58, 30  ;;  %v4160_v14 = vshrl.u32 %v9992_v34, %v4157_v42 }
 0x3da   : > { %v4163_v29 = vshrl.u32 %v9993_v22, %v4157_v42  ;;  %v4166_v6 = vshrl.u32 %v9994_v9, %v4157_v42  ;;  %v4169_v36 = vshrl.u32 %v9995_v44, %v4157_v42  ;;  %v4171_v5 = vshll.u32 %v9995_v44, %v4156_v31 }
 0x3db   : > { %v3963_v38 = vmul.f32 %v3962_v10, %v3960_v53  ;;  %v3970_v24 = vmul.f32 %v3969_v21, %v3960_v53  ;;  %v4088_v15 = vshll.u32 %v8956_v18, 30  ;;  %v4161_v39 = vor.u32 %v4160_v14, %v4159_v32 }
 0x3dc   : > { %v4170_v40 = vor.u32 %v4169_v36, %v4168_v52  ;;  %v4172_v7 = vshrl.u32 %v9996_v8, %v4157_v42  ;;  %v4164_v56 = vor.u32 %v4163_v29, %v4162_v43  ;;  %v4167_v55 = vor.u32 %v4166_v6, %v4165_v63 }
 0x3dd   : > { %v3964_v28 = vadd.f32 -0.4999988, %v3963_v38  ;;  %v3971_v20 = vadd.f32 -0.16666654, %v3970_v24  ;;  %v8972_v41 = vsub.s32 %v4085_v37, %v4088_v15  ;;  %vm4174_vm11 = vcmp.lt.s32.totalorder %v8959_v0, 1 }
 0x3de   : > { %vm4176_vm12 = vcmp.lt.s32.totalorder %v8959_v0, 3  ;;  %vm4177_vm13 = vcmp.lt.s32.totalorder %v8959_v0, 4  ;;  %vm4308_vm14 = vcmp.gt.s32.totalorder %v4307_v35, 0  ;;  %vm4175_vm0 = vcmp.lt.s32.totalorder %v8959_v0, 2 }
 0x3df   : > { %v3965_v49 = vmul.f32 %v3964_v28, %v3960_v53  ;;  %v3972_v26 = vmul.f32 %v3971_v20, %v3960_v53  ;;  %vm4090_vm9 = vcmp.lt.s32.totalorder %v8972_v41, 0  ;;  %v4091_v30 = vsub.s32 0, %v8972_v41 }
 0x3e0   : > { %v4173_v53 = vor.u32 %v4172_v7, %v4171_v5  ;;  %v4183_v37 = vsel %vm4177_vm13, %v4170_v40, 920167782  ;;  %v4182_v31 = vsel %vm4174_vm11, %v4161_v39, %v4164_v56  ;;  %v4111_v58 = vsub.s32 4, %v8956_v18 }
 0x3e1   : > { %v3966_v3 = vadd.f32 1.0, %v3965_v49  ;;  %v3973_v13 = vadd.f32 1.0, %v3972_v26  ;;  %v4092_v25 = vsel %vm4090_vm9, %v4091_v30, %v8972_v41  ;;  %v4309_v10 = vsel %vm4308_vm14, %v4307_v35, 0 }
 0x3e2   : > { %v4093_v1 = vclz %v4092_v25  ;;  %v4158_v45 = vshrl.u32 %v9991_v11, %v4157_v42  ;;  %v4179_v21 = vsel %vm4177_vm13, %v4167_v55, 2102212464  ;;  %v4186_v47 = vsel %vm4174_vm11, %v4164_v56, %v4167_v55 }
 0x3e3   : > { %v3974_v2 = vmul.f32 %v3973_v13, %v3958_v16  ;;  %v3983_v46 = vxor.u32 2147483648, %v3966_v3  ;;  %v4184_v16 = vsel %vm4176_vm12, %v4167_v55, %v4183_v37  ;;  %v4187_v38 = vsel %vm4177_vm13, %v4173_v53, 1326507024 }
 0x3e4   : > { %v5570_v17 = vadd.s32 4294967294, %v4093_v1  ;;  %v4185_v52 = vsel %vm4175_vm0, %v4182_v31, %v4184_v16  ;;  %v4112_v63 = vsel %vm3989_vm10, %v4111_v58, %v8956_v18  ;;  %v4192_v6 = vshrl.u32 %v8953_v4, 16 }
 0x3e5   : > { %v3980_v27 = vxor.u32 2147483648, %v3974_v2  ;;  %v3984_v48 = vsel %vm3982_vm5, %v3983_v46, %v3974_v2  ;;  %v9025_v36 = vshrl.u32 %v4309_v10, 5  ;;  %v4188_v50 = vsel %vm4176_vm12, %v4170_v40, %v4187_v38 }
 0x3e6   : > { %vm5571_vm1 = vcmp.lt.s32.totalorder %v5570_v17, 0  ;;  %v4215_v35 = vand.u32 65535, %v4185_v52  ;;  %v4178_v62 = vsel %vm4174_vm11, %v4158_v45, %v4161_v39  ;;  %v4189_v18 = vsel %vm4175_vm0, %v4186_v47, %v4188_v50 }
 0x3e7   : > { %v3981_v32 = vsel %vm3979_vm6, %v3966_v3, %v3980_v27  ;;  %v4096_v14 = vsel %vm5571_vm1, 0, %v5570_v17  ;;  %v4216_v5 = vshrl.u32 %v4185_v52, 16  ;;  %v4193_v26 = vand.u32 65535, %v4189_v18 }
 0x3e8   : > { %v3985_v42 = vsel %vm3978_vm7, %v3981_v32, %v3984_v48  ;;  %v4097_v24 = vsub.s32 32, %v4096_v14  ;;  %v4098_v15 = vshll.u32 %v8972_v41, %v4096_v14  ;;  %v4101_v43 = vsub.s32 4294967266, %v4096_v14 }
 0x3e9   : > { %v3986_v29 = vsel %vm3975_vm8, nan, %v3985_v42  ;;  %v4180_v41 = vsel %vm4176_vm12, %v4164_v56, %v4179_v21  ;;  %v4114_v30 = vsel %vm8993_vm15, 0, %v4112_v63  ;;  %v4217_v40 = vmul.u32 %v4215_v35, %v4191_v57 }
 0x3ea   : > { %v4099_v28 = vshrl.u32 %v8951_v61, %v4097_v24  ;;  %v4102_v20 = vadd.s32 127, %v4101_v43  ;;  %5404 = vst [vmem:[%s6492_s26 + $0xb0] sm:$0xff] %v3986_v29  ;;  %v4194_v61 = vshrl.u32 %v4189_v18, 16  ;;  %v4218_v55 = vmul.u32 %v4216_v5, %v4191_v57 }
 0x3eb   : > { %v4219_v3 = vmul.u32 %v4215_v35, %v4192_v6  ;;  %v4195_v39 = vmul.u32 %v4193_v26, %v4191_v57  ;;  %v9041_v56 = vsel %vm4175_vm0, %v4178_v62, %v4180_v41  ;;  %v4197_v2 = vmul.u32 %v4193_v26, %v4192_v6 }
 0x3ec   : > { %v4100_v7 = vor.u32 %v4099_v28, %v4098_v15  ;;  %v4103_v49 = vshll.u32 %v4102_v20, 23  ;;  %v4196_v1 = vmul.u32 %v4194_v61, %v4191_v57  ;;  %v4220_v46 = vmul.u32 %v4216_v5, %v4192_v6 }
 0x3ed   : > { %v4221_v53 = vshll.u32 %v4218_v55, 16  ;;  %v4198_v17 = vmul.u32 %v4194_v61, %v4192_v6  ;;  %v4311_v16 = vand.u32 31, %v4309_v10  ;;  %v9043_v27 = vadd.s32 3, %v4114_v30 }
 0x3ee   : > { %v4104_v13 = vor.u32 4788187, %v4103_v49  ;;  %v4107_v25 = vcvt.s32.f32 %v4100_v7  ;;  %v4199_v31 = vshll.u32 %v4196_v1, 16  ;;  %v4201_v48 = vshll.u32 %v4197_v2, 16 }
 0x3ef   : > { %v4223_v58 = vshll.u32 %v4219_v3, 16  ;;  %vm4225_vm2 = vc.u32 %v4217_v40, %v4221_v53  ;;  %v4200_v0 = vshrl.u32 %v4196_v1, 16  ;;  %v4227_v32 = vadd.s32 %v4221_v53, %v4217_v40 }
 0x3f0   : > { %v4105_v37 = vand.u32 2147483647, %v4104_v13  ;;  %vm4203_vm3 = vc.u32 %v4195_v39, %v4199_v31  ;;  %v4205_v21 = vadd.s32 %v4199_v31, %v4195_v39  ;;  %v4226_v57 = vsel %vm4225_vm2, 1, %v5768_v33 }
 0x3f1   : > { %v4204_v47 = vsel %vm4203_vm3, 1, %v5768_v33  ;;  %v4228_v14 = vadd.s32 %v4226_v57, %v4220_v46  ;;  %v9047_v42 = vsub.s32 32, %v4311_v16  ;;  %v4202_v10 = vshrl.u32 %v4197_v2, 16 }
 0x3f2   : > { %v4108_v45 = vmul.f32 %v4107_v25, %v4105_v37  ;;  %v4206_v38 = vadd.s32 %v4204_v47, %v4198_v17  ;;  %vm4207_vm4 = vc.u32 %v4205_v21, %v4201_v48  ;;  %v4222_v15 = vshrl.u32 %v4218_v55, 16 }
 0x3f3   : > { %v4208_v24 = vsel %vm4207_vm4, 1, %v5768_v33  ;;  %vm4229_vm5 = vc.u32 %v4227_v32, %v4223_v58  ;;  %v4224_v63 = vshrl.u32 %v4219_v3, 16  ;;  %v9056_v20 = vadd.s32 %v4227_v32, %v4223_v58 }
 0x3f4   : > { %v4109_v52 = vxor.u32 2147483648, %v4108_v45  ;;  %v4210_v29 = vadd.s32 %v4208_v24, %v4206_v38  ;;  %v4230_v6 = vsel %vm4229_vm5, 1, %v5768_v33  ;;  %v4314_v35 = vshll.u32 %v9991_v11, %v4311_v16 }
 0x3f5   : > { %v4232_v50 = vadd.s32 %v4230_v6, %v4228_v14  ;;  %v4315_v18 = vshrl.u32 %v9992_v34, %v9047_v42  ;;  %v4317_v5 = vshll.u32 %v9992_v34, %v4311_v16  ;;  %v4318_v49 = vshrl.u32 %v9993_v22, %v9047_v42 }
 0x3f6   : > { %v4110_v43 = vsel %vm3989_vm10, %v4109_v52, %v4108_v45  ;;  %v4211_v41 = vadd.s32 %v4210_v29, %v4200_v0  ;;  %v4320_v26 = vshll.u32 %v9993_v22, %v4311_v16  ;;  %v4323_v12 = vshll.u32 %v9994_v9, %v4311_v16 }
 0x3f7   : > { %v4113_v28 = vsel %vm8993_vm15, %v10047_v23, %v4110_v43  ;;  %v4233_v7 = vadd.s32 %v4232_v50, %v4222_v15  ;;  %v4324_v55 = vshrl.u32 %v9995_v44, %v9047_v42  ;;  %v4321_v13 = vshrl.u32 %v9994_v9, %v9047_v42 }
 0x3f8   : > { %v4115_v62 = vmul.f32 %v4113_v28, %v4113_v28  ;;  %v9066_v40 = vadd.s32 %v4211_v41, %v4202_v10  ;;  %v4326_v25 = vshll.u32 %v9995_v44, %v4311_v16  ;;  %v4327_v39 = vshrl.u32 %v9996_v8, %v9047_v42 }
 0x3f9   : > { %v4234_v3 = vadd.s32 %v4233_v7, %v4224_v63  ;;  %v4235_v46 = vmul.u32 %v8953_v4, %v9041_v56  ;;  %v9079_v37 = vor.u32 %v4315_v18, %v4314_v35  ;;  %v9081_v17 = vor.u32 %v4318_v49, %v4317_v5 }
 0x3fa   : > { %v4116_v61 = vmul.f32 -0.001358992, %v4115_v62  ;;  %v4123_v30 = vmul.f32 -0.00019511016, %v4115_v62  ;;  %vm4237_vm6 = vc.u32 %v9066_v40, %v9056_v20  ;;  %v4325_v31 = vor.u32 %v4324_v55, %v4323_v12 }
 0x3fb   : > { %v4238_v53 = vadd.s32 1, %v4234_v3  ;;  %v4305_v16 = vor.u32 8388608, %v8987_v60  ;;  %vm4329_vm7 = vcmp.lt.s32.totalorder %v9025_v36, 1  ;;  %v4322_v21 = vor.u32 %v4321_v13, %v4320_v26 }
 0x3fc   : > { %v4117_v1 = vadd.f32 0.041655596, %v4116_v61  ;;  %v4124_v2 = vadd.f32 0.008332121, %v4123_v30  ;;  %v4328_v57 = vor.u32 %v4327_v39, %v4326_v25  ;;  %vm4332_vm8 = vcmp.lt.s32.totalorder %v9025_v36, 4 }
 0x3fd   : > { %v4239_v45 = vsel %vm4237_vm6, %v4238_v53, %v4234_v3  ;;  %vm4331_vm9 = vcmp.lt.s32.totalorder %v9025_v36, 3  ;;  %v4132_v47 = vand.u32 3, %v9043_v27  ;;  %vm4330_vm10 = vcmp.lt.s32.totalorder %v9025_v36, 2 }
 0x3fe   : > { %v4118_v48 = vmul.f32 %v4117_v1, %v4115_v62  ;;  %v4125_v58 = vmul.f32 %v4124_v2, %v4115_v62  ;;  %v4240_v0 = vadd.s32 %v4239_v45, %v4235_v46  ;;  %v4337_v60 = vsel %vm4329_vm7, %v9079_v37, %v9081_v17 }
 0x3ff   : > { %v4338_v32 = vsel %vm4332_vm8, %v4325_v31, 920167782  ;;  %v4341_v27 = vsel %vm4329_vm7, %v9081_v17, %v4322_v21  ;;  %v4342_v24 = vsel %vm4332_vm8, %v4328_v57, 1326507024  ;;  %v9102_v15 = vshll.u32 %v4305_v16, 8 }
 0x400   : > { %v4119_v4 = vadd.f32 -0.4999988, %v4118_v48  ;;  %v4126_v56 = vadd.f32 -0.16666654, %v4125_v58  ;;  %v4241_v38 = vadd.s32 536870912, %v4240_v0  ;;  %v4339_v10 = vsel %vm4331_vm9, %v4322_v21, %v4338_v32 }
 0x401   : > { %v4340_v6 = vsel %vm4330_vm10, %v4337_v60, %v4339_v10  ;;  %vm4130_vm11 = vweird.f32 %v10047_v23  ;;  %vm4137_vm12 = vcmp.eq.s32.totalorder %v4132_v47, 2  ;;  %v4343_v50 = vsel %vm4331_vm9, %v4325_v31, %v4342_v24 }
 0x402   : > { %v4120_v14 = vmul.f32 %v4119_v4, %v4115_v62  ;;  %v4127_v52 = vmul.f32 %v4126_v56, %v4115_v62  ;;  %v9104_v63 = vshrl.u32 %v4241_v38, 30  ;;  %v4346_v35 = vand.u32 65535, %v9102_v15 }
 0x403   : > { %v4370_v5 = vand.u32 65535, %v4340_v6  ;;  %vm4134_vm13 = vcmp.eq.s32.totalorder %v4132_v47, 0  ;;  %v4344_v7 = vsel %vm4330_vm10, %v4341_v27, %v4343_v50  ;;  %v4347_v49 = vshrl.u32 %v9102_v15, 16 }
 0x404   : > { %v4121_v43 = vadd.f32 1.0, %v4120_v14  ;;  %v4128_v29 = vadd.f32 1.0, %v4127_v52  ;;  %v4243_v18 = vshll.u32 %v9104_v63, 30  ;;  %v4371_v26 = vshrl.u32 %v4340_v6, 16 }
 0x405   : > { %vm4133_vm14 = vcmp.lt.s32.totalorder %v4132_v47, 2  ;;  %v4313_v55 = vshrl.u32 %v9991_v11, %v9047_v42  ;;  %v4348_v3 = vand.u32 65535, %v4344_v7  ;;  %v4372_v1 = vmul.u32 %v4370_v5, %v4346_v35 }
 0x406   : > { %v4129_v62 = vmul.f32 %v4128_v29, %v4113_v28  ;;  %v4138_v41 = vxor.u32 2147483648, %v4121_v43  ;;  %v4244_v30 = vsub.s32 %v4240_v0, %v4243_v18  ;;  %v4349_v28 = vshrl.u32 %v4344_v7, 16 }
 0x407   : > { %v4373_v13 = vmul.u32 %v4371_v26, %v4346_v35  ;;  %v4350_v46 = vmul.u32 %v4348_v3, %v4346_v35  ;;  %v4352_v31 = vmul.u32 %v4348_v3, %v4347_v49  ;;  %v4374_v16 = vmul.u32 %v4370_v5, %v4347_v49  ;;  %v10056_v3 = vld [vmem:[#allocation18_spill] sm:$0xff] }
 0x408   : > { %v4135_v12 = vxor.u32 2147483648, %v4129_v62  ;;  %v4139_v61 = vsel %vm4137_vm12, %v4138_v41, %v4129_v62  ;;  %vm4245_vm15 = vcmp.lt.s32.totalorder %v4244_v30, 0  ;;  %v4246_v39 = vsub.s32 0, %v4244_v30 }
 0x409   : > { %v4351_v53 = vmul.u32 %v4349_v28, %v4346_v35  ;;  %v4376_v45 = vshll.u32 %v4373_v13, 16  ;;  %v4353_v42 = vmul.u32 %v4349_v28, %v4347_v49  ;;  %v4356_v56 = vshll.u32 %v4352_v31, 16 }
 0x40a   : > { %v4136_v25 = vsel %vm4134_vm13, %v4121_v43, %v4135_v12  ;;  %v4247_v58 = vsel %vm4245_vm15, %v4246_v39, %v4244_v30  ;;  %v4236_v0 = vadd.s32 %v9056_v20, %v9066_v40  ;;  %v4333_v47 = vsel %vm4329_vm7, %v4313_v55, %v9079_v37 }
 0x40b   : > { %v4140_v2 = vsel %vm4133_vm14, %v4136_v25, %v4139_v61  ;;  %v4248_v57 = vclz %v4247_v58  ;;  %v4354_v4 = vshll.u32 %v4351_v53, 16  ;;  %v4334_v60 = vsel %vm4332_vm8, %v4322_v21, 2102212464 }
 0x40c   : > { %v4141_v48 = vsel %vm4130_vm11, nan, %v4140_v2  ;;  %v4375_v23 = vmul.u32 %v4371_v26, %v4347_v49  ;;  %vm4380_vm1 = vc.u32 %v4372_v1, %v4376_v45  ;;  %v4378_v38 = vshll.u32 %v4374_v16, 16  ;;  %v10057_v2 = vld [vmem:[#allocation19_spill] sm:$0xff] }
 0x40d   : > { %5405 = vst [vmem:[%s6492_s26 + $0xb8] sm:$0xff] %v4141_v48  ;;  %v5573_v32 = vadd.s32 4294967294, %v4248_v57  ;;  %vm4358_vm0 = vc.u32 %v4350_v46, %v4354_v4  ;;  %v4360_v14 = vadd.s32 %v4354_v4, %v4350_v46  ;;  %v4381_v10 = vsel %vm4380_vm1, 1, %v5768_v33 }
 0x40e   : > { %v4359_v52 = vsel %vm4358_vm0, 1, %v5768_v33  ;;  %v4382_v27 = vadd.s32 %v4376_v45, %v4372_v1  ;;  %v4355_v20 = vshrl.u32 %v4351_v53, 16  ;;  %v4357_v37 = vshrl.u32 %v4352_v31, 16 }
 0x40f   : > { %vm5574_vm2 = vcmp.lt.s32.totalorder %v5573_v32, 0  ;;  %v4361_v40 = vadd.s32 %v4359_v52, %v4353_v42  ;;  %vm4362_vm3 = vc.u32 %v4360_v14, %v4356_v56  ;;  %v4383_v21 = vadd.s32 %v4381_v10, %v4375_v23 }
 0x410   : > { %v4251_v24 = vsel %vm5574_vm2, 0, %v5573_v32  ;;  %v4363_v43 = vsel %vm4362_vm3, 1, %v5768_v33  ;;  %v4266_v62 = vsub.s32 4, %v9104_v63  ;;  %v4335_v41 = vsel %vm4331_vm9, %v9081_v17, %v4334_v60 }
 0x411   : > { %v4252_v29 = vsub.s32 32, %v4251_v24  ;;  %v4253_v6 = vshll.u32 %v4244_v30, %v4251_v24  ;;  %v4256_v50 = vsub.s32 4294967266, %v4251_v24  ;;  %v4365_v35 = vadd.s32 %v4363_v43, %v4361_v40 }
 0x412   : > { %v4377_v18 = vshrl.u32 %v4373_v13, 16  ;;  %vm4384_vm4 = vc.u32 %v4382_v27, %v4378_v38  ;;  %v4379_v12 = vshrl.u32 %v4374_v16, 16  ;;  %v4386_v61 = vadd.s32 %v4382_v27, %v4378_v38 }
 0x413   : > { %v4254_v5 = vshrl.u32 %v4236_v0, %v4252_v29  ;;  %v4257_v7 = vadd.s32 127, %v4256_v50  ;;  %v4366_v49 = vadd.s32 %v4365_v35, %v4355_v20  ;;  %v4385_v26 = vsel %vm4384_vm4, 1, %v5768_v33 }
 0x414   : > { %v4387_v55 = vadd.s32 %v4385_v26, %v4383_v21  ;;  %v4452_v30 = vand.u32 2147483647, %v10056_v3  ;;  %v4455_v1 = vand.u32 2139095040, %v10056_v3  ;;  %vm4144_vm5 = vcmp.lt.s32.totalorder %v10050_v54, 0 }
 0x415   : > { %v4255_v28 = vor.u32 %v4254_v5, %v4253_v6  ;;  %v4258_v25 = vshll.u32 %v4257_v7, 23  ;;  %v4367_v39 = vadd.s32 %v4366_v49, %v4357_v37  ;;  %v4336_v17 = vsel %vm4330_vm10, %v4333_v47, %v4335_v41 }
 0x416   : > { %v4388_v13 = vadd.s32 %v4387_v55, %v4377_v18  ;;  %v4610_v46 = vand.u32 2139095040, %v10057_v2  ;;  %v4267_v48 = vsel %vm4144_vm5, %v4266_v62, %v9104_v63  ;;  %v4456_v16 = vshrl.u32 %v4455_v1, 23 }
 0x417   : > { %v4259_v53 = vor.u32 4788187, %v4258_v25  ;;  %v4262_v31 = vcvt.s32.f32 %v4255_v28  ;;  %v4459_v45 = vand.u32 8388607, %v4452_v30  ;;  %v4390_v4 = vmul.u32 %v9102_v15, %v4336_v17 }
 0x418   : > { %v4389_v58 = vadd.s32 %v4388_v13, %v4379_v12  ;;  %v4611_v57 = vshrl.u32 %v4610_v46, 23  ;;  %vm4392_vm6 = vc.u32 %v4367_v39, %v4386_v61  ;;  %vm9150_vm7 = vcmp.le.f32.partialorder %v4142_v59, 0.7853982 }
 0x419   : > { %v4260_v42 = vand.u32 2147483647, %v4259_v53  ;;  %v5578_v0 = vadd.s32 4294967169, %v4456_v16  ;;  %v4269_v63 = vsel %vm9150_vm7, 0, %v4267_v48  ;;  %v4460_v32 = vor.u32 8388608, %v4459_v45 }
 0x41a   : > { %v4393_v56 = vadd.s32 1, %v4389_v58  ;;  %v5581_v60 = vadd.s32 4294967169, %v4611_v57  ;;  %v4286_v15 = vadd.s32 3, %v4269_v63  ;;  %v4607_v43 = vand.u32 2147483647, %v10057_v2 }
 0x41b   : > { %v4263_v47 = vmul.f32 %v4262_v31, %v4260_v42  ;;  %v4462_v14 = vadd.s32 1, %v5578_v0  ;;  %v9161_v37 = vshll.u32 %v4460_v32, 8  ;;  %v9166_v50 = vadd.s32 %v4386_v61, %v4367_v39 }
 0x41c   : > { %v4394_v23 = vsel %vm4392_vm6, %v4393_v56, %v4389_v58  ;;  %v4617_v20 = vadd.s32 1, %v5581_v60  ;;  %v9164_v6 = vand.u32 3, %v4286_v15  ;;  %vm4299_vm9 = vcmp.lt.s32.totalorder %v10053_v19, 0 }
 0x41d   : > { %v4264_v52 = vxor.u32 2147483648, %v4263_v47  ;;  %v4395_v38 = vadd.s32 %v4394_v23, %v4390_v4  ;;  %vm4463_vm8 = vcmp.gt.s32.totalorder %v4462_v14, 0  ;;  %v9170_v5 = vand.u32 65535, %v9161_v37 }
 0x41e   : > { %v4464_v27 = vsel %vm4463_vm8, %v4462_v14, 0  ;;  %vm4618_vm10 = vcmp.gt.s32.totalorder %v4617_v20, 0  ;;  %v9173_v7 = vshrl.u32 %v9161_v37, 16  ;;  %v9177_v49 = vand.u32 8388607, %v4607_v43 }
 0x41f   : > { %v4265_v59 = vsel %vm4144_vm5, %v4264_v52, %v4263_v47  ;;  %v4396_v10 = vadd.s32 536870912, %v4395_v38  ;;  %v4466_v24 = vand.u32 31, %v4464_v27  ;;  %v9181_v55 = vshrl.u32 %v4464_v27, 5 }
 0x420   : > { %v4268_v40 = vsel %vm9150_vm7, %v10050_v54, %v4265_v59  ;;  %vm4292_vm11 = vcmp.eq.s32.totalorder %v9164_v6, 2  ;;  %v9187_v1 = vsel %vm4618_vm10, %v4617_v20, 0  ;;  %vm4289_vm13 = vcmp.eq.s32.totalorder %v9164_v6, 0 }
 0x421   : > { %v4270_v21 = vmul.f32 %v4268_v40, %v4268_v40  ;;  %v4397_v29 = vshrl.u32 %v4396_v10, 30  ;;  %v4467_v18 = vsub.s32 32, %v4466_v24  ;;  %v4469_v28 = vshll.u32 %v9991_v11, %v4466_v24 }
 0x422   : > { %v4472_v25 = vshll.u32 %v9992_v34, %v4466_v24  ;;  %v4475_v39 = vshll.u32 %v9993_v22, %v4466_v24  ;;  %v4478_v48 = vshll.u32 %v9994_v9, %v4466_v24  ;;  %vm4288_vm14 = vcmp.lt.s32.totalorder %v9164_v6, 2 }
 0x423   : > { %v4271_v35 = vmul.f32 -0.001358992, %v4270_v21  ;;  %v4278_v62 = vmul.f32 -0.00019511016, %v4270_v21  ;;  %v4398_v41 = vshll.u32 %v4397_v29, 30  ;;  %v4421_v53 = vsub.s32 4, %v4397_v29 }
 0x424   : > { %v4470_v31 = vshrl.u32 %v9992_v34, %v4467_v18  ;;  %v4479_v58 = vshrl.u32 %v9995_v44, %v4467_v18  ;;  %v4473_v42 = vshrl.u32 %v9993_v22, %v4467_v18  ;;  %vm4285_vm15 = vweird.f32 %v10050_v54 }
 0x425   : > { %v4272_v26 = vadd.f32 0.041655596, %v4271_v35  ;;  %v4279_v12 = vadd.f32 0.008332121, %v4278_v62  ;;  %v9179_v61 = vsub.s32 %v4395_v38, %v4398_v41  ;;  %v4476_v36 = vshrl.u32 %v9994_v9, %v4467_v18 }
 0x426   : > { %v4481_v56 = vshll.u32 %v9995_v44, %v4466_v24  ;;  %v4482_v0 = vshrl.u32 %v9996_v8, %v4467_v18  ;;  %v4468_v60 = vshrl.u32 %v9991_v11, %v4467_v18  ;;  %v9204_v23 = vshrl.u32 %v9187_v1, 5 }
 0x427   : > { %v4273_v17 = vmul.f32 %v4272_v26, %v4270_v21  ;;  %v4280_v13 = vmul.f32 %v4279_v12, %v4270_v21  ;;  %vm4400_vm12 = vcmp.lt.s32.totalorder %v9179_v61, 0  ;;  %v4401_v46 = vsub.s32 0, %v9179_v61 }
 0x428   : > { %v9208_v14 = vsel %vm4299_vm9, %v4421_v53, %v4397_v29  ;;  %v4471_v52 = vor.u32 %v4470_v31, %v4469_v28  ;;  %v4480_v38 = vor.u32 %v4479_v58, %v4478_v48  ;;  %v4474_v10 = vor.u32 %v4473_v42, %v4472_v25 }
 0x429   : > { %v4274_v16 = vadd.f32 -0.4999988, %v4273_v17  ;;  %v4281_v45 = vadd.f32 -0.16666654, %v4280_v13  ;;  %v4402_v57 = vsel %vm4400_vm12, %v4401_v46, %v9179_v61  ;;  %vm4487_vm0 = vcmp.lt.s32.totalorder %v9181_v55, 4 }
 0x42a   : > { %v4403_v4 = vclz %v4402_v57  ;;  %v4477_v27 = vor.u32 %v4476_v36, %v4475_v39  ;;  %v4483_v20 = vor.u32 %v4482_v0, %v4481_v56  ;;  %vm4484_vm2 = vcmp.lt.s32.totalorder %v9181_v55, 1 }
 0x42b   : > { %v4275_v47 = vmul.f32 %v4274_v16, %v4270_v21  ;;  %v4282_v63 = vmul.f32 %v4281_v45, %v4270_v21  ;;  %vm9214_vm3 = vcmp.le.f32.partialorder %v4297_v51, 0.7853982  ;;  %vm4486_vm4 = vcmp.lt.s32.totalorder %v9181_v55, 3 }
 0x42c   : > { %v5576_v32 = vadd.s32 4294967294, %v4403_v4  ;;  %v4493_v26 = vsel %vm4487_vm0, %v4480_v38, 920167782  ;;  %vm4485_vm5 = vcmp.lt.s32.totalorder %v9181_v55, 2  ;;  %v4492_v51 = vsel %vm4484_vm2, %v4471_v52, %v4474_v10 }
 0x42d   : > { %v4276_v15 = vadd.f32 1.0, %v4275_v47  ;;  %v4283_v59 = vadd.f32 1.0, %v4282_v63  ;;  %v4488_v39 = vsel %vm4484_vm2, %v4468_v60, %v4471_v52  ;;  %v4494_v13 = vsel %vm4486_vm4, %v4477_v27, %v4493_v26 }
 0x42e   : > { %vm5577_vm1 = vcmp.lt.s32.totalorder %v5576_v32, 0  ;;  %v4496_v46 = vsel %vm4484_vm2, %v4474_v10, %v4477_v27  ;;  %v4495_v58 = vsel %vm4485_vm5, %v4492_v51, %v4494_v13  ;;  %v9255_v54 = vand.u32 31, %v9187_v1 }
 0x42f   : > { %v4284_v24 = vmul.f32 %v4283_v59, %v4268_v40  ;;  %v4293_v21 = vxor.u32 2147483648, %v4276_v15  ;;  %v4406_v29 = vsel %vm5577_vm1, 0, %v5576_v32  ;;  %v4525_v57 = vand.u32 65535, %v4495_v58 }
 0x430   : > { %v4407_v62 = vsub.s32 32, %v4406_v29  ;;  %v4408_v41 = vshll.u32 %v9179_v61, %v4406_v29  ;;  %v4411_v18 = vsub.s32 4294967266, %v4406_v29  ;;  %v4489_v61 = vsel %vm4487_vm0, %v4477_v27, 2102212464 }
 0x431   : > { %v4290_v12 = vxor.u32 2147483648, %v4284_v24  ;;  %v4294_v40 = vsel %vm4292_vm11, %v4293_v21, %v4284_v24  ;;  %v4526_v42 = vshrl.u32 %v4495_v58, 16  ;;  %v4490_v56 = vsel %vm4486_vm4, %v4474_v10, %v4489_v61 }
 0x432   : > { %v4409_v28 = vshrl.u32 %v9166_v50, %v4407_v62  ;;  %v4412_v25 = vadd.s32 127, %v4411_v18  ;;  %v4497_v50 = vsel %vm4487_vm0, %v4483_v20, 1326507024  ;;  %v4424_v32 = vsel %vm9214_vm3, 0, %v9208_v14 }
 0x433   : > { %v4291_v17 = vsel %vm4289_vm13, %v4276_v15, %v4290_v12  ;;  %v4498_v45 = vsel %vm4486_vm4, %v4480_v38, %v4497_v50  ;;  %v4528_v63 = vmul.u32 %v4526_v42, %v9170_v5  ;;  %v4527_v52 = vmul.u32 %v4525_v57, %v9170_v5 }
 0x434   : > { %v4295_v53 = vsel %vm4288_vm14, %v4291_v17, %v4294_v40  ;;  %v4410_v31 = vor.u32 %v4409_v28, %v4408_v41  ;;  %v4413_v48 = vshll.u32 %v4412_v25, 23  ;;  %v4499_v6 = vsel %vm4485_vm5, %v4496_v46, %v4498_v45 }
 0x435   : > { %v4296_v16 = vsel %vm4285_vm15, nan, %v4295_v53  ;;  %v4503_v0 = vand.u32 65535, %v4499_v6  ;;  %v4504_v47 = vshrl.u32 %v4499_v6, 16  ;;  %v4529_v38 = vmul.u32 %v4525_v57, %v9173_v7 }
 0x436   : > { %v4414_v4 = vor.u32 4788187, %v4413_v48  ;;  %v4417_v36 = vcvt.s32.f32 %v4410_v31  ;;  %5406 = vst [vmem:[%s6492_s26 + $0xc0] sm:$0xff] %v4296_v16  ;;  %v9264_v15 = vsel %vm4485_vm5, %v4488_v39, %v4490_v56  ;;  %v4530_v20 = vmul.u32 %v4526_v42, %v9173_v7 }
 0x437   : > { %v4505_v59 = vmul.u32 %v4503_v0, %v9170_v5  ;;  %v4506_v10 = vmul.u32 %v4504_v47, %v9170_v5  ;;  %v4507_v1 = vmul.u32 %v4503_v0, %v9173_v7  ;;  %v4531_v24 = vshll.u32 %v4528_v63, 16 }
 0x438   : > { %v4415_v60 = vand.u32 2147483647, %v4414_v4  ;;  %v4533_v21 = vshll.u32 %v4529_v38, 16  ;;  %v4508_v14 = vmul.u32 %v4504_v47, %v9173_v7  ;;  %v9272_v41 = vsub.s32 32, %v9255_v54 }
 0x439   : > { %v4509_v29 = vshll.u32 %v4506_v10, 16  ;;  %v4511_v62 = vshll.u32 %v4507_v1, 16  ;;  %v4532_v18 = vshrl.u32 %v4528_v63, 16  ;;  %vm4535_vm6 = vc.u32 %v4527_v52, %v4531_v24 }
 0x43a   : > { %v4418_v27 = vmul.f32 %v4417_v36, %v4415_v60  ;;  %v4537_v26 = vadd.s32 %v4531_v24, %v4527_v52  ;;  %v4510_v12 = vshrl.u32 %v4506_v10, 16  ;;  %v4536_v40 = vsel %vm4535_vm6, 1, %v5768_v33 }
 0x43b   : > { %vm4513_vm7 = vc.u32 %v4505_v59, %v4509_v29  ;;  %v4515_v5 = vadd.s32 %v4509_v29, %v4505_v59  ;;  %v4538_v7 = vadd.s32 %v4536_v40, %v4530_v20  ;;  %v4534_v46 = vshrl.u32 %v4529_v38, 16 }
 0x43c   : > { %v4419_v55 = vxor.u32 2147483648, %v4418_v27  ;;  %v4514_v28 = vsel %vm4513_vm7, 1, %v5768_v33  ;;  %vm4539_vm8 = vc.u32 %v4537_v26, %v4533_v21  ;;  %v4441_v53 = vadd.s32 3, %v4424_v32 }
 0x43d   : > { %v4516_v39 = vadd.s32 %v4514_v28, %v4508_v14  ;;  %vm4517_vm10 = vc.u32 %v4515_v5, %v4511_v62  ;;  %v4540_v61 = vsel %vm4539_vm8, 1, %v5768_v33  ;;  %v4512_v31 = vshrl.u32 %v4507_v1, 16 }
 0x43e   : > { %v4420_v51 = vsel %vm4299_vm9, %v4419_v55, %v4418_v27  ;;  %v4518_v13 = vsel %vm4517_vm10, 1, %v5768_v33  ;;  %v4542_v50 = vadd.s32 %v4540_v61, %v4538_v7  ;;  %v4545_v58 = vmul.u32 %v9161_v37, %v9264_v15 }
 0x43f   : > { %v4423_v25 = vsel %vm9214_vm3, %v10053_v19, %v4420_v51  ;;  %v4520_v48 = vadd.s32 %v4518_v13, %v4516_v39  ;;  %v9285_v57 = vadd.s32 %v4537_v26, %v4533_v21  ;;  %v4624_v4 = vshll.u32 %v9991_v11, %v9255_v54 }
 0x440   : > { %v4425_v17 = vmul.f32 %v4423_v25, %v4423_v25  ;;  %v4543_v35 = vadd.s32 %v4542_v50, %v4532_v18  ;;  %v4625_v36 = vshrl.u32 %v9992_v34, %v9272_v41  ;;  %v4627_v56 = vshll.u32 %v9992_v34, %v9255_v54 }
 0x441   : > { %v4521_v42 = vadd.s32 %v4520_v48, %v4510_v12  ;;  %v4628_v37 = vshrl.u32 %v9993_v22, %v9272_v41  ;;  %v4630_v60 = vshll.u32 %v9993_v22, %v9255_v54  ;;  %v4633_v32 = vshll.u32 %v9994_v9, %v9255_v54 }
 0x442   : > { %v4426_v16 = vmul.f32 -0.001358992, %v4425_v17  ;;  %v4433_v45 = vmul.f32 -0.00019511016, %v4425_v17  ;;  %v4544_v47 = vadd.s32 %v4543_v35, %v4534_v46  ;;  %v4634_v52 = vshrl.u32 %v9995_v44, %v9272_v41 }
 0x443   : > { %v9295_v63 = vadd.s32 %v4521_v42, %v4512_v31  ;;  %v4631_v10 = vshrl.u32 %v9994_v9, %v9272_v41  ;;  %v4615_v1 = vor.u32 8388608, %v9177_v49  ;;  %v4636_v27 = vshll.u32 %v9995_v44, %v9255_v54 }
 0x444   : > { %v4427_v6 = vadd.f32 0.041655596, %v4426_v16  ;;  %v4434_v0 = vadd.f32 0.008332121, %v4433_v45  ;;  %v4548_v59 = vadd.s32 1, %v4544_v47  ;;  %v4637_v20 = vshrl.u32 %v9996_v8, %v9272_v41 }
 0x445   : > { %vm4547_vm9 = vc.u32 %v9295_v63, %v9285_v57  ;;  %v4635_v29 = vor.u32 %v4634_v52, %v4633_v32  ;;  %v4442_v62 = vand.u32 3, %v4441_v53  ;;  %v4626_v18 = vor.u32 %v4625_v36, %v4624_v4 }
 0x446   : > { %v4428_v38 = vmul.f32 %v4427_v6, %v4425_v17  ;;  %v4435_v15 = vmul.f32 %v4434_v0, %v4425_v17  ;;  %v4549_v14 = vsel %vm4547_vm9, %v4548_v59, %v4544_v47  ;;  %v9312_v26 = vor.u32 %v4628_v37, %v4627_v56 }
 0x447   : > { %v4550_v55 = vadd.s32 %v4549_v14, %v4545_v58  ;;  %v9314_v40 = vor.u32 %v4631_v10, %v4630_v60  ;;  %vm4639_vm11 = vcmp.lt.s32.totalorder %v9204_v23, 1  ;;  %v4638_v54 = vor.u32 %v4637_v20, %v4636_v27 }
 0x448   : > { %v4429_v24 = vadd.f32 -0.4999988, %v4428_v38  ;;  %v4436_v21 = vadd.f32 -0.16666654, %v4435_v15  ;;  %vm4641_vm12 = vcmp.lt.s32.totalorder %v9204_v23, 3  ;;  %vm4642_vm13 = vcmp.lt.s32.totalorder %v9204_v23, 4 }
 0x449   : > { %v4551_v49 = vadd.s32 536870912, %v4550_v55  ;;  %vm4440_vm14 = vweird.f32 %v10053_v19  ;;  %v4648_v7 = vsel %vm4642_vm13, %v4635_v29, 920167782  ;;  %vm4447_vm15 = vcmp.eq.s32.totalorder %v4442_v62, 2 }
 0x44a   : > { %v4430_v12 = vmul.f32 %v4429_v24, %v4425_v17  ;;  %v4437_v5 = vmul.f32 %v4436_v21, %v4425_v17  ;;  %vm4640_vm0 = vcmp.lt.s32.totalorder %v9204_v23, 2  ;;  %v4647_v61 = vsel %vm4639_vm11, %v4626_v18, %v9312_v26 }
 0x44b   : > { %v9322_v39 = vshrl.u32 %v4551_v49, 30  ;;  %v4649_v46 = vsel %vm4641_vm12, %v9314_v40, %v4648_v7  ;;  %v4651_v50 = vsel %vm4639_vm11, %v9312_v26, %v9314_v40  ;;  %vm4444_vm1 = vcmp.eq.s32.totalorder %v4442_v62, 0 }
 0x44c   : > { %v4431_v51 = vadd.f32 1.0, %v4430_v12  ;;  %v4438_v28 = vadd.f32 1.0, %v4437_v5  ;;  %v4652_v31 = vsel %vm4642_vm13, %v4638_v54, 1326507024  ;;  %v9338_v48 = vshll.u32 %v4615_v1, 8 }
 0x44d   : > { %v4553_v53 = vshll.u32 %v9322_v39, 30  ;;  %vm4443_vm2 = vcmp.lt.s32.totalorder %v4442_v62, 2  ;;  %v4653_v16 = vsel %vm4641_vm12, %v4635_v29, %v4652_v31  ;;  %v4650_v35 = vsel %vm4640_vm0, %v4647_v61, %v4649_v46 }
 0x44e   : > { %v4439_v17 = vmul.f32 %v4438_v28, %v4423_v25  ;;  %v4448_v13 = vxor.u32 2147483648, %v4431_v51  ;;  %v4654_v42 = vsel %vm4640_vm0, %v4651_v50, %v4653_v16  ;;  %v4656_v4 = vand.u32 65535, %v9338_v48 }
 0x44f   : > { %v4554_v45 = vsub.s32 %v4550_v55, %v4553_v53  ;;  %v4657_v56 = vshrl.u32 %v9338_v48, 16  ;;  %v4658_v6 = vand.u32 65535, %v4654_v42  ;;  %v4680_v0 = vand.u32 65535, %v4650_v35 }
 0x450   : > { %v4445_v25 = vxor.u32 2147483648, %v4439_v17  ;;  %v4449_v58 = vsel %vm4447_vm15, %v4448_v13, %v4439_v17  ;;  %v4659_v60 = vshrl.u32 %v4654_v42, 16  ;;  %v4623_v52 = vshrl.u32 %v9991_v11, %v9272_v41 }
 0x451   : > { %vm4555_vm3 = vcmp.lt.s32.totalorder %v4554_v45, 0  ;;  %v4556_v37 = vsub.s32 0, %v4554_v45  ;;  %v4662_v38 = vmul.u32 %v4658_v6, %v4657_v56  ;;  %v4681_v15 = vshrl.u32 %v4650_v35, 16 }
 0x452   : > { %v4446_v36 = vsel %vm4444_vm1, %v4431_v51, %v4445_v25  ;;  %v4660_v10 = vmul.u32 %v4658_v6, %v4656_v4  ;;  %v4661_v1 = vmul.u32 %v4659_v60, %v4656_v4  ;;  %v4663_v24 = vmul.u32 %v4659_v60, %v4657_v56 }
 0x453   : > { %v4450_v47 = vsel %vm4443_vm2, %v4446_v36, %v4449_v58  ;;  %v4557_v59 = vsel %vm4555_vm3, %v4556_v37, %v4554_v45  ;;  %v4683_v20 = vmul.u32 %v4681_v15, %v4656_v4  ;;  %v4666_v14 = vshll.u32 %v4662_v38, 16 }
 0x454   : > { %v4451_v32 = vsel %vm4440_vm14, nan, %v4450_v47  ;;  %v4558_v27 = vclz %v4557_v59  ;;  %v4664_v21 = vshll.u32 %v4661_v1, 16  ;;  %v4684_v29 = vmul.u32 %v4680_v0, %v4657_v56 }
 0x455   : > { %5407 = vst [vmem:[%s6492_s26 + $0xc8] sm:$0xff] %v4451_v32  ;;  %vm4454_vm4 = vcmp.lt.s32.totalorder %v10056_v3, 0  ;;  %v4546_v19 = vadd.s32 %v9285_v57, %v9295_v63  ;;  %v4643_v41 = vsel %vm4639_vm11, %v4623_v52, %v4626_v18  ;;  %v4665_v55 = vshrl.u32 %v4661_v1, 16 }
 0x456   : > { %v5579_v62 = vadd.s32 4294967294, %v4558_v27  ;;  %vm4668_vm5 = vc.u32 %v4660_v10, %v4664_v21  ;;  %v4670_v12 = vadd.s32 %v4664_v21, %v4660_v10  ;;  %v4682_v5 = vmul.u32 %v4680_v0, %v4656_v4 }
 0x457   : > { %v4669_v49 = vsel %vm4668_vm5, 1, %v5768_v33  ;;  %v4685_v54 = vmul.u32 %v4681_v15, %v4657_v56  ;;  %v4686_v51 = vshll.u32 %v4683_v20, 16  ;;  %v4688_v61 = vshll.u32 %v4684_v29, 16 }
 0x458   : > { %vm5580_vm6 = vcmp.lt.s32.totalorder %v5579_v62, 0  ;;  %v4671_v7 = vadd.s32 %v4669_v49, %v4663_v24  ;;  %vm4672_vm7 = vc.u32 %v4670_v12, %v4666_v14  ;;  %v4576_v18 = vsub.s32 4, %v9322_v39 }
 0x459   : > { %v4561_v28 = vsel %vm5580_vm6, 0, %v5579_v62  ;;  %v4673_v63 = vsel %vm4672_vm7, 1, %v5768_v33  ;;  %v4644_v46 = vsel %vm4642_vm13, %v9314_v40, 2102212464  ;;  %v4667_v50 = vshrl.u32 %v4662_v38, 16 }
 0x45a   : > { %v4562_v17 = vsub.s32 32, %v4561_v28  ;;  %v4563_v13 = vshll.u32 %v4554_v45, %v4561_v28  ;;  %v4566_v57 = vsub.s32 4294967266, %v4561_v28  ;;  %v4675_v53 = vadd.s32 %v4673_v63, %v4671_v7  ;;  %v10062_v45 = vld [vmem:[#allocation20_spill] sm:$0xff] }
 0x45b   : > { %vm4690_vm8 = vc.u32 %v4682_v5, %v4686_v51  ;;  %v4692_v58 = vadd.s32 %v4686_v51, %v4682_v5  ;;  %v4687_v35 = vshrl.u32 %v4683_v20, 16  ;;  %v4765_v4 = vand.u32 2139095040, %v10062_v45 }
 0x45c   : > { %v4564_v31 = vshrl.u32 %v4546_v19, %v4562_v17  ;;  %v4567_v25 = vadd.s32 127, %v4566_v57  ;;  %v4676_v16 = vadd.s32 %v4675_v53, %v4665_v55  ;;  %v4691_v42 = vsel %vm4690_vm8, 1, %v5768_v33 }
 0x45d   : > { %v4693_v6 = vadd.s32 %v4691_v42, %v4685_v54  ;;  %vm4694_vm10 = vc.u32 %v4692_v58, %v4688_v61  ;;  %v4577_v40 = vsel %vm4454_vm4, %v4576_v18, %v9322_v39  ;;  %v4645_v0 = vsel %vm4641_vm12, %v9312_v26, %v4644_v46 }
 0x45e   : > { %v4565_v36 = vor.u32 %v4564_v31, %v4563_v13  ;;  %v4568_v56 = vshll.u32 %v4567_v25, 23  ;;  %v4695_v47 = vsel %vm4694_vm10, 1, %v5768_v33  ;;  %v4766_v37 = vshrl.u32 %v4765_v4, 23 }
 0x45f   : > { %v4689_v52 = vshrl.u32 %v4684_v29, 16  ;;  %v4697_v38 = vadd.s32 %v4695_v47, %v4693_v6  ;;  %v9373_v15 = vadd.s32 %v4676_v16, %v4667_v50  ;;  %v9375_v59 = vadd.s32 %v4692_v58, %v4688_v61 }
 0x460   : > { %v4569_v60 = vor.u32 4788187, %v4568_v56  ;;  %v4572_v32 = vcvt.s32.f32 %v4565_v36  ;;  %v5584_v10 = vadd.s32 4294967169, %v4766_v37  ;;  %vm9379_vm9 = vcmp.le.f32.partialorder %v4452_v30, 0.7853982  ;;  %v10065_v56 = vld [vmem:[#allocation21_spill] sm:$0xff] }
 0x461   : > { %v4646_v26 = vsel %vm4640_vm0, %v4643_v41, %v4645_v0  ;;  %v4698_v27 = vadd.s32 %v4697_v38, %v4687_v35  ;;  %v4579_v20 = vsel %vm9379_vm9, 0, %v4577_v40  ;;  %vm4702_vm11 = vc.u32 %v9373_v15, %v9375_v59 }
 0x462   : > { %v4570_v1 = vand.u32 2147483647, %v4569_v60  ;;  %v4772_v24 = vadd.s32 1, %v5584_v10  ;;  %v4700_v29 = vmul.u32 %v9338_v48, %v4646_v26  ;;  %v4762_v30 = vand.u32 2147483647, %v10062_v45 }
 0x463   : > { %v4699_v14 = vadd.s32 %v4698_v27, %v4689_v52  ;;  %v4596_v62 = vadd.s32 3, %v4579_v20  ;;  %v4917_v6 = vand.u32 2147483647, %v10065_v56  ;;  %vm4609_vm0 = vcmp.lt.s32.totalorder %v10057_v2, 0 }
 0x464   : > { %v4573_v21 = vmul.f32 %v4572_v32, %v4570_v1  ;;  %vm4773_vm12 = vcmp.gt.s32.totalorder %v4772_v24, 0  ;;  %v4769_v54 = vand.u32 8388607, %v4762_v30  ;;  %vm4595_vm5 = vweird.f32 %v10056_v3 }
 0x465   : > { %v4703_v55 = vadd.s32 1, %v4699_v14  ;;  %v4774_v23 = vsel %vm4773_vm12, %v4772_v24, 0  ;;  %v9404_v7 = vand.u32 3, %v4596_v62  ;;  %vm9449_vm7 = vcmp.le.f32.partialorder %v4607_v43, 0.7853982 }
 0x466   : > { %v4574_v19 = vxor.u32 2147483648, %v4573_v21  ;;  %v4776_v41 = vand.u32 31, %v4774_v23  ;;  %v9406_v61 = vshrl.u32 %v4774_v23, 5  ;;  %v4770_v58 = vor.u32 8388608, %v4769_v54 }
 0x467   : > { %v4704_v5 = vsel %vm4702_vm11, %v4703_v55, %v4699_v14  ;;  %vm4602_vm13 = vcmp.eq.s32.totalorder %v9404_v7, 2  ;;  %vm4599_vm15 = vcmp.eq.s32.totalorder %v9404_v7, 0  ;;  %vm4598_vm2 = vcmp.lt.s32.totalorder %v9404_v7, 2 }
 0x468   : > { %v4575_v12 = vsel %vm4454_vm4, %v4574_v19, %v4573_v21  ;;  %v4705_v48 = vadd.s32 %v4704_v5, %v4700_v29  ;;  %v9400_v51 = vsub.s32 32, %v4776_v41  ;;  %v4779_v17 = vshll.u32 %v9991_v11, %v4776_v41 }
 0x469   : > { %v9396_v49 = vsel %vm9379_vm9, %v10056_v3, %v4575_v12  ;;  %v4782_v63 = vshll.u32 %v9992_v34, %v4776_v41  ;;  %v4788_v53 = vshll.u32 %v9994_v9, %v4776_v41  ;;  %v4785_v16 = vshll.u32 %v9993_v22, %v4776_v41 }
 0x46a   : > { %v4580_v28 = vmul.f32 %v9396_v49, %v9396_v49  ;;  %v4706_v13 = vadd.s32 536870912, %v4705_v48  ;;  %v4780_v57 = vshrl.u32 %v9992_v34, %v9400_v51  ;;  %v4783_v18 = vshrl.u32 %v9993_v22, %v9400_v51 }
 0x46b   : > { %v4789_v31 = vshrl.u32 %v9995_v44, %v9400_v51  ;;  %v4786_v35 = vshrl.u32 %v9994_v9, %v9400_v51  ;;  %v4791_v47 = vshll.u32 %v9995_v44, %v4776_v41  ;;  %v4792_v37 = vshrl.u32 %v9996_v8, %v9400_v51 }
 0x46c   : > { %v4581_v46 = vmul.f32 -0.001358992, %v4580_v28  ;;  %v4588_v50 = vmul.f32 -0.00019511016, %v4580_v28  ;;  %v4707_v25 = vshrl.u32 %v4706_v13, 30  ;;  %v9420_v36 = vor.u32 %v4780_v57, %v4779_v17 }
 0x46d   : > { %v9424_v0 = vor.u32 %v4783_v18, %v4782_v63  ;;  %v4790_v52 = vor.u32 %v4789_v31, %v4788_v53  ;;  %vm4794_vm14 = vcmp.lt.s32.totalorder %v9406_v61, 1  ;;  %v4787_v10 = vor.u32 %v4786_v35, %v4785_v16 }
 0x46e   : > { %v4582_v42 = vadd.f32 0.041655596, %v4581_v46  ;;  %v4589_v4 = vadd.f32 0.008332121, %v4588_v50  ;;  %v4708_v40 = vshll.u32 %v4707_v25, 30  ;;  %vm4797_vm1 = vcmp.lt.s32.totalorder %v9406_v61, 4 }
 0x46f   : > { %v9435_v39 = vshll.u32 %v4770_v58, 8  ;;  %vm4795_vm3 = vcmp.lt.s32.totalorder %v9406_v61, 2  ;;  %vm4796_vm4 = vcmp.lt.s32.totalorder %v9406_v61, 3  ;;  %v4793_v20 = vor.u32 %v4792_v37, %v4791_v47 }
 0x470   : > { %v4583_v60 = vmul.f32 %v4582_v42, %v4580_v28  ;;  %v4590_v32 = vmul.f32 %v4589_v4, %v4580_v28  ;;  %v9432_v38 = vsub.s32 %v4705_v48, %v4708_v40  ;;  %v4802_v24 = vsel %vm4794_vm14, %v9420_v36, %v9424_v0 }
 0x471   : > { %v4701_v19 = vadd.s32 %v9375_v59, %v9373_v15  ;;  %v4803_v62 = vsel %vm4797_vm1, %v4790_v52, 920167782  ;;  %v4731_v23 = vsub.s32 4, %v4707_v25  ;;  %v4920_v12 = vand.u32 2139095040, %v10065_v56 }
 0x472   : > { %v4584_v1 = vadd.f32 -0.4999988, %v4583_v60  ;;  %v4591_v26 = vadd.f32 -0.16666654, %v4590_v32  ;;  %vm4710_vm6 = vcmp.lt.s32.totalorder %v9432_v38, 0  ;;  %v4711_v27 = vsub.s32 0, %v9432_v38 }
 0x473   : > { %v4804_v41 = vsel %vm4796_vm4, %v4787_v10, %v4803_v62  ;;  %v4807_v15 = vsel %vm4797_vm1, %v4793_v20, 1326507024  ;;  %v4811_v59 = vand.u32 65535, %v9435_v39  ;;  %v9468_v17 = vand.u32 8388607, %v4917_v6 }
 0x474   : > { %v4585_v21 = vmul.f32 %v4584_v1, %v4580_v28  ;;  %v4592_v14 = vmul.f32 %v4591_v26, %v4580_v28  ;;  %v4712_v55 = vsel %vm4710_vm6, %v4711_v27, %v9432_v38  ;;  %v4805_v54 = vsel %vm4795_vm3, %v4802_v24, %v4804_v41 }
 0x475   : > { %v4713_v43 = vclz %v4712_v55  ;;  %v4836_v28 = vshrl.u32 %v4805_v54, 16  ;;  %v4806_v18 = vsel %vm4794_vm14, %v9424_v0, %v4787_v10  ;;  %v4778_v46 = vshrl.u32 %v9991_v11, %v9400_v51 }
 0x476   : > { %v4586_v5 = vadd.f32 1.0, %v4585_v21  ;;  %v4593_v48 = vadd.f32 1.0, %v4592_v14  ;;  %v4808_v50 = vsel %vm4796_vm4, %v4790_v52, %v4807_v15  ;;  %v4812_v53 = vshrl.u32 %v9435_v39, 16 }
 0x477   : > { %v5582_v63 = vadd.s32 4294967294, %v4713_v43  ;;  %v4921_v31 = vshrl.u32 %v4920_v12, 23  ;;  %v4809_v42 = vsel %vm4795_vm3, %v4806_v18, %v4808_v50  ;;  %v4835_v51 = vand.u32 65535, %v4805_v54 }
 0x478   : > { %v4594_v13 = vmul.f32 %v4593_v48, %v9396_v49  ;;  %v4603_v57 = vxor.u32 2147483648, %v4586_v5  ;;  %v9483_v49 = vsel %vm4609_vm0, %v4731_v23, %v4707_v25  ;;  %v4838_v4 = vmul.u32 %v4836_v28, %v4811_v59 }
 0x479   : > { %vm5583_vm8 = vcmp.lt.s32.totalorder %v5582_v63, 0  ;;  %v4734_v25 = vsel %vm9449_vm7, 0, %v9483_v49  ;;  %v4799_v52 = vsel %vm4797_vm1, %v4787_v10, 2102212464  ;;  %v5587_v1 = vadd.s32 4294967169, %v4921_v31 }
 0x47a   : > { %v4600_v58 = vxor.u32 2147483648, %v4594_v13  ;;  %v4604_v16 = vsel %vm4602_vm13, %v4603_v57, %v4594_v13  ;;  %v4716_v35 = vsel %vm5583_vm8, 0, %v5582_v63  ;;  %v4813_v24 = vand.u32 65535, %v4809_v42 }
 0x47b   : > { %v4717_v47 = vsub.s32 32, %v4716_v35  ;;  %v4718_v37 = vshll.u32 %v9432_v38, %v4716_v35  ;;  %v4721_v60 = vsub.s32 4294967266, %v4716_v35  ;;  %v4814_v21 = vshrl.u32 %v4809_v42, 16 }
 0x47c   : > { %v4601_v40 = vsel %vm4599_vm15, %v4586_v5, %v4600_v58  ;;  %v4837_v38 = vmul.u32 %v4835_v51, %v4811_v59  ;;  %v4839_v14 = vmul.u32 %v4835_v51, %v4812_v53  ;;  %v4841_v62 = vshll.u32 %v4838_v4, 16 }
 0x47d   : > { %v4605_v32 = vsel %vm4598_vm2, %v4601_v40, %v4604_v16  ;;  %v4719_v27 = vshrl.u32 %v4701_v19, %v4717_v47  ;;  %v4722_v20 = vadd.s32 127, %v4721_v60  ;;  %v4798_v23 = vsel %vm4794_vm14, %v4778_v46, %v9420_v36 }
 0x47e   : > { %v4606_v26 = vsel %vm4595_vm5, nan, %v4605_v32  ;;  %v4817_v41 = vmul.u32 %v4813_v24, %v4812_v53  ;;  %v4800_v3 = vsel %vm4796_vm4, %v9424_v0, %v4799_v52  ;;  %v4815_v10 = vmul.u32 %v4813_v24, %v4811_v59 }
 0x47f   : > { %5408 = vst [vmem:[%s6492_s26 + $0xd0] sm:$0xff] %v4606_v26  ;;  %v4720_v7 = vor.u32 %v4719_v27, %v4718_v37  ;;  %v4723_v55 = vshll.u32 %v4722_v20, 23  ;;  %v4816_v19 = vmul.u32 %v4814_v21, %v4811_v59  ;;  %v4840_v12 = vmul.u32 %v4836_v28, %v4812_v53 }
 0x480   : > { %v4818_v43 = vmul.u32 %v4814_v21, %v4812_v53  ;;  %v4843_v54 = vshll.u32 %v4839_v14, 16  ;;  %v4821_v13 = vshll.u32 %v4817_v41, 16  ;;  %v4842_v57 = vshrl.u32 %v4838_v4, 16 }
 0x481   : > { %v4724_v5 = vor.u32 4788187, %v4723_v55  ;;  %v4727_v48 = vcvt.s32.f32 %v4720_v7  ;;  %v4819_v15 = vshll.u32 %v4816_v19, 16  ;;  %vm4845_vm10 = vc.u32 %v4837_v38, %v4841_v62 }
 0x482   : > { %v4846_v18 = vsel %vm4845_vm10, 1, %v5768_v33  ;;  %v4847_v36 = vadd.s32 %v4841_v62, %v4837_v38  ;;  %v4927_v46 = vadd.s32 1, %v5587_v1  ;;  %v4820_v50 = vshrl.u32 %v4816_v19, 16 }
 0x483   : > { %v4725_v63 = vand.u32 2147483647, %v4724_v5  ;;  %vm4823_vm9 = vc.u32 %v4815_v10, %v4819_v15  ;;  %v4825_v31 = vadd.s32 %v4819_v15, %v4815_v10  ;;  %v4848_v0 = vadd.s32 %v4846_v18, %v4840_v12 }
 0x484   : > { %v4824_v59 = vsel %vm4823_vm9, 1, %v5768_v33  ;;  %v4844_v28 = vshrl.u32 %v4839_v14, 16  ;;  %vm4849_vm11 = vc.u32 %v4847_v36, %v4843_v54  ;;  %vm4928_vm13 = vcmp.gt.s32.totalorder %v4927_v46, 0 }
 0x485   : > { %v4728_v58 = vmul.f32 %v4727_v48, %v4725_v63  ;;  %v4826_v53 = vadd.s32 %v4824_v59, %v4818_v43  ;;  %vm4827_vm12 = vc.u32 %v4825_v31, %v4821_v13  ;;  %v4850_v16 = vsel %vm4849_vm11, 1, %v5768_v33 }
 0x486   : > { %v4828_v35 = vsel %vm4827_vm12, 1, %v5768_v33  ;;  %v4852_v42 = vadd.s32 %v4850_v16, %v4848_v0  ;;  %v4929_v51 = vsel %vm4928_vm13, %v4927_v46, 0  ;;  %v4801_v4 = vsel %vm4795_vm3, %v4798_v23, %v4800_v3 }
 0x487   : > { %v4729_v49 = vxor.u32 2147483648, %v4728_v58  ;;  %v4822_v40 = vshrl.u32 %v4817_v41, 16  ;;  %v4830_v47 = vadd.s32 %v4828_v35, %v4826_v53  ;;  %v4931_v37 = vand.u32 31, %v4929_v51 }
 0x488   : > { %v4751_v32 = vadd.s32 3, %v4734_v25  ;;  %v4853_v52 = vadd.s32 %v4852_v42, %v4842_v57  ;;  %v9517_v27 = vadd.s32 %v4847_v36, %v4843_v54  ;;  %v4855_v21 = vmul.u32 %v9435_v39, %v4801_v4 }
 0x489   : > { %v4730_v60 = vsel %vm4609_vm0, %v4729_v49, %v4728_v58  ;;  %v4831_v26 = vadd.s32 %v4830_v47, %v4820_v50  ;;  %v9519_v20 = vsub.s32 32, %v4931_v37  ;;  %v4925_v38 = vor.u32 8388608, %v9468_v17 }
 0x48a   : > { %v4733_v1 = vsel %vm9449_vm7, %v10057_v2, %v4730_v60  ;;  %v4854_v61 = vadd.s32 %v4853_v52, %v4844_v28  ;;  %v4934_v25 = vshll.u32 %v9991_v11, %v4931_v37  ;;  %v4937_v29 = vshll.u32 %v9992_v34, %v4931_v37 }
 0x48b   : > { %v4735_v24 = vmul.f32 %v4733_v1, %v4733_v1  ;;  %v9523_v14 = vadd.s32 %v4831_v26, %v4822_v40  ;;  %v4935_v62 = vshrl.u32 %v9992_v34, %v9519_v20  ;;  %v4938_v41 = vshrl.u32 %v9993_v22, %v9519_v20 }
 0x48c   : > { %v4858_v23 = vadd.s32 1, %v4854_v61  ;;  %v9531_v3 = vand.u32 3, %v4751_v32  ;;  %v9535_v39 = vshrl.u32 %v4929_v51, 5  ;;  %v4940_v17 = vshll.u32 %v9993_v22, %v4931_v37 }
 0x48d   : > { %v4736_v7 = vmul.f32 -0.001358992, %v4735_v24  ;;  %v4743_v55 = vmul.f32 -0.00019511016, %v4735_v24  ;;  %vm4857_vm14 = vc.u32 %v9523_v14, %v9517_v27  ;;  %v4941_v5 = vshrl.u32 %v9994_v9, %v9519_v20 }
 0x48e   : > { %v4859_v12 = vsel %vm4857_vm14, %v4858_v23, %v4854_v61  ;;  %v9540_v43 = vor.u32 %v4935_v62, %v4934_v25  ;;  %v4943_v54 = vshll.u32 %v9994_v9, %v4931_v37  ;;  %v4944_v15 = vshrl.u32 %v9995_v44, %v9519_v20 }
 0x48f   : > { %v4737_v10 = vadd.f32 0.041655596, %v4736_v7  ;;  %v4744_v19 = vadd.f32 0.008332121, %v4743_v55  ;;  %v4860_v48 = vadd.s32 %v4859_v12, %v4855_v21  ;;  %v9545_v63 = vor.u32 %v4938_v41, %v4937_v29 }
 0x490   : > { %v4946_v18 = vshll.u32 %v9995_v44, %v4931_v37  ;;  %v4945_v46 = vor.u32 %v4944_v15, %v4943_v54  ;;  %v4947_v50 = vshrl.u32 %v9996_v8, %v9519_v20  ;;  %vm4949_vm15 = vcmp.lt.s32.totalorder %v9535_v39, 1 }
 0x491   : > { %v4738_v13 = vmul.f32 %v4737_v10, %v4735_v24  ;;  %v4745_v57 = vmul.f32 %v4744_v19, %v4735_v24  ;;  %v4861_v36 = vadd.s32 536870912, %v4860_v48  ;;  %v9551_v58 = vor.u32 %v4941_v5, %v4940_v17 }
 0x492   : > { %v9553_v59 = vshll.u32 %v4925_v38, 8  ;;  %vm4950_vm0 = vcmp.lt.s32.totalorder %v9535_v39, 2  ;;  %vm4951_vm1 = vcmp.lt.s32.totalorder %v9535_v39, 3  ;;  %vm4952_vm2 = vcmp.lt.s32.totalorder %v9535_v39, 4 }
 0x493   : > { %v4739_v31 = vadd.f32 -0.4999988, %v4738_v13  ;;  %v4746_v0 = vadd.f32 -0.16666654, %v4745_v57  ;;  %v9555_v28 = vshrl.u32 %v4861_v36, 30  ;;  %v4948_v49 = vor.u32 %v4947_v50, %v4946_v18 }
 0x494   : > { %v4957_v35 = vsel %vm4949_vm15, %v9540_v43, %v9545_v63  ;;  %vm4753_vm3 = vcmp.lt.s32.totalorder %v9531_v3, 2  ;;  %v4958_v51 = vsel %vm4952_vm2, %v4945_v46, 920167782  ;;  %vm4754_vm4 = vcmp.eq.s32.totalorder %v9531_v3, 0 }
 0x495   : > { %v4740_v53 = vmul.f32 %v4739_v31, %v4735_v24  ;;  %v4747_v16 = vmul.f32 %v4746_v0, %v4735_v24  ;;  %v4863_v42 = vshll.u32 %v9555_v28, 30  ;;  %v4959_v47 = vsel %vm4951_vm1, %v9551_v58, %v4958_v51 }
 0x496   : > { %vm4757_vm5 = vcmp.eq.s32.totalorder %v9531_v3, 2  ;;  %v4960_v60 = vsel %vm4950_vm0, %v4957_v35, %v4959_v47  ;;  %v4961_v32 = vsel %vm4949_vm15, %v9545_v63, %v9551_v58  ;;  %v4962_v24 = vsel %vm4952_vm2, %v4948_v49, 1326507024 }
 0x497   : > { %v4741_v4 = vadd.f32 1.0, %v4740_v53  ;;  %v4748_v40 = vadd.f32 1.0, %v4747_v16  ;;  %v4864_v37 = vsub.s32 %v4860_v48, %v4863_v42  ;;  %v4966_v61 = vand.u32 65535, %v9553_v59 }
 0x498   : > { %v4963_v38 = vsel %vm4951_vm1, %v4945_v46, %v4962_v24  ;;  %v4967_v25 = vshrl.u32 %v9553_v59, 16  ;;  %v4991_v55 = vshrl.u32 %v4960_v60, 16  ;;  %vm4750_vm7 = vweird.f32 %v10057_v2 }
 0x499   : > { %v4749_v52 = vmul.f32 %v4748_v40, %v4733_v1  ;;  %v4758_v26 = vxor.u32 2147483648, %v4741_v4  ;;  %vm4865_vm6 = vcmp.lt.s32.totalorder %v4864_v37, 0  ;;  %v4866_v21 = vsub.s32 0, %v4864_v37 }
 0x49a   : > { %v4964_v7 = vsel %vm4950_vm0, %v4961_v32, %v4963_v38  ;;  %v4990_v19 = vand.u32 65535, %v4960_v60  ;;  %v9590_v12 = vmul.u32 %v4991_v55, %v4966_v61  ;;  %v4856_v2 = vadd.s32 %v9517_v27, %v9523_v14 }
 0x49b   : > { %v4755_v62 = vxor.u32 2147483648, %v4749_v52  ;;  %v4759_v29 = vsel %vm4757_vm5, %v4758_v26, %v4749_v52  ;;  %v4867_v1 = vsel %vm4865_vm6, %v4866_v21, %v4864_v37  ;;  %v4968_v23 = vand.u32 65535, %v4964_v7 }
 0x49c   : > { %v4969_v41 = vshrl.u32 %v4964_v7, 16  ;;  %v4868_v10 = vclz %v4867_v1  ;;  %v4992_v50 = vmul.u32 %v4990_v19, %v4966_v61  ;;  %v4994_v31 = vmul.u32 %v4990_v19, %v4967_v25 }
 0x49d   : > { %v4756_v17 = vsel %vm4754_vm4, %v4741_v4, %v4755_v62  ;;  %v4970_v48 = vmul.u32 %v4968_v23, %v4966_v61  ;;  %v4972_v15 = vmul.u32 %v4968_v23, %v4967_v25  ;;  %v4996_v3 = vshll.u32 %v9590_v12, 16 }
 0x49e   : > { %v4760_v5 = vsel %vm4753_vm3, %v4756_v17, %v4759_v29  ;;  %v4971_v54 = vmul.u32 %v4969_v41, %v4966_v61  ;;  %v5585_v57 = vadd.s32 4294967294, %v4868_v10  ;;  %v4973_v18 = vmul.u32 %v4969_v41, %v4967_v25 }
 0x49f   : > { %v4761_v13 = vsel %vm4750_vm7, nan, %v4760_v5  ;;  %v4976_v46 = vshll.u32 %v4972_v15, 16  ;;  %vm4764_vm9 = vcmp.lt.s32.totalorder %v10062_v45, 0  ;;  %v4933_v27 = vshrl.u32 %v9991_v11, %v9519_v20 }
 0x4a0   : > { %v4974_v36 = vshll.u32 %v4971_v54, 16  ;;  %5409 = vst [vmem:[%s6492_s26 + $0xd8] sm:$0xff] %v4761_v13  ;;  %vm5586_vm8 = vcmp.lt.s32.totalorder %v5585_v57, 0  ;;  %v4995_v51 = vmul.u32 %v4991_v55, %v4967_v25  ;;  %v4975_v47 = vshrl.u32 %v4971_v54, 16  ;;  %v10068_v25 = vld [vmem:[#allocation22_spill] sm:$0xff] }
 0x4a1   : > { %v4871_v0 = vsel %vm5586_vm8, 0, %v5585_v57  ;;  %v4886_v60 = vsub.s32 4, %v9555_v28  ;;  %v4998_v52 = vshll.u32 %v4994_v31, 16  ;;  %vm5000_vm12 = vc.u32 %v4992_v50, %v4996_v3 }
 0x4a2   : > { %vm4978_vm10 = vc.u32 %v4970_v48, %v4974_v36  ;;  %v4980_v53 = vadd.s32 %v4974_v36, %v4970_v48  ;;  %v4872_v16 = vsub.s32 32, %v4871_v0  ;;  %v4873_v49 = vshll.u32 %v4864_v37, %v4871_v0 }
 0x4a3   : > { %v4876_v35 = vsub.s32 4294967266, %v4871_v0  ;;  %v4979_v42 = vsel %vm4978_vm10, 1, %v5768_v33  ;;  %v5001_v61 = vsel %vm5000_vm12, 1, %v5768_v33  ;;  %v4954_v20 = vsel %vm4952_vm2, %v9551_v58, 2102212464 }
 0x4a4   : > { %v4981_v14 = vadd.s32 %v4979_v42, %v4973_v18  ;;  %v4874_v4 = vshrl.u32 %v4856_v2, %v4872_v16  ;;  %vm4982_vm11 = vc.u32 %v4980_v53, %v4976_v46  ;;  %v5002_v21 = vadd.s32 %v4996_v3, %v4992_v50 }
 0x4a5   : > { %v4877_v40 = vadd.s32 127, %v4876_v35  ;;  %v4983_v32 = vsel %vm4982_vm11, 1, %v5768_v33  ;;  %v5003_v38 = vadd.s32 %v5001_v61, %v4995_v51  ;;  %v5075_v62 = vand.u32 2139095040, %v10068_v25 }
 0x4a6   : > { %v4875_v37 = vor.u32 %v4874_v4, %v4873_v49  ;;  %v4985_v24 = vadd.s32 %v4983_v32, %v4981_v14  ;;  %v4977_v55 = vshrl.u32 %v4972_v15, 16  ;;  %v4887_v23 = vsel %vm4764_vm9, %v4886_v60, %v9555_v28  ;;  %v10071_v32 = vld [vmem:[#allocation8_spill] sm:$0xff] }
 0x4a7   : > { %v4878_v26 = vshll.u32 %v4877_v40, 23  ;;  %v4997_v41 = vshrl.u32 %v9590_v12, 16  ;;  %vm5004_vm13 = vc.u32 %v5002_v21, %v4998_v52  ;;  %v5076_v17 = vshrl.u32 %v5075_v62, 23 }
 0x4a8   : > { %v4882_v7 = vcvt.s32.f32 %v4875_v37  ;;  %v4986_v1 = vadd.s32 %v4985_v24, %v4975_v47  ;;  %v4953_v58 = vsel %vm4949_vm15, %v4933_v27, %v9540_v43  ;;  %v4955_v19 = vsel %vm4951_vm1, %v9545_v63, %v4954_v20 }
 0x4a9   : > { %v4879_v29 = vor.u32 4788187, %v4878_v26  ;;  %v5005_v5 = vsel %vm5004_vm13, 1, %v5768_v33  ;;  %vm9622_vm14 = vcmp.le.f32.partialorder %v4762_v30, 0.7853982  ;;  %v4999_v28 = vshrl.u32 %v4994_v31, 16 }
 0x4aa   : > { %v5007_v12 = vadd.s32 %v5005_v5, %v5003_v38  ;;  %v5590_v54 = vadd.s32 4294967169, %v5076_v17  ;;  %v4889_v13 = vsel %vm9622_vm14, 0, %v4887_v23  ;;  %v9628_v43 = vadd.s32 %v4986_v1, %v4977_v55 }
 0x4ab   : > { %v4880_v10 = vand.u32 2147483647, %v4879_v29  ;;  %v9630_v57 = vadd.s32 %v5002_v21, %v4998_v52  ;;  %v4956_v63 = vsel %vm4950_vm0, %v4953_v58, %v4955_v19  ;;  %v4906_v36 = vadd.s32 3, %v4889_v13 }
 0x4ac   : > { %v5008_v2 = vadd.s32 %v5007_v12, %v4997_v41  ;;  %v5082_v18 = vadd.s32 1, %v5590_v54  ;;  %v5072_v50 = vand.u32 2147483647, %v10068_v25  ;;  %v5010_v0 = vmul.u32 %v9553_v59, %v4956_v63 }
 0x4ad   : > { %v4883_v15 = vmul.f32 %v4882_v7, %v4880_v10  ;;  %vm5012_vm1 = vc.u32 %v9628_v43, %v9630_v57  ;;  %v9643_v35 = vand.u32 3, %v4906_v36  ;;  %v5227_v52 = vand.u32 2147483647, %v10071_v32 }
 0x4ae   : > { %v5009_v46 = vadd.s32 %v5008_v2, %v4999_v28  ;;  %vm5083_vm15 = vcmp.gt.s32.totalorder %v5082_v18, 0  ;;  %v5079_v59 = vand.u32 8388607, %v5072_v50  ;;  %v5230_v10 = vand.u32 2139095040, %v10071_v32 }
 0x4af   : > { %v4884_v30 = vxor.u32 2147483648, %v4883_v15  ;;  %v5084_v53 = vsel %vm5083_vm15, %v5082_v18, 0  ;;  %vm4912_vm0 = vcmp.eq.s32.totalorder %v9643_v35, 2  ;;  %vm4909_vm2 = vcmp.eq.s32.totalorder %v9643_v35, 0 }
 0x4b0   : > { %v5013_v3 = vadd.s32 1, %v5009_v46  ;;  %v5086_v16 = vand.u32 31, %v5084_v53  ;;  %v9649_v40 = vshrl.u32 %v5084_v53, 5  ;;  %v5080_v23 = vor.u32 8388608, %v5079_v59 }
 0x4b1   : > { %v4885_v31 = vsel %vm4764_vm9, %v4884_v30, %v4883_v15  ;;  %vm4908_vm3 = vcmp.lt.s32.totalorder %v9643_v35, 2  ;;  %vm4905_vm4 = vweird.f32 %v10062_v45  ;;  %vm4919_vm11 = vcmp.lt.s32.totalorder %v10065_v56, 0 }
 0x4b2   : > { %v4888_v39 = vsel %vm9622_vm14, %v10062_v45, %v4885_v31  ;;  %v5014_v42 = vsel %vm5012_vm1, %v5013_v3, %v5009_v46  ;;  %v9645_v27 = vsub.s32 32, %v5086_v16  ;;  %v5089_v47 = vshll.u32 %v9991_v11, %v5086_v16 }
 0x4b3   : > { %v4890_v49 = vmul.f32 %v4888_v39, %v4888_v39  ;;  %v5015_v4 = vadd.s32 %v5014_v42, %v5010_v0  ;;  %v5092_v60 = vshll.u32 %v9992_v34, %v5086_v16  ;;  %v5095_v21 = vshll.u32 %v9993_v22, %v5086_v16 }
 0x4b4   : > { %v5090_v61 = vshrl.u32 %v9992_v34, %v9645_v27  ;;  %v5093_v20 = vshrl.u32 %v9993_v22, %v9645_v27  ;;  %v5096_v38 = vshrl.u32 %v9994_v9, %v9645_v27  ;;  %v5098_v62 = vshll.u32 %v9994_v9, %v5086_v16 }
 0x4b5   : > { %v4891_v14 = vmul.f32 -0.001358992, %v4890_v49  ;;  %v4898_v51 = vmul.f32 -0.00019511016, %v4890_v49  ;;  %v5016_v24 = vadd.s32 536870912, %v5015_v4  ;;  %v5099_v1 = vshrl.u32 %v9995_v44, %v9645_v27 }
 0x4b6   : > { %v5101_v41 = vshll.u32 %v9995_v44, %v5086_v16  ;;  %v5102_v17 = vshrl.u32 %v9996_v8, %v9645_v27  ;;  %v5091_v48 = vor.u32 %v5090_v61, %v5089_v47  ;;  %v9675_v28 = vor.u32 %v5093_v20, %v5092_v60 }
 0x4b7   : > { %v4892_v37 = vadd.f32 0.041655596, %v4891_v14  ;;  %v4899_v26 = vadd.f32 0.008332121, %v4898_v51  ;;  %v9663_v55 = vshrl.u32 %v5016_v24, 30  ;;  %v5097_v12 = vor.u32 %v5096_v38, %v5095_v21 }
 0x4b8   : > { %v5100_v54 = vor.u32 %v5099_v1, %v5098_v62  ;;  %v5103_v15 = vor.u32 %v5102_v17, %v5101_v41  ;;  %vm5104_vm5 = vcmp.lt.s32.totalorder %v9649_v40, 1  ;;  %vm5105_vm6 = vcmp.lt.s32.totalorder %v9649_v40, 2 }
 0x4b9   : > { %v4893_v29 = vmul.f32 %v4892_v37, %v4890_v49  ;;  %v4900_v7 = vmul.f32 %v4899_v26, %v4890_v49  ;;  %v5018_v5 = vshll.u32 %v9663_v55, 30  ;;  %vm5106_vm7 = vcmp.lt.s32.totalorder %v9649_v40, 3 }
 0x4ba   : > { %vm5107_vm8 = vcmp.lt.s32.totalorder %v9649_v40, 4  ;;  %v9681_v18 = vshll.u32 %v5080_v23, 8  ;;  %v5112_v31 = vsel %vm5104_vm5, %v5091_v48, %v9675_v28  ;;  %v5116_v53 = vsel %vm5104_vm5, %v9675_v28, %v5097_v12 }
 0x4bb   : > { %v4894_v58 = vadd.f32 -0.4999988, %v4893_v29  ;;  %v4901_v19 = vadd.f32 -0.16666654, %v4900_v7  ;;  %v5019_v2 = vsub.s32 %v5015_v4, %v5018_v5  ;;  %v5113_v0 = vsel %vm5107_vm8, %v5100_v54, 920167782 }
 0x4bc   : > { %v5117_v3 = vsel %vm5107_vm8, %v5103_v15, 1326507024  ;;  %v5231_v14 = vshrl.u32 %v5230_v10, 23  ;;  %v5114_v4 = vsel %vm5106_vm7, %v5097_v12, %v5113_v0  ;;  %v5121_v47 = vand.u32 65535, %v9681_v18 }
 0x4bd   : > { %v4895_v13 = vmul.f32 %v4894_v58, %v4890_v49  ;;  %v4902_v63 = vmul.f32 %v4901_v19, %v4890_v49  ;;  %vm5020_vm10 = vcmp.lt.s32.totalorder %v5019_v2, 0  ;;  %v5021_v46 = vsub.s32 0, %v5019_v2 }
 0x4be   : > { %v5118_v59 = vsel %vm5106_vm7, %v5100_v54, %v5117_v3  ;;  %v5115_v26 = vsel %vm5105_vm6, %v5112_v31, %v5114_v4  ;;  %v5122_v61 = vshrl.u32 %v9681_v18, 16  ;;  %v5011_v62 = vadd.s32 %v9630_v57, %v9628_v43 }
 0x4bf   : > { %v4896_v30 = vadd.f32 1.0, %v4895_v13  ;;  %v4903_v36 = vadd.f32 1.0, %v4902_v63  ;;  %v5022_v42 = vsel %vm5020_vm10, %v5021_v46, %v5019_v2  ;;  %v5088_v29 = vshrl.u32 %v9991_v11, %v9645_v27 }
 0x4c0   : > { %v5023_v51 = vclz %v5022_v42  ;;  %v5593_v7 = vadd.s32 4294967169, %v5231_v14  ;;  %v5145_v23 = vand.u32 65535, %v5115_v26  ;;  %v5146_v41 = vshrl.u32 %v5115_v26, 16 }
 0x4c1   : > { %v4904_v16 = vmul.f32 %v4903_v36, %v4888_v39  ;;  %v4913_v49 = vxor.u32 2147483648, %v4896_v30  ;;  %v5119_v39 = vsel %vm5105_vm6, %v5116_v53, %v5118_v59  ;;  %v5041_v27 = vsub.s32 4, %v9663_v55 }
 0x4c2   : > { %v5588_v24 = vadd.s32 4294967294, %v5023_v51  ;;  %v5123_v20 = vand.u32 65535, %v5119_v39  ;;  %v5124_v21 = vshrl.u32 %v5119_v39, 16  ;;  %v5108_v35 = vsel %vm5104_vm5, %v5088_v29, %v5091_v48 }
 0x4c3   : > { %v4910_v60 = vxor.u32 2147483648, %v4904_v16  ;;  %v4914_v37 = vsel %vm4912_vm0, %v4913_v49, %v4904_v16  ;;  %v5109_v15 = vsel %vm5107_vm8, %v5097_v12, 2102212464  ;;  %v5237_v45 = vadd.s32 1, %v5593_v7 }
 0x4c4   : > { %vm5589_vm9 = vcmp.lt.s32.totalorder %v5588_v24, 0  ;;  %v5125_v58 = vmul.u32 %v5123_v20, %v5121_v47  ;;  %v5126_v19 = vmul.u32 %v5124_v21, %v5121_v47  ;;  %v5127_v54 = vmul.u32 %v5123_v20, %v5122_v61 }
 0x4c5   : > { %v4911_v38 = vsel %vm4909_vm2, %v4896_v30, %v4910_v60  ;;  %v5026_v10 = vsel %vm5589_vm9, 0, %v5588_v24  ;;  %v5128_v30 = vmul.u32 %v5124_v21, %v5122_v61  ;;  %v5147_v0 = vmul.u32 %v5145_v23, %v5121_v47 }
 0x4c6   : > { %v4915_v1 = vsel %vm4908_vm3, %v4911_v38, %v4914_v37  ;;  %v5027_v43 = vsub.s32 32, %v5026_v10  ;;  %v5028_v57 = vshll.u32 %v5019_v2, %v5026_v10  ;;  %v5031_v5 = vsub.s32 4294967266, %v5026_v10 }
 0x4c7   : > { %v4916_v17 = vsel %vm4905_vm4, nan, %v4915_v1  ;;  %v5129_v36 = vshll.u32 %v5126_v19, 16  ;;  %v5130_v46 = vshrl.u32 %v5126_v19, 16  ;;  %v5131_v31 = vshll.u32 %v5127_v54, 16 }
 0x4c8   : > { %5410 = vst [vmem:[%s6492_s26 + $0xe0] sm:$0xff] %v4916_v17  ;;  %v5029_v13 = vshrl.u32 %v5011_v62, %v5027_v43  ;;  %v5032_v63 = vadd.s32 127, %v5031_v5  ;;  %v5148_v2 = vmul.u32 %v5146_v41, %v5121_v47  ;;  %vm9724_vm12 = vcmp.le.f32.partialorder %v4917_v6, 0.7853982 }
 0x4c9   : > { %vm5133_vm13 = vc.u32 %v5125_v58, %v5129_v36  ;;  %v5135_v16 = vadd.s32 %v5129_v36, %v5125_v58  ;;  %v5149_v49 = vmul.u32 %v5145_v23, %v5122_v61  ;;  %v5150_v42 = vmul.u32 %v5146_v41, %v5122_v61 }
 0x4ca   : > { %v5030_v3 = vor.u32 %v5029_v13, %v5028_v57  ;;  %v5033_v48 = vshll.u32 %v5032_v63, 23  ;;  %v5134_v12 = vsel %vm5133_vm13, 1, %v5768_v33  ;;  %v5151_v14 = vshll.u32 %v5148_v2, 16 }
 0x4cb   : > { %v5136_v59 = vadd.s32 %v5134_v12, %v5128_v30  ;;  %vm5137_vm14 = vc.u32 %v5135_v16, %v5131_v31  ;;  %v5110_v6 = vsel %vm5106_vm7, %v9675_v28, %v5109_v15  ;;  %v5132_v47 = vshrl.u32 %v5127_v54, 16 }
 0x4cc   : > { %v5034_v51 = vor.u32 4788187, %v5033_v48  ;;  %v5037_v4 = vcvt.s32.f32 %v5030_v3  ;;  %v5138_v60 = vsel %vm5137_vm14, 1, %v5768_v33  ;;  %v5153_v37 = vshll.u32 %v5149_v49, 16 }
 0x4cd   : > { %v5140_v39 = vadd.s32 %v5138_v60, %v5136_v59  ;;  %vm5155_vm15 = vc.u32 %v5147_v0, %v5151_v14  ;;  %v5157_v24 = vadd.s32 %v5151_v14, %v5147_v0  ;;  %v5042_v61 = vsel %vm4919_vm11, %v5041_v27, %v9663_v55 }
 0x4ce   : > { %v5035_v26 = vand.u32 2147483647, %v5034_v51  ;;  %v5152_v20 = vshrl.u32 %v5148_v2, 16  ;;  %v5156_v21 = vsel %vm5155_vm15, 1, %v5768_v33  ;;  %vm5238_vm1 = vcmp.gt.s32.totalorder %v5237_v45, 0 }
 0x4cf   : > { %v5141_v62 = vadd.s32 %v5140_v39, %v5130_v46  ;;  %v5158_v29 = vadd.s32 %v5156_v21, %v5150_v42  ;;  %vm5159_vm0 = vc.u32 %v5157_v24, %v5153_v37  ;;  %v5111_v28 = vsel %vm5105_vm6, %v5108_v35, %v5110_v6 }
 0x4d0   : > { %v5038_v38 = vmul.f32 %v5037_v4, %v5035_v26  ;;  %v5160_v7 = vsel %vm5159_vm0, 1, %v5768_v33  ;;  %v9740_v1 = vadd.s32 %v5157_v24, %v5153_v37  ;;  %v5239_v23 = vsel %vm5238_vm1, %v5237_v45, 0 }
 0x4d1   : > { %v9742_v17 = vadd.s32 %v5141_v62, %v5132_v47  ;;  %v5154_v55 = vshrl.u32 %v5149_v49, 16  ;;  %v5162_v10 = vadd.s32 %v5160_v7, %v5158_v29  ;;  %v5044_v58 = vsel %vm9724_vm12, 0, %v5042_v61 }
 0x4d2   : > { %v5039_v41 = vxor.u32 2147483648, %v5038_v38  ;;  %v5234_v19 = vand.u32 8388607, %v5227_v52  ;;  %v5241_v43 = vand.u32 31, %v5239_v23  ;;  %v5165_v5 = vmul.u32 %v9681_v18, %v5111_v28 }
 0x4d3   : > { %v5163_v57 = vadd.s32 %v5162_v10, %v5152_v20  ;;  %v9751_v54 = vshrl.u32 %v5239_v23, 5  ;;  %vm5167_vm2 = vc.u32 %v9742_v17, %v9740_v1  ;;  %v5061_v48 = vadd.s32 3, %v5044_v58 }
 0x4d4   : > { %v5040_v40 = vsel %vm4919_vm11, %v5039_v41, %v5038_v38  ;;  %v9758_v35 = vsub.s32 32, %v5241_v43  ;;  %v5244_v15 = vshll.u32 %v9991_v11, %v5241_v43  ;;  %v5247_v63 = vshll.u32 %v9992_v34, %v5241_v43 }
 0x4d5   : > { %v5043_v27 = vsel %vm9724_vm12, %v10065_v56, %v5040_v40  ;;  %v5164_v13 = vadd.s32 %v5163_v57, %v5154_v55  ;;  %v5250_v30 = vshll.u32 %v9993_v22, %v5241_v43  ;;  %v5253_v31 = vshll.u32 %v9994_v9, %v5241_v43 }
 0x4d6   : > { %v5045_v45 = vmul.f32 %v5043_v27, %v5043_v27  ;;  %v5245_v18 = vshrl.u32 %v9992_v34, %v9758_v35  ;;  %v5248_v36 = vshrl.u32 %v9993_v22, %v9758_v35  ;;  %v5251_v46 = vshrl.u32 %v9994_v9, %v9758_v35 }
 0x4d7   : > { %v5168_v53 = vadd.s32 1, %v5164_v13  ;;  %v5254_v3 = vshrl.u32 %v9995_v44, %v9758_v35  ;;  %v5235_v16 = vor.u32 8388608, %v5234_v19  ;;  %v5256_v42 = vshll.u32 %v9995_v44, %v5241_v43 }
 0x4d8   : > { %v5046_v0 = vmul.f32 -0.001358992, %v5045_v45  ;;  %v5053_v2 = vmul.f32 -0.00019511016, %v5045_v45  ;;  %v9772_v12 = vor.u32 %v5245_v18, %v5244_v15  ;;  %v9778_v9 = vor.u32 %v5248_v36, %v5247_v63 }
 0x4d9   : > { %v5169_v22 = vsel %vm5167_vm2, %v5168_v53, %v5164_v13  ;;  %v5255_v51 = vor.u32 %v5254_v3, %v5253_v31  ;;  %v5257_v4 = vshrl.u32 %v9996_v8, %v9758_v35  ;;  %v9782_v47 = vor.u32 %v5251_v46, %v5250_v30 }
 0x4da   : > { %v5047_v49 = vadd.f32 0.041655596, %v5046_v0  ;;  %v5054_v34 = vadd.f32 0.008332121, %v5053_v2  ;;  %v5170_v14 = vadd.s32 %v5169_v22, %v5165_v5  ;;  %vm5259_vm3 = vcmp.lt.s32.totalorder %v9751_v54, 1 }
 0x4db   : > { %v5062_v60 = vand.u32 3, %v5061_v48  ;;  %vm5261_vm4 = vcmp.lt.s32.totalorder %v9751_v54, 3  ;;  %vm5262_vm5 = vcmp.lt.s32.totalorder %v9751_v54, 4  ;;  %v5258_v39 = vor.u32 %v5257_v4, %v5256_v42 }
 0x4dc   : > { %v5048_v59 = vmul.f32 %v5047_v49, %v5045_v45  ;;  %v5055_v6 = vmul.f32 %v5054_v34, %v5045_v45  ;;  %v5171_v37 = vadd.s32 536870912, %v5170_v14  ;;  %vm5260_vm6 = vcmp.lt.s32.totalorder %v9751_v54, 2 }
 0x4dd   : > { %v5267_v8 = vsel %vm5259_vm3, %v9772_v12, %v9778_v9  ;;  %v5268_v61 = vsel %vm5262_vm5, %v5255_v51, 920167782  ;;  %v9796_v20 = vshll.u32 %v5235_v16, 8  ;;  %vm5060_vm7 = vweird.f32 %v10065_v56 }
 0x4de   : > { %v5049_v44 = vadd.f32 -0.4999988, %v5048_v59  ;;  %v5056_v26 = vadd.f32 -0.16666654, %v5055_v6  ;;  %v9788_v24 = vshrl.u32 %v5171_v37, 30  ;;  %v5269_v62 = vsel %vm5261_vm4, %v9782_v47, %v5268_v61 }
 0x4df   : > { %vm5064_vm8 = vcmp.eq.s32.totalorder %v5062_v60, 0  ;;  %v5270_v28 = vsel %vm5260_vm6, %v5267_v8, %v5269_v62  ;;  %v5271_v7 = vsel %vm5259_vm3, %v9778_v9, %v9782_v47  ;;  %vm5067_vm10 = vcmp.eq.s32.totalorder %v5062_v60, 2 }
 0x4e0   : > { %v5050_v21 = vmul.f32 %v5049_v44, %v5045_v45  ;;  %v5057_v38 = vmul.f32 %v5056_v26, %v5045_v45  ;;  %v5173_v29 = vshll.u32 %v9788_v24, 30  ;;  %v5272_v55 = vsel %vm5262_vm5, %v5258_v39, 1326507024 }
 0x4e1   : > { %v5273_v58 = vsel %vm5261_vm4, %v5255_v51, %v5272_v55  ;;  %v5276_v19 = vand.u32 65535, %v9796_v20  ;;  %v5277_v43 = vshrl.u32 %v9796_v20, 16  ;;  %v5301_v15 = vshrl.u32 %v5270_v28, 16 }
 0x4e2   : > { %v5051_v23 = vadd.f32 1.0, %v5050_v21  ;;  %v5058_v41 = vadd.f32 1.0, %v5057_v38  ;;  %v5174_v10 = vsub.s32 %v5170_v14, %v5173_v29  ;;  %v5274_v5 = vsel %vm5260_vm6, %v5271_v7, %v5273_v58 }
 0x4e3   : > { %v5278_v13 = vand.u32 65535, %v5274_v5  ;;  %v5279_v63 = vshrl.u32 %v5274_v5, 16  ;;  %vm5063_vm11 = vcmp.lt.s32.totalorder %v5062_v60, 2  ;;  %v5300_v36 = vand.u32 65535, %v5270_v28 }
 0x4e4   : > { %v5059_v40 = vmul.f32 %v5058_v41, %v5043_v27  ;;  %v5068_v57 = vxor.u32 2147483648, %v5051_v23  ;;  %vm5175_vm9 = vcmp.lt.s32.totalorder %v5174_v10, 0  ;;  %v5176_v45 = vsub.s32 0, %v5174_v10 }
 0x4e5   : > { %v5280_v31 = vmul.u32 %v5278_v13, %v5276_v19  ;;  %v5281_v0 = vmul.u32 %v5279_v63, %v5276_v19  ;;  %v5282_v2 = vmul.u32 %v5278_v13, %v5277_v43  ;;  %v5303_v3 = vmul.u32 %v5301_v15, %v5276_v19 }
 0x4e6   : > { %v5065_v30 = vxor.u32 2147483648, %v5059_v40  ;;  %v5069_v18 = vsel %vm5067_vm10, %v5068_v57, %v5059_v40  ;;  %v5177_v46 = vsel %vm5175_vm9, %v5176_v45, %v5174_v10  ;;  %v5283_v16 = vmul.u32 %v5279_v63, %v5277_v43 }
 0x4e7   : > { %v5178_v53 = vclz %v5177_v46  ;;  %v5284_v49 = vshll.u32 %v5281_v0, 16  ;;  %v5286_v34 = vshll.u32 %v5282_v2, 16  ;;  %v5166_v14 = vadd.s32 %v9740_v1, %v9742_v17 }
 0x4e8   : > { %v5066_v27 = vsel %vm5064_vm8, %v5051_v23, %v5065_v30  ;;  %v5302_v4 = vmul.u32 %v5300_v36, %v5276_v19  ;;  %v5285_v59 = vshrl.u32 %v5281_v0, 16  ;;  %v5304_v60 = vmul.u32 %v5300_v36, %v5277_v43 }
 0x4e9   : > { %v5070_v48 = vsel %vm5063_vm11, %v5066_v27, %v5069_v18  ;;  %v5591_v42 = vadd.s32 4294967294, %v5178_v53  ;;  %vm5288_vm12 = vc.u32 %v5280_v31, %v5284_v49  ;;  %v5290_v51 = vadd.s32 %v5284_v49, %v5280_v31 }
 0x4ea   : > { %v5071_v22 = vsel %vm5060_vm7, nan, %v5070_v48  ;;  %v5289_v6 = vsel %vm5288_vm12, 1, %v5768_v33  ;;  %v5306_v26 = vshll.u32 %v5303_v3, 16  ;;  %v5243_v1 = vshrl.u32 %v9991_v11, %v9758_v35 }
 0x4eb   : > { %5411 = vst [vmem:[%s6492_s26 + $0xe8] sm:$0xff] %v5071_v22  ;;  %vm5592_vm13 = vcmp.lt.s32.totalorder %v5591_v42, 0  ;;  %v5291_v44 = vadd.s32 %v5289_v6, %v5283_v16  ;;  %vm5292_vm14 = vc.u32 %v5290_v51, %v5286_v34  ;;  %v5305_v21 = vmul.u32 %v5301_v15, %v5277_v43 }
 0x4ec   : > { %v5181_v37 = vsel %vm5592_vm13, 0, %v5591_v42  ;;  %v5293_v61 = vsel %vm5292_vm14, 1, %v5768_v33  ;;  %v5308_v29 = vshll.u32 %v5304_v60, 16  ;;  %v5264_v28 = vsel %vm5262_vm5, %v9782_v47, 2102212464 }
 0x4ed   : > { %v5182_v39 = vsub.s32 32, %v5181_v37  ;;  %v5183_v56 = vshll.u32 %v5174_v10, %v5181_v37  ;;  %v5186_v8 = vsub.s32 4294967266, %v5181_v37  ;;  %v5295_v17 = vadd.s32 %v5293_v61, %v5291_v44 }
 0x4ee   : > { %v5287_v7 = vshrl.u32 %v5282_v2, 16  ;;  %vm5310_vm15 = vc.u32 %v5302_v4, %v5306_v26  ;;  %v5312_v23 = vadd.s32 %v5306_v26, %v5302_v4  ;;  %v5263_v11 = vsel %vm5259_vm3, %v5243_v1, %v9772_v12 }
 0x4ef   : > { %v5184_v38 = vshrl.u32 %v5166_v14, %v5182_v39  ;;  %v5187_v62 = vadd.s32 127, %v5186_v8  ;;  %v5296_v10 = vadd.s32 %v5295_v17, %v5285_v59  ;;  %v5311_v58 = vsel %vm5310_vm15, 1, %v5768_v33 }
 0x4f0   : > { %v5307_v35 = vshrl.u32 %v5303_v3, 16  ;;  %v5313_v19 = vadd.s32 %v5311_v58, %v5305_v21  ;;  %vm5314_vm1 = vc.u32 %v5312_v23, %v5308_v29  ;;  %v5265_v47 = vsel %vm5261_vm4, %v9778_v9, %v5264_v28 }
 0x4f1   : > { %v5185_v41 = vor.u32 %v5184_v38, %v5183_v56  ;;  %v5188_v55 = vshll.u32 %v5187_v62, 23  ;;  %v5315_v57 = vsel %vm5314_vm1, 1, %v5768_v33  ;;  %v5309_v5 = vshrl.u32 %v5304_v60, 16 }
 0x4f2   : > { %v5317_v15 = vadd.s32 %v5315_v57, %v5313_v19  ;;  %v5297_v13 = vadd.s32 %v5296_v10, %v5287_v7  ;;  %v5316_v63 = vadd.s32 %v5312_v23, %v5308_v29  ;;  %v5266_v30 = vsel %vm5260_vm6, %v5263_v11, %v5265_v47 }
 0x4f3   : > { %v5189_v43 = vor.u32 4788187, %v5188_v55  ;;  %v5192_v40 = vcvt.s32.f32 %v5185_v41  ;;  %vm5074_vm0 = vcmp.lt.s32.totalorder %v10068_v25, 0  ;;  %v5196_v36 = vsub.s32 4, %v9788_v24 }
 0x4f4   : > { %v5318_v12 = vadd.s32 %v5317_v15, %v5307_v35  ;;  %vm9845_vm2 = vcmp.le.f32.partialorder %v5072_v50, 0.7853982  ;;  %v5320_v31 = vmul.u32 %v9796_v20, %v5266_v30  ;;  %vm5322_vm3 = vc.u32 %v5297_v13, %v5316_v63 }
 0x4f5   : > { %v5190_v45 = vand.u32 2147483647, %v5189_v43  ;;  %v5197_v2 = vsel %vm5074_vm0, %v5196_v36, %v9788_v24  ;;  %vm5215_vm8 = vweird.f32 %v10068_v25  ;;  %v5321_v28 = vadd.s32 %v5316_v63, %v5297_v13 }
 0x4f6   : > { %v5319_v46 = vadd.s32 %v5318_v12, %v5309_v5  ;;  %v5199_v50 = vsel %vm9845_vm2, 0, %v5197_v2  ;;  %vm5229_vm9 = vcmp.lt.s32.totalorder %v10071_v32, 0  ;;  %vm5228_vm11 = vcmp.le.f32.partialorder %v5227_v52, 0.7853982 }
 0x4f7   : > { %v5193_v18 = vmul.f32 %v5192_v40, %v5190_v45  ;;  %v5216_v14 = vadd.s32 3, %v5199_v50  ;;  %vm5370_vm15 = vweird.f32 %v10071_v32 }
 0x4f8   : > { %v5323_v0 = vadd.s32 1, %v5319_v46 }
 0x4f9   : > { %v5194_v33 = vxor.u32 2147483648, %v5193_v18  ;;  %v5217_v37 = vand.u32 3, %v5216_v14 }
 0x4fa   : > { %v5324_v53 = vsel %vm5322_vm3, %v5323_v0, %v5319_v46 }
 0x4fb   : > { %v5195_v54 = vsel %vm5074_vm0, %v5194_v33, %v5193_v18  ;;  %v5325_v48 = vadd.s32 %v5324_v53, %v5320_v31  ;;  %vm5222_vm5 = vcmp.eq.s32.totalorder %v5217_v37, 2  ;;  %vm5219_vm6 = vcmp.eq.s32.totalorder %v5217_v37, 0 }
 0x4fc   : > { %v5198_v27 = vsel %vm9845_vm2, %v10068_v25, %v5195_v54  ;;  %vm5218_vm7 = vcmp.lt.s32.totalorder %v5217_v37, 2 }
 0x4fd   : > { %v5200_v3 = vmul.f32 %v5198_v27, %v5198_v27  ;;  %v5326_v34 = vadd.s32 536870912, %v5325_v48 }
 0x4ff   : > { %v5201_v16 = vmul.f32 -0.001358992, %v5200_v3  ;;  %v5208_v49 = vmul.f32 -0.00019511016, %v5200_v3  ;;  %v5327_v42 = vshrl.u32 %v5326_v34, 30 }
 0x501   : > { %v5202_v22 = vadd.f32 0.041655596, %v5201_v16  ;;  %v5209_v20 = vadd.f32 0.008332121, %v5208_v49  ;;  %v5328_v24 = vshll.u32 %v5327_v42, 30  ;;  %v5351_v25 = vsub.s32 4, %v5327_v42 }
 0x503   : > { %v5203_v51 = vmul.f32 %v5202_v22, %v5200_v3  ;;  %v5210_v4 = vmul.f32 %v5209_v20, %v5200_v3  ;;  %v5329_v60 = vsub.s32 %v5325_v48, %v5328_v24  ;;  %v5352_v63 = vsel %vm5229_vm9, %v5351_v25, %v5327_v42 }
 0x504   : > { %v5354_v18 = vsel %vm5228_vm11, 0, %v5352_v63 }
 0x505   : > { %v5204_v59 = vadd.f32 -0.4999988, %v5203_v51  ;;  %v5211_v6 = vadd.f32 -0.16666654, %v5210_v4  ;;  %vm5330_vm4 = vcmp.lt.s32.totalorder %v5329_v60, 0  ;;  %v5331_v39 = vsub.s32 0, %v5329_v60 }
 0x506   : > { %v5371_v31 = vadd.s32 3, %v5354_v18 }
 0x507   : > { %v5205_v44 = vmul.f32 %v5204_v59, %v5200_v3  ;;  %v5212_v26 = vmul.f32 %v5211_v6, %v5200_v3  ;;  %v5332_v61 = vsel %vm5330_vm4, %v5331_v39, %v5329_v60 }
 0x508   : > { %v5333_v1 = vclz %v5332_v61  ;;  %v5372_v53 = vand.u32 3, %v5371_v31 }
 0x509   : > { %v5206_v56 = vadd.f32 1.0, %v5205_v44  ;;  %v5213_v8 = vadd.f32 1.0, %v5212_v26 }
 0x50a   : > { %v5594_v38 = vadd.s32 4294967294, %v5333_v1  ;;  %vm5377_vm12 = vcmp.eq.s32.totalorder %v5372_v53, 2  ;;  %vm5374_vm13 = vcmp.eq.s32.totalorder %v5372_v53, 0  ;;  %vm5373_vm14 = vcmp.lt.s32.totalorder %v5372_v53, 2 }
 0x50b   : > { %v5214_v17 = vmul.f32 %v5213_v8, %v5198_v27  ;;  %v5223_v21 = vxor.u32 2147483648, %v5206_v56 }
 0x50c   : > { %vm5595_vm10 = vcmp.lt.s32.totalorder %v5594_v38, 0 }
 0x50d   : > { %v5220_v62 = vxor.u32 2147483648, %v5214_v17  ;;  %v5224_v29 = vsel %vm5222_vm5, %v5223_v21, %v5214_v17  ;;  %v5336_v23 = vsel %vm5595_vm10, 0, %v5594_v38 }
 0x50e   : > { %v5337_v55 = vsub.s32 32, %v5336_v23  ;;  %v5338_v10 = vshll.u32 %v5329_v60, %v5336_v23  ;;  %v5341_v58 = vsub.s32 4294967266, %v5336_v23 }
 0x50f   : > { %v5221_v7 = vsel %vm5219_vm6, %v5206_v56, %v5220_v62 }
 0x510   : > { %v5225_v41 = vsel %vm5218_vm7, %v5221_v7, %v5224_v29  ;;  %v5339_v35 = vshrl.u32 %v5321_v28, %v5337_v55  ;;  %v5342_v19 = vadd.s32 127, %v5341_v58 }
 0x511   : > { %v5226_v11 = vsel %vm5215_vm8, nan, %v5225_v41 }
 0x512   : > { %5412 = vst [vmem:[%s6492_s26 + $0xf0] sm:$0xff] %v5226_v11  ;;  %v5340_v43 = vor.u32 %v5339_v35, %v5338_v10  ;;  %v5343_v40 = vshll.u32 %v5342_v19, 23 }
 0x514   : > { %v5344_v47 = vor.u32 4788187, %v5343_v40  ;;  %v5347_v57 = vcvt.s32.f32 %v5340_v43 }
 0x516   : > { %v5345_v5 = vand.u32 2147483647, %v5344_v47 }
 0x518   : > { %v5348_v15 = vmul.f32 %v5347_v57, %v5345_v5 }
 0x51a   : > { %v5349_v45 = vxor.u32 2147483648, %v5348_v15 }
 0x51c   : > { %v5350_v13 = vsel %vm5229_vm9, %v5349_v45, %v5348_v15 }
 0x51d   : > { %v5353_v30 = vsel %vm5228_vm11, %v10071_v32, %v5350_v13 }
 0x51e   : > { %v5355_v12 = vmul.f32 %v5353_v30, %v5353_v30 }
 0x520   : > { %v5356_v36 = vmul.f32 -0.001358992, %v5355_v12  ;;  %v5363_v46 = vmul.f32 -0.00019511016, %v5355_v12 }
 0x522   : > { %v5357_v9 = vadd.f32 0.041655596, %v5356_v36  ;;  %v5364_v33 = vadd.f32 0.008332121, %v5363_v46 }
 0x524   : > { %v5358_v0 = vmul.f32 %v5357_v9, %v5355_v12  ;;  %v5365_v54 = vmul.f32 %v5364_v33, %v5355_v12 }
 0x526   : > { %v5359_v2 = vadd.f32 -0.4999988, %v5358_v0  ;;  %v5366_v27 = vadd.f32 -0.16666654, %v5365_v54 }
 0x528   : > { %v5360_v52 = vmul.f32 %v5359_v2, %v5355_v12  ;;  %v5367_v3 = vmul.f32 %v5366_v27, %v5355_v12 }
 0x52a   : > { %v5361_v48 = vadd.f32 1.0, %v5360_v52  ;;  %v5368_v50 = vadd.f32 1.0, %v5367_v3 }
 0x52c   : > { %v5369_v16 = vmul.f32 %v5368_v50, %v5353_v30  ;;  %v5378_v49 = vxor.u32 2147483648, %v5361_v48 }
 0x52e   : > { %v5375_v34 = vxor.u32 2147483648, %v5369_v16  ;;  %v5379_v22 = vsel %vm5377_vm12, %v5378_v49, %v5369_v16 }
 0x530   : > { %v5376_v20 = vsel %vm5374_vm13, %v5361_v48, %v5375_v34 }
 0x531   : > { %v5380_v42 = vsel %vm5373_vm14, %v5376_v20, %v5379_v22 }
 0x532   : > { %v5381_v14 = vsel %vm5370_vm15, nan, %v5380_v42 }
 0x533   : > { %5413 = vst [vmem:[%s6492_s26 + $0xf8] sm:$0xff] %v5381_v14 }
 0x534   : > { %5720 = shalt.err (!%p5717_p7)
}
 0x535   : > { %s5769_s20 = smov 256   ;;  %s5770_s21 = smov 16  }
 0x536   : > { %5608 = dma.vmem_to_hbm [thread:$0]  (%p5819_p5), %s5429_s2, 4096, %s5431_s3, %s5415_s4, %s5769_s20, %s5769_s20, %s5770_s21  }
 0x537 PF: > { %p5620_p8 = scmp.ge.s32.totalorder %s5759_s9, 2  ;;  %s5445_s22 = sand.u32 1, %s5747_s6  }
 0x538   : > { %s5446_s23 = scalar_lea.sflag [#allocation4], %s5445_s22 }
 0x539   : > { %p5615_p9 = pnand %p5620_p8, %p5823_p6 }
 0x53b   : > { %p5616_p10 = pneg %p5615_p9 }
 0x53d   : > { %5742 = dma.done.wait (%p5616_p10), %s5446_s23, 4096  }
 0x53e   : > { %5744 = vsyncadd (%p5616_p10), %s5446_s23, 4294963200  ;;  %p12_p11 = scmp.ge.s32.totalorder %s5806_s12, 4   ;;  %s10076_s6 = smov %s5751_s7 }
 0x53f   : > { %s10077_s7 = smov %s5755_s8  ;;  %s10078_s8 = smov %s5817_s15 }
 0x540   : > { %s10079_s9 = smov %s5806_s12  ;;  %14 = sbr.rel (!%p12_p11) target bundleno = 4 (0x4), region = 63 }
 0x545   :  { %5452 = vsyncpa [#allocation3], 1 }
 0x546   :  { %5454 = vsyncpa [#allocation3 + $0x1], 1 }
 0x547   :  { %5455 = vsyncpa [#allocation4], 1 }
 0x548   :  { %5457 = vsyncpa [#allocation4 + $0x1], 1 }

</bundles_post_ra>
